<compile_context>
chip_gen: v5e
topology: v5e:2x2
jax: 0.10.0
libtpu: 0.0.40
codegen_flags: <defaults>
</compile_context>

<pallas_src>
import jax
import jax.numpy as jnp
from jax.experimental import pallas as pl
from jax.experimental.pallas import tpu as pltpu

LANE = 128
SUBLANE = 8
SUBLANE_BF16 = 16   # bf16 packs 2 rows per sublane -> keep the W pitch a multiple of 16


def _ceil_to(x, m):
    return ((x + m - 1) // m) * m


def _pick_tile_h(H, W, Cw, tile_h=None, max_tile=32, patches_budget=8 << 20):
    """Largest divisor of H <= max_tile whose im2col 'patches' temporary fits the budget."""
    if tile_h is not None and H % tile_h == 0:
        return tile_h
    per_row = max(W * 9 * Cw * 2, 1)           # bf16 patches bytes per output row
    cap = max(1, min(max_tile, patches_budget // per_row))
    best = 1
    for t in range(1, min(H, cap) + 1):
        if H % t == 0:
            best = t
    return best


def _vmem_limit_bytes():
    cap = None
    try:
        cap = getattr(pltpu.get_tpu_info(), "vmem_capacity_bytes", None)
    except Exception:
        cap = None
    if not cap:
        cap = 128 * 1024 * 1024
    # ~100 MiB on 128 MiB parts (v5e/v6e), ~52 MiB on 64 MiB parts (v7x).
    return min(100 * 1024 * 1024, int(cap) * 13 // 16)


def bottleneck_kernel(x_ref, xres_ref,
                      w1_ref, b1_ref, w2_ref, b2_ref, w3_ref, b3_ref,
                      out_ref):
    # x_ref:    (1, H+2, Wp, Cp)     bf16, spatially zero-padded (+1 ring, W pitch
    #                                rounded to 16), channel-padded to a multiple of 128
    # xres_ref: (1, TH, W, Cout_p)   f32, unpadded identity tile (channel-padded)
    # out_ref:  (1, TH, W, Cout_p)   f32
    _, Hp, Wp, Cp = x_ref.shape
    _, TH, W, Cout_p = out_ref.shape
    Cw = w1_ref.shape[1]
    H = Hp - 2
    TH2 = TH + 2

    i = pl.program_id(1)
    h0 = pl.multiple_of(i * TH, TH)          # first padded-x row of this tile's halo slab

    # ---- cbr1: 1x1 conv (channel matmul, BN scale folded into w1) + bias + ReLU -------
    xa = x_ref[:, pl.ds(h0, TH2), :, :]                       # (1, TH2, Wp, Cp) bf16
    y1 = jnp.dot(xa.reshape(TH2 * Wp, Cp), w1_ref[...],
                 preferred_element_type=jnp.float32)
    y1 = jnp.maximum(y1 + b1_ref[...], 0.0).reshape(TH2, Wp, Cw)

    # conv2's zero padding: zero the spatial-pad ring (the folded BN bias / ReLU above is
    # non-zero there).  Rank-2 predicate broadcast over channels -> minimal VALU work.
    rows = h0 + jax.lax.broadcasted_iota(jnp.int32, (TH2, Wp, 1), 0)
    cols = jax.lax.broadcasted_iota(jnp.int32, (TH2, Wp, 1), 1)
    valid = (rows >= 1) & (rows <= H) & (cols >= 1) & (cols <= W)
    y1 = jnp.where(valid, y1, 0.0)

    # ---- cbr2: 3x3 conv via im2col -> single MXU matmul (K = 9*Cw) + bias + ReLU ------
    taps = []
    for dy in range(3):
        for dx in range(3):
            taps.append(y1[dy:dy + TH, dx:dx + W, :]
                        .reshape(TH * W, Cw).astype(jnp.bfloat16))
    patches = jnp.concatenate(taps, axis=-1)                  # (TH*W, 9*Cw), lane-dense
    y2 = jnp.dot(patches, w2_ref[...], preferred_element_type=jnp.float32)
    y2 = jnp.maximum(y2 + b2_ref[...], 0.0)

    # ---- cb1: 1x1 conv + bias (no ReLU), then residual add (f32, aligned block) -------
    y3 = jnp.dot(y2.astype(jnp.bfloat16), w3_ref[...],
                 preferred_element_type=jnp.float32) + b3_ref[...]
    out_ref[...] = y3.reshape(1, TH, W, Cout_p) + xres_ref[...]


def bottleneck_forward_nhwc(x_nhwc, kernel_params, tile_h=None):
    """NHWC Bottleneck forward. Keep the surrounding model NHWC and call this directly."""
    w1, b1, w2, b2, w3, b3 = kernel_params
    N, H, W, Cin = x_nhwc.shape
    Cp, Cw = w1.shape               # padded inplanes / padded width
    Cout_p = w3.shape[1]            # padded output channels
    assert Cp == Cout_p, "identity skip requires inplanes == planes * expansion"

    tile_h = _pick_tile_h(H, W, Cw, tile_h)
    n_h = H // tile_h

    # Conv-path input: spatial pad ring + W pitch rounded for bf16 packing + dense lanes,
    # stored in bf16 (halves DMA bytes and the VMEM block).  Residual path: unpadded f32.
    Wp = _ceil_to(W + 2, SUBLANE_BF16)
    x_pad = jnp.pad(x_nhwc, ((0, 0), (1, 1), (1, Wp - W - 1),
                             (0, Cp - Cin))).astype(jnp.bfloat16)
    x_res = jnp.pad(x_nhwc.astype(jnp.float32),
                    ((0, 0), (0, 0), (0, 0), (0, Cout_p - Cin)))

    flops = 2 * N * H * W * (Cp * Cw + 9 * Cw * Cw + Cw * Cout_p)
    bytes_accessed = int(
        x_pad.size * x_pad.dtype.itemsize + x_res.size * 4 + N * H * W * Cout_p * 4
        + sum(int(a.size) * a.dtype.itemsize for a in kernel_params))
    cost = pl.CostEstimate(flops=flops, transcendentals=0, bytes_accessed=bytes_accessed)

    def build(weight_mode):
        def w_spec(a):
            idx = lambda n, i: (0,) * a.ndim
            if weight_mode is None:
                return pl.BlockSpec(a.shape, idx)
            return pl.BlockSpec(a.shape, idx, pipeline_mode=weight_mode)

        in_specs = [
            # Full padded image of one batch element; consecutive H-tiles reuse the block.
            pl.BlockSpec((1, H + 2, Wp, Cp), lambda n, i: (n, 0, 0, 0)),
            # Tile-aligned identity block (sublane-aligned, DMA overlaps with compute).
            pl.BlockSpec((1, tile_h, W, Cout_p), lambda n, i: (n, i, 0, 0)),
            w_spec(w1), w_spec(b1), w_spec(w2), w_spec(b2), w_spec(w3), w_spec(b3),
        ]
        out_specs = pl.BlockSpec((1, tile_h, W, Cout_p), lambda n, i: (n, i, 0, 0))
        return pl.pallas_call(
            bottleneck_kernel,
            out_shape=jax.ShapeDtypeStruct((N, H, W, Cout_p), jnp.float32),
            grid=(N, n_h),
            in_specs=in_specs,
            out_specs=out_specs,
            cost_estimate=cost,
            compiler_params=pltpu.CompilerParams(
                # Batch axis parallel (megacore split stays on n), H-tile axis arbitrary
                # so both v7x cores never duplicate the same per-batch x block.
                dimension_semantics=("parallel", "arbitrary"),
                vmem_limit_bytes=_vmem_limit_bytes()),
        )

    args = (x_pad, x_res, w1, b1, w2, b2, w3, b3)
    try:
        # Constant-index weight/BN blocks: single buffer (no double-buffer VMEM waste).
        out = build(pl.Buffered(1))(*args)
    except Exception:
        # Fallback for JAX builds where single-buffered pipeline_mode is unsupported.
        out = build(None)(*args)

    return out[..., :Cin]       # Cout == Cin for the identity-skip Bottleneck config


def bottleneck_forward(x_nchw, kernel_params, tile_h=None):
    """Thin NCHW adapter (PyTorch layout parity). Prefer bottleneck_forward_nhwc in an
    NHWC end-to-end model to avoid the boundary transposes."""
    x_nhwc = jnp.transpose(x_nchw, (0, 2, 3, 1))
    out = bottleneck_forward_nhwc(x_nhwc, kernel_params, tile_h=tile_h)
    return jnp.transpose(out, (0, 3, 1, 2))


def make_params(key, inplanes, planes, base_width=32, groups=1):
    """Deterministic synthetic params. Inference BatchNorm is folded into per-channel
    scale & bias: y = conv(x) * scale + bias.  The scale is folded into the conv weight
    columns (f32) before the bf16 cast; only the bias is applied in-kernel."""
    expansion = 4
    width = int(planes * (base_width / 32.0)) * groups
    cout = planes * expansion
    assert cout == inplanes, "downsample=None requires inplanes == planes * expansion"
    ks = jax.random.split(key, 6)

    def bn_fold(k, c):
        kg, kb, km, kv = jax.random.split(k, 4)
        gamma = jax.random.uniform(kg, (c,), jnp.float32, 0.5, 1.5)
        beta = 0.1 * jax.random.normal(kb, (c,), jnp.float32)
        mean = 0.1 * jax.random.normal(km, (c,), jnp.float32)
        var = jax.random.uniform(kv, (c,), jnp.float32, 0.5, 1.5)
        scale = gamma / jnp.sqrt(var + 1e-5)
        bias = beta - mean * scale
        return scale, bias

    # PyTorch conv weight layout: (Cout, Cin, kh, kw), bias=False
    w1_t = 0.1 * jax.random.normal(ks[0], (width, inplanes, 1, 1), jnp.float32)
    w2_t = 0.1 * jax.random.normal(ks[1], (width, width, 3, 3), jnp.float32)
    w3_t = 0.1 * jax.random.normal(ks[2], (cout, width, 1, 1), jnp.float32)
    s1, b1 = bn_fold(ks[3], width)
    s2, b2 = bn_fold(ks[4], width)
    s3, b3 = bn_fold(ks[5], cout)

    cin_p = _ceil_to(inplanes, LANE)
    cw_p = _ceil_to(width, LANE)
    cout_p = _ceil_to(cout, LANE)

    def pad2(a, r, c):
        return jnp.pad(a, ((0, r - a.shape[0]), (0, c - a.shape[1])))

    def pad_vec(v, c):
        return jnp.pad(v, (0, c - v.shape[0])).reshape(1, c)

    # Kernel layouts: 1x1 -> (Cin_p, Cw_p) / (Cw_p, Cout_p) matmul weights;
    # 3x3 -> im2col weight (9*Cw_p, Cw_p) with row blocks ordered k = 3*dy + dx.
    # BN scale folded into the output-channel columns in f32, then cast to bf16.
    w1_m = jnp.transpose(w1_t[:, :, 0, 0], (1, 0)) * s1[None, :]
    w1_k = pad2(w1_m, cin_p, cw_p).astype(jnp.bfloat16)

    w2_hwio = jnp.transpose(w2_t, (2, 3, 1, 0)) * s2[None, None, None, :]   # (3,3,ci,co)
    w2_hwio = jnp.pad(w2_hwio, ((0, 0), (0, 0),
                                (0, cw_p - width), (0, cw_p - width)))
    w2_k = w2_hwio.reshape(9 * cw_p, cw_p).astype(jnp.bfloat16)

    w3_m = jnp.transpose(w3_t[:, :, 0, 0], (1, 0)) * s3[None, :]
    w3_k = pad2(w3_m, cw_p, cout_p).astype(jnp.bfloat16)

    kernel_params = (w1_k, pad_vec(b1, cw_p),
                     w2_k, pad_vec(b2, cw_p),
                     w3_k, pad_vec(b3, cout_p))
    torch_params = (w1_t, w2_t, w3_t, s1, b1, s2, b2, s3, b3)
    return kernel_params, torch_params


def reference_forward(x_nchw, torch_params):
    """Plain-JAX NCHW reference matching the PyTorch forward (inference BN, f32)."""
    w1_t, w2_t, w3_t, s1, b1, s2, b2, s3, b3 = torch_params

    def conv(x, w, pad):
        return jax.lax.conv_general_dilated(
            x, w, (1, 1), [(pad, pad), (pad, pad)],
            dimension_numbers=('NCHW', 'OIHW', 'NCHW'),
            precision=jax.lax.Precision.HIGHEST)

    def bn(y, s, b):
        return y * s.reshape(1, -1, 1, 1) + b.reshape(1, -1, 1, 1)

    out = jax.nn.relu(bn(conv(x_nchw, w1_t, 0), s1, b1))
    out = jax.nn.relu(bn(conv(out, w2_t, 1), s2, b2))
    out = bn(conv(out, w3_t, 0), s3, b3)
    return out + x_nchw  # quant_func.add(out, identity)


if __name__ == "__main__":
    key = jax.random.PRNGKey(0)
    kx, kp = jax.random.split(key)

    inplanes, planes = 16, 4   # inplanes == planes * expansion -> identity skip works
    N, H, W = 2, 16, 16
    x = jax.random.normal(kx, (N, inplanes, H, W), jnp.float32)

    kernel_params, torch_params = make_params(kp, inplanes, planes)

    out = bottleneck_forward(x, kernel_params)      # tile_h auto-picked (16 here)
    out = jax.block_until_ready(out)

    ref = reference_forward(x, torch_params)
    assert out.shape == ref.shape == (N, planes * 4, H, W), (out.shape, ref.shape)
    max_err = float(jnp.max(jnp.abs(out - ref)))
    # bf16 MXU operands with f32 accumulation (f32 residual) -> small bounded mismatch.
    assert max_err < 5e-2, f"max abs error too large: {max_err}"

    print("KERNEL_OK")
</pallas_src>

<mosaic_0001>
module attributes {stable_mosaic.version = 11 : i64} {
  func.func @bottleneck_kernel(%arg0: i32, %arg1: i32, %arg2: memref<1x18x32x128xbf16, #tpu.memory_space<vmem>>, %arg3: memref<1x16x16x128xf32, #tpu.memory_space<vmem>>, %arg4: memref<128x128xbf16, #tpu.memory_space<vmem>>, %arg5: memref<1x128xf32, #tpu.memory_space<vmem>>, %arg6: memref<1152x128xbf16, #tpu.memory_space<vmem>>, %arg7: memref<1x128xf32, #tpu.memory_space<vmem>>, %arg8: memref<128x128xbf16, #tpu.memory_space<vmem>>, %arg9: memref<1x128xf32, #tpu.memory_space<vmem>>, %arg10: memref<1x16x16x128xf32, #tpu.memory_space<vmem>>) attributes {dimension_semantics = [#tpu.dimension_semantics<parallel>, #tpu.dimension_semantics<arbitrary>], iteration_bounds = array<i64: 2, 1>, scalar_prefetch = 0 : i64, scratch_operands = 0 : i64, tpu.core_type = #tpu.core_type<tc>, window_params = [{transform_indices = @transform_0, window_bounds = array<i64: 1, 18, 32, 128>}, {transform_indices = @transform_1, window_bounds = array<i64: 1, 16, 16, 128>}, {pipeline_mode = #tpu.pipeline_mode<synchronous>, transform_indices = @transform_2, window_bounds = array<i64: 128, 128>}, {pipeline_mode = #tpu.pipeline_mode<synchronous>, transform_indices = @transform_3, window_bounds = array<i64: 1, 128>}, {pipeline_mode = #tpu.pipeline_mode<synchronous>, transform_indices = @transform_4, window_bounds = array<i64: 1152, 128>}, {pipeline_mode = #tpu.pipeline_mode<synchronous>, transform_indices = @transform_5, window_bounds = array<i64: 1, 128>}, {pipeline_mode = #tpu.pipeline_mode<synchronous>, transform_indices = @transform_6, window_bounds = array<i64: 128, 128>}, {pipeline_mode = #tpu.pipeline_mode<synchronous>, transform_indices = @transform_7, window_bounds = array<i64: 1, 128>}, {transform_indices = @transform_8, window_bounds = array<i64: 1, 16, 16, 128>}]} {
    %c16_i32 = arith.constant 16 : i32
    %0 = arith.muli %arg1, %c16_i32 : i32
    %1 = tpu.assume_multiple %0, 16 : i32
    %c0 = arith.constant 0 : index
    %2 = arith.index_cast %1 : i32 to index
    %c0_0 = arith.constant 0 : index
    %c0_1 = arith.constant 0 : index
    %3 = vector.load %arg2[%c0, %2, %c0_0, %c0_1] : memref<1x18x32x128xbf16, #tpu.memory_space<vmem>>, vector<1x18x32x128xbf16>
    %4 = vector.shape_cast %3 : vector<1x18x32x128xbf16> to vector<576x128xbf16>
    %c0_2 = arith.constant 0 : index
    %c0_3 = arith.constant 0 : index
    %5 = vector.load %arg4[%c0_2, %c0_3] : memref<128x128xbf16, #tpu.memory_space<vmem>>, vector<128x128xbf16>
    %cst = arith.constant dense<0.000000e+00> : vector<576x128xf32>
    %6 = tpu.matmul %4, %5, %cst {dimension_numbers = #tpu.dot_dimension_numbers<[1], [0], [0], [1], [0, 0, 1, 1], [], []>} : vector<576x128xbf16>, vector<128x128xbf16>, vector<576x128xf32> -> vector<576x128xf32>
    %c0_4 = arith.constant 0 : index
    %c0_5 = arith.constant 0 : index
    %7 = vector.load %arg5[%c0_4, %c0_5] : memref<1x128xf32, #tpu.memory_space<vmem>>, vector<1x128xf32>
    %8 = vector.broadcast %7 : vector<1x128xf32> to vector<576x128xf32>
    %9 = arith.addf %6, %8 : vector<576x128xf32>
    %cst_6 = arith.constant 0.000000e+00 : f32
    %10 = vector.broadcast %cst_6 : f32 to vector<576x128xf32>
    %11 = arith.maximumf %9, %10 : vector<576x128xf32>
    %12 = vector.shape_cast %11 : vector<576x128xf32> to vector<18x32x128xf32>
    %13 = tpu.iota {dimensions = array<i32: 0>} : vector<18x32x1xi32>
    %14 = vector.broadcast %1 : i32 to vector<18x32x1xi32>
    %15 = arith.addi %14, %13 : vector<18x32x1xi32>
    %16 = tpu.iota {dimensions = array<i32: 1>} : vector<18x32x1xi32>
    %c1_i32 = arith.constant 1 : i32
    %17 = vector.broadcast %c1_i32 : i32 to vector<18x32x1xi32>
    %18 = arith.cmpi sge, %15, %17 : vector<18x32x1xi32>
    %c16_i32_7 = arith.constant 16 : i32
    %19 = vector.broadcast %c16_i32_7 : i32 to vector<18x32x1xi32>
    %20 = arith.cmpi sle, %15, %19 : vector<18x32x1xi32>
    %21 = arith.andi %18, %20 : vector<18x32x1xi1>
    %c1_i32_8 = arith.constant 1 : i32
    %22 = vector.broadcast %c1_i32_8 : i32 to vector<18x32x1xi32>
    %23 = arith.cmpi sge, %16, %22 : vector<18x32x1xi32>
    %24 = arith.andi %21, %23 : vector<18x32x1xi1>
    %c16_i32_9 = arith.constant 16 : i32
    %25 = vector.broadcast %c16_i32_9 : i32 to vector<18x32x1xi32>
    %26 = arith.cmpi sle, %16, %25 : vector<18x32x1xi32>
    %27 = arith.andi %24, %26 : vector<18x32x1xi1>
    %cst_10 = arith.constant 0.000000e+00 : f32
    %28 = vector.shape_cast %27 : vector<18x32x1xi1> to vector<18x32x1xi1>
    %29 = vector.broadcast %28 : vector<18x32x1xi1> to vector<18x32x128xi1>
    %30 = vector.broadcast %cst_10 : f32 to vector<18x32x128xf32>
    %31 = arith.select %29, %12, %30 : vector<18x32x128xi1>, vector<18x32x128xf32>
    %32 = vector.extract_strided_slice %31 {offsets = [0, 0, 0], sizes = [16, 16, 128], strides = [1, 1, 1]} : vector<18x32x128xf32> to vector<16x16x128xf32>
    %33 = vector.shape_cast %32 : vector<16x16x128xf32> to vector<256x128xf32>
    %34 = arith.truncf %33 : vector<256x128xf32> to vector<256x128xbf16>
    %35 = vector.extract_strided_slice %31 {offsets = [0, 1, 0], sizes = [16, 16, 128], strides = [1, 1, 1]} : vector<18x32x128xf32> to vector<16x16x128xf32>
    %36 = vector.shape_cast %35 : vector<16x16x128xf32> to vector<256x128xf32>
    %37 = arith.truncf %36 : vector<256x128xf32> to vector<256x128xbf16>
    %38 = vector.extract_strided_slice %31 {offsets = [0, 2, 0], sizes = [16, 16, 128], strides = [1, 1, 1]} : vector<18x32x128xf32> to vector<16x16x128xf32>
    %39 = vector.shape_cast %38 : vector<16x16x128xf32> to vector<256x128xf32>
    %40 = arith.truncf %39 : vector<256x128xf32> to vector<256x128xbf16>
    %41 = vector.extract_strided_slice %31 {offsets = [1, 0, 0], sizes = [16, 16, 128], strides = [1, 1, 1]} : vector<18x32x128xf32> to vector<16x16x128xf32>
    %42 = vector.shape_cast %41 : vector<16x16x128xf32> to vector<256x128xf32>
    %43 = arith.truncf %42 : vector<256x128xf32> to vector<256x128xbf16>
    %44 = vector.extract_strided_slice %31 {offsets = [1, 1, 0], sizes = [16, 16, 128], strides = [1, 1, 1]} : vector<18x32x128xf32> to vector<16x16x128xf32>
    %45 = vector.shape_cast %44 : vector<16x16x128xf32> to vector<256x128xf32>
    %46 = arith.truncf %45 : vector<256x128xf32> to vector<256x128xbf16>
    %47 = vector.extract_strided_slice %31 {offsets = [1, 2, 0], sizes = [16, 16, 128], strides = [1, 1, 1]} : vector<18x32x128xf32> to vector<16x16x128xf32>
    %48 = vector.shape_cast %47 : vector<16x16x128xf32> to vector<256x128xf32>
    %49 = arith.truncf %48 : vector<256x128xf32> to vector<256x128xbf16>
    %50 = vector.extract_strided_slice %31 {offsets = [2, 0, 0], sizes = [16, 16, 128], strides = [1, 1, 1]} : vector<18x32x128xf32> to vector<16x16x128xf32>
    %51 = vector.shape_cast %50 : vector<16x16x128xf32> to vector<256x128xf32>
    %52 = arith.truncf %51 : vector<256x128xf32> to vector<256x128xbf16>
    %53 = vector.extract_strided_slice %31 {offsets = [2, 1, 0], sizes = [16, 16, 128], strides = [1, 1, 1]} : vector<18x32x128xf32> to vector<16x16x128xf32>
    %54 = vector.shape_cast %53 : vector<16x16x128xf32> to vector<256x128xf32>
    %55 = arith.truncf %54 : vector<256x128xf32> to vector<256x128xbf16>
    %56 = vector.extract_strided_slice %31 {offsets = [2, 2, 0], sizes = [16, 16, 128], strides = [1, 1, 1]} : vector<18x32x128xf32> to vector<16x16x128xf32>
    %57 = vector.shape_cast %56 : vector<16x16x128xf32> to vector<256x128xf32>
    %58 = arith.truncf %57 : vector<256x128xf32> to vector<256x128xbf16>
    %59 = tpu.concatenate %34, %37, %40, %43, %46, %49, %52, %55, %58 in 1 : vector<256x128xbf16>, vector<256x128xbf16>, vector<256x128xbf16>, vector<256x128xbf16>, vector<256x128xbf16>, vector<256x128xbf16>, vector<256x128xbf16>, vector<256x128xbf16>, vector<256x128xbf16> -> vector<256x1152xbf16>
    %c0_11 = arith.constant 0 : index
    %c0_12 = arith.constant 0 : index
    %60 = vector.load %arg6[%c0_11, %c0_12] : memref<1152x128xbf16, #tpu.memory_space<vmem>>, vector<1152x128xbf16>
    %cst_13 = arith.constant dense<0.000000e+00> : vector<256x128xf32>
    %61 = tpu.matmul %59, %60, %cst_13 {dimension_numbers = #tpu.dot_dimension_numbers<[1], [0], [0], [1], [0, 0, 1, 1], [], []>} : vector<256x1152xbf16>, vector<1152x128xbf16>, vector<256x128xf32> -> vector<256x128xf32>
    %c0_14 = arith.constant 0 : index
    %c0_15 = arith.constant 0 : index
    %62 = vector.load %arg7[%c0_14, %c0_15] : memref<1x128xf32, #tpu.memory_space<vmem>>, vector<1x128xf32>
    %63 = vector.broadcast %62 : vector<1x128xf32> to vector<256x128xf32>
    %64 = arith.addf %61, %63 : vector<256x128xf32>
    %cst_16 = arith.constant 0.000000e+00 : f32
    %65 = vector.broadcast %cst_16 : f32 to vector<256x128xf32>
    %66 = arith.maximumf %64, %65 : vector<256x128xf32>
    %67 = arith.truncf %66 : vector<256x128xf32> to vector<256x128xbf16>
    %c0_17 = arith.constant 0 : index
    %c0_18 = arith.constant 0 : index
    %68 = vector.load %arg8[%c0_17, %c0_18] : memref<128x128xbf16, #tpu.memory_space<vmem>>, vector<128x128xbf16>
    %cst_19 = arith.constant dense<0.000000e+00> : vector<256x128xf32>
    %69 = tpu.matmul %67, %68, %cst_19 {dimension_numbers = #tpu.dot_dimension_numbers<[1], [0], [0], [1], [0, 0, 1, 1], [], []>} : vector<256x128xbf16>, vector<128x128xbf16>, vector<256x128xf32> -> vector<256x128xf32>
    %c0_20 = arith.constant 0 : index
    %c0_21 = arith.constant 0 : index
    %70 = vector.load %arg9[%c0_20, %c0_21] : memref<1x128xf32, #tpu.memory_space<vmem>>, vector<1x128xf32>
    %71 = vector.broadcast %70 : vector<1x128xf32> to vector<256x128xf32>
    %72 = arith.addf %69, %71 : vector<256x128xf32>
    %73 = vector.shape_cast %72 : vector<256x128xf32> to vector<1x16x16x128xf32>
    %c0_22 = arith.constant 0 : index
    %c0_23 = arith.constant 0 : index
    %c0_24 = arith.constant 0 : index
    %c0_25 = arith.constant 0 : index
    %74 = vector.load %arg3[%c0_22, %c0_23, %c0_24, %c0_25] : memref<1x16x16x128xf32, #tpu.memory_space<vmem>>, vector<1x16x16x128xf32>
    %75 = arith.addf %73, %74 : vector<1x16x16x128xf32>
    %c0_26 = arith.constant 0 : index
    %c0_27 = arith.constant 0 : index
    %c0_28 = arith.constant 0 : index
    %c0_29 = arith.constant 0 : index
    %76 = vector.load %arg10[%c0_26, %c0_27, %c0_28, %c0_29] : memref<1x16x16x128xf32, #tpu.memory_space<vmem>>, vector<1x16x16x128xf32>
    tpu.vector_store %arg10[%c0_26, %c0_27, %c0_28, %c0_29], %75 {strides = array<i32>} : memref<1x16x16x128xf32, #tpu.memory_space<vmem>>, vector<1x16x16x128xf32>,
    return
  }
  func.func @transform_0(%arg0: i32, %arg1: i32) -> (i32, i32, i32, i32) {
    %c0_i32 = arith.constant 0 : i32
    %c0_i32_0 = arith.constant 0 : i32
    %c0_i32_1 = arith.constant 0 : i32
    %c0_i32_2 = arith.constant 0 : i32
    return %arg0, %c0_i32, %c0_i32_0, %c0_i32_1 : i32, i32, i32, i32
  }
  func.func @transform_1(%arg0: i32, %arg1: i32) -> (i32, i32, i32, i32) {
    %c0_i32 = arith.constant 0 : i32
    %c0_i32_0 = arith.constant 0 : i32
    %c0_i32_1 = arith.constant 0 : i32
    return %arg0, %arg1, %c0_i32, %c0_i32_0 : i32, i32, i32, i32
  }
  func.func @transform_2(%arg0: i32, %arg1: i32) -> (i32, i32) {
    %c0_i32 = arith.constant 0 : i32
    %c0_i32_0 = arith.constant 0 : i32
    %c0_i32_1 = arith.constant 0 : i32
    return %c0_i32, %c0_i32_0 : i32, i32
  }
  func.func @transform_3(%arg0: i32, %arg1: i32) -> (i32, i32) {
    %c0_i32 = arith.constant 0 : i32
    %c0_i32_0 = arith.constant 0 : i32
    %c0_i32_1 = arith.constant 0 : i32
    return %c0_i32, %c0_i32_0 : i32, i32
  }
  func.func @transform_4(%arg0: i32, %arg1: i32) -> (i32, i32) {
    %c0_i32 = arith.constant 0 : i32
    %c0_i32_0 = arith.constant 0 : i32
    %c0_i32_1 = arith.constant 0 : i32
    return %c0_i32, %c0_i32_0 : i32, i32
  }
  func.func @transform_5(%arg0: i32, %arg1: i32) -> (i32, i32) {
    %c0_i32 = arith.constant 0 : i32
    %c0_i32_0 = arith.constant 0 : i32
    %c0_i32_1 = arith.constant 0 : i32
    return %c0_i32, %c0_i32_0 : i32, i32
  }
  func.func @transform_6(%arg0: i32, %arg1: i32) -> (i32, i32) {
    %c0_i32 = arith.constant 0 : i32
    %c0_i32_0 = arith.constant 0 : i32
    %c0_i32_1 = arith.constant 0 : i32
    return %c0_i32, %c0_i32_0 : i32, i32
  }
  func.func @transform_7(%arg0: i32, %arg1: i32) -> (i32, i32) {
    %c0_i32 = arith.constant 0 : i32
    %c0_i32_0 = arith.constant 0 : i32
    %c0_i32_1 = arith.constant 0 : i32
    return %c0_i32, %c0_i32_0 : i32, i32
  }
  func.func @transform_8(%arg0: i32, %arg1: i32) -> (i32, i32, i32, i32) {
    %c0_i32 = arith.constant 0 : i32
    %c0_i32_0 = arith.constant 0 : i32
    %c0_i32_1 = arith.constant 0 : i32
    return %arg0, %arg1, %c0_i32, %c0_i32_0 : i32, i32, i32, i32
  }
}

module attributes {stable_mosaic.version = 11 : i64} {
  func.func @bottleneck_kernel(%arg0: i32, %arg1: i32, %arg2: memref<1x18x32x128xbf16, #tpu.memory_space<vmem>>, %arg3: memref<1x16x16x128xf32, #tpu.memory_space<vmem>>, %arg4: memref<128x128xbf16, #tpu.memory_space<vmem>>, %arg5: memref<1x128xf32, #tpu.memory_space<vmem>>, %arg6: memref<1152x128xbf16, #tpu.memory_space<vmem>>, %arg7: memref<1x128xf32, #tpu.memory_space<vmem>>, %arg8: memref<128x128xbf16, #tpu.memory_space<vmem>>, %arg9: memref<1x128xf32, #tpu.memory_space<vmem>>, %arg10: memref<1x16x16x128xf32, #tpu.memory_space<vmem>>) attributes {dimension_semantics = [#tpu.dimension_semantics<parallel>, #tpu.dimension_semantics<arbitrary>], iteration_bounds = array<i64: 2, 1>, scalar_prefetch = 0 : i64, scratch_operands = 0 : i64, tpu.core_type = #tpu.core_type<tc>, window_params = [{transform_indices = @transform_0, window_bounds = array<i64: 1, 18, 32, 128>}, {transform_indices = @transform_1, window_bounds = array<i64: 1, 16, 16, 128>}, {pipeline_mode = #tpu.pipeline_mode<synchronous>, transform_indices = @transform_2, window_bounds = array<i64: 128, 128>}, {pipeline_mode = #tpu.pipeline_mode<synchronous>, transform_indices = @transform_3, window_bounds = array<i64: 1, 128>}, {pipeline_mode = #tpu.pipeline_mode<synchronous>, transform_indices = @transform_4, window_bounds = array<i64: 1152, 128>}, {pipeline_mode = #tpu.pipeline_mode<synchronous>, transform_indices = @transform_5, window_bounds = array<i64: 1, 128>}, {pipeline_mode = #tpu.pipeline_mode<synchronous>, transform_indices = @transform_6, window_bounds = array<i64: 128, 128>}, {pipeline_mode = #tpu.pipeline_mode<synchronous>, transform_indices = @transform_7, window_bounds = array<i64: 1, 128>}, {transform_indices = @transform_8, window_bounds = array<i64: 1, 16, 16, 128>}]} {
    %c16_i32 = arith.constant 16 : i32
    %0 = arith.muli %arg1, %c16_i32 : i32
    %1 = tpu.assume_multiple %0, 16 : i32
    %c0 = arith.constant 0 : index
    %2 = arith.index_cast %1 : i32 to index
    %c0_0 = arith.constant 0 : index
    %c0_1 = arith.constant 0 : index
    %3 = vector.load %arg2[%c0, %2, %c0_0, %c0_1] : memref<1x18x32x128xbf16, #tpu.memory_space<vmem>>, vector<1x18x32x128xbf16>
    %4 = vector.shape_cast %3 : vector<1x18x32x128xbf16> to vector<576x128xbf16>
    %c0_2 = arith.constant 0 : index
    %c0_3 = arith.constant 0 : index
    %5 = vector.load %arg4[%c0_2, %c0_3] : memref<128x128xbf16, #tpu.memory_space<vmem>>, vector<128x128xbf16>
    %cst = arith.constant dense<0.000000e+00> : vector<576x128xf32>
    %6 = tpu.matmul %4, %5, %cst {dimension_numbers = #tpu.dot_dimension_numbers<[1], [0], [0], [1], [0, 0, 1, 1], [], []>} : vector<576x128xbf16>, vector<128x128xbf16>, vector<576x128xf32> -> vector<576x128xf32>
    %c0_4 = arith.constant 0 : index
    %c0_5 = arith.constant 0 : index
    %7 = vector.load %arg5[%c0_4, %c0_5] : memref<1x128xf32, #tpu.memory_space<vmem>>, vector<1x128xf32>
    %8 = vector.broadcast %7 : vector<1x128xf32> to vector<576x128xf32>
    %9 = arith.addf %6, %8 : vector<576x128xf32>
    %cst_6 = arith.constant 0.000000e+00 : f32
    %10 = vector.broadcast %cst_6 : f32 to vector<576x128xf32>
    %11 = arith.maximumf %9, %10 : vector<576x128xf32>
    %12 = vector.shape_cast %11 : vector<576x128xf32> to vector<18x32x128xf32>
    %13 = tpu.iota {dimensions = array<i32: 0>} : vector<18x32x1xi32>
    %14 = vector.broadcast %1 : i32 to vector<18x32x1xi32>
    %15 = arith.addi %14, %13 : vector<18x32x1xi32>
    %16 = tpu.iota {dimensions = array<i32: 1>} : vector<18x32x1xi32>
    %c1_i32 = arith.constant 1 : i32
    %17 = vector.broadcast %c1_i32 : i32 to vector<18x32x1xi32>
    %18 = arith.cmpi sge, %15, %17 : vector<18x32x1xi32>
    %c16_i32_7 = arith.constant 16 : i32
    %19 = vector.broadcast %c16_i32_7 : i32 to vector<18x32x1xi32>
    %20 = arith.cmpi sle, %15, %19 : vector<18x32x1xi32>
    %21 = arith.andi %18, %20 : vector<18x32x1xi1>
    %c1_i32_8 = arith.constant 1 : i32
    %22 = vector.broadcast %c1_i32_8 : i32 to vector<18x32x1xi32>
    %23 = arith.cmpi sge, %16, %22 : vector<18x32x1xi32>
    %24 = arith.andi %21, %23 : vector<18x32x1xi1>
    %c16_i32_9 = arith.constant 16 : i32
    %25 = vector.broadcast %c16_i32_9 : i32 to vector<18x32x1xi32>
    %26 = arith.cmpi sle, %16, %25 : vector<18x32x1xi32>
    %27 = arith.andi %24, %26 : vector<18x32x1xi1>
    %cst_10 = arith.constant 0.000000e+00 : f32
    %28 = vector.shape_cast %27 : vector<18x32x1xi1> to vector<18x32x1xi1>
    %29 = vector.broadcast %28 : vector<18x32x1xi1> to vector<18x32x128xi1>
    %30 = vector.broadcast %cst_10 : f32 to vector<18x32x128xf32>
    %31 = arith.select %29, %12, %30 : vector<18x32x128xi1>, vector<18x32x128xf32>
    %32 = vector.extract_strided_slice %31 {offsets = [0, 0, 0], sizes = [16, 16, 128], strides = [1, 1, 1]} : vector<18x32x128xf32> to vector<16x16x128xf32>
    %33 = vector.shape_cast %32 : vector<16x16x128xf32> to vector<256x128xf32>
    %34 = arith.truncf %33 : vector<256x128xf32> to vector<256x128xbf16>
    %35 = vector.extract_strided_slice %31 {offsets = [0, 1, 0], sizes = [16, 16, 128], strides = [1, 1, 1]} : vector<18x32x128xf32> to vector<16x16x128xf32>
    %36 = vector.shape_cast %35 : vector<16x16x128xf32> to vector<256x128xf32>
    %37 = arith.truncf %36 : vector<256x128xf32> to vector<256x128xbf16>
    %38 = vector.extract_strided_slice %31 {offsets = [0, 2, 0], sizes = [16, 16, 128], strides = [1, 1, 1]} : vector<18x32x128xf32> to vector<16x16x128xf32>
    %39 = vector.shape_cast %38 : vector<16x16x128xf32> to vector<256x128xf32>
    %40 = arith.truncf %39 : vector<256x128xf32> to vector<256x128xbf16>
    %41 = vector.extract_strided_slice %31 {offsets = [1, 0, 0], sizes = [16, 16, 128], strides = [1, 1, 1]} : vector<18x32x128xf32> to vector<16x16x128xf32>
    %42 = vector.shape_cast %41 : vector<16x16x128xf32> to vector<256x128xf32>
    %43 = arith.truncf %42 : vector<256x128xf32> to vector<256x128xbf16>
    %44 = vector.extract_strided_slice %31 {offsets = [1, 1, 0], sizes = [16, 16, 128], strides = [1, 1, 1]} : vector<18x32x128xf32> to vector<16x16x128xf32>
    %45 = vector.shape_cast %44 : vector<16x16x128xf32> to vector<256x128xf32>
    %46 = arith.truncf %45 : vector<256x128xf32> to vector<256x128xbf16>
    %47 = vector.extract_strided_slice %31 {offsets = [1, 2, 0], sizes = [16, 16, 128], strides = [1, 1, 1]} : vector<18x32x128xf32> to vector<16x16x128xf32>
    %48 = vector.shape_cast %47 : vector<16x16x128xf32> to vector<256x128xf32>
    %49 = arith.truncf %48 : vector<256x128xf32> to vector<256x128xbf16>
    %50 = vector.extract_strided_slice %31 {offsets = [2, 0, 0], sizes = [16, 16, 128], strides = [1, 1, 1]} : vector<18x32x128xf32> to vector<16x16x128xf32>
    %51 = vector.shape_cast %50 : vector<16x16x128xf32> to vector<256x128xf32>
    %52 = arith.truncf %51 : vector<256x128xf32> to vector<256x128xbf16>
    %53 = vector.extract_strided_slice %31 {offsets = [2, 1, 0], sizes = [16, 16, 128], strides = [1, 1, 1]} : vector<18x32x128xf32> to vector<16x16x128xf32>
    %54 = vector.shape_cast %53 : vector<16x16x128xf32> to vector<256x128xf32>
    %55 = arith.truncf %54 : vector<256x128xf32> to vector<256x128xbf16>
    %56 = vector.extract_strided_slice %31 {offsets = [2, 2, 0], sizes = [16, 16, 128], strides = [1, 1, 1]} : vector<18x32x128xf32> to vector<16x16x128xf32>
    %57 = vector.shape_cast %56 : vector<16x16x128xf32> to vector<256x128xf32>
    %58 = arith.truncf %57 : vector<256x128xf32> to vector<256x128xbf16>
    %59 = tpu.concatenate %34, %37, %40, %43, %46, %49, %52, %55, %58 in 1 : vector<256x128xbf16>, vector<256x128xbf16>, vector<256x128xbf16>, vector<256x128xbf16>, vector<256x128xbf16>, vector<256x128xbf16>, vector<256x128xbf16>, vector<256x128xbf16>, vector<256x128xbf16> -> vector<256x1152xbf16>
    %c0_11 = arith.constant 0 : index
    %c0_12 = arith.constant 0 : index
    %60 = vector.load %arg6[%c0_11, %c0_12] : memref<1152x128xbf16, #tpu.memory_space<vmem>>, vector<1152x128xbf16>
    %cst_13 = arith.constant dense<0.000000e+00> : vector<256x128xf32>
    %61 = tpu.matmul %59, %60, %cst_13 {dimension_numbers = #tpu.dot_dimension_numbers<[1], [0], [0], [1], [0, 0, 1, 1], [], []>} : vector<256x1152xbf16>, vector<1152x128xbf16>, vector<256x128xf32> -> vector<256x128xf32>
    %c0_14 = arith.constant 0 : index
    %c0_15 = arith.constant 0 : index
    %62 = vector.load %arg7[%c0_14, %c0_15] : memref<1x128xf32, #tpu.memory_space<vmem>>, vector<1x128xf32>
    %63 = vector.broadcast %62 : vector<1x128xf32> to vector<256x128xf32>
    %64 = arith.addf %61, %63 : vector<256x128xf32>
    %cst_16 = arith.constant 0.000000e+00 : f32
    %65 = vector.broadcast %cst_16 : f32 to vector<256x128xf32>
    %66 = arith.maximumf %64, %65 : vector<256x128xf32>
    %67 = arith.truncf %66 : vector<256x128xf32> to vector<256x128xbf16>
    %c0_17 = arith.constant 0 : index
    %c0_18 = arith.constant 0 : index
    %68 = vector.load %arg8[%c0_17, %c0_18] : memref<128x128xbf16, #tpu.memory_space<vmem>>, vector<128x128xbf16>
    %cst_19 = arith.constant dense<0.000000e+00> : vector<256x128xf32>
    %69 = tpu.matmul %67, %68, %cst_19 {dimension_numbers = #tpu.dot_dimension_numbers<[1], [0], [0], [1], [0, 0, 1, 1], [], []>} : vector<256x128xbf16>, vector<128x128xbf16>, vector<256x128xf32> -> vector<256x128xf32>
    %c0_20 = arith.constant 0 : index
    %c0_21 = arith.constant 0 : index
    %70 = vector.load %arg9[%c0_20, %c0_21] : memref<1x128xf32, #tpu.memory_space<vmem>>, vector<1x128xf32>
    %71 = vector.broadcast %70 : vector<1x128xf32> to vector<256x128xf32>
    %72 = arith.addf %69, %71 : vector<256x128xf32>
    %73 = vector.shape_cast %72 : vector<256x128xf32> to vector<1x16x16x128xf32>
    %c0_22 = arith.constant 0 : index
    %c0_23 = arith.constant 0 : index
    %c0_24 = arith.constant 0 : index
    %c0_25 = arith.constant 0 : index
    %74 = vector.load %arg3[%c0_22, %c0_23, %c0_24, %c0_25] : memref<1x16x16x128xf32, #tpu.memory_space<vmem>>, vector<1x16x16x128xf32>
    %75 = arith.addf %73, %74 : vector<1x16x16x128xf32>
    %c0_26 = arith.constant 0 : index
    %c0_27 = arith.constant 0 : index
    %c0_28 = arith.constant 0 : index
    %c0_29 = arith.constant 0 : index
    %76 = vector.load %arg10[%c0_26, %c0_27, %c0_28, %c0_29] : memref<1x16x16x128xf32, #tpu.memory_space<vmem>>, vector<1x16x16x128xf32>
    tpu.vector_store %arg10[%c0_26, %c0_27, %c0_28, %c0_29], %75 {strides = array<i32>} : memref<1x16x16x128xf32, #tpu.memory_space<vmem>>, vector<1x16x16x128xf32>,
    return
  }
  func.func @transform_0(%arg0: i32, %arg1: i32) -> (i32, i32, i32, i32) {
    %c0_i32 = arith.constant 0 : i32
    %c0_i32_0 = arith.constant 0 : i32
    %c0_i32_1 = arith.constant 0 : i32
    %c0_i32_2 = arith.constant 0 : i32
    return %arg0, %c0_i32, %c0_i32_0, %c0_i32_1 : i32, i32, i32, i32
  }
  func.func @transform_1(%arg0: i32, %arg1: i32) -> (i32, i32, i32, i32) {
    %c0_i32 = arith.constant 0 : i32
    %c0_i32_0 = arith.constant 0 : i32
    %c0_i32_1 = arith.constant 0 : i32
    return %arg0, %arg1, %c0_i32, %c0_i32_0 : i32, i32, i32, i32
  }
  func.func @transform_2(%arg0: i32, %arg1: i32) -> (i32, i32) {
    %c0_i32 = arith.constant 0 : i32
    %c0_i32_0 = arith.constant 0 : i32
    %c0_i32_1 = arith.constant 0 : i32
    return %c0_i32, %c0_i32_0 : i32, i32
  }
  func.func @transform_3(%arg0: i32, %arg1: i32) -> (i32, i32) {
    %c0_i32 = arith.constant 0 : i32
    %c0_i32_0 = arith.constant 0 : i32
    %c0_i32_1 = arith.constant 0 : i32
    return %c0_i32, %c0_i32_0 : i32, i32
  }
  func.func @transform_4(%arg0: i32, %arg1: i32) -> (i32, i32) {
    %c0_i32 = arith.constant 0 : i32
    %c0_i32_0 = arith.constant 0 : i32
    %c0_i32_1 = arith.constant 0 : i32
    return %c0_i32, %c0_i32_0 : i32, i32
  }
  func.func @transform_5(%arg0: i32, %arg1: i32) -> (i32, i32) {
    %c0_i32 = arith.constant 0 : i32
    %c0_i32_0 = arith.constant 0 : i32
    %c0_i32_1 = arith.constant 0 : i32
    return %c0_i32, %c0_i32_0 : i32, i32
  }
  func.func @transform_6(%arg0: i32, %arg1: i32) -> (i32, i32) {
    %c0_i32 = arith.constant 0 : i32
    %c0_i32_0 = arith.constant 0 : i32
    %c0_i32_1 = arith.constant 0 : i32
    return %c0_i32, %c0_i32_0 : i32, i32
  }
  func.func @transform_7(%arg0: i32, %arg1: i32) -> (i32, i32) {
    %c0_i32 = arith.constant 0 : i32
    %c0_i32_0 = arith.constant 0 : i32
    %c0_i32_1 = arith.constant 0 : i32
    return %c0_i32, %c0_i32_0 : i32, i32
  }
  func.func @transform_8(%arg0: i32, %arg1: i32) -> (i32, i32, i32, i32) {
    %c0_i32 = arith.constant 0 : i32
    %c0_i32_0 = arith.constant 0 : i32
    %c0_i32_1 = arith.constant 0 : i32
    return %arg0, %arg1, %c0_i32, %c0_i32_0 : i32, i32, i32, i32
  }
}

</mosaic_0001>

<bundles_post_ra>
// kernel: tpu_custom_call.1
= control target key start
LH: loop header
LB: loop body
LE: loop exit
PB: predicated region body
PF: predicated region fallthrough
CT: control target
= control target key end

     0   :  { %s6142_s0 = inlined_call_operand.hbm [shape: bf16[2,18,32,128], index: 0, kind: input, shape index: {}]   ;;  %s6143_s1 = inlined_call_operand.hbm [shape: f32[2,16,16,128], index: 1, kind: input, shape index: {}]   ;;  %s6144_s2 = inlined_call_operand.hbm [shape: bf16[128,128], index: 2, kind: input, shape index: {}]   ;;  %s6145_s3 = inlined_call_operand.vmem [shape: f32[1,128], index: 3, kind: input, shape index: {}]   ;;  %s6146_s4 = inlined_call_operand.hbm [shape: bf16[1152,128], index: 4, kind: input, shape index: {}]   ;;  %s6147_s5 = inlined_call_operand.vmem [shape: f32[1,128], index: 5, kind: input, shape index: {}]   ;;  %s6148_s6 = inlined_call_operand.hbm [shape: bf16[128,128], index: 6, kind: input, shape index: {}]   ;;  %s6149_s7 = inlined_call_operand.vmem [shape: f32[1,128], index: 7, kind: input, shape index: {}]   ;;  %s6150_s8 = inlined_call_operand.hbm [shape: f32[2,16,16,128], index: 8, kind: output, shape index: {}]  }
   0x1   :  { %6195 = sst [smem:[#allocation94_spill]] %s6142_s0 }
   0x2   :  { %6196 = sst [smem:[#allocation95_spill]] %s6144_s2 }
   0x3   :  { %6197 = sst [smem:[#allocation96_spill]] %s6146_s4 }
   0x4   :  { %6198 = sst [smem:[#allocation97_spill]] %s6148_s6 }
   0x5   :  { %13 = vsyncpa [#allocation3], 0 }
   0x6   :  { %15 = vsyncpa [#allocation3 + $0x1], 0 }
   0x7   :  { %16 = vsyncpa [#allocation6], 0 }
   0x8   :  { %18 = vsyncpa [#allocation6 + $0x1], 0 }
   0x9   :  { %19 = vsyncpa [#allocation9], 0 }
   0xa   :  { %20 = vsyncpa [#allocation4], 0 }
   0xb   :  { %22 = vsyncpa [#allocation4 + $0x1], 0  ;;  %s5034_s27 = smov 0   ;;  %s5036_s28 = smov 0  }
   0xc   :  { %s5038_s29 = smov 0   ;;  %s5040_s30 = smov 0  }
   0xd   :  { %s5042_s9 = smov 0   ;;  %s5044_s10 = smov 0  }
   0xe LB: > { %6199 = sst [smem:[#allocation17_spill]] %s4956_s27  ;;  %s5065_s11 = sadd.s32 4294967295, %s4976_s10   ;;  %s4976_s10 = sphi %s5044_s10, %s28_s10   ;;  %s4972_s9 = sphi %s5042_s9, %s6396_s9   ;;  %s4968_s30 = sphi %s5040_s30, %s6395_s30   ;;  %s4964_s29 = sphi %s5038_s29, %s6391_s29   ;;  %s4960_s28 = sphi %s5036_s28, %s6394_s28   ;;  %s4956_s27 = sphi %s5034_s27, %s6393_s27  }
   0xf   : > { %6200 = sst [smem:[#allocation18_spill]] %s4964_s29  ;;  %s3957_s12 = sadd.s32 4294967294, %s4976_s10  }
  0x10   : > { %6201 = sst [smem:[#allocation19_spill]] %s4976_s10  ;;  %p60_p0 = scmp.ne.s32.totalorder %s4960_s28, %s4956_s27 }
  0x11   : > { %p61_p1 = scmp.eq.s32.totalorder %s5065_s11, 0  ;;  %p240_p2 = scmp.eq.s32.totalorder %s5065_s11, 1 }
  0x12   : > { %p246_p3 = scmp.eq.s32.totalorder %s3957_s12, 1  ;;  %p3958_p5 = scmp.ge.s32.totalorder %s4976_s10, 1 }
  0x13   : > { %p5074_p4 = por %p61_p1, %p60_p0  ;;  %p253_p7 = scmp.lt.s32.totalorder %s4976_s10, 3 }
  0x14   : > { %p5079_p6 = por %p246_p3, %p60_p0  ;;  %s6205_s2 = sld [smem:[#allocation95_spill]] }
  0x15   : > { %p5087_p8 = pnand %p3958_p5, %p253_p7  ;;  %s4978_s19 = smov [#allocation7]  }
  0x16   : > { %s6203_s14 = scalar_select %p5079_p6, 1, 0 }
  0x17   : > { %p4637_p9 = pneg %p5087_p8  ;;  %s266_s20 = sshll.u32 %s4978_s19, 4  ;;  %s267_s20 = int_to_ptr.vmem [resolvable:$true] %s266_s20 }
  0x18   : > { %6204 = sst [smem:[#allocation20_spill]] %s6203_s14  ;;  %p3962_p11 = scmp.ge.s32.totalorder %s4976_s10, 2 }
  0x19   : > { %p5095_p10 = pnand %p4637_p9, %p61_p1  ;;  %s6208_s4 = sld [smem:[#allocation96_spill]] }
  0x1a   : > { %s264_s17 = sshll.u32 %s6205_s2, 4  ;;  %s6151_s25 = smov 64   ;;  %s265_s17 = int_to_ptr.hbm [resolvable:$true] %s264_s17 }
  0x1b   : > { %s6152_s26 = smov 4   ;;  %s4981_s12 = smov [#allocation8]  }
  0x1c   : > { %4640 = dma.hbm_to_vmem [thread:$0]  (!%p5095_p10), %s265_s17, 1024, %s267_s20, [#allocation6], %s6151_s25, %s6151_s25, %s6152_s26  }
  0x1d   : > { %s283_s15 = sshll.u32 %s4981_s12, 4  ;;  %s6209_s6 = sld [smem:[#allocation97_spill]]  ;;  %s284_s15 = int_to_ptr.vmem [resolvable:$true] %s283_s15 }
  0x1e   : > { %s4982_s23 = smov [#allocation10]   ;;  %s40_s17 = sadd.s32 1, %s4972_s9 }
  0x1f   : > { %s281_s24 = sshll.u32 %s6208_s4, 4  ;;  %s300_s2 = sshll.u32 %s4982_s23, 4  ;;  %s282_s24 = int_to_ptr.hbm [resolvable:$true] %s281_s24  ;;  %s301_s2 = int_to_ptr.vmem [resolvable:$true] %s300_s2 }
  0x20   : > { %4643 = dma.hbm_to_vmem [thread:$0]  (!%p5095_p10), %s282_s24, 9216, %s284_s15, [#allocation9], %s6151_s25, %s6151_s25, %s6152_s26  }
  0x21   : > { %p42_p12 = scmp.ge.s32.totalorder %s40_s17, 2  ;;  %s47_s20 = sadd.s32 1, %s4964_s29 }
  0x22   : > { %p54_p13 = scmp.ne.s32.totalorder %s4964_s29, %s4960_s28  ;;  %p55_p0 = scmp.eq.s32.totalorder %s4976_s10, 0 }
  0x23   : > { %s298_s22 = sshll.u32 %s6209_s6, 4  ;;  %s6398_s17 = smov (%p42_p12, %s40_s17), 0  ;;  %s299_s22 = int_to_ptr.hbm [resolvable:$true] %s298_s22 }
  0x24   : > { %4646 = dma.hbm_to_vmem [thread:$0]  (!%p5095_p10), %s299_s22, 1024, %s301_s2, [#allocation9], %s6151_s25, %s6151_s25, %s6152_s26  }
  0x25   : > { %6210 = sst [smem:[#allocation21_spill]] %s6398_s17  ;;  %p56_p3 = por %p55_p0, %p54_p13 }
  0x26   : > { %p5130_p5 = por %p240_p2, %p54_p13  ;;  %s44_s21 = ssub.s32 %s4972_s9, %s6398_s17 }
  0x27   : > { %p4661_p7 = scmp.lt.s32.totalorder %s4976_s10, 2  ;;  %p45_p9 = scmp.eq.s32.totalorder %s44_s21, 0 }
  0x28   : > { %s317_s2 = sand.u32 1, %s4964_s29   ;;  %s4617_s16 = smul.u32 288, %s4972_s9 }
  0x29   : > { %s4616_s12 = smul.u32 288, %s317_s2  ;;  %p5142_p10 = pnand %p4661_p7, %p56_p3 }
  0x2a   : > { %s5139_s15 = scalar_select %p45_p9, %s4964_s29, %s47_s20  }
  0x2b   : > { %s321_s19 = scalar_lea.vmem [#allocation2], %s4616_s12  ;;  %s6214_s0 = sld [smem:[#allocation94_spill]] }
  0x2c   : > { %6212 = sst [smem:[#allocation22_spill]] %s5139_s15  ;;  %s329_s22 = sshll.u32 %s321_s19, 4  ;;  %s330_s22 = int_to_ptr.vmem [resolvable:$true] %s329_s22 }
  0x2d   : > { %s339_s21 = sand.u32 1, %s4976_s10   ;;  %s318_s17 = scalar_lea.sflag [#allocation3], %s317_s2 }
  0x2e   : > { %s6215_s20 = smov 4   ;;  %s6216_s15 = smov 64  }
  0x2f   : > { %s3964_s12 = sshll.u32 %s317_s2, 8  ;;  %s4474_s19 = sshll.u32 %s4972_s9, 8 }
  0x30   : > { %s351_s27 = scalar_lea.hbm %s6143_s1, %s4474_s19  ;;  %s343_s25 = scalar_lea.vmem [#allocation5], %s3964_s12 }
  0x31   : > { %s326_s4 = scalar_lea.hbm %s6214_s0, %s4617_s16  ;;  %s354_s26 = sshll.u32 %s343_s25, 4  ;;  %s355_s26 = int_to_ptr.vmem [resolvable:$true] %s354_s26 }
  0x32   : > { %s327_s6 = sshll.u32 %s326_s4, 4  ;;  %s352_s16 = sshll.u32 %s351_s27, 4  ;;  %s328_s6 = int_to_ptr.hbm [resolvable:$true] %s327_s6  ;;  %s353_s16 = int_to_ptr.hbm [resolvable:$true] %s352_s16 }
  0x33   : > { %4650 = dma.hbm_to_vmem [thread:$0]  (!%p5142_p10), %s328_s6, 4608, %s330_s22, %s318_s17, %s6216_s15, %s6216_s15, %s6215_s20  }
  0x34   : > { %s340_s4 = scalar_lea.sflag [#allocation6], %s339_s21  ;;  %s4983_s0 = smov 128  }
  0x35   : > { %s4984_s10 = smov 8   ;;  %366 = sbr.rel (%p5087_p8) target bundleno = 1540 (0x604), region = 52 }
  0x36   : > { %4653 = dma.hbm_to_vmem [thread:$0]  (!%p5142_p10), %s353_s16, 4096, %s355_s26, %s340_s4, %s4983_s0, %s4983_s0, %s4984_s10  }
  0x3a   : > { %s5164_s6 = sand.u32 1, %s4960_s28  }
  0x3b   : > { %s4618_s29 = smul.u32 288, %s5164_s6  ;;  %s369_s14 = scalar_lea.sflag [#allocation3], %s5164_s6 }
  0x3d   : > { %s5168_s17 = scalar_lea.vmem [#allocation2], %s4618_s29 }
  0x3e   : > { %4935 = dma.done.wait (%p5074_p4), %s369_s14, 4608  }
  0x3f   : > { %4937 = vsyncadd (%p5074_p4), %s369_s14, 4294962688  ;;  %s378_s0 = sand.u32 1, %s5065_s11   ;;  %s3968_s27 = sshll.u32 %s5164_s6, 8 }
  0x40   : > { %s379_s10 = scalar_lea.sflag [#allocation6], %s378_s0  ;;  %s5178_s18 = scalar_lea.vmem [#allocation5], %s3968_s27 }
  0x41   : > { %4939 = dma.done.wait (%p5074_p4), %s379_s10, 4096  }
  0x42   : > { %4941 = vsyncadd (%p5074_p4), %s379_s10, 4294963200 }
  0x43   : > { %4943 = dma.done.wait (%p61_p1), [#allocation6], 1024  }
  0x44   : > { %4945 = vsyncadd (%p61_p1), [#allocation6], 4294966272 }
  0x45   : > { %4947 = dma.done.wait (%p61_p1), [#allocation9], 10240  }
  0x46   : > { %4949 = vsyncadd (%p61_p1), [#allocation9], 4294957056  ;;  %v4518_v0 = vld [vmem:[#allocation7 + $0x38] sm:$0xff]  ;;  %v4517_v1 = vld [vmem:[#allocation7 + $0x30] sm:$0xff]  ;;  %v4985_v38 = vmov 0.0|0.0   ;;  %v4986_v46 = vmov 0.0   ;;  %v1041_v62 = vlaneseq }
  0x47   : > { %798 = vmatpush.bf16.msra.mxu0 %v4518_v0  ;;  %4600 = vmatpush.bf16.msra.mxu1 %v4518_v0  ;;  %v4516_v2 = vld [vmem:[#allocation7 + $0x28] sm:$0xff]  ;;  %v4515_v3 = vld [vmem:[#allocation7 + $0x20] sm:$0xff]  ;;  %v4514_v4 = vld [vmem:[#allocation7 + $0x18] sm:$0xff]  ;;  %v1823_v39 = vunpack.c.l.b16 %v4985_v38  ;;  %v1456_v47 = vrot.slane %v4986_v46, 1  ;;  %v1601_v48 = vrot.slane %v4986_v46, 2  ;;  %vm1455_vm1 = vcmask 1046528  }
  0x48   : > { %4601 = vmatpush.bf16.msra.mxu2 %v4518_v0  ;;  %v4513_v5 = vld [vmem:[#allocation7 + $0x10] sm:$0xff]  ;;  %v4512_v6 = vld [vmem:[#allocation7 + $0x8] sm:$0xff]  ;;  %v4511_v7 = vld [vmem:[#allocation7] sm:$0xff]  ;;  %vm1600_vm2 = vcmask 1045504   ;;  %s5994_s29 = scalar_lea.vmem [#allocation11], %s3968_s27  ;;  %s4599_s14 = sshll.u32 %s4968_s30, 8 }
  0x49   : > { %v4475_v8 = vld [vmem:[%s5168_s17] sm:$0xff]  ;;  %v4476_v9 = vld [vmem:[%s5168_s17 + $0x8] sm:$0xff]  ;;  %v4477_v10 = vld [vmem:[%s5168_s17 + $0x10] sm:$0xff]  ;;  %v5204_v41 = vpack.c.b16 %v1823_v39, %v1823_v39  ;;  %v1568_v50 = vpack.c.bf16 %v1456_v47, %v1456_v47  ;;  %v1713_v51 = vpack.c.bf16 %v1601_v48, %v1601_v48  ;;  %s3812_s27 = scalar_lea.hbm %s6150_s8, %s4599_s14  ;;  %s3813_s10 = sshll.u32 %s5994_s29, 4  ;;  %s3814_s10 = int_to_ptr.vmem [resolvable:$true] %s3813_s10 }
  0x4a   : > { %v4478_v11 = vld [vmem:[%s5168_s17 + $0x18] sm:$0xff]  ;;  %v4479_v12 = vld [vmem:[%s5168_s17 + $0x20] sm:$0xff]  ;;  %v4480_v13 = vld [vmem:[%s5168_s17 + $0x28] sm:$0xff]  ;;  %s3815_s11 = sshll.u32 %s3812_s27, 4  ;;  %s3798_s13 = scalar_lea.sflag [#allocation4], %s5164_s6  ;;  %s3816_s11 = int_to_ptr.hbm [resolvable:$true] %s3815_s11 }
  0x4b   : > { %799 = vmatpush.bf16.msra.mxu0 %v4517_v1  ;;  %4602 = vmatpush.bf16.msra.mxu1 %v4517_v1  ;;  %v4481_v14 = vld [vmem:[%s5168_s17 + $0x30] sm:$0xff]  ;;  %v4508_v15 = vld [vmem:[%s5168_s17 + $0x108] sm:$0xff]  ;;  %v4526_v16 = vld [vmem:[#allocation8 + $0x38] sm:$0xff]  ;;  %6217 = vst [vmem:[#allocation23_spill] sm:$0xff] %v5204_v41  ;;  %v1919_v54 = vunpack.c.l.b16 %v1568_v50  ;;  %v2015_v55 = vunpack.c.l.b16 %v1713_v51  ;;  %s4896_s2 = sshra.s32 %s3816_s11, 4  ;;  %s4902_s23 = scalar_lea.hbm %s6150_s8, 512  ;;  %s4897_s2 = int_to_ptr.hbm [resolvable:$true] %s4896_s2 }
  0x4c   : > { %4603 = vmatpush.bf16.msra.mxu2 %v4517_v1  ;;  %v4525_v17 = vld [vmem:[#allocation8 + $0x30] sm:$0xff]  ;;  %v4524_v18 = vld [vmem:[#allocation8 + $0x28] sm:$0xff]  ;;  %v4523_v19 = vld [vmem:[#allocation8 + $0x20] sm:$0xff]  ;;  %s4898_s30 = scalar_lea.hbm %s4897_s2, 256  ;;  %p4903_p8 = scmp.lt.s32.totalorder %s4897_s2, %s6150_s8 }
  0x4d   : > { %v4534_v20 = vld [vmem:[#allocation8 + $0x78] sm:$0xff]  ;;  %v4509_v23 = vld [vmem:[%s5168_s17 + $0x110] sm:$0xff]  ;;  %v4532_v28 = vld [vmem:[#allocation8 + $0x68] sm:$0xff]  ;;  %v5207_v56 = vpack.c.b16 %v1919_v54, %v1919_v54  ;;  %v5209_v57 = vpack.c.b16 %v2015_v55, %v2015_v55  ;;  %p4899_p1 = scmp.ne.s32.totalorder %s4897_s2, %s4898_s30  ;;  %p4904_p12 = scmp.lt.s32.totalorder %s4902_s23, %s4898_s30 }
  0x4e   : > { %v4542_v21 = vld [vmem:[#allocation8 + $0xb8] sm:$0xff]  ;;  %v4533_v25 = vld [vmem:[#allocation8 + $0x70] sm:$0xff]  ;;  %v4540_v29 = vld [vmem:[#allocation8 + $0xa8] sm:$0xff] }
  0x4f   : > { %800 = vmatpush.bf16.msra.mxu0 %v4516_v2  ;;  %4604 = vmatpush.bf16.msra.mxu1 %v4516_v2  ;;  %v4482_v22 = vld [vmem:[%s5168_s17 + $0x38] sm:$0xff]  ;;  %v4541_v26 = vld [vmem:[#allocation8 + $0xb0] sm:$0xff]  ;;  %v4520_v30 = vld [vmem:[#allocation8 + $0x8] sm:$0xff]  ;;  %6218 = vst [vmem:[#allocation24_spill] sm:$0xff] %v5207_v56  ;;  %p4900_p2 = pnand %p4899_p1, %p5130_p5  ;;  %p4905_p13 = por %p4904_p12, %p4903_p8 }
  0x50   : > { %4605 = vmatpush.bf16.msra.mxu2 %v4516_v2  ;;  %2873 = vmatpush.bf16.msra.mxu3 %v4542_v21  ;;  %v4522_v24 = vld [vmem:[#allocation8 + $0x18] sm:$0xff]  ;;  %v4521_v27 = vld [vmem:[#allocation8 + $0x10] sm:$0xff]  ;;  %v4531_v31 = vld [vmem:[#allocation8 + $0x60] sm:$0xff]  ;;  %6219 = vst [vmem:[#allocation25_spill] sm:$0xff] %v5209_v57  ;;  %v5221_v2 = vshrl.u32 %v1041_v62, 7 }
  0x51   : > { %v4539_v32 = vld [vmem:[#allocation8 + $0xa0] sm:$0xff]  ;;  %v4510_v33 = vld [vmem:[%s5168_s17 + $0x118] sm:$0xff]  ;;  %v4529_v42 = vld [vmem:[#allocation8 + $0x50] sm:$0xff]  ;;  %p4901_p4 = pneg %p4900_p2 }
  0x52   : > { %v4519_v34 = vld [vmem:[#allocation8] sm:$0xff]  ;;  %v4530_v35 = vld [vmem:[#allocation8 + $0x58] sm:$0xff]  ;;  %v4537_v43 = vld [vmem:[#allocation8 + $0x90] sm:$0xff]  ;;  %6220 = vst [vmem:[#allocation26_spill] sm:$0xff] %v5221_v2  ;;  %vm1099_vm0 = vcmp.ge.s32.totalorder %v5221_v2, 1 }
  0x53   : > { %801 = vmatpush.bf16.msra.mxu0 %v4515_v3  ;;  %4606 = vmatpush.bf16.msra.mxu1 %v4515_v3  ;;  %v4538_v36 = vld [vmem:[#allocation8 + $0x98] sm:$0xff]  ;;  %v4483_v37 = vld [vmem:[%s5168_s17 + $0x40] sm:$0xff]  ;;  %v4528_v44 = vld [vmem:[#allocation8 + $0x48] sm:$0xff]  ;;  %p4906_p0 = pnand %p4905_p13, %p4901_p4 }
  0x54   : > { %4607 = vmatpush.bf16.msra.mxu2 %v4515_v3  ;;  %2874 = vmatpush.bf16.msra.mxu3 %v4541_v26  ;;  %v4536_v45 = vld [vmem:[#allocation8 + $0x88] sm:$0xff]  ;;  %v4527_v52 = vld [vmem:[#allocation8 + $0x40] sm:$0xff]  ;;  %v4485_v63 = vld [vmem:[%s5168_s17 + $0x50] sm:$0xff] }
  0x55   : > { %v4535_v53 = vld [vmem:[#allocation8 + $0x80] sm:$0xff]  ;;  %v4484_v58 = vld [vmem:[%s5168_s17 + $0x48] sm:$0xff] }
  0x56   : > { %v5217_v61 = vld [vmem:[%s6145_s3] ss:$0 sm:$0xff] }
  0x57   : > { %802 = vmatpush.bf16.msra.mxu0 %v4514_v4  ;;  %4608 = vmatpush.bf16.msra.mxu1 %v4514_v4 }
  0x58   : > { %4609 = vmatpush.bf16.msra.mxu2 %v4514_v4  ;;  %2875 = vmatpush.bf16.msra.mxu3 %v4540_v29 }
  0x5b   : > { %803 = vmatpush.bf16.msra.mxu0 %v4513_v5  ;;  %4610 = vmatpush.bf16.msra.mxu1 %v4513_v5 }
  0x5c   : > { %4611 = vmatpush.bf16.msra.mxu2 %v4513_v5  ;;  %2876 = vmatpush.bf16.msra.mxu3 %v4539_v32 }
  0x5f   : > { %804 = vmatpush.bf16.msra.mxu0 %v4512_v6  ;;  %4612 = vmatpush.bf16.msra.mxu1 %v4512_v6 }
  0x60   : > { %4613 = vmatpush.bf16.msra.mxu2 %v4512_v6  ;;  %2877 = vmatpush.bf16.msra.mxu3 %v4538_v36 }
  0x63   : > { %805 = vmatpush.bf16.msra.mxu0 %v4511_v7  ;;  %4614 = vmatpush.bf16.msra.mxu1 %v4511_v7 }
  0x64   : > { %4615 = vmatpush.bf16.msra.mxu2 %v4511_v7  ;;  %2878 = vmatpush.bf16.msra.mxu3 %v4537_v43 }
  0x66   : > { %806 = vmatmul.bf16.vlgmr.msra.gmra.mxu0 %v4475_v8  ;;  %955 = vmatmul.bf16.vlgmr.msra.gmra.mxu1 %v4508_v15 }
  0x67   : > { %2695 = vmatpush.bf16.msrb.mxu1 %v4526_v16  ;;  %964 = vmatmul.bf16.vlgmr.msra.gmra.mxu2 %v4510_v33 }
  0x68   : > { %2784 = vmatpush.bf16.msrb.mxu2 %v4534_v20  ;;  %2879 = vmatpush.bf16.msra.mxu3 %v4536_v45 }
  0x6b   : > { %2696 = vmatpush.bf16.msrb.mxu1 %v4525_v17 }
  0x6c   : > { %2785 = vmatpush.bf16.msrb.mxu2 %v4533_v25  ;;  %2880 = vmatpush.bf16.msra.mxu3 %v4535_v53 }
  0x6f   : > { %2697 = vmatpush.bf16.msrb.mxu1 %v4524_v18  ;;  %2881 = vmatmul.bf16.vlgmr.msra.gmra.mxu3 %v5209_v57 }
  0x70   : > { %2786 = vmatpush.bf16.msrb.mxu2 %v4532_v28 }
  0x73   : > { %2698 = vmatpush.bf16.msrb.mxu1 %v4523_v19 }
  0x74   : > { %2787 = vmatpush.bf16.msrb.mxu2 %v4531_v31 }
  0x76   : > { %811 = vmatmul.bf16.gmra.mxu0 %v4476_v9  ;;  %959 = vmatmul.bf16.gmra.mxu1 %v4509_v23 }
  0x77   : > { %2699 = vmatpush.bf16.msrb.mxu1 %v4522_v24 }
  0x78   : > { %2788 = vmatpush.bf16.msrb.mxu2 %v4530_v35 }
  0x7b   : > { %2700 = vmatpush.bf16.msrb.mxu1 %v4521_v27 }
  0x7c   : > { %2789 = vmatpush.bf16.msrb.mxu2 %v4529_v42 }
  0x7f   : > { %2701 = vmatpush.bf16.msrb.mxu1 %v4520_v30 }
  0x80   : > { %2790 = vmatpush.bf16.msrb.mxu2 %v4528_v44 }
  0x83   : > { %2702 = vmatpush.bf16.msrb.mxu1 %v4519_v34 }
  0x84   : > { %2791 = vmatpush.bf16.msrb.mxu2 %v4527_v52  ;;  %v4488_v52 = vld [vmem:[%s5168_s17 + $0x68] sm:$0xff] }
  0x86   : > { %815 = vmatmul.bf16.gmra.mxu0 %v4477_v10  ;;  %2703 = vmatmul.bf16.vlgmr.msrb.gmra.mxu1 %v5204_v41  ;;  %v5228_v10 = vadd.s32 16, %v5221_v2 }
  0x87   : > { %2792 = vmatmul.bf16.vlgmr.msrb.gmra.mxu2 %v5207_v56  ;;  %v4502_v56 = vld [vmem:[%s5168_s17 + $0xd8] sm:$0xff] }
  0x88   : > { %6221 = vst [vmem:[#allocation27_spill] sm:$0xff] %v5228_v10  ;;  %vm1158_vm3 = vcmp.le.s32.totalorder %v5228_v10, 16 }
  0x96   : > { %820 = vmatmul.bf16.gmra.mxu0 %v4478_v11  ;;  %v4486_v11 = vld [vmem:[%s5168_s17 + $0x58] sm:$0xff] }
  0xa6   : > { %824 = vmatmul.bf16.gmra.mxu0 %v4479_v12 }
  0xb6   : > { %829 = vmatmul.bf16.gmra.mxu0 %v4480_v13 }
  0xc6   : > { %833 = vmatmul.bf16.gmra.mxu0 %v4481_v14 }
  0xd6   : > { %838 = vmatmul.bf16.gmra.mxu0 %v4482_v22 }
  0xe3   : > { %v807_v40 = vpop.f32.mrf.mxu0 }
  0xe4   : > { %v4487_v40 = vld [vmem:[%s5168_s17 + $0x60] sm:$0xff] }
  0xe6   : > { %842 = vmatmul.bf16.gmra.mxu0 %v4483_v37 }
  0xeb   : > { %v809_v49 = vpop.f32.mrf.mxu0 }
  0xf3   : > { %v812_v59 = vpop.f32.mrf.mxu0 }
  0xf6   : > { %847 = vmatmul.bf16.gmra.mxu0 %v4484_v58 }
  0xfb   : > { %v814_v60 = vpop.f32.mrf.mxu0 }
 0x103   : > { %v816_v0 = vpop.f32.mrf.mxu0 }
 0x104   : > { %v817_v1 = vadd.f32 %v5217_v61, %v816_v0 }
 0x106   : > { %851 = vmatmul.bf16.gmra.mxu0 %v4485_v63  ;;  %v972_v3 = vmax.f32 %v817_v1, 0.0 }
 0x108   : > { %v1324_v4 = vsel %vm1099_vm0, %v972_v3, 0.0 }
 0x109   : > { %v1377_v8 = vpack.c.bf16 %v1324_v4, %v1324_v4  ;;  %v1461_v19 = vrot.slane %v1324_v4, 1  ;;  %v1606_v20 = vrot.slane %v1324_v4, 2 }
 0x10b   : > { %v818_v5 = vpop.f32.mrf.mxu0  ;;  %v1825_v12 = vunpack.c.l.b16 %v1377_v8 }
 0x10c   : > { %v819_v6 = vadd.f32 %v5217_v61, %v818_v5 }
 0x10e   : > { %v973_v7 = vmax.f32 %v819_v6, 0.0 }
 0x110   : > { %v1378_v9 = vpack.c.bf16 %v973_v7, %v973_v7  ;;  %v1462_v14 = vrot.slane %v973_v7, 1  ;;  %v1607_v15 = vrot.slane %v973_v7, 2 }
 0x112   : > { %v1826_v13 = vunpack.c.l.b16 %v1378_v9  ;;  %v1463_v22 = vsel %vm1455_vm1, %v1461_v19, %v1462_v14  ;;  %v1608_v23 = vsel %vm1600_vm2, %v1606_v20, %v1607_v15 }
 0x113   : > { %v821_v16 = vpop.f32.mrf.mxu0  ;;  %v1570_v27 = vpack.c.bf16 %v1463_v22, %v1463_v22  ;;  %v1715_v28 = vpack.c.bf16 %v1608_v23, %v1608_v23  ;;  %v4489_v22 = vld [vmem:[%s5168_s17 + $0x70] sm:$0xff] }
 0x114   : > { %v822_v17 = vadd.f32 %v5217_v61, %v821_v16  ;;  %v5232_v18 = vpack.c.b16 %v1826_v13, %v1825_v12 }
 0x115   : > { %v1921_v34 = vunpack.c.l.b16 %v1570_v27  ;;  %v2017_v36 = vunpack.c.l.b16 %v1715_v28 }
 0x116   : > { %v974_v21 = vmax.f32 %v822_v17, 0.0  ;;  %856 = vmatmul.bf16.gmra.mxu0 %v4486_v11  ;;  %2708 = vmatmul.bf16.gmra.mxu1 %v5232_v18 }
 0x118   : > { %v1326_v24 = vsel %vm1158_vm3, %v974_v21, 0.0 }
 0x119   : > { %v1464_v25 = vrot.slane %v1326_v24, 1  ;;  %v1609_v26 = vrot.slane %v1326_v24, 2  ;;  %v5271_v24 = vpop.f32.mrf.mxu1 }
 0x11a   : > { %6222 = vst [vmem:[#allocation28_spill] sm:$0xff] %v5271_v24 }
 0x11b   : > { %v823_v29 = vpop.f32.mrf.mxu0  ;;  %v1465_v30 = vsel %vm1455_vm1, %v1462_v14, %v1464_v25  ;;  %v1610_v31 = vsel %vm1600_vm2, %v1607_v15, %v1609_v26 }
 0x11c   : > { %v1571_v32 = vpack.c.bf16 %v1465_v30, %v1465_v30  ;;  %v1716_v33 = vpack.c.bf16 %v1610_v31, %v1610_v31 }
 0x11e   : > { %v1922_v35 = vunpack.c.l.b16 %v1571_v32  ;;  %v2018_v37 = vunpack.c.l.b16 %v1716_v33 }
 0x120   : > { %v5242_v38 = vpack.c.b16 %v1922_v35, %v1921_v34  ;;  %v5244_v39 = vpack.c.b16 %v2018_v37, %v2017_v36  ;;  %v4490_v35 = vld [vmem:[%s5168_s17 + $0x78] sm:$0xff] }
 0x121   : > { %v958_v29 = vpop.f32.mrf.mxu1 }
 0x122   : > { %2797 = vmatmul.bf16.gmra.mxu2 %v5242_v38  ;;  %2886 = vmatmul.bf16.gmra.mxu3 %v5244_v39 }
 0x123   : > { %v825_v42 = vpop.f32.mrf.mxu0 }
 0x124   : > { %v826_v43 = vadd.f32 %v5217_v61, %v825_v42 }
 0x126   : > { %860 = vmatmul.bf16.gmra.mxu0 %v4487_v40  ;;  %v975_v44 = vmax.f32 %v826_v43, 0.0 }
 0x128   : > { %v1327_v45 = vsel %vm1099_vm0, %v975_v44, 0.0 }
 0x129   : > { %v1379_v48 = vpack.c.bf16 %v1327_v45, %v1327_v45  ;;  %v1466_v62 = vrot.slane %v1327_v45, 1  ;;  %v1611_v63 = vrot.slane %v1327_v45, 2  ;;  %v960_v43 = vpop.f32.mrf.mxu1 }
 0x12b   : > { %v827_v46 = vpop.f32.mrf.mxu0  ;;  %v1827_v51 = vunpack.c.l.b16 %v1379_v48 }
 0x12c   : > { %v828_v47 = vadd.f32 %v5217_v61, %v827_v46 }
 0x12e   : > { %v976_v49 = vmax.f32 %v828_v47, 0.0 }
 0x130   : > { %v1380_v50 = vpack.c.bf16 %v976_v49, %v976_v49  ;;  %v1467_v54 = vrot.slane %v976_v49, 1  ;;  %v1612_v55 = vrot.slane %v976_v49, 2 }
 0x132   : > { %v1828_v53 = vunpack.c.l.b16 %v1380_v50  ;;  %v1468_v1 = vsel %vm1455_vm1, %v1466_v62, %v1467_v54  ;;  %v1613_v3 = vsel %vm1600_vm2, %v1611_v63, %v1612_v55  ;;  %v962_v63 = vpop.f32.mrf.mxu1 }
 0x133   : > { %v830_v58 = vpop.f32.mrf.mxu0  ;;  %v1572_v7 = vpack.c.bf16 %v1468_v1, %v1468_v1  ;;  %v1717_v8 = vpack.c.bf16 %v1613_v3, %v1613_v3 }
 0x134   : > { %v831_v59 = vadd.f32 %v5217_v61, %v830_v58  ;;  %v5255_v60 = vpack.c.b16 %v1828_v53, %v1827_v51 }
 0x135   : > { %v1923_v15 = vunpack.c.l.b16 %v1572_v7  ;;  %v2019_v17 = vunpack.c.l.b16 %v1717_v8 }
 0x136   : > { %v977_v0 = vmax.f32 %v831_v59, 0.0  ;;  %865 = vmatmul.bf16.gmra.mxu0 %v4488_v52  ;;  %2713 = vmatmul.bf16.gmra.mxu1 %v5255_v60 }
 0x138   : > { %v1329_v4 = vsel %vm1158_vm3, %v977_v0, 0.0 }
 0x139   : > { %v1469_v5 = vrot.slane %v1329_v4, 1  ;;  %v1614_v6 = vrot.slane %v1329_v4, 2 }
 0x13b   : > { %v832_v9 = vpop.f32.mrf.mxu0  ;;  %v1470_v11 = vsel %vm1455_vm1, %v1467_v54, %v1469_v5  ;;  %v1615_v12 = vsel %vm1600_vm2, %v1612_v55, %v1614_v6 }
 0x13c   : > { %v1573_v13 = vpack.c.bf16 %v1470_v11, %v1470_v11  ;;  %v1718_v14 = vpack.c.bf16 %v1615_v12, %v1615_v12  ;;  %v965_v9 = vpop.f32.mrf.mxu2  ;;  %v4491_v11 = vld [vmem:[%s5168_s17 + $0x80] sm:$0xff] }
 0x13d   : > { %v4493_v9 = vld [vmem:[%s5168_s17 + $0x90] sm:$0xff] }
 0x13e   : > { %v1924_v16 = vunpack.c.l.b16 %v1573_v13  ;;  %v2020_v19 = vunpack.c.l.b16 %v1718_v14 }
 0x140   : > { %v5264_v20 = vpack.c.b16 %v1924_v16, %v1923_v15  ;;  %v5266_v21 = vpack.c.b16 %v2020_v19, %v2019_v17 }
 0x142   : > { %2802 = vmatmul.bf16.gmra.mxu2 %v5264_v20  ;;  %2891 = vmatmul.bf16.gmra.mxu3 %v5266_v21 }
 0x143   : > { %v834_v23 = vpop.f32.mrf.mxu0 }
 0x144   : > { %v835_v25 = vadd.f32 %v5217_v61, %v834_v23  ;;  %v967_v15 = vpop.f32.mrf.mxu2 }
 0x146   : > { %869 = vmatmul.bf16.gmra.mxu0 %v4489_v22  ;;  %v978_v26 = vmax.f32 %v835_v25, 0.0 }
 0x148   : > { %v1330_v27 = vsel %vm1099_vm0, %v978_v26, 0.0 }
 0x149   : > { %v1381_v31 = vpack.c.bf16 %v1330_v27, %v1330_v27  ;;  %v1471_v46 = vrot.slane %v1330_v27, 1  ;;  %v1616_v47 = vrot.slane %v1330_v27, 2  ;;  %v4492_v27 = vld [vmem:[%s5168_s17 + $0x88] sm:$0xff] }
 0x14b   : > { %v836_v28 = vpop.f32.mrf.mxu0  ;;  %v1829_v34 = vunpack.c.l.b16 %v1381_v31 }
 0x14c   : > { %v837_v30 = vadd.f32 %v5217_v61, %v836_v28 }
 0x14e   : > { %v979_v32 = vmax.f32 %v837_v30, 0.0 }
 0x150   : > { %v1382_v33 = vpack.c.bf16 %v979_v32, %v979_v32  ;;  %v1472_v37 = vrot.slane %v979_v32, 1  ;;  %v1617_v40 = vrot.slane %v979_v32, 2  ;;  %v5303_v32 = vld [vmem:[%s6147_s5] ss:$0 sm:$0xff] }
 0x152   : > { %v1830_v36 = vunpack.c.l.b16 %v1382_v33  ;;  %v1473_v49 = vsel %vm1455_vm1, %v1471_v46, %v1472_v37  ;;  %v1618_v50 = vsel %vm1600_vm2, %v1616_v47, %v1617_v40  ;;  %v2793_v47 = vpop.f32.mrf.mxu2 }
 0x153   : > { %v839_v42 = vpop.f32.mrf.mxu0  ;;  %v1574_v54 = vpack.c.bf16 %v1473_v49, %v1473_v49  ;;  %v1719_v55 = vpack.c.bf16 %v1618_v50, %v1618_v50 }
 0x154   : > { %v840_v44 = vadd.f32 %v5217_v61, %v839_v42  ;;  %v5279_v45 = vpack.c.b16 %v1830_v36, %v1829_v34 }
 0x155   : > { %v1925_v3 = vunpack.c.l.b16 %v1574_v54  ;;  %v2021_v5 = vunpack.c.l.b16 %v1719_v55 }
 0x156   : > { %v980_v48 = vmax.f32 %v840_v44, 0.0  ;;  %874 = vmatmul.bf16.gmra.mxu0 %v4490_v35  ;;  %2718 = vmatmul.bf16.gmra.mxu1 %v5279_v45  ;;  %v2704_v35 = vpop.f32.mrf.mxu1 }
 0x158   : > { %v1332_v51 = vsel %vm1158_vm3, %v980_v48, 0.0 }
 0x159   : > { %v1474_v52 = vrot.slane %v1332_v51, 1  ;;  %v1619_v53 = vrot.slane %v1332_v51, 2 }
 0x15b   : > { %v841_v58 = vpop.f32.mrf.mxu0  ;;  %v1475_v59 = vsel %vm1455_vm1, %v1472_v37, %v1474_v52  ;;  %v1620_v62 = vsel %vm1600_vm2, %v1617_v40, %v1619_v53  ;;  %v2705_v40 = vadd.f32 %v5303_v32, %v2704_v35  ;;  %v2882_v53 = vpop.f32.mrf.mxu3 }
 0x15c   : > { %v1575_v0 = vpack.c.bf16 %v1475_v59, %v1475_v59  ;;  %v1720_v1 = vpack.c.bf16 %v1620_v62, %v1620_v62 }
 0x15d   : > { %v2794_v50 = vadd.f32 %v2793_v47, %v2705_v40 }
 0x15e   : > { %v1926_v4 = vunpack.c.l.b16 %v1575_v0  ;;  %v2022_v6 = vunpack.c.l.b16 %v1720_v1 }
 0x15f   : > { %v5316_v59 = vadd.f32 %v2882_v53, %v2794_v50  ;;  %v5340_v50 = vpop.f32.mrf.mxu2 }
 0x160   : > { %v5288_v7 = vpack.c.b16 %v1926_v4, %v1925_v3  ;;  %v5290_v8 = vpack.c.b16 %v2022_v6, %v2021_v5 }
 0x162   : > { %2807 = vmatmul.bf16.gmra.mxu2 %v5288_v7  ;;  %2896 = vmatmul.bf16.gmra.mxu3 %v5290_v8 }
 0x163   : > { %v843_v12 = vpop.f32.mrf.mxu0 }
 0x164   : > { %v844_v13 = vadd.f32 %v5217_v61, %v843_v12 }
 0x166   : > { %878 = vmatmul.bf16.gmra.mxu0 %v4491_v11  ;;  %v981_v14 = vmax.f32 %v844_v13, 0.0 }
 0x168   : > { %v1333_v16 = vsel %vm1099_vm0, %v981_v14, 0.0 }
 0x169   : > { %v1383_v22 = vpack.c.bf16 %v1333_v16, %v1333_v16  ;;  %v1476_v36 = vrot.slane %v1333_v16, 1  ;;  %v1621_v37 = vrot.slane %v1333_v16, 2 }
 0x16b   : > { %v845_v17 = vpop.f32.mrf.mxu0  ;;  %v1831_v26 = vunpack.c.l.b16 %v1383_v22 }
 0x16c   : > { %v846_v19 = vadd.f32 %v5217_v61, %v845_v17 }
 0x16e   : > { %v982_v23 = vmax.f32 %v846_v19, 0.0 }
 0x170   : > { %v1384_v25 = vpack.c.bf16 %v982_v23, %v982_v23  ;;  %v1477_v29 = vrot.slane %v982_v23, 1  ;;  %v1622_v30 = vrot.slane %v982_v23, 2 }
 0x172   : > { %v1832_v28 = vunpack.c.l.b16 %v1384_v25  ;;  %v1478_v43 = vsel %vm1455_vm1, %v1476_v36, %v1477_v29  ;;  %v1623_v44 = vsel %vm1600_vm2, %v1621_v37, %v1622_v30  ;;  %v4494_v25 = vld [vmem:[%s5168_s17 + $0x98] sm:$0xff]  ;;  %v5334_v37 = vpop.f32.mrf.mxu1 }
 0x173   : > { %v848_v31 = vpop.f32.mrf.mxu0  ;;  %v1576_v51 = vpack.c.bf16 %v1478_v43, %v1478_v43  ;;  %v1721_v52 = vpack.c.bf16 %v1623_v44, %v1623_v44 }
 0x174   : > { %v849_v33 = vadd.f32 %v5217_v61, %v848_v31  ;;  %v5306_v34 = vpack.c.b16 %v1832_v28, %v1831_v26 }
 0x175   : > { %v1927_v0 = vunpack.c.l.b16 %v1576_v51  ;;  %v2023_v3 = vunpack.c.l.b16 %v1721_v52 }
 0x176   : > { %v983_v42 = vmax.f32 %v849_v33, 0.0  ;;  %883 = vmatmul.bf16.gmra.mxu0 %v4492_v27  ;;  %2723 = vmatmul.bf16.gmra.mxu1 %v5306_v34 }
 0x178   : > { %v1335_v46 = vsel %vm1158_vm3, %v983_v42, 0.0 }
 0x179   : > { %v1479_v48 = vrot.slane %v1335_v46, 1  ;;  %v1624_v49 = vrot.slane %v1335_v46, 2 }
 0x17b   : > { %v850_v54 = vpop.f32.mrf.mxu0  ;;  %v1480_v55 = vsel %vm1455_vm1, %v1477_v29, %v1479_v48  ;;  %v1625_v58 = vsel %vm1600_vm2, %v1622_v30, %v1624_v49 }
 0x17c   : > { %v1577_v62 = vpack.c.bf16 %v1480_v55, %v1480_v55  ;;  %v1722_v63 = vpack.c.bf16 %v1625_v58, %v1625_v58  ;;  %v5344_v55 = vpop.f32.mrf.mxu3 }
 0x17e   : > { %v1928_v1 = vunpack.c.l.b16 %v1577_v62  ;;  %v2024_v4 = vunpack.c.l.b16 %v1722_v63 }
 0x180   : > { %v5318_v5 = vpack.c.b16 %v1928_v1, %v1927_v0  ;;  %v5320_v6 = vpack.c.b16 %v2024_v4, %v2023_v3 }
 0x182   : > { %2812 = vmatmul.bf16.gmra.mxu2 %v5318_v5  ;;  %2901 = vmatmul.bf16.gmra.mxu3 %v5320_v6 }
 0x183   : > { %v852_v11 = vpop.f32.mrf.mxu0 }
 0x184   : > { %v853_v12 = vadd.f32 %v5217_v61, %v852_v11 }
 0x186   : > { %887 = vmatmul.bf16.gmra.mxu0 %v4493_v9  ;;  %v984_v13 = vmax.f32 %v853_v12, 0.0  ;;  %v4495_v9 = vld [vmem:[%s5168_s17 + $0xa0] sm:$0xff] }
 0x188   : > { %v1336_v14 = vsel %vm1099_vm0, %v984_v13, 0.0 }
 0x189   : > { %v1385_v17 = vpack.c.bf16 %v1336_v14, %v1336_v14  ;;  %v1481_v33 = vrot.slane %v1336_v14, 1  ;;  %v1626_v35 = vrot.slane %v1336_v14, 2 }
 0x18b   : > { %v854_v15 = vpop.f32.mrf.mxu0  ;;  %v1833_v23 = vunpack.c.l.b16 %v1385_v17 }
 0x18c   : > { %v855_v16 = vadd.f32 %v5217_v61, %v854_v15 }
 0x18e   : > { %v985_v19 = vmax.f32 %v855_v16, 0.0 }
 0x190   : > { %v1386_v22 = vpack.c.bf16 %v985_v19, %v985_v19  ;;  %v1482_v27 = vrot.slane %v985_v19, 1  ;;  %v1627_v28 = vrot.slane %v985_v19, 2 }
 0x192   : > { %v1834_v26 = vunpack.c.l.b16 %v1386_v22  ;;  %v1483_v40 = vsel %vm1455_vm1, %v1481_v33, %v1482_v27  ;;  %v1628_v42 = vsel %vm1600_vm2, %v1626_v35, %v1627_v28 }
 0x193   : > { %v857_v29 = vpop.f32.mrf.mxu0  ;;  %v1578_v47 = vpack.c.bf16 %v1483_v40, %v1483_v40  ;;  %v1723_v48 = vpack.c.bf16 %v1628_v42, %v1628_v42  ;;  %v2709_v4 = vpop.f32.mrf.mxu1 }
 0x194   : > { %v858_v30 = vadd.f32 %v5217_v61, %v857_v29  ;;  %v5331_v31 = vpack.c.b16 %v1834_v26, %v1833_v23  ;;  %v2710_v12 = vadd.f32 %v5303_v32, %v2709_v4 }
 0x195   : > { %v1929_v58 = vunpack.c.l.b16 %v1578_v47  ;;  %v2025_v63 = vunpack.c.l.b16 %v1723_v48 }
 0x196   : > { %v986_v36 = vmax.f32 %v858_v30, 0.0  ;;  %892 = vmatmul.bf16.gmra.mxu0 %v4494_v25  ;;  %2728 = vmatmul.bf16.gmra.mxu1 %v5331_v31  ;;  %v4496_v30 = vld [vmem:[%s5168_s17 + $0xa8] sm:$0xff] }
 0x198   : > { %v1338_v43 = vsel %vm1158_vm3, %v986_v36, 0.0 }
 0x199   : > { %v1484_v44 = vrot.slane %v1338_v43, 1  ;;  %v1629_v46 = vrot.slane %v1338_v43, 2 }
 0x19b   : > { %v859_v49 = vpop.f32.mrf.mxu0  ;;  %v1485_v51 = vsel %vm1455_vm1, %v1482_v27, %v1484_v44  ;;  %v1630_v52 = vsel %vm1600_vm2, %v1627_v28, %v1629_v46 }
 0x19c   : > { %v1579_v53 = vpack.c.bf16 %v1485_v51, %v1485_v51  ;;  %v1724_v54 = vpack.c.bf16 %v1630_v52, %v1630_v52  ;;  %v5369_v52 = vpop.f32.mrf.mxu1 }
 0x19e   : > { %v1930_v62 = vunpack.c.l.b16 %v1579_v53  ;;  %v2026_v0 = vunpack.c.l.b16 %v1724_v54 }
 0x1a0   : > { %v5346_v1 = vpack.c.b16 %v1930_v62, %v1929_v58  ;;  %v5348_v3 = vpack.c.b16 %v2026_v0, %v2025_v63 }
 0x1a2   : > { %2817 = vmatmul.bf16.gmra.mxu2 %v5346_v1  ;;  %2906 = vmatmul.bf16.gmra.mxu3 %v5348_v3 }
 0x1a3   : > { %v861_v11 = vpop.f32.mrf.mxu0 }
 0x1a4   : > { %v862_v13 = vadd.f32 %v5217_v61, %v861_v11 }
 0x1a5   : > { %v2798_v14 = vpop.f32.mrf.mxu2  ;;  %v2887_v17 = vpop.f32.mrf.mxu3 }
 0x1a6   : > { %v2799_v15 = vadd.f32 %v2798_v14, %v2710_v12  ;;  %896 = vmatmul.bf16.gmra.mxu0 %v4495_v9  ;;  %v987_v16 = vmax.f32 %v862_v13, 0.0 }
 0x1a8   : > { %v5355_v19 = vadd.f32 %v2887_v17, %v2799_v15  ;;  %v1339_v22 = vsel %vm1099_vm0, %v987_v16, 0.0 }
 0x1a9   : > { %v1387_v26 = vpack.c.bf16 %v1339_v22, %v1339_v22  ;;  %v1486_v44 = vrot.slane %v1339_v22, 1  ;;  %v1631_v46 = vrot.slane %v1339_v22, 2 }
 0x1ab   : > { %v863_v23 = vpop.f32.mrf.mxu0  ;;  %v1835_v29 = vunpack.c.l.b16 %v1387_v26  ;;  %v4497_v26 = vld [vmem:[%s5168_s17 + $0xb0] sm:$0xff] }
 0x1ac   : > { %v864_v25 = vadd.f32 %v5217_v61, %v863_v23 }
 0x1ad   : > { %v5373_v12 = vpop.f32.mrf.mxu2  ;;  %v5375_v17 = vpop.f32.mrf.mxu3 }
 0x1ae   : > { %v988_v27 = vmax.f32 %v864_v25, 0.0  ;;  %6223 = vst [vmem:[#allocation29_spill] sm:$0xff] %v5375_v17 }
 0x1b0   : > { %v1388_v28 = vpack.c.bf16 %v988_v27, %v988_v27  ;;  %v1487_v35 = vrot.slane %v988_v27, 1  ;;  %v1632_v36 = vrot.slane %v988_v27, 2 }
 0x1b2   : > { %v1836_v33 = vunpack.c.l.b16 %v1388_v28  ;;  %v1488_v48 = vsel %vm1455_vm1, %v1486_v44, %v1487_v35  ;;  %v1633_v49 = vsel %vm1600_vm2, %v1631_v46, %v1632_v36 }
 0x1b3   : > { %v866_v40 = vpop.f32.mrf.mxu0  ;;  %v1580_v58 = vpack.c.bf16 %v1488_v48, %v1488_v48  ;;  %v1725_v62 = vpack.c.bf16 %v1633_v49, %v1633_v49  ;;  %v2714_v25 = vpop.f32.mrf.mxu1 }
 0x1b4   : > { %v867_v42 = vadd.f32 %v5217_v61, %v866_v40  ;;  %v5362_v43 = vpack.c.b16 %v1836_v33, %v1835_v29  ;;  %v2715_v28 = vadd.f32 %v5303_v32, %v2714_v25 }
 0x1b5   : > { %v1931_v13 = vunpack.c.l.b16 %v1580_v58  ;;  %v2027_v15 = vunpack.c.l.b16 %v1725_v62 }
 0x1b6   : > { %v989_v47 = vmax.f32 %v867_v42, 0.0  ;;  %901 = vmatmul.bf16.gmra.mxu0 %v4496_v30  ;;  %2733 = vmatmul.bf16.gmra.mxu1 %v5362_v43 }
 0x1b8   : > { %v1341_v51 = vsel %vm1158_vm3, %v989_v47, 0.0 }
 0x1b9   : > { %v1489_v53 = vrot.slane %v1341_v51, 1  ;;  %v1634_v54 = vrot.slane %v1341_v51, 2  ;;  %v4558_v51 = vld [vmem:[#allocation8 + $0x138] sm:$0xff] }
 0x1ba   : > { %3051 = vmatpush.bf16.msra.mxu2 %v4558_v51 }
 0x1bb   : > { %v868_v63 = vpop.f32.mrf.mxu0  ;;  %v1490_v0 = vsel %vm1455_vm1, %v1487_v35, %v1489_v53  ;;  %v1635_v4 = vsel %vm1600_vm2, %v1632_v36, %v1634_v54  ;;  %v4498_v54 = vld [vmem:[%s5168_s17 + $0xb8] sm:$0xff] }
 0x1bc   : > { %v1581_v9 = vpack.c.bf16 %v1490_v0, %v1490_v0  ;;  %v1726_v11 = vpack.c.bf16 %v1635_v4, %v1635_v4 }
 0x1be   : > { %v1932_v14 = vunpack.c.l.b16 %v1581_v9  ;;  %v2028_v16 = vunpack.c.l.b16 %v1726_v11 }
 0x1c0   : > { %v5377_v22 = vpack.c.b16 %v1932_v14, %v1931_v13  ;;  %v5379_v23 = vpack.c.b16 %v2028_v16, %v2027_v15 }
 0x1c2   : > { %2822 = vmatmul.bf16.gmra.mxu2 %v5377_v22  ;;  %2911 = vmatmul.bf16.gmra.mxu3 %v5379_v23 }
 0x1c3   : > { %v870_v27 = vpop.f32.mrf.mxu0 }
 0x1c4   : > { %v871_v29 = vadd.f32 %v5217_v61, %v870_v27 }
 0x1c5   : > { %v2803_v30 = vpop.f32.mrf.mxu2  ;;  %v2892_v36 = vpop.f32.mrf.mxu3 }
 0x1c6   : > { %v2804_v33 = vadd.f32 %v2803_v30, %v2715_v28  ;;  %905 = vmatmul.bf16.gmra.mxu0 %v4497_v26  ;;  %v990_v35 = vmax.f32 %v871_v29, 0.0  ;;  %v5400_v26 = vpop.f32.mrf.mxu1  ;;  %v4566_v29 = vld [vmem:[#allocation8 + $0x178] sm:$0xff] }
 0x1c7   : > { %6224 = vst [vmem:[#allocation30_spill] sm:$0xff] %v5400_v26  ;;  %v4550_v30 = vld [vmem:[#allocation8 + $0xf8] sm:$0xff]  ;;  %3140 = vmatpush.bf16.msrb.mxu3 %v4566_v29 }
 0x1c8   : > { %v5386_v40 = vadd.f32 %v2892_v36, %v2804_v33  ;;  %v1342_v42 = vsel %vm1099_vm0, %v990_v35, 0.0  ;;  %2962 = vmatpush.bf16.msra.mxu1 %v4550_v30 }
 0x1c9   : > { %v1389_v47 = vpack.c.bf16 %v1342_v42, %v1342_v42  ;;  %v1491_v11 = vrot.slane %v1342_v42, 1  ;;  %v1636_v13 = vrot.slane %v1342_v42, 2 }
 0x1cb   : > { %v872_v44 = vpop.f32.mrf.mxu0  ;;  %v1837_v53 = vunpack.c.l.b16 %v1389_v47 }
 0x1cc   : > { %v873_v46 = vadd.f32 %v5217_v61, %v872_v44 }
 0x1ce   : > { %v991_v48 = vmax.f32 %v873_v46, 0.0 }
 0x1d0   : > { %v1390_v49 = vpack.c.bf16 %v991_v48, %v991_v48  ;;  %v1492_v62 = vrot.slane %v991_v48, 1  ;;  %v1637_v63 = vrot.slane %v991_v48, 2  ;;  %v5404_v48 = vpop.f32.mrf.mxu2 }
 0x1d1   : > { %6225 = vst [vmem:[#allocation31_spill] sm:$0xff] %v5404_v48 }
 0x1d2   : > { %v1838_v58 = vunpack.c.l.b16 %v1390_v49  ;;  %v1493_v15 = vsel %vm1455_vm1, %v1491_v11, %v1492_v62  ;;  %v1638_v16 = vsel %vm1600_vm2, %v1636_v13, %v1637_v63 }
 0x1d3   : > { %v875_v0 = vpop.f32.mrf.mxu0  ;;  %v1582_v33 = vpack.c.bf16 %v1493_v15, %v1493_v15  ;;  %v1727_v35 = vpack.c.bf16 %v1638_v16, %v1638_v16 }
 0x1d4   : > { %v876_v4 = vadd.f32 %v5217_v61, %v875_v0  ;;  %v5393_v9 = vpack.c.b16 %v1838_v58, %v1837_v53  ;;  %v5406_v58 = vpop.f32.mrf.mxu3 }
 0x1d5   : > { %v1933_v49 = vunpack.c.l.b16 %v1582_v33  ;;  %v2029_v53 = vunpack.c.l.b16 %v1727_v35  ;;  %6226 = vst [vmem:[#allocation32_spill] sm:$0xff] %v5406_v58 }
 0x1d6   : > { %v992_v14 = vmax.f32 %v876_v4, 0.0  ;;  %910 = vmatmul.bf16.gmra.mxu0 %v4498_v54  ;;  %2738 = vmatmul.bf16.gmra.mxu1 %v5393_v9 }
 0x1d8   : > { %v1344_v25 = vsel %vm1158_vm3, %v992_v14, 0.0 }
 0x1d9   : > { %v1494_v27 = vrot.slane %v1344_v25, 1  ;;  %v1639_v28 = vrot.slane %v1344_v25, 2 }
 0x1db   : > { %v877_v36 = vpop.f32.mrf.mxu0  ;;  %v1495_v42 = vsel %vm1455_vm1, %v1492_v62, %v1494_v27  ;;  %v1640_v44 = vsel %vm1600_vm2, %v1637_v63, %v1639_v28  ;;  %v2719_v62 = vpop.f32.mrf.mxu1  ;;  %v4499_v63 = vld [vmem:[%s5168_s17 + $0xc0] sm:$0xff] }
 0x1dc   : > { %v1583_v46 = vpack.c.bf16 %v1495_v42, %v1495_v42  ;;  %v1728_v47 = vpack.c.bf16 %v1640_v44, %v1640_v44  ;;  %v2720_v13 = vadd.f32 %v5303_v32, %v2719_v62  ;;  %v4557_v44 = vld [vmem:[#allocation8 + $0x130] sm:$0xff] }
 0x1dd   : > { %3052 = vmatpush.bf16.msra.mxu2 %v4557_v44 }
 0x1de   : > { %v1934_v51 = vunpack.c.l.b16 %v1583_v46  ;;  %v2030_v54 = vunpack.c.l.b16 %v1728_v47  ;;  %v4500_v47 = vld [vmem:[%s5168_s17 + $0xc8] sm:$0xff] }
 0x1e0   : > { %v5408_v0 = vpack.c.b16 %v1934_v51, %v1933_v49  ;;  %v5410_v4 = vpack.c.b16 %v2030_v54, %v2029_v53 }
 0x1e2   : > { %6227 = vst [vmem:[#allocation33_spill] sm:$0xff] %v5408_v0  ;;  %2827 = vmatmul.bf16.gmra.mxu2 %v5408_v0  ;;  %2916 = vmatmul.bf16.gmra.mxu3 %v5410_v4 }
 0x1e3   : > { %6228 = vst [vmem:[#allocation34_spill] sm:$0xff] %v5410_v4  ;;  %v879_v11 = vpop.f32.mrf.mxu0 }
 0x1e4   : > { %v880_v14 = vadd.f32 %v5217_v61, %v879_v11 }
 0x1e5   : > { %v2808_v15 = vpop.f32.mrf.mxu2  ;;  %v2897_v27 = vpop.f32.mrf.mxu3 }
 0x1e6   : > { %v2809_v16 = vadd.f32 %v2808_v15, %v2720_v13  ;;  %914 = vmatmul.bf16.gmra.mxu0 %v4499_v63  ;;  %v993_v25 = vmax.f32 %v880_v14, 0.0 }
 0x1e8   : > { %v5417_v28 = vadd.f32 %v2897_v27, %v2809_v16  ;;  %v1345_v29 = vsel %vm1099_vm0, %v993_v25, 0.0  ;;  %v5431_v27 = vpop.f32.mrf.mxu1 }
 0x1e9   : > { %v1391_v35 = vpack.c.bf16 %v1345_v29, %v1345_v29  ;;  %v1496_v11 = vrot.slane %v1345_v29, 1  ;;  %v1641_v13 = vrot.slane %v1345_v29, 2  ;;  %6231 = vst [vmem:[#allocation37_spill] sm:$0xff] %v5431_v27 }
 0x1ea   : > { %6229 = vst [vmem:[#allocation35_spill] sm:$0xff] %v5417_v28 }
 0x1eb   : > { %v881_v30 = vpop.f32.mrf.mxu0  ;;  %v1839_v46 = vunpack.c.l.b16 %v1391_v35  ;;  %v4565_v35 = vld [vmem:[#allocation8 + $0x170] sm:$0xff] }
 0x1ec   : > { %v882_v33 = vadd.f32 %v5217_v61, %v881_v30  ;;  %3141 = vmatpush.bf16.msrb.mxu3 %v4565_v35 }
 0x1ed   : > { %v5437_v57 = vpop.f32.mrf.mxu3 }
 0x1ee   : > { %v994_v36 = vmax.f32 %v882_v33, 0.0  ;;  %6233 = vst [vmem:[#allocation39_spill] sm:$0xff] %v5437_v57 }
 0x1f0   : > { %v1392_v42 = vpack.c.bf16 %v994_v36, %v994_v36  ;;  %v1497_v51 = vrot.slane %v994_v36, 1  ;;  %v1642_v53 = vrot.slane %v994_v36, 2  ;;  %v4549_v36 = vld [vmem:[#allocation8 + $0xf0] sm:$0xff] }
 0x1f1   : > { %2963 = vmatpush.bf16.msra.mxu1 %v4549_v36 }
 0x1f2   : > { %v1840_v49 = vunpack.c.l.b16 %v1392_v42  ;;  %v1498_v15 = vsel %vm1455_vm1, %v1496_v11, %v1497_v51  ;;  %v1643_v16 = vsel %vm1600_vm2, %v1641_v13, %v1642_v53 }
 0x1f3   : > { %v884_v54 = vpop.f32.mrf.mxu0  ;;  %v1584_v42 = vpack.c.bf16 %v1498_v15, %v1498_v15  ;;  %v1729_v44 = vpack.c.bf16 %v1643_v16, %v1643_v16 }
 0x1f4   : > { %v885_v62 = vadd.f32 %v5217_v61, %v884_v54  ;;  %v5424_v63 = vpack.c.b16 %v1840_v49, %v1839_v46 }
 0x1f5   : > { %v1935_v11 = vunpack.c.l.b16 %v1584_v42 }
 0x1f6   : > { %6230 = vst [vmem:[#allocation36_spill] sm:$0xff] %v5424_v63  ;;  %v995_v14 = vmax.f32 %v885_v62, 0.0  ;;  %919 = vmatmul.bf16.gmra.mxu0 %v4500_v47  ;;  %2743 = vmatmul.bf16.gmra.mxu1 %v5424_v63  ;;  %v5435_v62 = vpop.f32.mrf.mxu2 }
 0x1f7   : > { %6232 = vst [vmem:[#allocation38_spill] sm:$0xff] %v5435_v62 }
 0x1f8   : > { %v1347_v25 = vsel %vm1158_vm3, %v995_v14, 0.0  ;;  %v2031_v14 = vunpack.c.l.b16 %v1729_v44 }
 0x1f9   : > { %v1499_v30 = vrot.slane %v1347_v25, 1  ;;  %v1644_v33 = vrot.slane %v1347_v25, 2 }
 0x1fb   : > { %v886_v29 = vpop.f32.mrf.mxu0  ;;  %v1500_v46 = vsel %vm1455_vm1, %v1497_v51, %v1499_v30  ;;  %v1645_v47 = vsel %vm1600_vm2, %v1642_v53, %v1644_v33  ;;  %v2724_v51 = vpop.f32.mrf.mxu1  ;;  %v4501_v53 = vld [vmem:[%s5168_s17 + $0xd0] sm:$0xff] }
 0x1fc   : > { %v1585_v49 = vpack.c.bf16 %v1500_v46, %v1500_v46  ;;  %v1730_v54 = vpack.c.bf16 %v1645_v47, %v1645_v47  ;;  %v2725_v33 = vadd.f32 %v5303_v32, %v2724_v51 }
 0x1fe   : > { %v1936_v13 = vunpack.c.l.b16 %v1585_v49  ;;  %v2032_v25 = vunpack.c.l.b16 %v1730_v54 }
 0x200   : > { %v5439_v15 = vpack.c.b16 %v1936_v13, %v1935_v11  ;;  %v5441_v16 = vpack.c.b16 %v2032_v25, %v2031_v14  ;;  %v4556_v25 = vld [vmem:[#allocation8 + $0x128] sm:$0xff] }
 0x201   : > { %3053 = vmatpush.bf16.msra.mxu2 %v4556_v25 }
 0x202   : > { %6234 = vst [vmem:[#allocation40_spill] sm:$0xff] %v5439_v15  ;;  %2832 = vmatmul.bf16.gmra.mxu2 %v5439_v15  ;;  %2921 = vmatmul.bf16.gmra.mxu3 %v5441_v16 }
 0x203   : > { %6235 = vst [vmem:[#allocation41_spill] sm:$0xff] %v5441_v16  ;;  %v888_v30 = vpop.f32.mrf.mxu0 }
 0x204   : > { %v889_v35 = vadd.f32 %v5217_v61, %v888_v30 }
 0x205   : > { %v2813_v36 = vpop.f32.mrf.mxu2  ;;  %v2902_v29 = vpop.f32.mrf.mxu3 }
 0x206   : > { %v2814_v42 = vadd.f32 %v2813_v36, %v2725_v33  ;;  %923 = vmatmul.bf16.gmra.mxu0 %v4501_v53  ;;  %v996_v44 = vmax.f32 %v889_v35, 0.0 }
 0x208   : > { %v5448_v46 = vadd.f32 %v2902_v29, %v2814_v42  ;;  %v1348_v47 = vsel %vm1099_vm0, %v996_v44, 0.0 }
 0x209   : > { %v1393_v11 = vpack.c.bf16 %v1348_v47, %v1348_v47  ;;  %v1501_v29 = vrot.slane %v1348_v47, 1  ;;  %v1646_v44 = vrot.slane %v1348_v47, 2 }
 0x20a   : > { %6236 = vst [vmem:[#allocation42_spill] sm:$0xff] %v5448_v46 }
 0x20b   : > { %v890_v49 = vpop.f32.mrf.mxu0  ;;  %v1841_v51 = vunpack.c.l.b16 %v1393_v11 }
 0x20c   : > { %v891_v54 = vadd.f32 %v5217_v61, %v890_v49 }
 0x20d   : > { %v5466_v57 = vpop.f32.mrf.mxu2  ;;  %v5468_v46 = vpop.f32.mrf.mxu3 }
 0x20e   : > { %v997_v13 = vmax.f32 %v891_v54, 0.0  ;;  %6238 = vst [vmem:[#allocation44_spill] sm:$0xff] %v5466_v57 }
 0x20f   : > { %6239 = vst [vmem:[#allocation45_spill] sm:$0xff] %v5468_v46  ;;  %v4504_v46 = vld [vmem:[%s5168_s17 + $0xe8] sm:$0xff] }
 0x210   : > { %v1394_v14 = vpack.c.bf16 %v997_v13, %v997_v13  ;;  %v1502_v33 = vrot.slane %v997_v13, 1  ;;  %v1647_v53 = vrot.slane %v997_v13, 2 }
 0x212   : > { %v1842_v30 = vunpack.c.l.b16 %v1394_v14  ;;  %v1503_v49 = vsel %vm1455_vm1, %v1501_v29, %v1502_v33  ;;  %v1648_v54 = vsel %vm1600_vm2, %v1646_v44, %v1647_v53  ;;  %v5462_v14 = vpop.f32.mrf.mxu1 }
 0x213   : > { %v893_v35 = vpop.f32.mrf.mxu0  ;;  %6237 = vst [vmem:[#allocation43_spill] sm:$0xff] %v5462_v14  ;;  %v1731_v24 = vpack.c.bf16 %v1648_v54, %v1648_v54 }
 0x214   : > { %v894_v36 = vadd.f32 %v5217_v61, %v893_v35  ;;  %v5455_v42 = vpack.c.b16 %v1842_v30, %v1841_v51  ;;  %v4564_v35 = vld [vmem:[#allocation8 + $0x168] sm:$0xff]  ;;  %v1586_v30 = vpack.c.bf16 %v1503_v49, %v1503_v49 }
 0x215   : > { %v4548_v51 = vld [vmem:[#allocation8 + $0xe8] sm:$0xff]  ;;  %3142 = vmatpush.bf16.msrb.mxu3 %v4564_v35  ;;  %v2033_v62 = vunpack.c.l.b16 %v1731_v24 }
 0x216   : > { %v998_v41 = vmax.f32 %v894_v36, 0.0  ;;  %928 = vmatmul.bf16.gmra.mxu0 %v4502_v56  ;;  %2748 = vmatmul.bf16.gmra.mxu1 %v5455_v42 }
 0x217   : > { %2964 = vmatpush.bf16.msra.mxu1 %v4548_v51 }
 0x218   : > { %v1350_v11 = vsel %vm1158_vm3, %v998_v41, 0.0  ;;  %v1937_v41 = vunpack.c.l.b16 %v1586_v30 }
 0x219   : > { %v1504_v13 = vrot.slane %v1350_v11, 1  ;;  %v1649_v25 = vrot.slane %v1350_v11, 2 }
 0x21b   : > { %v895_v47 = vpop.f32.mrf.mxu0  ;;  %v1505_v56 = vsel %vm1455_vm1, %v1502_v33, %v1504_v13  ;;  %v1650_v36 = vsel %vm1600_vm2, %v1647_v53, %v1649_v25  ;;  %v2729_v33 = vpop.f32.mrf.mxu1  ;;  %v4503_v53 = vld [vmem:[%s5168_s17 + $0xe0] sm:$0xff] }
 0x21c   : > { %v1587_v29 = vpack.c.bf16 %v1505_v56, %v1505_v56  ;;  %v1732_v44 = vpack.c.bf16 %v1650_v36, %v1650_v36  ;;  %v2730_v25 = vadd.f32 %v5303_v32, %v2729_v33 }
 0x21e   : > { %v1938_v14 = vunpack.c.l.b16 %v1587_v29  ;;  %v2034_v11 = vunpack.c.l.b16 %v1732_v44 }
 0x220   : > { %v5470_v49 = vpack.c.b16 %v1938_v14, %v1937_v41  ;;  %v5472_v54 = vpack.c.b16 %v2034_v11, %v2033_v62  ;;  %v4555_v11 = vld [vmem:[#allocation8 + $0x120] sm:$0xff] }
 0x221   : > { %3054 = vmatpush.bf16.msra.mxu2 %v4555_v11 }
 0x222   : > { %6240 = vst [vmem:[#allocation46_spill] sm:$0xff] %v5472_v54  ;;  %2837 = vmatmul.bf16.gmra.mxu2 %v5470_v49  ;;  %2926 = vmatmul.bf16.gmra.mxu3 %v5472_v54 }
 0x223   : > { %v897_v13 = vpop.f32.mrf.mxu0 }
 0x224   : > { %v898_v35 = vadd.f32 %v5217_v61, %v897_v13 }
 0x225   : > { %v2818_v24 = vpop.f32.mrf.mxu2  ;;  %v2907_v14 = vpop.f32.mrf.mxu3 }
 0x226   : > { %v2819_v51 = vadd.f32 %v2818_v24, %v2730_v25  ;;  %932 = vmatmul.bf16.gmra.mxu0 %v4503_v53  ;;  %v999_v30 = vmax.f32 %v898_v35, 0.0 }
 0x228   : > { %v5479_v47 = vadd.f32 %v2907_v14, %v2819_v51  ;;  %v1351_v62 = vsel %vm1099_vm0, %v999_v30, 0.0 }
 0x229   : > { %v1395_v29 = vpack.c.bf16 %v1351_v62, %v1351_v62  ;;  %v1506_v14 = vrot.slane %v1351_v62, 1  ;;  %v1651_v30 = vrot.slane %v1351_v62, 2 }
 0x22a   : > { %6241 = vst [vmem:[#allocation47_spill] sm:$0xff] %v5479_v47 }
 0x22b   : > { %v899_v56 = vpop.f32.mrf.mxu0  ;;  %v1843_v33 = vunpack.c.l.b16 %v1395_v29 }
 0x22c   : > { %v900_v36 = vadd.f32 %v5217_v61, %v899_v56 }
 0x22d   : > { %v5497_v47 = vpop.f32.mrf.mxu2  ;;  %v5499_v58 = vpop.f32.mrf.mxu3 }
 0x22e   : > { %v1000_v44 = vmax.f32 %v900_v36, 0.0  ;;  %6243 = vst [vmem:[#allocation49_spill] sm:$0xff] %v5497_v47  ;;  %v4506_v47 = vld [vmem:[%s5168_s17 + $0xf8] sm:$0xff] }
 0x22f   : > { %6244 = vst [vmem:[#allocation50_spill] sm:$0xff] %v5499_v58 }
 0x230   : > { %v1396_v41 = vpack.c.bf16 %v1000_v44, %v1000_v44  ;;  %v1507_v25 = vrot.slane %v1000_v44, 1  ;;  %v1652_v53 = vrot.slane %v1000_v44, 2 }
 0x232   : > { %v1844_v13 = vunpack.c.l.b16 %v1396_v41  ;;  %v1508_v56 = vsel %vm1455_vm1, %v1506_v14, %v1507_v25  ;;  %v1653_v36 = vsel %vm1600_vm2, %v1651_v30, %v1652_v53  ;;  %v5493_v41 = vpop.f32.mrf.mxu1 }
 0x233   : > { %v902_v35 = vpop.f32.mrf.mxu0  ;;  %6242 = vst [vmem:[#allocation48_spill] sm:$0xff] %v5493_v41 }
 0x234   : > { %v903_v24 = vadd.f32 %v5217_v61, %v902_v35  ;;  %v5486_v51 = vpack.c.b16 %v1844_v13, %v1843_v33  ;;  %v4563_v61 = vld [vmem:[#allocation8 + $0x160] sm:$0xff]  ;;  %v1588_v13 = vpack.c.bf16 %v1508_v56, %v1508_v56  ;;  %v1733_v35 = vpack.c.bf16 %v1653_v36, %v1653_v36 }
 0x235   : > { %v4547_v33 = vld [vmem:[#allocation8 + $0xe0] sm:$0xff]  ;;  %3143 = vmatpush.bf16.msrb.mxu3 %v4563_v61 }
 0x236   : > { %v1001_v57 = vmax.f32 %v903_v24, 0.0  ;;  %937 = vmatmul.bf16.gmra.mxu0 %v4504_v46  ;;  %2753 = vmatmul.bf16.gmra.mxu1 %v5486_v51  ;;  %v2035_v27 = vunpack.c.l.b16 %v1733_v35  ;;  %v5512_v61 = vld [vmem:[%s6145_s3] ss:$0 sm:$0xff] }
 0x237   : > { %2965 = vmatpush.bf16.msra.mxu1 %v4547_v33 }
 0x238   : > { %v1353_v29 = vsel %vm1158_vm3, %v1001_v57, 0.0  ;;  %v1939_v57 = vunpack.c.l.b16 %v1588_v13 }
 0x239   : > { %v1509_v44 = vrot.slane %v1353_v29, 1  ;;  %v1654_v11 = vrot.slane %v1353_v29, 2 }
 0x23b   : > { %v904_v62 = vpop.f32.mrf.mxu0  ;;  %v1510_v46 = vsel %vm1455_vm1, %v1507_v25, %v1509_v44  ;;  %v1655_v24 = vsel %vm1600_vm2, %v1652_v53, %v1654_v11  ;;  %v2734_v25 = vpop.f32.mrf.mxu1  ;;  %v4505_v53 = vld [vmem:[%s5168_s17 + $0xf0] sm:$0xff] }
 0x23c   : > { %v1589_v14 = vpack.c.bf16 %v1510_v46, %v1510_v46  ;;  %v1734_v30 = vpack.c.bf16 %v1655_v24, %v1655_v24  ;;  %v2735_v11 = vadd.f32 %v5303_v32, %v2734_v25  ;;  %v4554_v25 = vld [vmem:[#allocation8 + $0x118] sm:$0xff] }
 0x23d   : > { %3055 = vmatpush.bf16.msra.mxu2 %v4554_v25 }
 0x23e   : > { %v1940_v41 = vunpack.c.l.b16 %v1589_v14  ;;  %v2036_v29 = vunpack.c.l.b16 %v1734_v30 }
 0x240   : > { %v5501_v56 = vpack.c.b16 %v1940_v41, %v1939_v57  ;;  %v5503_v36 = vpack.c.b16 %v2036_v29, %v2035_v27 }
 0x242   : > { %2842 = vmatmul.bf16.gmra.mxu2 %v5501_v56  ;;  %2931 = vmatmul.bf16.gmra.mxu3 %v5503_v36 }
 0x243   : > { %v906_v44 = vpop.f32.mrf.mxu0 }
 0x244   : > { %v907_v41 = vadd.f32 %v5512_v61, %v906_v44 }
 0x245   : > { %v2823_v33 = vpop.f32.mrf.mxu2  ;;  %v2912_v35 = vpop.f32.mrf.mxu3 }
 0x246   : > { %v2824_v27 = vadd.f32 %v2823_v33, %v2735_v11  ;;  %941 = vmatmul.bf16.gmra.mxu0 %v4505_v53  ;;  %v1002_v13 = vmax.f32 %v907_v41, 0.0 }
 0x248   : > { %v5515_v62 = vadd.f32 %v2912_v35, %v2824_v27  ;;  %v1354_v46 = vsel %vm1099_vm0, %v1002_v13, 0.0 }
 0x249   : > { %v1397_v30 = vpack.c.bf16 %v1354_v46, %v1354_v46  ;;  %v1511_v35 = vrot.slane %v1354_v46, 1  ;;  %v1656_v13 = vrot.slane %v1354_v46, 2 }
 0x24a   : > { %6245 = vst [vmem:[#allocation51_spill] sm:$0xff] %v5515_v62 }
 0x24b   : > { %v908_v24 = vpop.f32.mrf.mxu0  ;;  %v1845_v58 = vunpack.c.l.b16 %v1397_v30 }
 0x24c   : > { %v909_v14 = vadd.f32 %v5512_v61, %v908_v24 }
 0x24e   : > { %v1003_v57 = vmax.f32 %v909_v14, 0.0 }
 0x250   : > { %v1398_v29 = vpack.c.bf16 %v1003_v57, %v1003_v57  ;;  %v1512_v11 = vrot.slane %v1003_v57, 1  ;;  %v1657_v53 = vrot.slane %v1003_v57, 2 }
 0x252   : > { %v1846_v44 = vunpack.c.l.b16 %v1398_v29  ;;  %v1513_v24 = vsel %vm1455_vm1, %v1511_v35, %v1512_v11  ;;  %v1658_v14 = vsel %vm1600_vm2, %v1656_v13, %v1657_v53  ;;  %v5529_v29 = vpop.f32.mrf.mxu1 }
 0x253   : > { %v911_v41 = vpop.f32.mrf.mxu0  ;;  %6247 = vst [vmem:[#allocation53_spill] sm:$0xff] %v5529_v29  ;;  %v1590_v48 = vpack.c.bf16 %v1513_v24, %v1513_v24  ;;  %v1735_v46 = vpack.c.bf16 %v1658_v14, %v1658_v14 }
 0x254   : > { %v912_v33 = vadd.f32 %v5512_v61, %v911_v41  ;;  %v5522_v27 = vpack.c.b16 %v1846_v44, %v1845_v58  ;;  %v4562_v41 = vld [vmem:[#allocation8 + $0x158] sm:$0xff] }
 0x255   : > { %v4546_v58 = vld [vmem:[#allocation8 + $0xd8] sm:$0xff]  ;;  %3144 = vmatpush.bf16.msrb.mxu3 %v4562_v41  ;;  %v1941_v29 = vunpack.c.l.b16 %v1590_v48  ;;  %v2037_v26 = vunpack.c.l.b16 %v1735_v46 }
 0x256   : > { %6246 = vst [vmem:[#allocation52_spill] sm:$0xff] %v5522_v27  ;;  %v1004_v62 = vmax.f32 %v912_v33, 0.0  ;;  %946 = vmatmul.bf16.gmra.mxu0 %v4506_v47  ;;  %2758 = vmatmul.bf16.gmra.mxu1 %v5522_v27  ;;  %v4598_v44 = vld [vmem:[#allocation10 + $0x38] sm:$0xff]  ;;  %v5535_v27 = vpop.f32.mrf.mxu3 }
 0x257   : > { %2966 = vmatpush.bf16.msra.mxu1 %v4546_v58  ;;  %3612 = vmatpush.bf16.msrb.mxu0 %v4598_v44  ;;  %6249 = vst [vmem:[#allocation55_spill] sm:$0xff] %v5535_v27  ;;  %v4561_v27 = vld [vmem:[#allocation8 + $0x150] sm:$0xff] }
 0x258   : > { %v1356_v30 = vsel %vm1158_vm3, %v1004_v62, 0.0  ;;  %v5533_v62 = vpop.f32.mrf.mxu2 }
 0x259   : > { %v1514_v57 = vrot.slane %v1356_v30, 1  ;;  %v1659_v25 = vrot.slane %v1356_v30, 2  ;;  %6248 = vst [vmem:[#allocation54_spill] sm:$0xff] %v5533_v62  ;;  %3145 = vmatpush.bf16.msrb.mxu3 %v4561_v27 }
 0x25b   : > { %v913_v33 = vpop.f32.mrf.mxu0  ;;  %v1515_v47 = vsel %vm1455_vm1, %v1512_v11, %v1514_v57  ;;  %v1660_v28 = vsel %vm1600_vm2, %v1657_v53, %v1659_v25  ;;  %v2739_v11 = vpop.f32.mrf.mxu1  ;;  %v4507_v53 = vld [vmem:[%s5168_s17 + $0x100] sm:$0xff] }
 0x25c   : > { %v1591_v35 = vpack.c.bf16 %v1515_v47, %v1515_v47  ;;  %v1736_v13 = vpack.c.bf16 %v1660_v28, %v1660_v28  ;;  %v2740_v57 = vadd.f32 %v5303_v32, %v2739_v11 }
 0x25e   : > { %v1942_v30 = vunpack.c.l.b16 %v1591_v35  ;;  %v2038_v17 = vunpack.c.l.b16 %v1736_v13  ;;  %v4553_v13 = vld [vmem:[#allocation8 + $0x110] sm:$0xff] }
 0x25f   : > { %3056 = vmatpush.bf16.msra.mxu2 %v4553_v13 }
 0x260   : > { %v5537_v24 = vpack.c.b16 %v1942_v30, %v1941_v29  ;;  %v5539_v14 = vpack.c.b16 %v2038_v17, %v2037_v26 }
 0x262   : > { %6250 = vst [vmem:[#allocation56_spill] sm:$0xff] %v5537_v24  ;;  %2847 = vmatmul.bf16.gmra.mxu2 %v5537_v24  ;;  %2936 = vmatmul.bf16.gmra.mxu3 %v5539_v14 }
 0x263   : > { %6251 = vst [vmem:[#allocation57_spill] sm:$0xff] %v5539_v14  ;;  %v915_v28 = vpop.f32.mrf.mxu0 }
 0x264   : > { %v916_v48 = vadd.f32 %v5512_v61, %v915_v28 }
 0x265   : > { %v2828_v25 = vpop.f32.mrf.mxu2  ;;  %v2917_v44 = vpop.f32.mrf.mxu3 }
 0x266   : > { %v2829_v41 = vadd.f32 %v2828_v25, %v2740_v57  ;;  %950 = vmatmul.bf16.gmra.mxu0 %v4507_v53  ;;  %v1005_v58 = vmax.f32 %v916_v48, 0.0 }
 0x268   : > { %v5546_v29 = vadd.f32 %v2917_v44, %v2829_v41  ;;  %v1357_v17 = vsel %vm1099_vm0, %v1005_v58, 0.0 }
 0x269   : > { %v1399_v33 = vpack.c.bf16 %v1357_v17, %v1357_v17  ;;  %v1516_v41 = vrot.slane %v1357_v17, 1  ;;  %v1661_v44 = vrot.slane %v1357_v17, 2 }
 0x26a   : > { %6252 = vst [vmem:[#allocation58_spill] sm:$0xff] %v5546_v29 }
 0x26b   : > { %v917_v26 = vpop.f32.mrf.mxu0  ;;  %v1847_v30 = vunpack.c.l.b16 %v1399_v33 }
 0x26c   : > { %v918_v46 = vadd.f32 %v5512_v61, %v917_v26 }
 0x26d   : > { %v5563_v29 = vpop.f32.mrf.mxu2 }
 0x26e   : > { %v1006_v47 = vmax.f32 %v918_v46, 0.0  ;;  %6255 = vst [vmem:[#allocation61_spill] sm:$0xff] %v5563_v29 }
 0x270   : > { %v1400_v35 = vpack.c.bf16 %v1006_v47, %v1006_v47  ;;  %v1517_v28 = vrot.slane %v1006_v47, 1  ;;  %v1662_v57 = vrot.slane %v1006_v47, 2 }
 0x272   : > { %v1848_v11 = vunpack.c.l.b16 %v1400_v35  ;;  %v1518_v26 = vsel %vm1455_vm1, %v1516_v41, %v1517_v28  ;;  %v1663_v46 = vsel %vm1600_vm2, %v1661_v44, %v1662_v57  ;;  %v5559_v35 = vpop.f32.mrf.mxu1 }
 0x273   : > { %v920_v53 = vpop.f32.mrf.mxu0  ;;  %6254 = vst [vmem:[#allocation60_spill] sm:$0xff] %v5559_v35 }
 0x274   : > { %v921_v48 = vadd.f32 %v5512_v61, %v920_v53  ;;  %v5552_v25 = vpack.c.b16 %v1848_v11, %v1847_v30  ;;  %v4545_v53 = vld [vmem:[#allocation8 + $0xd0] sm:$0xff]  ;;  %v1592_v30 = vpack.c.bf16 %v1518_v26, %v1518_v26  ;;  %v1737_v11 = vpack.c.bf16 %v1663_v46, %v1663_v46 }
 0x275   : > { %2967 = vmatpush.bf16.msra.mxu1 %v4545_v53 }
 0x276   : > { %6253 = vst [vmem:[#allocation59_spill] sm:$0xff] %v5552_v25  ;;  %v1007_v58 = vmax.f32 %v921_v48, 0.0  ;;  %2763 = vmatmul.bf16.gmra.mxu1 %v5552_v25  ;;  %v2039_v35 = vunpack.c.l.b16 %v1737_v11 }
 0x278   : > { %v1359_v33 = vsel %vm1158_vm3, %v1007_v58, 0.0  ;;  %v1943_v58 = vunpack.c.l.b16 %v1592_v30 }
 0x279   : > { %v1519_v47 = vrot.slane %v1359_v33, 1  ;;  %v1664_v13 = vrot.slane %v1359_v33, 2  ;;  %v5565_v33 = vpop.f32.mrf.mxu3 }
 0x27a   : > { %6256 = vst [vmem:[#allocation62_spill] sm:$0xff] %v5565_v33 }
 0x27b   : > { %v922_v62 = vpop.f32.mrf.mxu0  ;;  %v1520_v17 = vsel %vm1455_vm1, %v1517_v28, %v1519_v47  ;;  %v1665_v48 = vsel %vm1600_vm2, %v1662_v57, %v1664_v13 }
 0x27c   : > { %v1593_v41 = vpack.c.bf16 %v1520_v17, %v1520_v17  ;;  %v1738_v44 = vpack.c.bf16 %v1665_v48, %v1665_v48  ;;  %v2744_v62 = vpop.f32.mrf.mxu1 }
 0x27d   : > { %v2745_v28 = vadd.f32 %v5303_v32, %v2744_v62 }
 0x27e   : > { %v1944_v25 = vunpack.c.l.b16 %v1593_v41  ;;  %v2040_v14 = vunpack.c.l.b16 %v1738_v44  ;;  %v4552_v41 = vld [vmem:[#allocation8 + $0x108] sm:$0xff] }
 0x27f   : > { %3057 = vmatpush.bf16.msra.mxu2 %v4552_v41  ;;  %v4560_v41 = vld [vmem:[#allocation8 + $0x148] sm:$0xff] }
 0x280   : > { %v5567_v24 = vpack.c.b16 %v1944_v25, %v1943_v58  ;;  %v5569_v26 = vpack.c.b16 %v2040_v14, %v2039_v35  ;;  %3146 = vmatpush.bf16.msrb.mxu3 %v4560_v41 }
 0x282   : > { %6257 = vst [vmem:[#allocation63_spill] sm:$0xff] %v5567_v24  ;;  %2852 = vmatmul.bf16.gmra.mxu2 %v5567_v24  ;;  %2941 = vmatmul.bf16.gmra.mxu3 %v5569_v26 }
 0x283   : > { %6258 = vst [vmem:[#allocation64_spill] sm:$0xff] %v5569_v26  ;;  %v924_v27 = vpop.f32.mrf.mxu0 }
 0x284   : > { %v925_v57 = vadd.f32 %v5512_v61, %v924_v27 }
 0x285   : > { %v2833_v46 = vpop.f32.mrf.mxu2  ;;  %v2922_v53 = vpop.f32.mrf.mxu3 }
 0x286   : > { %v2834_v47 = vadd.f32 %v2833_v46, %v2745_v28  ;;  %v1008_v13 = vmax.f32 %v925_v57, 0.0 }
 0x288   : > { %v5575_v30 = vadd.f32 %v2922_v53, %v2834_v47  ;;  %v1360_v14 = vsel %vm1099_vm0, %v1008_v13, 0.0 }
 0x289   : > { %v1401_v11 = vpack.c.bf16 %v1360_v14, %v1360_v14  ;;  %v1521_v46 = vrot.slane %v1360_v14, 1  ;;  %v1666_v47 = vrot.slane %v1360_v14, 2 }
 0x28a   : > { %6259 = vst [vmem:[#allocation65_spill] sm:$0xff] %v5575_v30 }
 0x28b   : > { %v926_v25 = vpop.f32.mrf.mxu0  ;;  %v1849_v44 = vunpack.c.l.b16 %v1401_v11  ;;  %v5588_v11 = vpop.f32.mrf.mxu1 }
 0x28c   : > { %v927_v35 = vadd.f32 %v5512_v61, %v926_v25  ;;  %6261 = vst [vmem:[#allocation67_spill] sm:$0xff] %v5588_v11 }
 0x28d   : > { %v5594_v26 = vpop.f32.mrf.mxu3 }
 0x28e   : > { %v1009_v17 = vmax.f32 %v927_v35, 0.0  ;;  %6263 = vst [vmem:[#allocation69_spill] sm:$0xff] %v5594_v26 }
 0x290   : > { %v1402_v48 = vpack.c.bf16 %v1009_v17, %v1009_v17  ;;  %v1522_v58 = vrot.slane %v1009_v17, 1  ;;  %v1667_v62 = vrot.slane %v1009_v17, 2 }
 0x292   : > { %v1850_v32 = vunpack.c.l.b16 %v1402_v48  ;;  %v1523_v53 = vsel %vm1455_vm1, %v1521_v46, %v1522_v58  ;;  %v1668_v25 = vsel %vm1600_vm2, %v1666_v47, %v1667_v62 }
 0x293   : > { %v929_v27 = vpop.f32.mrf.mxu0  ;;  %v1739_v33 = vpack.c.bf16 %v1668_v25, %v1668_v25 }
 0x294   : > { %v930_v28 = vadd.f32 %v5512_v61, %v929_v27  ;;  %v5581_v57 = vpack.c.b16 %v1850_v32, %v1849_v44  ;;  %v4544_v27 = vld [vmem:[#allocation8 + $0xc8] sm:$0xff]  ;;  %v4597_v44 = vld [vmem:[#allocation10 + $0x30] sm:$0xff]  ;;  %v1594_v32 = vpack.c.bf16 %v1523_v53, %v1523_v53 }
 0x295   : > { %2968 = vmatpush.bf16.msra.mxu1 %v4544_v27  ;;  %3613 = vmatpush.bf16.msrb.mxu0 %v4597_v44 }
 0x296   : > { %6260 = vst [vmem:[#allocation66_spill] sm:$0xff] %v5581_v57  ;;  %v1010_v13 = vmax.f32 %v930_v28, 0.0  ;;  %2768 = vmatmul.bf16.gmra.mxu1 %v5581_v57  ;;  %v1945_v11 = vunpack.c.l.b16 %v1594_v32 }
 0x298   : > { %v1362_v35 = vsel %vm1158_vm3, %v1010_v13, 0.0  ;;  %v5592_v13 = vpop.f32.mrf.mxu2 }
 0x299   : > { %v1524_v17 = vrot.slane %v1362_v35, 1  ;;  %v1669_v48 = vrot.slane %v1362_v35, 2  ;;  %6262 = vst [vmem:[#allocation68_spill] sm:$0xff] %v5592_v13  ;;  %v2041_v35 = vunpack.c.l.b16 %v1739_v33  ;;  %v4559_v13 = vld [vmem:[#allocation8 + $0x140] sm:$0xff] }
 0x29a   : > { %3147 = vmatpush.bf16.msrb.mxu3 %v4559_v13 }
 0x29b   : > { %v931_v14 = vpop.f32.mrf.mxu0  ;;  %v1525_v28 = vsel %vm1455_vm1, %v1522_v58, %v1524_v17  ;;  %v1670_v29 = vsel %vm1600_vm2, %v1667_v62, %v1669_v48  ;;  %v2749_v58 = vpop.f32.mrf.mxu1 }
 0x29c   : > { %v1595_v46 = vpack.c.bf16 %v1525_v28, %v1525_v28  ;;  %v1740_v47 = vpack.c.bf16 %v1670_v29, %v1670_v29  ;;  %v5605_v29 = vld [vmem:[%s6147_s5] ss:$0 sm:$0xff] }
 0x29d   : > { %v2750_v33 = vadd.f32 %v5605_v29, %v2749_v58 }
 0x29e   : > { %v1946_v30 = vunpack.c.l.b16 %v1595_v46  ;;  %v2042_v57 = vunpack.c.l.b16 %v1740_v47  ;;  %v4551_v47 = vld [vmem:[#allocation8 + $0x100] sm:$0xff] }
 0x29f   : > { %3058 = vmatpush.bf16.msra.mxu2 %v4551_v47 }
 0x2a0   : > { %v5596_v53 = vpack.c.b16 %v1946_v30, %v1945_v11  ;;  %v5598_v25 = vpack.c.b16 %v2042_v57, %v2041_v35 }
 0x2a2   : > { %6264 = vst [vmem:[#allocation70_spill] sm:$0xff] %v5596_v53  ;;  %2857 = vmatmul.bf16.gmra.mxu2 %v5596_v53  ;;  %2946 = vmatmul.bf16.gmra.mxu3 %v5598_v25 }
 0x2a3   : > { %6265 = vst [vmem:[#allocation71_spill] sm:$0xff] %v5598_v25  ;;  %v933_v62 = vpop.f32.mrf.mxu0 }
 0x2a4   : > { %v934_v17 = vadd.f32 %v5512_v61, %v933_v62 }
 0x2a5   : > { %v2838_v48 = vpop.f32.mrf.mxu2  ;;  %v2927_v57 = vpop.f32.mrf.mxu3 }
 0x2a6   : > { %v2839_v30 = vadd.f32 %v2838_v48, %v2750_v33  ;;  %v1011_v11 = vmax.f32 %v934_v17, 0.0 }
 0x2a8   : > { %v5609_v41 = vadd.f32 %v2927_v57, %v2839_v30  ;;  %v1363_v27 = vsel %vm1099_vm0, %v1011_v11, 0.0 }
 0x2a9   : > { %v1403_v14 = vpack.c.bf16 %v1363_v27, %v1363_v27  ;;  %v1526_v30 = vrot.slane %v1363_v27, 1  ;;  %v1671_v57 = vrot.slane %v1363_v27, 2 }
 0x2aa   : > { %6266 = vst [vmem:[#allocation72_spill] sm:$0xff] %v5609_v41 }
 0x2ab   : > { %v935_v44 = vpop.f32.mrf.mxu0  ;;  %v1851_v35 = vunpack.c.l.b16 %v1403_v14 }
 0x2ac   : > { %v936_v32 = vadd.f32 %v5512_v61, %v935_v44 }
 0x2ae   : > { %v1012_v28 = vmax.f32 %v936_v32, 0.0 }
 0x2b0   : > { %v1404_v46 = vpack.c.bf16 %v1012_v28, %v1012_v28  ;;  %v1527_v62 = vrot.slane %v1012_v28, 1  ;;  %v1672_v26 = vrot.slane %v1012_v28, 2 }
 0x2b2   : > { %v1852_v58 = vunpack.c.l.b16 %v1404_v46  ;;  %v1528_v44 = vsel %vm1455_vm1, %v1526_v30, %v1527_v62  ;;  %v1673_v32 = vsel %vm1600_vm2, %v1671_v57, %v1672_v26  ;;  %v5622_v46 = vpop.f32.mrf.mxu1 }
 0x2b3   : > { %v938_v33 = vpop.f32.mrf.mxu0  ;;  %6268 = vst [vmem:[#allocation74_spill] sm:$0xff] %v5622_v46 }
 0x2b4   : > { %v939_v17 = vadd.f32 %v5512_v61, %v938_v33  ;;  %v5615_v48 = vpack.c.b16 %v1852_v58, %v1851_v35  ;;  %v4543_v33 = vld [vmem:[#allocation8 + $0xc0] sm:$0xff]  ;;  %v1596_v35 = vpack.c.bf16 %v1528_v44, %v1528_v44  ;;  %v1741_v58 = vpack.c.bf16 %v1673_v32, %v1673_v32 }
 0x2b5   : > { %2969 = vmatpush.bf16.msra.mxu1 %v4543_v33 }
 0x2b6   : > { %6267 = vst [vmem:[#allocation73_spill] sm:$0xff] %v5615_v48  ;;  %v1013_v11 = vmax.f32 %v939_v17, 0.0  ;;  %2773 = vmatmul.bf16.gmra.mxu1 %v5615_v48  ;;  %v5626_v48 = vpop.f32.mrf.mxu2  ;;  %v2043_v46 = vunpack.c.l.b16 %v1741_v58 }
 0x2b7   : > { %6269 = vst [vmem:[#allocation75_spill] sm:$0xff] %v5626_v48 }
 0x2b8   : > { %v1365_v14 = vsel %vm1158_vm3, %v1013_v11, 0.0  ;;  %v1947_v11 = vunpack.c.l.b16 %v1596_v35 }
 0x2b9   : > { %v1529_v28 = vrot.slane %v1365_v14, 1  ;;  %v1674_v47 = vrot.slane %v1365_v14, 2  ;;  %v5628_v14 = vpop.f32.mrf.mxu3 }
 0x2ba   : > { %6270 = vst [vmem:[#allocation76_spill] sm:$0xff] %v5628_v14 }
 0x2bb   : > { %v940_v41 = vpop.f32.mrf.mxu0  ;;  %v1530_v27 = vsel %vm1455_vm1, %v1527_v62, %v1529_v28  ;;  %v1675_v17 = vsel %vm1600_vm2, %v1672_v26, %v1674_v47 }
 0x2bc   : > { %v1597_v30 = vpack.c.bf16 %v1530_v27, %v1530_v27  ;;  %v1742_v57 = vpack.c.bf16 %v1675_v17, %v1675_v17  ;;  %v2754_v41 = vpop.f32.mrf.mxu1 }
 0x2bd   : > { %v2755_v13 = vadd.f32 %v5605_v29, %v2754_v41 }
 0x2be   : > { %v1948_v25 = vunpack.c.l.b16 %v1597_v30  ;;  %v2044_v53 = vunpack.c.l.b16 %v1742_v57 }
 0x2c0   : > { %v5630_v24 = vpack.c.b16 %v1948_v25, %v1947_v11  ;;  %v5632_v44 = vpack.c.b16 %v2044_v53, %v2043_v46  ;;  %v4582_v11 = vld [vmem:[#allocation8 + $0x1f8] sm:$0xff] }
 0x2c1   : > { %3318 = vmatpush.bf16.msrb.mxu2 %v4582_v11 }
 0x2c2   : > { %6271 = vst [vmem:[#allocation77_spill] sm:$0xff] %v5630_v24  ;;  %2862 = vmatmul.bf16.gmra.mxu2 %v5630_v24  ;;  %2951 = vmatmul.bf16.gmra.mxu3 %v5632_v44 }
 0x2c3   : > { %6272 = vst [vmem:[#allocation78_spill] sm:$0xff] %v5632_v44  ;;  %v942_v26 = vpop.f32.mrf.mxu0 }
 0x2c4   : > { %v943_v62 = vadd.f32 %v5512_v61, %v942_v26 }
 0x2c5   : > { %v2843_v32 = vpop.f32.mrf.mxu2  ;;  %v2932_v33 = vpop.f32.mrf.mxu3 }
 0x2c6   : > { %v2844_v28 = vadd.f32 %v2843_v32, %v2755_v13  ;;  %v1014_v47 = vmax.f32 %v943_v62, 0.0  ;;  %v4590_v32 = vld [vmem:[#allocation8 + $0x238] sm:$0xff] }
 0x2c7   : > { %3407 = vmatpush.bf16.msra.mxu3 %v4590_v32 }
 0x2c8   : > { %v5638_v35 = vadd.f32 %v2932_v33, %v2844_v28  ;;  %v1366_v53 = vsel %vm1099_vm0, %v1014_v47, 0.0 }
 0x2c9   : > { %v1405_v58 = vpack.c.bf16 %v1366_v53, %v1366_v53  ;;  %v1531_v28 = vrot.slane %v1366_v53, 1  ;;  %v1676_v47 = vrot.slane %v1366_v53, 2 }
 0x2ca   : > { %6273 = vst [vmem:[#allocation79_spill] sm:$0xff] %v5638_v35 }
 0x2cb   : > { %v944_v25 = vpop.f32.mrf.mxu0  ;;  %v1853_v30 = vunpack.c.l.b16 %v1405_v58 }
 0x2cc   : > { %v945_v46 = vadd.f32 %v5512_v61, %v944_v25  ;;  %v4574_v25 = vld [vmem:[#allocation8 + $0x1b8] sm:$0xff] }
 0x2cd   : > { %3229 = vmatpush.bf16.msrb.mxu1 %v4574_v25  ;;  %v5655_v2 = vpop.f32.mrf.mxu2 }
 0x2ce   : > { %v1015_v27 = vmax.f32 %v945_v46, 0.0  ;;  %v4596_v46 = vld [vmem:[#allocation10 + $0x28] sm:$0xff] }
 0x2cf   : > { %3614 = vmatpush.bf16.msrb.mxu0 %v4596_v46  ;;  %v5657_v46 = vpop.f32.mrf.mxu3 }
 0x2d0   : > { %v1406_v17 = vpack.c.bf16 %v1015_v27, %v1015_v27  ;;  %v1532_v41 = vrot.slane %v1015_v27, 1  ;;  %v1677_v26 = vrot.slane %v1015_v27, 2 }
 0x2d2   : > { %v1854_v57 = vunpack.c.l.b16 %v1406_v17  ;;  %v1533_v58 = vsel %vm1455_vm1, %v1531_v28, %v1532_v41  ;;  %v1678_v17 = vsel %vm1600_vm2, %v1676_v47, %v1677_v26 }
 0x2d3   : > { %v947_v14 = vpop.f32.mrf.mxu0  ;;  %v1598_v53 = vpack.c.bf16 %v1533_v58, %v1533_v58  ;;  %v1743_v11 = vpack.c.bf16 %v1678_v17, %v1678_v17 }
 0x2d4   : > { %v948_v13 = vadd.f32 %v5512_v61, %v947_v14  ;;  %v5644_v62 = vpack.c.b16 %v1854_v57, %v1853_v30  ;;  %v5651_v14 = vpop.f32.mrf.mxu1 }
 0x2d5   : > { %6275 = vst [vmem:[#allocation81_spill] sm:$0xff] %v5651_v14  ;;  %v1949_v47 = vunpack.c.l.b16 %v1598_v53 }
 0x2d6   : > { %6274 = vst [vmem:[#allocation80_spill] sm:$0xff] %v5644_v62  ;;  %v1016_v33 = vmax.f32 %v948_v13, 0.0  ;;  %2778 = vmatmul.bf16.gmra.mxu1 %v5644_v62 }
 0x2d8   : > { %v1368_v27 = vsel %vm1158_vm3, %v1016_v33, 0.0  ;;  %v2045_v33 = vunpack.c.l.b16 %v1743_v11 }
 0x2d9   : > { %v1534_v30 = vrot.slane %v1368_v27, 1  ;;  %v1679_v57 = vrot.slane %v1368_v27, 2 }
 0x2db   : > { %v949_v13 = vpop.f32.mrf.mxu0  ;;  %v1535_v32 = vsel %vm1455_vm1, %v1532_v41, %v1534_v30  ;;  %v1680_v48 = vsel %vm1600_vm2, %v1677_v26, %v1679_v57  ;;  %v4589_v30 = vld [vmem:[#allocation8 + $0x230] sm:$0xff] }
 0x2dc   : > { %v1599_v35 = vpack.c.bf16 %v1535_v32, %v1535_v32  ;;  %v1744_v28 = vpack.c.bf16 %v1680_v48, %v1680_v48  ;;  %v2759_v58 = vpop.f32.mrf.mxu1  ;;  %3408 = vmatpush.bf16.msra.mxu3 %v4589_v30  ;;  %v4573_v57 = vld [vmem:[#allocation8 + $0x1b0] sm:$0xff] }
 0x2dd   : > { %v2760_v41 = vadd.f32 %v5605_v29, %v2759_v58  ;;  %3230 = vmatpush.bf16.msrb.mxu1 %v4573_v57  ;;  %v4572_v58 = vld [vmem:[#allocation8 + $0x1a8] sm:$0xff] }
 0x2de   : > { %v1950_v10 = vunpack.c.l.b16 %v1599_v35  ;;  %v2046_v25 = vunpack.c.l.b16 %v1744_v28 }
 0x2e0   : > { %v5659_v14 = vpack.c.b16 %v1950_v10, %v1949_v47  ;;  %v5661_v27 = vpack.c.b16 %v2046_v25, %v2045_v33  ;;  %v4581_v10 = vld [vmem:[#allocation8 + $0x1f0] sm:$0xff]  ;;  %v4580_v33 = vld [vmem:[#allocation8 + $0x1e8] sm:$0xff] }
 0x2e1   : > { %3319 = vmatpush.bf16.msrb.mxu2 %v4581_v10  ;;  %v4588_v25 = vld [vmem:[#allocation8 + $0x228] sm:$0xff]  ;;  %3231 = vmatpush.bf16.msrb.mxu1 %v4572_v58 }
 0x2e2   : > { %6276 = vst [vmem:[#allocation82_spill] sm:$0xff] %v5659_v14  ;;  %2867 = vmatmul.bf16.gmra.mxu2 %v5659_v14  ;;  %2956 = vmatmul.bf16.gmra.mxu3 %v5661_v27 }
 0x2e3   : > { %6277 = vst [vmem:[#allocation83_spill] sm:$0xff] %v5661_v27  ;;  %3409 = vmatpush.bf16.msra.mxu3 %v4588_v25 }
 0x2e4   : > { %v5672_v53 = vpop.f32.mrf.mxu1 }
 0x2e5   : > { %v2848_v48 = vpop.f32.mrf.mxu2  ;;  %v2937_v35 = vpop.f32.mrf.mxu3  ;;  %3320 = vmatpush.bf16.msrb.mxu2 %v4580_v33  ;;  %v4571_v33 = vld [vmem:[#allocation8 + $0x1a0] sm:$0xff] }
 0x2e6   : > { %v2849_v26 = vadd.f32 %v2848_v48, %v2760_v41  ;;  %2970 = vmatmul.bf16.vlgmr.msra.gmra.mxu1 %v5232_v18  ;;  %v4595_v48 = vld [vmem:[#allocation10 + $0x20] sm:$0xff] }
 0x2e7   : > { %3615 = vmatpush.bf16.msrb.mxu0 %v4595_v48  ;;  %3232 = vmatpush.bf16.msrb.mxu1 %v4571_v33  ;;  %v4578_v33 = vld [vmem:[#allocation8 + $0x1d8] sm:$0xff] }
 0x2e8   : > { %v5667_v17 = vadd.f32 %v2937_v35, %v2849_v26 }
 0x2ed   : > { %v5674_v11 = vpop.f32.mrf.mxu2  ;;  %v5676_v18 = vpop.f32.mrf.mxu3 }
 0x2f2   : > { %3059 = vmatmul.bf16.vlgmr.msra.gmra.mxu2 %v5242_v38  ;;  %3148 = vmatmul.bf16.vlgmr.msrb.gmra.mxu3 %v5244_v39 }
 0x2f3   : > { %v2764_v13 = vpop.f32.mrf.mxu1 }
 0x2f4   : > { %v2765_v38 = vadd.f32 %v5605_v29, %v2764_v13 }
 0x2f6   : > { %2975 = vmatmul.bf16.gmra.mxu1 %v5255_v60 }
 0x2fb   : > { %v5687_v41 = vpop.f32.mrf.mxu1 }
 0x302   : > { %3064 = vmatmul.bf16.gmra.mxu2 %v5264_v20  ;;  %3153 = vmatmul.bf16.gmra.mxu3 %v5266_v21 }
 0x305   : > { %v2853_v39 = vpop.f32.mrf.mxu2  ;;  %v2942_v28 = vpop.f32.mrf.mxu3 }
 0x306   : > { %v2854_v32 = vadd.f32 %v2853_v39, %v2765_v38  ;;  %2980 = vmatmul.bf16.gmra.mxu1 %v5279_v45 }
 0x308   : > { %v5682_v47 = vadd.f32 %v2942_v28, %v2854_v32  ;;  %v4579_v32 = vld [vmem:[#allocation8 + $0x1e0] sm:$0xff] }
 0x309   : > { %3321 = vmatpush.bf16.msrb.mxu2 %v4579_v32  ;;  %v4587_v28 = vld [vmem:[#allocation8 + $0x220] sm:$0xff] }
 0x30a   : > { %3410 = vmatpush.bf16.msra.mxu3 %v4587_v28 }
 0x30d   : > { %v5689_v26 = vpop.f32.mrf.mxu2  ;;  %v5691_v35 = vpop.f32.mrf.mxu3  ;;  %3322 = vmatpush.bf16.msrb.mxu2 %v4578_v33 }
 0x312   : > { %3069 = vmatmul.bf16.gmra.mxu2 %v5288_v7  ;;  %3158 = vmatmul.bf16.gmra.mxu3 %v5290_v8 }
 0x313   : > { %v2769_v10 = vpop.f32.mrf.mxu1 }
 0x314   : > { %v2770_v30 = vadd.f32 %v5605_v29, %v2769_v10 }
 0x316   : > { %2985 = vmatmul.bf16.gmra.mxu1 %v5306_v34 }
 0x31b   : > { %v5702_v25 = vpop.f32.mrf.mxu1 }
 0x31c   : > { %6278 = vst [vmem:[#allocation84_spill] sm:$0xff] %v5702_v25 }
 0x322   : > { %3074 = vmatmul.bf16.gmra.mxu2 %v5318_v5  ;;  %3163 = vmatmul.bf16.gmra.mxu3 %v5320_v6 }
 0x325   : > { %v2858_v57 = vpop.f32.mrf.mxu2  ;;  %v2947_v38 = vpop.f32.mrf.mxu3 }
 0x326   : > { %v2859_v13 = vadd.f32 %v2858_v57, %v2770_v30  ;;  %2990 = vmatmul.bf16.gmra.mxu1 %v5331_v31 }
 0x328   : > { %v5697_v39 = vadd.f32 %v2947_v38, %v2859_v13 }
 0x32d   : > { %v5704_v58 = vpop.f32.mrf.mxu2  ;;  %v5706_v48 = vpop.f32.mrf.mxu3 }
 0x32e   : > { %6279 = vst [vmem:[#allocation85_spill] sm:$0xff] %v5704_v58  ;;  %v4586_v58 = vld [vmem:[#allocation8 + $0x218] sm:$0xff] }
 0x32f   : > { %6280 = vst [vmem:[#allocation86_spill] sm:$0xff] %v5706_v48  ;;  %3411 = vmatpush.bf16.msra.mxu3 %v4586_v58 }
 0x332   : > { %3079 = vmatmul.bf16.gmra.mxu2 %v5346_v1  ;;  %3168 = vmatmul.bf16.gmra.mxu3 %v5348_v3 }
 0x333   : > { %v2774_v10 = vpop.f32.mrf.mxu1 }
 0x334   : > { %v2775_v30 = vadd.f32 %v5605_v29, %v2774_v10  ;;  %v4570_v10 = vld [vmem:[#allocation8 + $0x198] sm:$0xff] }
 0x335   : > { %3233 = vmatpush.bf16.msrb.mxu1 %v4570_v10 }
 0x336   : > { %2995 = vmatmul.bf16.gmra.mxu1 %v5362_v43 }
 0x33b   : > { %v5714_v28 = vpop.f32.mrf.mxu1 }
 0x33c   : > { %6282 = vst [vmem:[#allocation88_spill] sm:$0xff] %v5714_v28 }
 0x342   : > { %3084 = vmatmul.bf16.gmra.mxu2 %v5377_v22  ;;  %3173 = vmatmul.bf16.gmra.mxu3 %v5379_v23 }
 0x345   : > { %v2863_v57 = vpop.f32.mrf.mxu2  ;;  %v2952_v38 = vpop.f32.mrf.mxu3 }
 0x346   : > { %v2864_v13 = vadd.f32 %v2863_v57, %v2775_v30  ;;  %3000 = vmatmul.bf16.gmra.mxu1 %v5393_v9 }
 0x348   : > { %v5712_v32 = vadd.f32 %v2952_v38, %v2864_v13  ;;  %v4594_v38 = vld [vmem:[#allocation10 + $0x18] sm:$0xff] }
 0x349   : > { %3616 = vmatpush.bf16.msrb.mxu0 %v4594_v38 }
 0x34a   : > { %6281 = vst [vmem:[#allocation87_spill] sm:$0xff] %v5712_v32 }
 0x34d   : > { %v5719_v57 = vpop.f32.mrf.mxu2  ;;  %v5721_v13 = vpop.f32.mrf.mxu3 }
 0x34e   : > { %6283 = vst [vmem:[#allocation89_spill] sm:$0xff] %v5719_v57 }
 0x34f   : > { %6284 = vst [vmem:[#allocation90_spill] sm:$0xff] %v5721_v13 }
 0x352   : > { %3089 = vmatmul.bf16.gmra.mxu2 %v5408_v0  ;;  %3178 = vmatmul.bf16.gmra.mxu3 %v5410_v4 }
 0x353   : > { %v2779_v48 = vpop.f32.mrf.mxu1 }
 0x354   : > { %v2780_v33 = vadd.f32 %v5605_v29, %v2779_v48  ;;  %v2707_v48 = vadd.f32 %v5605_v29, %v5334_v37  ;;  %v4569_v37 = vld [vmem:[#allocation8 + $0x190] sm:$0xff] }
 0x355   : > { %3234 = vmatpush.bf16.msrb.mxu1 %v4569_v37 }
 0x356   : > { %3005 = vmatmul.bf16.gmra.mxu1 %v5424_v63 }
 0x35b   : > { %v2781_v30 = vpop.f32.mrf.mxu1 }
 0x35c   : > { %v2782_v13 = vadd.f32 %v5605_v29, %v2781_v30 }
 0x362   : > { %3094 = vmatmul.bf16.gmra.mxu2 %v5439_v15  ;;  %3183 = vmatmul.bf16.gmra.mxu3 %v5441_v16 }
 0x363   : > { %v2971_v28 = vpop.f32.mrf.mxu1 }
 0x364   : > { %v2972_v32 = vadd.f32 %v2971_v28, %v5316_v59  ;;  %v4577_v59 = vld [vmem:[#allocation8 + $0x1d0] sm:$0xff] }
 0x365   : > { %v2868_v63 = vpop.f32.mrf.mxu2  ;;  %v2957_v58 = vpop.f32.mrf.mxu3  ;;  %3323 = vmatpush.bf16.msrb.mxu2 %v4577_v59  ;;  %v4585_v28 = vld [vmem:[#allocation8 + $0x210] sm:$0xff] }
 0x366   : > { %v2869_v25 = vadd.f32 %v2868_v63, %v2780_v33  ;;  %3010 = vmatmul.bf16.gmra.mxu1 %v5455_v42  ;;  %v2796_v33 = vadd.f32 %v5340_v50, %v2707_v48  ;;  %3412 = vmatpush.bf16.msra.mxu3 %v4585_v28 }
 0x368   : > { %v5728_v10 = vadd.f32 %v2957_v58, %v2869_v25 }
 0x36b   : > { %v2973_v57 = vpop.f32.mrf.mxu1 }
 0x36d   : > { %v2870_v4 = vpop.f32.mrf.mxu2  ;;  %v2959_v15 = vpop.f32.mrf.mxu3 }
 0x36e   : > { %v2871_v0 = vadd.f32 %v2870_v4, %v2782_v13 }
 0x370   : > { %v5731_v16 = vadd.f32 %v2959_v15, %v2871_v0  ;;  %v2885_v15 = vadd.f32 %v5344_v55, %v2796_v33  ;;  %v6289_v33 = vld [vmem:[#allocation29_spill] sm:$0xff] }
 0x372   : > { %3099 = vmatmul.bf16.gmra.mxu2 %v5470_v49  ;;  %3188 = vmatmul.bf16.gmra.mxu3 %v5472_v54  ;;  %v2974_v58 = vadd.f32 %v2973_v57, %v2885_v15 }
 0x373   : > { %v2976_v63 = vpop.f32.mrf.mxu1 }
 0x374   : > { %v2977_v25 = vadd.f32 %v2976_v63, %v5355_v19 }
 0x375   : > { %v3060_v38 = vpop.f32.mrf.mxu2  ;;  %v3149_v30 = vpop.f32.mrf.mxu3 }
 0x376   : > { %v3061_v4 = vadd.f32 %v3060_v38, %v2972_v32  ;;  %3015 = vmatmul.bf16.gmra.mxu1 %v5486_v51  ;;  %v2712_v32 = vadd.f32 %v5605_v29, %v5369_v52  ;;  %v6291_v52 = vld [vmem:[#allocation56_spill] sm:$0xff] }
 0x378   : > { %v5740_v0 = vadd.f32 %v3149_v30, %v3061_v4  ;;  %v2801_v38 = vadd.f32 %v5373_v12, %v2712_v32  ;;  %v6287_v30 = vld [vmem:[#allocation52_spill] sm:$0xff] }
 0x37a   : > { %6285 = vst [vmem:[#allocation91_spill] sm:$0xff] %v5740_v0  ;;  %v2890_v4 = vadd.f32 %v6289_v33, %v2801_v38  ;;  %v4584_v38 = vld [vmem:[#allocation8 + $0x208] sm:$0xff]  ;;  %v6295_v33 = vld [vmem:[#allocation31_spill] sm:$0xff]  ;;  %v4593_v0 = vld [vmem:[#allocation10 + $0x10] sm:$0xff] }
 0x37b   : > { %v2978_v13 = vpop.f32.mrf.mxu1  ;;  %3413 = vmatpush.bf16.msra.mxu3 %v4584_v38  ;;  %3617 = vmatpush.bf16.msrb.mxu0 %v4593_v0  ;;  %v6302_v38 = vld [vmem:[#allocation37_spill] sm:$0xff] }
 0x37c   : > { %v2979_v15 = vadd.f32 %v2978_v13, %v2890_v4 }
 0x37d   : > { %v3062_v54 = vpop.f32.mrf.mxu2  ;;  %v3151_v19 = vpop.f32.mrf.mxu3 }
 0x37e   : > { %v3063_v59 = vadd.f32 %v3062_v54, %v2974_v58 }
 0x380   : > { %v5743_v63 = vadd.f32 %v3151_v19, %v3063_v59 }
 0x382   : > { %6286 = vst [vmem:[#allocation92_spill] sm:$0xff] %v5743_v63  ;;  %3104 = vmatmul.bf16.gmra.mxu2 %v5501_v56  ;;  %3193 = vmatmul.bf16.gmra.mxu3 %v5503_v36 }
 0x383   : > { %v2981_v50 = vpop.f32.mrf.mxu1 }
 0x384   : > { %v2982_v48 = vadd.f32 %v2981_v50, %v5386_v40  ;;  %v6292_v40 = vld [vmem:[#allocation57_spill] sm:$0xff]  ;;  %v4576_v50 = vld [vmem:[#allocation8 + $0x1c8] sm:$0xff] }
 0x385   : > { %v3065_v28 = vpop.f32.mrf.mxu2  ;;  %v3154_v55 = vpop.f32.mrf.mxu3  ;;  %3324 = vmatpush.bf16.msrb.mxu2 %v4576_v50 }
 0x386   : > { %v3066_v57 = vadd.f32 %v3065_v28, %v2977_v25  ;;  %3020 = vmatmul.bf16.gmra.mxu1 %v6287_v30  ;;  %v6293_v25 = vld [vmem:[#allocation30_spill] sm:$0xff]  ;;  %v6294_v28 = vld [vmem:[#allocation35_spill] sm:$0xff] }
 0x387   : > { %v2717_v32 = vadd.f32 %v5605_v29, %v6293_v25  ;;  %v6300_v30 = vld [vmem:[#allocation63_spill] sm:$0xff] }
 0x388   : > { %v5752_v54 = vadd.f32 %v3154_v55, %v3066_v57 }
 0x389   : > { %v2806_v4 = vadd.f32 %v6295_v33, %v2717_v32 }
 0x38a   : > { %6288 = vst [vmem:[#allocation93_spill] sm:$0xff] %v5752_v54 }
 0x38b   : > { %v2983_v37 = vpop.f32.mrf.mxu1 }
 0x38d   : > { %v3067_v58 = vpop.f32.mrf.mxu2  ;;  %v3156_v19 = vpop.f32.mrf.mxu3 }
 0x38e   : > { %v3068_v59 = vadd.f32 %v3067_v58, %v2979_v15  ;;  %v6296_v58 = vld [vmem:[#allocation59_spill] sm:$0xff] }
 0x390   : > { %v5755_v63 = vadd.f32 %v3156_v19, %v3068_v59  ;;  %v4568_v59 = vld [vmem:[#allocation8 + $0x188] sm:$0xff] }
 0x391   : > { %3235 = vmatpush.bf16.msrb.mxu1 %v4568_v59 }
 0x392   : > { %6290 = vst [vmem:[#allocation29_spill] sm:$0xff] %v5755_v63  ;;  %3109 = vmatmul.bf16.gmra.mxu2 %v6291_v52  ;;  %3198 = vmatmul.bf16.gmra.mxu3 %v6292_v40  ;;  %v6298_v63 = vld [vmem:[#allocation32_spill] sm:$0xff] }
 0x393   : > { %v2986_v12 = vpop.f32.mrf.mxu1  ;;  %v2895_v54 = vadd.f32 %v6298_v63, %v2806_v4 }
 0x394   : > { %v2987_v55 = vadd.f32 %v2986_v12, %v6294_v28 }
 0x395   : > { %v3070_v57 = vpop.f32.mrf.mxu2  ;;  %v3159_v13 = vpop.f32.mrf.mxu3  ;;  %v2984_v25 = vadd.f32 %v2983_v37, %v2895_v54  ;;  %v6304_v54 = vld [vmem:[#allocation38_spill] sm:$0xff] }
 0x396   : > { %v3071_v15 = vadd.f32 %v3070_v57, %v2982_v48  ;;  %3025 = vmatmul.bf16.gmra.mxu1 %v6296_v58  ;;  %v6301_v48 = vld [vmem:[#allocation64_spill] sm:$0xff]  ;;  %v2722_v57 = vadd.f32 %v5605_v29, %v6302_v38  ;;  %v6309_v38 = vld [vmem:[#allocation70_spill] sm:$0xff] }
 0x397   : > { %v6328_v58 = vld [vmem:[#allocation58_spill] sm:$0xff] }
 0x398   : > { %v5764_v19 = vadd.f32 %v3159_v13, %v3071_v15  ;;  %v6303_v13 = vld [vmem:[#allocation42_spill] sm:$0xff]  ;;  %v2811_v37 = vadd.f32 %v6304_v54, %v2722_v57 }
 0x39a   : > { %6297 = vst [vmem:[#allocation30_spill] sm:$0xff] %v5764_v19 }
 0x39b   : > { %v2988_v40 = vpop.f32.mrf.mxu1 }
 0x39d   : > { %v3072_v52 = vpop.f32.mrf.mxu2  ;;  %v3161_v12 = vpop.f32.mrf.mxu3 }
 0x39e   : > { %v3073_v50 = vadd.f32 %v3072_v52, %v2984_v25  ;;  %v6305_v52 = vld [vmem:[#allocation66_spill] sm:$0xff]  ;;  %v6307_v25 = vld [vmem:[#allocation39_spill] sm:$0xff] }
 0x3a0   : > { %v5767_v28 = vadd.f32 %v3161_v12, %v3073_v50  ;;  %v2900_v12 = vadd.f32 %v6307_v25, %v2811_v37  ;;  %v4583_v37 = vld [vmem:[#allocation8 + $0x200] sm:$0xff]  ;;  %v6313_v25 = vld [vmem:[#allocation44_spill] sm:$0xff] }
 0x3a1   : > { %3414 = vmatpush.bf16.msra.mxu3 %v4583_v37 }
 0x3a2   : > { %6299 = vst [vmem:[#allocation35_spill] sm:$0xff] %v5767_v28  ;;  %3114 = vmatmul.bf16.gmra.mxu2 %v6300_v30  ;;  %3203 = vmatmul.bf16.gmra.mxu3 %v6301_v48  ;;  %v2989_v28 = vadd.f32 %v2988_v40, %v2900_v12 }
 0x3a3   : > { %v2991_v32 = vpop.f32.mrf.mxu1 }
 0x3a4   : > { %v2992_v63 = vadd.f32 %v2991_v32, %v6303_v13  ;;  %v6310_v32 = vld [vmem:[#allocation71_spill] sm:$0xff] }
 0x3a5   : > { %v3075_v33 = vpop.f32.mrf.mxu2  ;;  %v3164_v4 = vpop.f32.mrf.mxu3  ;;  %v4575_v13 = vld [vmem:[#allocation8 + $0x1c0] sm:$0xff] }
 0x3a6   : > { %v3076_v15 = vadd.f32 %v3075_v33, %v2987_v55  ;;  %3030 = vmatmul.bf16.gmra.mxu1 %v6305_v52  ;;  %v6311_v55 = vld [vmem:[#allocation43_spill] sm:$0xff]  ;;  %3325 = vmatpush.bf16.msrb.mxu2 %v4575_v13 }
 0x3a7   : > { %v2727_v33 = vadd.f32 %v5605_v29, %v6311_v55 }
 0x3a8   : > { %v5776_v59 = vadd.f32 %v3164_v4, %v3076_v15  ;;  %v6312_v4 = vld [vmem:[#allocation47_spill] sm:$0xff] }
 0x3a9   : > { %v2816_v12 = vadd.f32 %v6313_v25, %v2727_v33 }
 0x3aa   : > { %6306 = vst [vmem:[#allocation31_spill] sm:$0xff] %v5776_v59  ;;  %v6316_v59 = vld [vmem:[#allocation45_spill] sm:$0xff] }
 0x3ab   : > { %v2993_v50 = vpop.f32.mrf.mxu1 }
 0x3ad   : > { %v3077_v19 = vpop.f32.mrf.mxu2  ;;  %v3166_v0 = vpop.f32.mrf.mxu3 }
 0x3ae   : > { %v3078_v48 = vadd.f32 %v3077_v19, %v2989_v28  ;;  %v6314_v28 = vld [vmem:[#allocation73_spill] sm:$0xff] }
 0x3b0   : > { %v5779_v30 = vadd.f32 %v3166_v0, %v3078_v48  ;;  %v951_v48 = vpop.f32.mrf.mxu0 }
 0x3b1   : > { %v952_v33 = vadd.f32 %v5512_v61, %v951_v48  ;;  %v4730_v48 = vld [vmem:[%s6145_s3] ss:$0 sm:$0xff] }
 0x3b2   : > { %6308 = vst [vmem:[#allocation32_spill] sm:$0xff] %v5779_v30  ;;  %3119 = vmatmul.bf16.gmra.mxu2 %v6309_v38  ;;  %3208 = vmatmul.bf16.gmra.mxu3 %v6310_v32  ;;  %v4567_v30 = vld [vmem:[#allocation8 + $0x180] sm:$0xff]  ;;  %v2905_v32 = vadd.f32 %v6316_v59, %v2816_v12  ;;  %v6320_v12 = vld [vmem:[#allocation49_spill] sm:$0xff] }
 0x3b3   : > { %v2996_v57 = vpop.f32.mrf.mxu1  ;;  %3236 = vmatpush.bf16.msrb.mxu1 %v4567_v30  ;;  %v6319_v59 = vld [vmem:[#allocation51_spill] sm:$0xff] }
 0x3b4   : > { %v2997_v54 = vadd.f32 %v2996_v57, %v6312_v4  ;;  %v2994_v38 = vadd.f32 %v2993_v50, %v2905_v32  ;;  %v1017_v32 = vmax.f32 %v952_v33, 0.0  ;;  %v6324_v33 = vld [vmem:[#allocation50_spill] sm:$0xff] }
 0x3b5   : > { %v3080_v15 = vpop.f32.mrf.mxu2  ;;  %v3169_v40 = vpop.f32.mrf.mxu3 }
 0x3b6   : > { %v3081_v19 = vadd.f32 %v3080_v15, %v2992_v63  ;;  %3035 = vmatmul.bf16.gmra.mxu1 %v6314_v28  ;;  %v6318_v15 = vld [vmem:[#allocation48_spill] sm:$0xff] }
 0x3b8   : > { %v5788_v0 = vadd.f32 %v3169_v40, %v3081_v19  ;;  %v953_v63 = vpop.f32.mrf.mxu0  ;;  %v2732_v40 = vadd.f32 %v5605_v29, %v6318_v15 }
 0x3b9   : > { %v954_v30 = vadd.f32 %v5512_v61, %v953_v63  ;;  %v1369_v63 = vsel %vm1099_vm0, %v1017_v32, 0.0 }
 0x3ba   : > { %6315 = vst [vmem:[#allocation37_spill] sm:$0xff] %v5788_v0  ;;  %v2821_v19 = vadd.f32 %v6320_v12, %v2732_v40  ;;  %v1759_v32 = vrot.slane %v1369_v63, 2 }
 0x3bb   : > { %v2998_v55 = vpop.f32.mrf.mxu1 }
 0x3bd   : > { %v3082_v57 = vpop.f32.mrf.mxu2  ;;  %v3171_v13 = vpop.f32.mrf.mxu3 }
 0x3be   : > { %v3083_v4 = vadd.f32 %v3082_v57, %v2994_v38 }
 0x3c0   : > { %v5791_v52 = vadd.f32 %v3171_v13, %v3083_v4  ;;  %v6321_v13 = vld [vmem:[#allocation28_spill] sm:$0xff] }
 0x3c1   : > { %v957_v4 = vadd.f32 %v4730_v48, %v6321_v13 }
 0x3c2   : > { %6317 = vst [vmem:[#allocation42_spill] sm:$0xff] %v5791_v52  ;;  %3124 = vmatmul.bf16.gmra.mxu2 %v5630_v24  ;;  %3213 = vmatmul.bf16.gmra.mxu3 %v5632_v44  ;;  %v1018_v52 = vmax.f32 %v954_v30, 0.0 }
 0x3c3   : > { %v3001_v37 = vpop.f32.mrf.mxu1 }
 0x3c4   : > { %v3002_v50 = vadd.f32 %v3001_v37, %v6319_v59  ;;  %v2910_v37 = vadd.f32 %v6324_v33, %v2821_v19  ;;  %v1745_v59 = vpack.c.bf16 %v1369_v63, %v1369_v63  ;;  %v1746_v0 = vpack.c.bf16 %v1018_v52, %v1018_v52  ;;  %v6327_v33 = vld [vmem:[#allocation53_spill] sm:$0xff] }
 0x3c5   : > { %v3085_v25 = vpop.f32.mrf.mxu2  ;;  %v3174_v38 = vpop.f32.mrf.mxu3  ;;  %v1760_v13 = vrot.slane %v1018_v52, 2 }
 0x3c6   : > { %v3086_v57 = vadd.f32 %v3085_v25, %v2997_v54  ;;  %3040 = vmatmul.bf16.gmra.mxu1 %v5644_v62  ;;  %v1019_v54 = vmax.f32 %v957_v4, 0.0  ;;  %v2999_v25 = vadd.f32 %v2998_v55, %v2910_v37  ;;  %v2081_v44 = vunpack.c.l.b16 %v1745_v59 }
 0x3c7   : > { %v2082_v28 = vunpack.c.l.b16 %v1746_v0  ;;  %v2737_v0 = vadd.f32 %v5605_v29, %v6327_v33 }
 0x3c8   : > { %v5806_v15 = vadd.f32 %v3174_v38, %v3086_v57  ;;  %v1371_v30 = vsel %vm1158_vm3, %v1019_v54, 0.0  ;;  %v1750_v38 = vrot.slane %v1369_v63, 1  ;;  %v1751_v57 = vrot.slane %v1018_v52, 1 }
 0x3c9   : > { %v5817_v19 = vpack.c.b16 %v2082_v28, %v2081_v44  ;;  %v1753_v55 = vrot.slane %v1371_v30, 1  ;;  %v1762_v4 = vrot.slane %v1371_v30, 2  ;;  %v1761_v63 = vsel %vm1600_vm2, %v1759_v32, %v1760_v13  ;;  %v6329_v44 = vld [vmem:[#allocation54_spill] sm:$0xff] }
 0x3ca   : > { %6322 = vst [vmem:[#allocation38_spill] sm:$0xff] %v5806_v15  ;;  %v1752_v59 = vsel %vm1455_vm1, %v1750_v38, %v1751_v57  ;;  %v2826_v28 = vadd.f32 %v6329_v44, %v2737_v0  ;;  %v6330_v38 = vld [vmem:[#allocation55_spill] sm:$0xff] }
 0x3cb   : > { %v3003_v40 = vpop.f32.mrf.mxu1  ;;  %v1754_v52 = vsel %vm1455_vm1, %v1751_v57, %v1753_v55  ;;  %v1763_v54 = vsel %vm1600_vm2, %v1760_v13, %v1762_v4 }
 0x3cc   : > { %v1758_v33 = vpack.c.bf16 %v1754_v52, %v1754_v52 }
 0x3cd   : > { %v3087_v12 = vpop.f32.mrf.mxu2  ;;  %v3176_v62 = vpop.f32.mrf.mxu3 }
 0x3ce   : > { %v3088_v24 = vadd.f32 %v3087_v12, %v2999_v25  ;;  %v1757_v12 = vpack.c.bf16 %v1752_v59, %v1752_v59  ;;  %v2088_v55 = vunpack.c.l.b16 %v1758_v33  ;;  %v6334_v33 = vld [vmem:[#allocation62_spill] sm:$0xff] }
 0x3d0   : > { %v5813_v48 = vadd.f32 %v3176_v62, %v3088_v24 }
 0x3d2   : > { %6326 = vst [vmem:[#allocation39_spill] sm:$0xff] %v5813_v48  ;;  %3129 = vmatmul.bf16.gmra.mxu2 %v5659_v14  ;;  %3218 = vmatmul.bf16.gmra.mxu3 %v5661_v27  ;;  %v2915_v48 = vadd.f32 %v6330_v38, %v2826_v28  ;;  %v2087_v27 = vunpack.c.l.b16 %v1757_v12 }
 0x3d3   : > { %v3006_v61 = vpop.f32.mrf.mxu1 }
 0x3d4   : > { %v3007_v37 = vadd.f32 %v3006_v61, %v6328_v58  ;;  %v1766_v61 = vpack.c.bf16 %v1761_v63, %v1761_v63  ;;  %v1767_v58 = vpack.c.bf16 %v1763_v54, %v1763_v54  ;;  %v3004_v57 = vadd.f32 %v3003_v40, %v2915_v48  ;;  %v6331_v63 = vld [vmem:[#allocation60_spill] sm:$0xff]  ;;  %v6332_v48 = vld [vmem:[#allocation65_spill] sm:$0xff] }
 0x3d5   : > { %v3090_v24 = vpop.f32.mrf.mxu2  ;;  %v3179_v62 = vpop.f32.mrf.mxu3  ;;  %v2742_v40 = vadd.f32 %v5605_v29, %v6331_v63 }
 0x3d6   : > { %v3091_v25 = vadd.f32 %v3090_v24, %v3002_v50  ;;  %3045 = vmatmul.bf16.gmra.mxu1 %v5817_v19  ;;  %v2093_v32 = vunpack.c.l.b16 %v1766_v61  ;;  %v2094_v14 = vunpack.c.l.b16 %v1767_v58  ;;  %v5833_v24 = vpack.c.b16 %v2088_v55, %v2087_v27 }
 0x3d8   : > { %v5828_v30 = vadd.f32 %v3179_v62, %v3091_v25  ;;  %v5835_v59 = vpack.c.b16 %v2094_v14, %v2093_v32  ;;  %v4592_v62 = vld [vmem:[#allocation10 + $0x8] sm:$0xff]  ;;  %v6333_v25 = vld [vmem:[#allocation61_spill] sm:$0xff] }
 0x3d9   : > { %3618 = vmatpush.bf16.msrb.mxu0 %v4592_v62  ;;  %v2831_v12 = vadd.f32 %v6333_v25, %v2742_v40  ;;  %v6337_v40 = vld [vmem:[#allocation68_spill] sm:$0xff] }
 0x3db   : > { %v3008_v15 = vpop.f32.mrf.mxu1  ;;  %v2920_v61 = vadd.f32 %v6334_v33, %v2831_v12 }
 0x3dd   : > { %v3092_v13 = vpop.f32.mrf.mxu2  ;;  %v3181_v4 = vpop.f32.mrf.mxu3  ;;  %v3009_v38 = vadd.f32 %v3008_v15, %v2920_v61 }
 0x3de   : > { %v3093_v0 = vadd.f32 %v3092_v13, %v3004_v57 }
 0x3e0   : > { %v5831_v50 = vadd.f32 %v3181_v4, %v3093_v0  ;;  %v6335_v0 = vld [vmem:[#allocation67_spill] sm:$0xff] }
 0x3e2   : > { %3134 = vmatmul.bf16.gmra.mxu2 %v5833_v24  ;;  %3223 = vmatmul.bf16.gmra.mxu3 %v5835_v59 }
 0x3e3   : > { %v3011_v52 = vpop.f32.mrf.mxu1 }
 0x3e4   : > { %v3012_v54 = vadd.f32 %v3011_v52, %v6332_v48 }
 0x3e5   : > { %v3095_v44 = vpop.f32.mrf.mxu2  ;;  %v3184_v28 = vpop.f32.mrf.mxu3 }
 0x3e6   : > { %v3096_v27 = vadd.f32 %v3095_v44, %v3007_v37  ;;  %3237 = vmatmul.bf16.vlgmr.msrb.gmra.mxu1 %v5255_v60  ;;  %v2747_v37 = vadd.f32 %v5605_v29, %v6335_v0  ;;  %v6336_v60 = vld [vmem:[#allocation72_spill] sm:$0xff]  ;;  %v6341_v0 = vld [vmem:[#allocation75_spill] sm:$0xff] }
 0x3e8   : > { %v5844_v14 = vadd.f32 %v3184_v28, %v3096_v27  ;;  %v2836_v48 = vadd.f32 %v6337_v40, %v2747_v37  ;;  %v6338_v28 = vld [vmem:[#allocation69_spill] sm:$0xff] }
 0x3ea   : > { %v2925_v25 = vadd.f32 %v6338_v28, %v2836_v48 }
 0x3eb   : > { %v3013_v58 = vpop.f32.mrf.mxu1 }
 0x3ec   : > { %v3014_v12 = vadd.f32 %v3013_v58, %v2925_v25 }
 0x3ed   : > { %v3097_v57 = vpop.f32.mrf.mxu2  ;;  %v3186_v55 = vpop.f32.mrf.mxu3 }
 0x3ee   : > { %v3098_v32 = vadd.f32 %v3097_v57, %v3009_v38  ;;  %v6339_v57 = vld [vmem:[#allocation74_spill] sm:$0xff] }
 0x3f0   : > { %v5847_v13 = vadd.f32 %v3186_v55, %v3098_v32 }
 0x3f2   : > { %3326 = vmatmul.bf16.vlgmr.msrb.gmra.mxu2 %v5264_v20  ;;  %3415 = vmatmul.bf16.vlgmr.msra.gmra.mxu3 %v5266_v21 }
 0x3f3   : > { %v3016_v4 = vpop.f32.mrf.mxu1 }
 0x3f4   : > { %v3017_v62 = vadd.f32 %v3016_v4, %v6336_v60 }
 0x3f5   : > { %v3100_v52 = vpop.f32.mrf.mxu2  ;;  %v3189_v63 = vpop.f32.mrf.mxu3 }
 0x3f6   : > { %v3101_v15 = vadd.f32 %v3100_v52, %v3012_v54  ;;  %3242 = vmatmul.bf16.gmra.mxu1 %v5279_v45  ;;  %v2752_v54 = vadd.f32 %v5605_v29, %v6339_v57  ;;  %v6340_v45 = vld [vmem:[#allocation79_spill] sm:$0xff]  ;;  %v6342_v52 = vld [vmem:[#allocation76_spill] sm:$0xff] }
 0x3f8   : > { %v5856_v44 = vadd.f32 %v3189_v63, %v3101_v15  ;;  %v2841_v37 = vadd.f32 %v6341_v0, %v2752_v54 }
 0x3fa   : > { %v2930_v63 = vadd.f32 %v6342_v52, %v2841_v37 }
 0x3fb   : > { %v3018_v20 = vpop.f32.mrf.mxu1 }
 0x3fc   : > { %v3019_v40 = vadd.f32 %v3018_v20, %v2930_v63 }
 0x3fd   : > { %v3102_v21 = vpop.f32.mrf.mxu2  ;;  %v3191_v27 = vpop.f32.mrf.mxu3 }
 0x3fe   : > { %v3103_v33 = vadd.f32 %v3102_v21, %v3014_v12  ;;  %v6343_v12 = vld [vmem:[#allocation81_spill] sm:$0xff] }
 0x400   : > { %v5859_v61 = vadd.f32 %v3191_v27, %v3103_v33 }
 0x402   : > { %3331 = vmatmul.bf16.gmra.mxu2 %v5288_v7  ;;  %3420 = vmatmul.bf16.gmra.mxu3 %v5290_v8 }
 0x403   : > { %v3021_v38 = vpop.f32.mrf.mxu1 }
 0x404   : > { %v3022_v55 = vadd.f32 %v3021_v38, %v6340_v45 }
 0x405   : > { %v3105_v32 = vpop.f32.mrf.mxu2  ;;  %v3194_v4 = vpop.f32.mrf.mxu3 }
 0x406   : > { %v3106_v58 = vadd.f32 %v3105_v32, %v3017_v62  ;;  %3247 = vmatmul.bf16.gmra.mxu1 %v5306_v34  ;;  %v2757_v62 = vadd.f32 %v5605_v29, %v6343_v12 }
 0x408   : > { %v5868_v60 = vadd.f32 %v3194_v4, %v3106_v58  ;;  %v2846_v33 = vadd.f32 %v5655_v2, %v2757_v62  ;;  %v2762_v2 = vadd.f32 %v5605_v29, %v5672_v53 }
 0x40a   : > { %v2935_v57 = vadd.f32 %v5657_v46, %v2846_v33  ;;  %v2851_v37 = vadd.f32 %v5674_v11, %v2762_v2 }
 0x40b   : > { %v3023_v7 = vpop.f32.mrf.mxu1 }
 0x40c   : > { %v3024_v54 = vadd.f32 %v3023_v7, %v2935_v57 }
 0x40d   : > { %v3107_v8 = vpop.f32.mrf.mxu2  ;;  %v3196_v48 = vpop.f32.mrf.mxu3 }
 0x40e   : > { %v3108_v15 = vadd.f32 %v3107_v8, %v3019_v40 }
 0x410   : > { %v5871_v28 = vadd.f32 %v3196_v48, %v3108_v15 }
 0x412   : > { %3336 = vmatmul.bf16.gmra.mxu2 %v5318_v5  ;;  %3425 = vmatmul.bf16.gmra.mxu3 %v5320_v6 }
 0x413   : > { %v3026_v25 = vpop.f32.mrf.mxu1 }
 0x414   : > { %v3027_v34 = vadd.f32 %v3026_v25, %v5667_v17 }
 0x415   : > { %v3110_v21 = vpop.f32.mrf.mxu2  ;;  %v3199_v27 = vpop.f32.mrf.mxu3 }
 0x416   : > { %v3111_v20 = vadd.f32 %v3110_v21, %v3022_v55  ;;  %3252 = vmatmul.bf16.gmra.mxu1 %v5331_v31  ;;  %v4591_v55 = vld [vmem:[#allocation10] sm:$0xff] }
 0x417   : > { %3619 = vmatpush.bf16.msrb.mxu0 %v4591_v55 }
 0x418   : > { %v5880_v38 = vadd.f32 %v3199_v27, %v3111_v20 }
 0x41b   : > { %v3028_v5 = vpop.f32.mrf.mxu1 }
 0x41d   : > { %v3112_v6 = vpop.f32.mrf.mxu2  ;;  %v3201_v45 = vpop.f32.mrf.mxu3 }
 0x41e   : > { %v3113_v32 = vadd.f32 %v3112_v6, %v3024_v54 }
 0x420   : > { %v5883_v4 = vadd.f32 %v3201_v45, %v3113_v32 }
 0x422   : > { %3341 = vmatmul.bf16.gmra.mxu2 %v5346_v1  ;;  %3430 = vmatmul.bf16.gmra.mxu3 %v5348_v3  ;;  %v2940_v1 = vadd.f32 %v5676_v18, %v2851_v37 }
 0x423   : > { %v3031_v17 = vpop.f32.mrf.mxu1 }
 0x424   : > { %v3032_v31 = vadd.f32 %v3031_v17, %v5682_v47  ;;  %v3029_v63 = vadd.f32 %v3028_v5, %v2940_v1  ;;  %v6349_v17 = vld [vmem:[#allocation36_spill] sm:$0xff] }
 0x425   : > { %v3115_v0 = vpop.f32.mrf.mxu2  ;;  %v3204_v46 = vpop.f32.mrf.mxu3 }
 0x426   : > { %v3116_v58 = vadd.f32 %v3115_v0, %v3027_v34  ;;  %3257 = vmatmul.bf16.gmra.mxu1 %v5362_v43  ;;  %v2767_v43 = vadd.f32 %v5605_v29, %v5687_v41  ;;  %v6344_v41 = vld [vmem:[#allocation33_spill] sm:$0xff] }
 0x428   : > { %v5892_v52 = vadd.f32 %v3204_v46, %v3116_v58  ;;  %v2856_v18 = vadd.f32 %v5689_v26, %v2767_v43  ;;  %v6346_v26 = vld [vmem:[#allocation84_spill] sm:$0xff] }
 0x429   : > { %v2772_v57 = vadd.f32 %v5605_v29, %v6346_v26  ;;  %v6351_v29 = vld [vmem:[#allocation40_spill] sm:$0xff] }
 0x42a   : > { %v2945_v62 = vadd.f32 %v5691_v35, %v2856_v18  ;;  %v6348_v35 = vld [vmem:[#allocation85_spill] sm:$0xff] }
 0x42b   : > { %v3033_v3 = vpop.f32.mrf.mxu1  ;;  %v2861_v45 = vadd.f32 %v6348_v35, %v2772_v57 }
 0x42c   : > { %v3034_v34 = vadd.f32 %v3033_v3, %v2945_v62 }
 0x42d   : > { %v3117_v7 = vpop.f32.mrf.mxu2  ;;  %v3206_v40 = vpop.f32.mrf.mxu3 }
 0x42e   : > { %v3118_v53 = vadd.f32 %v3117_v7, %v3029_v63  ;;  %v6352_v63 = vld [vmem:[#allocation41_spill] sm:$0xff] }
 0x430   : > { %v5895_v8 = vadd.f32 %v3206_v40, %v3118_v53  ;;  %v4731_v40 = vld [vmem:[%s6147_s5] ss:$0 sm:$0xff]  ;;  %v6353_v53 = vld [vmem:[#allocation88_spill] sm:$0xff] }
 0x432   : > { %3346 = vmatmul.bf16.gmra.mxu2 %v5377_v22  ;;  %3435 = vmatmul.bf16.gmra.mxu3 %v5379_v23 }
 0x433   : > { %v3036_v11 = vpop.f32.mrf.mxu1 }
 0x434   : > { %v3037_v47 = vadd.f32 %v3036_v11, %v5697_v39  ;;  %v6345_v39 = vld [vmem:[#allocation34_spill] sm:$0xff]  ;;  %v2777_v11 = vadd.f32 %v4731_v40, %v6353_v53 }
 0x435   : > { %v3120_v48 = vpop.f32.mrf.mxu2  ;;  %v3209_v15 = vpop.f32.mrf.mxu3 }
 0x436   : > { %v3121_v25 = vadd.f32 %v3120_v48, %v3032_v31  ;;  %3262 = vmatmul.bf16.gmra.mxu1 %v5393_v9  ;;  %v6347_v9 = vld [vmem:[#allocation87_spill] sm:$0xff]  ;;  %v6350_v31 = vld [vmem:[#allocation86_spill] sm:$0xff] }
 0x437   : > { %v2950_v55 = vadd.f32 %v6350_v31, %v2861_v45 }
 0x438   : > { %v5904_v12 = vadd.f32 %v3209_v15, %v3121_v25  ;;  %v6354_v15 = vld [vmem:[#allocation89_spill] sm:$0xff] }
 0x439   : > { %v2866_v18 = vadd.f32 %v6354_v15, %v2777_v11 }
 0x43b   : > { %v3038_v22 = vpop.f32.mrf.mxu1 }
 0x43c   : > { %v3039_v46 = vadd.f32 %v3038_v22, %v2950_v55  ;;  %v6355_v22 = vld [vmem:[#allocation90_spill] sm:$0xff]  ;;  %v6357_v55 = vld [vmem:[#allocation52_spill] sm:$0xff] }
 0x43d   : > { %v3122_v23 = vpop.f32.mrf.mxu2  ;;  %v3211_v21 = vpop.f32.mrf.mxu3 }
 0x43e   : > { %v3123_v27 = vadd.f32 %v3122_v23, %v3034_v34  ;;  %v2955_v34 = vadd.f32 %v6355_v22, %v2866_v18  ;;  %v6363_v22 = vld [vmem:[#allocation93_spill] sm:$0xff] }
 0x440   : > { %v5907_v33 = vadd.f32 %v3211_v21, %v3123_v27 }
 0x442   : > { %3351 = vmatmul.bf16.gmra.mxu2 %v6344_v41  ;;  %3440 = vmatmul.bf16.gmra.mxu3 %v6345_v39 }
 0x443   : > { %v3041_v20 = vpop.f32.mrf.mxu1 }
 0x444   : > { %v3042_v5 = vadd.f32 %v3041_v20, %v6347_v9 }
 0x445   : > { %v3125_v54 = vpop.f32.mrf.mxu2  ;;  %v3214_v6 = vpop.f32.mrf.mxu3 }
 0x446   : > { %v3126_v32 = vadd.f32 %v3125_v54, %v3037_v47  ;;  %3267 = vmatmul.bf16.gmra.mxu1 %v6349_v17 }
 0x448   : > { %v5916_v2 = vadd.f32 %v3214_v6, %v3126_v32 }
 0x44b   : > { %v3043_v0 = vpop.f32.mrf.mxu1 }
 0x44c   : > { %v3044_v21 = vadd.f32 %v3043_v0, %v2955_v34  ;;  %v6358_v0 = vld [vmem:[#allocation91_spill] sm:$0xff] }
 0x44d   : > { %v3127_v37 = vpop.f32.mrf.mxu2  ;;  %v3216_v58 = vpop.f32.mrf.mxu3 }
 0x44e   : > { %v3128_v1 = vadd.f32 %v3127_v37, %v3039_v46 }
 0x450   : > { %v5919_v3 = vadd.f32 %v3216_v58, %v3128_v1  ;;  %v6359_v58 = vld [vmem:[#allocation92_spill] sm:$0xff] }
 0x452   : > { %3356 = vmatmul.bf16.gmra.mxu2 %v6351_v29  ;;  %3445 = vmatmul.bf16.gmra.mxu3 %v6352_v63 }
 0x453   : > { %v3046_v7 = vpop.f32.mrf.mxu1 }
 0x454   : > { %v3047_v43 = vadd.f32 %v3046_v7, %v5728_v10  ;;  %v6356_v10 = vld [vmem:[#allocation46_spill] sm:$0xff] }
 0x455   : > { %v3130_v47 = vpop.f32.mrf.mxu2  ;;  %v3219_v48 = vpop.f32.mrf.mxu3 }
 0x456   : > { %v3131_v25 = vadd.f32 %v3130_v47, %v3042_v5  ;;  %3272 = vmatmul.bf16.gmra.mxu1 %v5455_v42 }
 0x458   : > { %v5930_v62 = vadd.f32 %v3219_v48, %v3131_v25  ;;  %v6362_v25 = vld [vmem:[#allocation59_spill] sm:$0xff] }
 0x45b   : > { %v3048_v23 = vpop.f32.mrf.mxu1 }
 0x45c   : > { %v3049_v27 = vadd.f32 %v3048_v23, %v5731_v16 }
 0x45d   : > { %v3132_v41 = vpop.f32.mrf.mxu2  ;;  %v3221_v39 = vpop.f32.mrf.mxu3 }
 0x45e   : > { %v3133_v20 = vadd.f32 %v3132_v41, %v3044_v21 }
 0x460   : > { %v5934_v26 = vadd.f32 %v3221_v39, %v3133_v20 }
 0x462   : > { %3361 = vmatmul.bf16.gmra.mxu2 %v5470_v49  ;;  %3450 = vmatmul.bf16.gmra.mxu3 %v6356_v10 }
 0x463   : > { %v3238_v57 = vpop.f32.mrf.mxu1 }
 0x464   : > { %v3239_v46 = vadd.f32 %v3238_v57, %v6358_v0 }
 0x465   : > { %v3135_v9 = vpop.f32.mrf.mxu2  ;;  %v3224_v42 = vpop.f32.mrf.mxu3 }
 0x466   : > { %v3136_v5 = vadd.f32 %v3135_v9, %v3047_v43  ;;  %3277 = vmatmul.bf16.gmra.mxu1 %v5486_v51  ;;  %v6360_v43 = vld [vmem:[#allocation56_spill] sm:$0xff] }
 0x468   : > { %v5939_v54 = vadd.f32 %v3224_v42, %v3136_v5 }
 0x46b   : > { %v3240_v6 = vpop.f32.mrf.mxu1 }
 0x46c   : > { %v3241_v1 = vadd.f32 %v3240_v6, %v6359_v58  ;;  %v6365_v6 = vld [vmem:[#allocation63_spill] sm:$0xff] }
 0x46d   : > { %v3137_v35 = vpop.f32.mrf.mxu2  ;;  %v3226_v16 = vpop.f32.mrf.mxu3 }
 0x46e   : > { %v3138_v45 = vadd.f32 %v3137_v35, %v3049_v27  ;;  %v6364_v27 = vld [vmem:[#allocation29_spill] sm:$0xff]  ;;  %v6366_v35 = vld [vmem:[#allocation64_spill] sm:$0xff] }
 0x470   : > { %v5941_v32 = vadd.f32 %v3226_v16, %v3138_v45 }
 0x472   : > { %3366 = vmatmul.bf16.gmra.mxu2 %v5501_v56  ;;  %3455 = vmatmul.bf16.gmra.mxu3 %v5503_v36  ;;  %v6361_v36 = vld [vmem:[#allocation57_spill] sm:$0xff] }
 0x473   : > { %v3243_v49 = vpop.f32.mrf.mxu1 }
 0x474   : > { %v3244_v34 = vadd.f32 %v3243_v49, %v6363_v22  ;;  %v6367_v49 = vld [vmem:[#allocation66_spill] sm:$0xff] }
 0x475   : > { %v3327_v17 = vpop.f32.mrf.mxu2  ;;  %v3416_v31 = vpop.f32.mrf.mxu3 }
 0x476   : > { %3282 = vmatmul.bf16.gmra.mxu1 %v6357_v55  ;;  %v3328_v51 = vadd.f32 %v3327_v17, %v3239_v46  ;;  %v6368_v55 = vld [vmem:[#allocation30_spill] sm:$0xff] }
 0x478   : > { %v3417_v7 = vadd.f32 %v3416_v31, %v3328_v51 }
 0x47a   : > { %v3496_v11 = vmax.f32 %v3417_v7, 0.0 }
 0x47b   : > { %v3245_v37 = vpop.f32.mrf.mxu1 }
 0x47c   : > { %v3246_v41 = vadd.f32 %v3245_v37, %v6364_v27  ;;  %v6369_v37 = vld [vmem:[#allocation35_spill] sm:$0xff] }
 0x47d   : > { %v3329_v29 = vpop.f32.mrf.mxu2  ;;  %v3418_v63 = vpop.f32.mrf.mxu3 }
 0x47e   : > { %v3330_v40 = vadd.f32 %v3329_v29, %v3241_v1 }
 0x480   : > { %v3419_v53 = vadd.f32 %v3418_v63, %v3330_v40 }
 0x482   : > { %v3497_v56 = vmax.f32 %v3419_v53, 0.0  ;;  %3371 = vmatmul.bf16.gmra.mxu2 %v6360_v43  ;;  %3460 = vmatmul.bf16.gmra.mxu3 %v6361_v36  ;;  %v6371_v43 = vld [vmem:[#allocation71_spill] sm:$0xff] }
 0x483   : > { %v3248_v47 = vpop.f32.mrf.mxu1 }
 0x484   : > { %v3528_v48 = vpack.c.bf16 %v3497_v56, %v3496_v11  ;;  %v3249_v0 = vadd.f32 %v3248_v47, %v6368_v55  ;;  %v6370_v56 = vld [vmem:[#allocation70_spill] sm:$0xff]  ;;  %v6372_v47 = vld [vmem:[#allocation73_spill] sm:$0xff] }
 0x485   : > { %v3332_v15 = vpop.f32.mrf.mxu2  ;;  %v3421_v18 = vpop.f32.mrf.mxu3 }
 0x486   : > { %3287 = vmatmul.bf16.gmra.mxu1 %v6362_v25  ;;  %3620 = vmatmul.bf16.vlgmr.msrb.gmra.mxu0 %v3528_v48  ;;  %v3333_v23 = vadd.f32 %v3332_v15, %v3244_v34  ;;  %v6373_v25 = vld [vmem:[#allocation31_spill] sm:$0xff] }
 0x488   : > { %v3422_v10 = vadd.f32 %v3421_v18, %v3333_v23 }
 0x48a   : > { %v3498_v42 = vmax.f32 %v3422_v10, 0.0 }
 0x48b   : > { %v3250_v21 = vpop.f32.mrf.mxu1 }
 0x48c   : > { %v3251_v58 = vadd.f32 %v3250_v21, %v6369_v37  ;;  %v6374_v21 = vld [vmem:[#allocation32_spill] sm:$0xff] }
 0x48d   : > { %v3334_v39 = vpop.f32.mrf.mxu2  ;;  %v3423_v20 = vpop.f32.mrf.mxu3 }
 0x48e   : > { %v3335_v57 = vadd.f32 %v3334_v39, %v3246_v41 }
 0x490   : > { %v3424_v9 = vadd.f32 %v3423_v20, %v3335_v57 }
 0x492   : > { %v3499_v5 = vmax.f32 %v3424_v9, 0.0  ;;  %3376 = vmatmul.bf16.gmra.mxu2 %v6365_v6  ;;  %3465 = vmatmul.bf16.gmra.mxu3 %v6366_v35  ;;  %v6376_v6 = vld [vmem:[#allocation78_spill] sm:$0xff] }
 0x493   : > { %v3253_v16 = vpop.f32.mrf.mxu1 }
 0x494   : > { %v3529_v45 = vpack.c.bf16 %v3499_v5, %v3498_v42  ;;  %v3254_v22 = vadd.f32 %v3253_v16, %v6373_v25  ;;  %v6375_v5 = vld [vmem:[#allocation77_spill] sm:$0xff]  ;;  %v6377_v16 = vld [vmem:[#allocation80_spill] sm:$0xff] }
 0x495   : > { %v3337_v17 = vpop.f32.mrf.mxu2  ;;  %v3426_v31 = vpop.f32.mrf.mxu3 }
 0x496   : > { %3292 = vmatmul.bf16.gmra.mxu1 %v6367_v49  ;;  %3625 = vmatmul.bf16.gmra.mxu0 %v3529_v45  ;;  %v3338_v46 = vadd.f32 %v3337_v17, %v3249_v0  ;;  %v6378_v49 = vld [vmem:[#allocation37_spill] sm:$0xff] }
 0x498   : > { %v3427_v63 = vadd.f32 %v3426_v31, %v3338_v46 }
 0x49a   : > { %v3500_v53 = vmax.f32 %v3427_v63, 0.0 }
 0x49b   : > { %v3255_v51 = vpop.f32.mrf.mxu1 }
 0x49c   : > { %v3256_v27 = vadd.f32 %v3255_v51, %v6374_v21  ;;  %v6379_v51 = vld [vmem:[#allocation42_spill] sm:$0xff] }
 0x49d   : > { %v3339_v1 = vpop.f32.mrf.mxu2  ;;  %v3428_v29 = vpop.f32.mrf.mxu3 }
 0x49e   : > { %v3340_v7 = vadd.f32 %v3339_v1, %v3251_v58 }
 0x4a0   : > { %v3429_v40 = vadd.f32 %v3428_v29, %v3340_v7 }
 0x4a2   : > { %v3501_v11 = vmax.f32 %v3429_v40, 0.0  ;;  %3381 = vmatmul.bf16.gmra.mxu2 %v6370_v56  ;;  %3470 = vmatmul.bf16.gmra.mxu3 %v6371_v43  ;;  %v6381_v56 = vld [vmem:[#allocation83_spill] sm:$0xff] }
 0x4a3   : > { %v3258_v36 = vpop.f32.mrf.mxu1 }
 0x4a4   : > { %v3530_v48 = vpack.c.bf16 %v3501_v11, %v3500_v53  ;;  %v3259_v55 = vadd.f32 %v3258_v36, %v6378_v49  ;;  %v6380_v11 = vld [vmem:[#allocation82_spill] sm:$0xff] }
 0x4a5   : > { %v3342_v15 = vpop.f32.mrf.mxu2  ;;  %v3431_v18 = vpop.f32.mrf.mxu3  ;;  %v6382_v36 = vld [vmem:[#allocation38_spill] sm:$0xff] }
 0x4a6   : > { %3297 = vmatmul.bf16.gmra.mxu1 %v6372_v47  ;;  %3630 = vmatmul.bf16.gmra.mxu0 %v3530_v48  ;;  %v3343_v34 = vadd.f32 %v3342_v15, %v3254_v22 }
 0x4a8   : > { %v3432_v20 = vadd.f32 %v3431_v18, %v3343_v34  ;;  %v6383_v34 = vld [vmem:[#allocation39_spill] sm:$0xff] }
 0x4aa   : > { %v3502_v9 = vmax.f32 %v3432_v20, 0.0 }
 0x4ab   : > { %v3260_v23 = vpop.f32.mrf.mxu1 }
 0x4ac   : > { %v3261_v37 = vadd.f32 %v3260_v23, %v6379_v51  ;;  %v6385_v51 = vld [vmem:[#allocation24_spill] sm:$0xff] }
 0x4ad   : > { %v3344_v41 = vpop.f32.mrf.mxu2  ;;  %v3433_v39 = vpop.f32.mrf.mxu3 }
 0x4ae   : > { %v3345_v10 = vadd.f32 %v3344_v41, %v3256_v27 }
 0x4b0   : > { %v3434_v57 = vadd.f32 %v3433_v39, %v3345_v10 }
 0x4b2   : > { %v3503_v42 = vmax.f32 %v3434_v57, 0.0  ;;  %3386 = vmatmul.bf16.gmra.mxu2 %v6375_v5  ;;  %3475 = vmatmul.bf16.gmra.mxu3 %v6376_v6  ;;  %v6384_v6 = vld [vmem:[#allocation23_spill] sm:$0xff] }
 0x4b3   : > { %v3263_v35 = vpop.f32.mrf.mxu1 }
 0x4b4   : > { %v3531_v45 = vpack.c.bf16 %v3503_v42, %v3502_v9  ;;  %v3264_v47 = vadd.f32 %v3263_v35, %v6382_v36 }
 0x4b5   : > { %v3347_v17 = vpop.f32.mrf.mxu2  ;;  %v3436_v31 = vpop.f32.mrf.mxu3 }
 0x4b6   : > { %3302 = vmatmul.bf16.gmra.mxu1 %v6377_v16  ;;  %3635 = vmatmul.bf16.gmra.mxu0 %v3531_v45  ;;  %v3348_v0 = vadd.f32 %v3347_v17, %v3259_v55 }
 0x4b8   : > { %v3437_v29 = vadd.f32 %v3436_v31, %v3348_v0 }
 0x4ba   : > { %v3504_v40 = vmax.f32 %v3437_v29, 0.0 }
 0x4bb   : > { %v3265_v46 = vpop.f32.mrf.mxu1 }
 0x4bc   : > { %v3266_v23 = vadd.f32 %v3265_v46, %v6383_v34 }
 0x4bd   : > { %v3349_v58 = vpop.f32.mrf.mxu2  ;;  %v3438_v1 = vpop.f32.mrf.mxu3 }
 0x4be   : > { %v3350_v63 = vadd.f32 %v3349_v58, %v3261_v37  ;;  %v6386_v37 = vld [vmem:[#allocation25_spill] sm:$0xff] }
 0x4c0   : > { %v3439_v7 = vadd.f32 %v3438_v1, %v3350_v63 }
 0x4c2   : > { %v3505_v53 = vmax.f32 %v3439_v7, 0.0  ;;  %3391 = vmatmul.bf16.gmra.mxu2 %v6380_v11  ;;  %3480 = vmatmul.bf16.gmra.mxu3 %v6381_v56 }
 0x4c3   : > { %v3268_v43 = vpop.f32.mrf.mxu1 }
 0x4c4   : > { %v3532_v48 = vpack.c.bf16 %v3505_v53, %v3504_v40  ;;  %v3269_v35 = vadd.f32 %v3268_v43, %v5828_v30 }
 0x4c5   : > { %v3352_v15 = vpop.f32.mrf.mxu2  ;;  %v3441_v18 = vpop.f32.mrf.mxu3 }
 0x4c6   : > { %3307 = vmatmul.bf16.gmra.mxu1 %v5817_v19  ;;  %3640 = vmatmul.bf16.gmra.mxu0 %v3532_v48  ;;  %v3353_v25 = vadd.f32 %v3352_v15, %v3264_v47 }
 0x4c8   : > { %v3442_v41 = vadd.f32 %v3441_v18, %v3353_v25 }
 0x4ca   : > { %v3506_v10 = vmax.f32 %v3442_v41, 0.0 }
 0x4cb   : > { %v3270_v22 = vpop.f32.mrf.mxu1 }
 0x4cc   : > { %v3271_v31 = vadd.f32 %v3270_v22, %v5831_v50 }
 0x4cd   : > { %v3354_v21 = vpop.f32.mrf.mxu2  ;;  %v3443_v27 = vpop.f32.mrf.mxu3 }
 0x4ce   : > { %v3355_v39 = vadd.f32 %v3354_v21, %v3266_v23 }
 0x4d0   : > { %v3444_v20 = vadd.f32 %v3443_v27, %v3355_v39 }
 0x4d2   : > { %v3507_v57 = vmax.f32 %v3444_v20, 0.0  ;;  %3396 = vmatmul.bf16.gmra.mxu2 %v5833_v24  ;;  %3485 = vmatmul.bf16.gmra.mxu3 %v5835_v59 }
 0x4d3   : > { %v3273_v9 = vpop.f32.mrf.mxu1 }
 0x4d4   : > { %v3533_v19 = vpack.c.bf16 %v3507_v57, %v3506_v10  ;;  %v3274_v30 = vadd.f32 %v3273_v9, %v5844_v14  ;;  %v5987_v10 = vld [vmem:[%s6149_s7] ss:$0 sm:$0xff] }
 0x4d5   : > { %v3357_v42 = vpop.f32.mrf.mxu2  ;;  %v3446_v5 = vpop.f32.mrf.mxu3 }
 0x4d6   : > { %3312 = vmatmul.bf16.gmra.mxu1 %v6384_v6  ;;  %3645 = vmatmul.bf16.gmra.mxu0 %v3533_v19  ;;  %v3358_v45 = vadd.f32 %v3357_v42, %v3269_v35  ;;  %v3701_v42 = vld [vmem:[%s5178_s18] sm:$0xff] }
 0x4d8   : > { %v3447_v55 = vadd.f32 %v3446_v5, %v3358_v45 }
 0x4da   : > { %v3508_v46 = vmax.f32 %v3447_v55, 0.0  ;;  %v3702_v55 = vld [vmem:[%s5178_s18 + $0x8] sm:$0xff] }
 0x4db   : > { %v3275_v17 = vpop.f32.mrf.mxu1 }
 0x4dc   : > { %v3276_v40 = vadd.f32 %v3275_v17, %v5847_v13 }
 0x4dd   : > { %v3359_v16 = vpop.f32.mrf.mxu2  ;;  %v3448_v49 = vpop.f32.mrf.mxu3 }
 0x4de   : > { %v3360_v0 = vadd.f32 %v3359_v16, %v3271_v31 }
 0x4e0   : > { %v3449_v24 = vadd.f32 %v3448_v49, %v3360_v0 }
 0x4e2   : > { %v3509_v59 = vmax.f32 %v3449_v24, 0.0  ;;  %3401 = vmatmul.bf16.gmra.mxu2 %v6385_v51  ;;  %3490 = vmatmul.bf16.gmra.mxu3 %v6386_v37 }
 0x4e3   : > { %v3278_v58 = vpop.f32.mrf.mxu1 }
 0x4e4   : > { %v3534_v1 = vpack.c.bf16 %v3509_v59, %v3508_v46  ;;  %v3279_v34 = vadd.f32 %v3278_v58, %v5856_v44 }
 0x4e5   : > { %v3362_v29 = vpop.f32.mrf.mxu2  ;;  %v3451_v63 = vpop.f32.mrf.mxu3 }
 0x4e6   : > { %3650 = vmatmul.bf16.gmra.mxu0 %v3534_v1  ;;  %v3363_v7 = vadd.f32 %v3362_v29, %v3274_v30 }
 0x4e8   : > { %v3452_v56 = vadd.f32 %v3451_v63, %v3363_v7  ;;  %v3703_v7 = vld [vmem:[%s5178_s18 + $0x10] sm:$0xff] }
 0x4ea   : > { %v3510_v15 = vmax.f32 %v3452_v56, 0.0 }
 0x4eb   : > { %v3280_v50 = vpop.f32.mrf.mxu1 }
 0x4ec   : > { %v3281_v21 = vadd.f32 %v3280_v50, %v5859_v61 }
 0x4ed   : > { %v3364_v53 = vpop.f32.mrf.mxu2  ;;  %v3453_v11 = vpop.f32.mrf.mxu3 }
 0x4ee   : > { %v3365_v43 = vadd.f32 %v3364_v53, %v3276_v40 }
 0x4f0   : > { %v3454_v48 = vadd.f32 %v3453_v11, %v3365_v43 }
 0x4f2   : > { %v3511_v18 = vmax.f32 %v3454_v48, 0.0 }
 0x4f3   : > { %v3283_v36 = vpop.f32.mrf.mxu1 }
 0x4f4   : > { %v3535_v47 = vpack.c.bf16 %v3511_v18, %v3510_v15  ;;  %v3284_v17 = vadd.f32 %v3283_v36, %v5868_v60  ;;  %v3704_v18 = vld [vmem:[%s5178_s18 + $0x18] sm:$0xff] }
 0x4f5   : > { %v3367_v25 = vpop.f32.mrf.mxu2  ;;  %v3456_v22 = vpop.f32.mrf.mxu3 }
 0x4f6   : > { %3655 = vmatmul.bf16.gmra.mxu0 %v3535_v47  ;;  %v3368_v14 = vadd.f32 %v3367_v25, %v3279_v34 }
 0x4f8   : > { %v3457_v41 = vadd.f32 %v3456_v22, %v3368_v14 }
 0x4fa   : > { %v3512_v57 = vmax.f32 %v3457_v41, 0.0 }
 0x4fb   : > { %v3285_v23 = vpop.f32.mrf.mxu1 }
 0x4fc   : > { %v3286_v0 = vadd.f32 %v3285_v23, %v5871_v28 }
 0x4fd   : > { %v3369_v13 = vpop.f32.mrf.mxu2  ;;  %v3458_v27 = vpop.f32.mrf.mxu3 }
 0x4fe   : > { %v3370_v39 = vadd.f32 %v3369_v13, %v3281_v21 }
 0x500   : > { %v3459_v20 = vadd.f32 %v3458_v27, %v3370_v39  ;;  %v3705_v39 = vld [vmem:[%s5178_s18 + $0x20] sm:$0xff] }
 0x502   : > { %v3513_v9 = vmax.f32 %v3459_v20, 0.0 }
 0x503   : > { %v3288_v19 = vpop.f32.mrf.mxu1  ;;  %v3621_v44 = vpop.f32.mrf.mxu0 }
 0x504   : > { %v3536_v5 = vpack.c.bf16 %v3513_v9, %v3512_v57  ;;  %v3622_v61 = vadd.f32 %v5987_v10, %v3621_v44  ;;  %v3289_v56 = vadd.f32 %v3288_v19, %v5880_v38 }
 0x505   : > { %v3372_v6 = vpop.f32.mrf.mxu2  ;;  %v3461_v35 = vpop.f32.mrf.mxu3 }
 0x506   : > { %v3733_v45 = vadd.f32 %v3701_v42, %v3622_v61  ;;  %3660 = vmatmul.bf16.gmra.mxu0 %v3536_v5  ;;  %v3373_v31 = vadd.f32 %v3372_v6, %v3284_v17  ;;  %v3706_v61 = vld [vmem:[%s5178_s18 + $0x28] sm:$0xff] }
 0x508   : > { %3765 = vst [vmem:[%s5994_s29] sm:$0xff] %v3733_v45  ;;  %v3462_v51 = vadd.f32 %v3461_v35, %v3373_v31 }
 0x50a   : > { %v3514_v1 = vmax.f32 %v3462_v51, 0.0 }
 0x50b   : > { %v3290_v16 = vpop.f32.mrf.mxu1  ;;  %v3623_v49 = vpop.f32.mrf.mxu0 }
 0x50c   : > { %v3624_v24 = vadd.f32 %v5987_v10, %v3623_v49  ;;  %v3291_v36 = vadd.f32 %v3290_v16, %v5883_v4 }
 0x50d   : > { %v3374_v46 = vpop.f32.mrf.mxu2  ;;  %v3463_v59 = vpop.f32.mrf.mxu3 }
 0x50e   : > { %v3734_v37 = vadd.f32 %v3702_v55, %v3624_v24  ;;  %v3375_v60 = vadd.f32 %v3374_v46, %v3286_v0 }
 0x510   : > { %3766 = vst [vmem:[%s5994_s29 + $0x8] sm:$0xff] %v3734_v37  ;;  %v3464_v58 = vadd.f32 %v3463_v59, %v3375_v60  ;;  %v3707_v59 = vld [vmem:[%s5178_s18 + $0x30] sm:$0xff] }
 0x512   : > { %v3515_v29 = vmax.f32 %v3464_v58, 0.0 }
 0x513   : > { %v3293_v63 = vpop.f32.mrf.mxu1  ;;  %v3626_v30 = vpop.f32.mrf.mxu0 }
 0x514   : > { %v3537_v50 = vpack.c.bf16 %v3515_v29, %v3514_v1  ;;  %v3627_v40 = vadd.f32 %v5987_v10, %v3626_v30  ;;  %v3294_v44 = vadd.f32 %v3293_v63, %v5892_v52 }
 0x515   : > { %v3377_v28 = vpop.f32.mrf.mxu2  ;;  %v3466_v53 = vpop.f32.mrf.mxu3 }
 0x516   : > { %v3735_v11 = vadd.f32 %v3703_v7, %v3627_v40  ;;  %3665 = vmatmul.bf16.gmra.mxu0 %v3537_v50  ;;  %v3378_v43 = vadd.f32 %v3377_v28, %v3289_v56  ;;  %v3708_v7 = vld [vmem:[%s5178_s18 + $0x38] sm:$0xff] }
 0x518   : > { %3767 = vst [vmem:[%s5994_s29 + $0x10] sm:$0xff] %v3735_v11  ;;  %v3467_v34 = vadd.f32 %v3466_v53, %v3378_v43 }
 0x51a   : > { %v3516_v38 = vmax.f32 %v3467_v34, 0.0 }
 0x51b   : > { %v3295_v48 = vpop.f32.mrf.mxu1  ;;  %v3628_v15 = vpop.f32.mrf.mxu0 }
 0x51c   : > { %v3629_v47 = vadd.f32 %v5987_v10, %v3628_v15  ;;  %v3296_v6 = vadd.f32 %v3295_v48, %v5895_v8 }
 0x51d   : > { %v3379_v25 = vpop.f32.mrf.mxu2  ;;  %v3468_v22 = vpop.f32.mrf.mxu3 }
 0x51e   : > { %v3736_v14 = vadd.f32 %v3704_v18, %v3629_v47  ;;  %v3380_v23 = vadd.f32 %v3379_v25, %v3291_v36  ;;  %v3709_v47 = vld [vmem:[%s5178_s18 + $0x40] sm:$0xff] }
 0x520   : > { %3768 = vst [vmem:[%s5994_s29 + $0x18] sm:$0xff] %v3736_v14  ;;  %v3469_v21 = vadd.f32 %v3468_v22, %v3380_v23 }
 0x522   : > { %v3517_v13 = vmax.f32 %v3469_v21, 0.0 }
 0x523   : > { %v3298_v27 = vpop.f32.mrf.mxu1  ;;  %v3631_v41 = vpop.f32.mrf.mxu0 }
 0x524   : > { %v3538_v20 = vpack.c.bf16 %v3517_v13, %v3516_v38  ;;  %v3632_v57 = vadd.f32 %v5987_v10, %v3631_v41  ;;  %v3299_v29 = vadd.f32 %v3298_v27, %v5904_v12  ;;  %v3710_v27 = vld [vmem:[%s5178_s18 + $0x48] sm:$0xff] }
 0x525   : > { %v3382_v4 = vpop.f32.mrf.mxu2  ;;  %v3471_v9 = vpop.f32.mrf.mxu3 }
 0x526   : > { %v3737_v19 = vadd.f32 %v3705_v39, %v3632_v57  ;;  %3670 = vmatmul.bf16.gmra.mxu0 %v3538_v20  ;;  %v3383_v42 = vadd.f32 %v3382_v4, %v3294_v44 }
 0x528   : > { %3769 = vst [vmem:[%s5994_s29 + $0x20] sm:$0xff] %v3737_v19  ;;  %v3472_v16 = vadd.f32 %v3471_v9, %v3383_v42 }
 0x52a   : > { %v3518_v52 = vmax.f32 %v3472_v16, 0.0 }
 0x52b   : > { %v3633_v5 = vpop.f32.mrf.mxu0  ;;  %v3300_v35 = vpop.f32.mrf.mxu1 }
 0x52c   : > { %v3634_v45 = vadd.f32 %v5987_v10, %v3633_v5  ;;  %v3301_v50 = vadd.f32 %v3300_v35, %v5907_v33 }
 0x52d   : > { %v3384_v17 = vpop.f32.mrf.mxu2  ;;  %v3473_v31 = vpop.f32.mrf.mxu3 }
 0x52e   : > { %v3738_v49 = vadd.f32 %v3706_v61, %v3634_v45  ;;  %v3385_v55 = vadd.f32 %v3384_v17, %v3296_v6  ;;  %v3711_v61 = vld [vmem:[%s5178_s18 + $0x50] sm:$0xff] }
 0x530   : > { %3770 = vst [vmem:[%s5994_s29 + $0x28] sm:$0xff] %v3738_v49  ;;  %v3474_v0 = vadd.f32 %v3473_v31, %v3385_v55 }
 0x532   : > { %v3519_v24 = vmax.f32 %v3474_v0, 0.0  ;;  %v3712_v0 = vld [vmem:[%s5178_s18 + $0x58] sm:$0xff] }
 0x533   : > { %v3636_v46 = vpop.f32.mrf.mxu0  ;;  %v3303_v58 = vpop.f32.mrf.mxu1 }
 0x534   : > { %v3539_v51 = vpack.c.bf16 %v3519_v24, %v3518_v52  ;;  %v3637_v37 = vadd.f32 %v5987_v10, %v3636_v46  ;;  %v3304_v23 = vadd.f32 %v3303_v58, %v5916_v2 }
 0x535   : > { %v3387_v8 = vpop.f32.mrf.mxu2  ;;  %v3476_v60 = vpop.f32.mrf.mxu3 }
 0x536   : > { %v3739_v1 = vadd.f32 %v3707_v59, %v3637_v37  ;;  %3675 = vmatmul.bf16.gmra.mxu0 %v3539_v51  ;;  %v3388_v63 = vadd.f32 %v3387_v8, %v3299_v29 }
 0x538   : > { %3771 = vst [vmem:[%s5994_s29 + $0x30] sm:$0xff] %v3739_v1  ;;  %v3477_v11 = vadd.f32 %v3476_v60, %v3388_v63  ;;  %v3713_v63 = vld [vmem:[%s5178_s18 + $0x60] sm:$0xff] }
 0x53a   : > { %v3520_v12 = vmax.f32 %v3477_v11, 0.0 }
 0x53b   : > { %v3638_v30 = vpop.f32.mrf.mxu0  ;;  %v3305_v48 = vpop.f32.mrf.mxu1 }
 0x53c   : > { %v3639_v40 = vadd.f32 %v5987_v10, %v3638_v30  ;;  %v3306_v41 = vadd.f32 %v3305_v48, %v5919_v3 }
 0x53d   : > { %v3389_v28 = vpop.f32.mrf.mxu2  ;;  %v3478_v53 = vpop.f32.mrf.mxu3 }
 0x53e   : > { %v3740_v56 = vadd.f32 %v3708_v7, %v3639_v40  ;;  %v3390_v43 = vadd.f32 %v3389_v28, %v3301_v50 }
 0x540   : > { %3772 = vst [vmem:[%s5994_s29 + $0x38] sm:$0xff] %v3740_v56  ;;  %v3479_v15 = vadd.f32 %v3478_v53, %v3390_v43  ;;  %v3714_v43 = vld [vmem:[%s5178_s18 + $0x68] sm:$0xff] }
 0x542   : > { %v3521_v18 = vmax.f32 %v3479_v15, 0.0 }
 0x543   : > { %v3641_v36 = vpop.f32.mrf.mxu0  ;;  %v3308_v21 = vpop.f32.mrf.mxu1 }
 0x544   : > { %v3540_v25 = vpack.c.bf16 %v3521_v18, %v3520_v12  ;;  %v3642_v22 = vadd.f32 %v5987_v10, %v3641_v36  ;;  %v3309_v16 = vadd.f32 %v3308_v21, %v5930_v62 }
 0x545   : > { %v3392_v33 = vpop.f32.mrf.mxu2  ;;  %v3481_v34 = vpop.f32.mrf.mxu3 }
 0x546   : > { %v3741_v14 = vadd.f32 %v3709_v47, %v3642_v22  ;;  %3680 = vmatmul.bf16.gmra.mxu0 %v3540_v25  ;;  %v3393_v38 = vadd.f32 %v3392_v33, %v3304_v23 }
 0x548   : > { %3773 = vst [vmem:[%s5994_s29 + $0x40] sm:$0xff] %v3741_v14  ;;  %v3482_v4 = vadd.f32 %v3481_v34, %v3393_v38  ;;  %v3715_v14 = vld [vmem:[%s5178_s18 + $0x70] sm:$0xff] }
 0x54a   : > { %v3522_v2 = vmax.f32 %v3482_v4, 0.0 }
 0x54b   : > { %v3643_v13 = vpop.f32.mrf.mxu0  ;;  %v3310_v6 = vpop.f32.mrf.mxu1 }
 0x54c   : > { %v3644_v39 = vadd.f32 %v5987_v10, %v3643_v13  ;;  %v3311_v52 = vadd.f32 %v3310_v6, %v5934_v26  ;;  %v3716_v13 = vld [vmem:[%s5178_s18 + $0x78] sm:$0xff] }
 0x54d   : > { %v3394_v20 = vpop.f32.mrf.mxu2  ;;  %v3483_v57 = vpop.f32.mrf.mxu3 }
 0x54e   : > { %v3742_v9 = vadd.f32 %v3710_v27, %v3644_v39  ;;  %v3395_v19 = vadd.f32 %v3394_v20, %v3306_v41  ;;  %v3717_v20 = vld [vmem:[%s5178_s18 + $0x80] sm:$0xff] }
 0x550   : > { %3774 = vst [vmem:[%s5994_s29 + $0x48] sm:$0xff] %v3742_v9  ;;  %v3484_v44 = vadd.f32 %v3483_v57, %v3395_v19  ;;  %v3718_v19 = vld [vmem:[%s5178_s18 + $0x88] sm:$0xff] }
 0x552   : > { %v3523_v42 = vmax.f32 %v3484_v44, 0.0 }
 0x553   : > { %v3646_v5 = vpop.f32.mrf.mxu0  ;;  %v3313_v60 = vpop.f32.mrf.mxu1 }
 0x554   : > { %v3541_v35 = vpack.c.bf16 %v3523_v42, %v3522_v2  ;;  %v3647_v45 = vadd.f32 %v5987_v10, %v3646_v5  ;;  %v3314_v28 = vadd.f32 %v3313_v60, %v5939_v54  ;;  %v3719_v5 = vld [vmem:[%s5178_s18 + $0x90] sm:$0xff] }
 0x555   : > { %v3397_v3 = vpop.f32.mrf.mxu2  ;;  %v3486_v17 = vpop.f32.mrf.mxu3 }
 0x556   : > { %v3743_v31 = vadd.f32 %v3711_v61, %v3647_v45  ;;  %3685 = vmatmul.bf16.gmra.mxu0 %v3541_v35  ;;  %v3398_v49 = vadd.f32 %v3397_v3, %v3309_v16  ;;  %v3720_v45 = vld [vmem:[%s5178_s18 + $0x98] sm:$0xff]  ;;  %v3721_v16 = vld [vmem:[%s5178_s18 + $0xa0] sm:$0xff] }
 0x558   : > { %3775 = vst [vmem:[%s5994_s29 + $0x50] sm:$0xff] %v3743_v31  ;;  %v3487_v51 = vadd.f32 %v3486_v17, %v3398_v49 }
 0x55a   : > { %v3524_v62 = vmax.f32 %v3487_v51, 0.0  ;;  %v3723_v51 = vld [vmem:[%s5178_s18 + $0xb0] sm:$0xff] }
 0x55b   : > { %v3648_v55 = vpop.f32.mrf.mxu0  ;;  %v3315_v53 = vpop.f32.mrf.mxu1 }
 0x55c   : > { %v3649_v24 = vadd.f32 %v5987_v10, %v3648_v55  ;;  %v3316_v48 = vadd.f32 %v3315_v53, %v5941_v32 }
 0x55d   : > { %v3399_v46 = vpop.f32.mrf.mxu2  ;;  %v3488_v59 = vpop.f32.mrf.mxu3 }
 0x55e   : > { %v3744_v37 = vadd.f32 %v3712_v0, %v3649_v24  ;;  %v3400_v8 = vadd.f32 %v3399_v46, %v3311_v52  ;;  %v3722_v52 = vld [vmem:[%s5178_s18 + $0xa8] sm:$0xff] }
 0x560   : > { %3776 = vst [vmem:[%s5994_s29 + $0x58] sm:$0xff] %v3744_v37  ;;  %v3489_v58 = vadd.f32 %v3488_v59, %v3400_v8 }
 0x562   : > { %v3525_v1 = vmax.f32 %v3489_v58, 0.0  ;;  %v3724_v58 = vld [vmem:[%s5178_s18 + $0xb8] sm:$0xff] }
 0x563   : > { %v3651_v29 = vpop.f32.mrf.mxu0 }
 0x564   : > { %v3542_v30 = vpack.c.bf16 %v3525_v1, %v3524_v62  ;;  %v3652_v7 = vadd.f32 %v5987_v10, %v3651_v29 }
 0x565   : > { %v3402_v26 = vpop.f32.mrf.mxu2  ;;  %v3491_v50 = vpop.f32.mrf.mxu3 }
 0x566   : > { %v3745_v40 = vadd.f32 %v3713_v63, %v3652_v7  ;;  %3690 = vmatmul.bf16.gmra.mxu0 %v3542_v30  ;;  %v3403_v11 = vadd.f32 %v3402_v26, %v3314_v28  ;;  %v3725_v63 = vld [vmem:[%s5178_s18 + $0xc0] sm:$0xff] }
 0x568   : > { %3777 = vst [vmem:[%s5994_s29 + $0x60] sm:$0xff] %v3745_v40  ;;  %v3492_v18 = vadd.f32 %v3491_v50, %v3403_v11  ;;  %v3726_v50 = vld [vmem:[%s5178_s18 + $0xc8] sm:$0xff]  ;;  %v3727_v11 = vld [vmem:[%s5178_s18 + $0xd0] sm:$0xff] }
 0x56a   : > { %v3526_v22 = vmax.f32 %v3492_v18, 0.0 }
 0x56b   : > { %v3653_v56 = vpop.f32.mrf.mxu0 }
 0x56c   : > { %v3654_v15 = vadd.f32 %v5987_v10, %v3653_v56 }
 0x56d   : > { %v3404_v12 = vpop.f32.mrf.mxu2  ;;  %v3493_v25 = vpop.f32.mrf.mxu3 }
 0x56e   : > { %v3746_v36 = vadd.f32 %v3714_v43, %v3654_v15  ;;  %v3405_v47 = vadd.f32 %v3404_v12, %v3316_v48  ;;  %v3728_v15 = vld [vmem:[%s5178_s18 + $0xd8] sm:$0xff] }
 0x570   : > { %3778 = vst [vmem:[%s5994_s29 + $0x68] sm:$0xff] %v3746_v36  ;;  %v3494_v54 = vadd.f32 %v3493_v25, %v3405_v47  ;;  %v3729_v47 = vld [vmem:[%s5178_s18 + $0xe0] sm:$0xff] }
 0x572   : > { %v3527_v33 = vmax.f32 %v3494_v54, 0.0 }
 0x573   : > { %v3656_v34 = vpop.f32.mrf.mxu0 }
 0x574   : > { %v3543_v23 = vpack.c.bf16 %v3527_v33, %v3526_v22  ;;  %v3657_v32 = vadd.f32 %v5987_v10, %v3656_v34  ;;  %v3730_v33 = vld [vmem:[%s5178_s18 + $0xe8] sm:$0xff] }
 0x576   : > { %v3747_v21 = vadd.f32 %v3715_v14, %v3657_v32  ;;  %3695 = vmatmul.bf16.gmra.mxu0 %v3543_v23  ;;  %v3731_v32 = vld [vmem:[%s5178_s18 + $0xf0] sm:$0xff] }
 0x578   : > { %3779 = vst [vmem:[%s5994_s29 + $0x70] sm:$0xff] %v3747_v21 }
 0x57b   : > { %v3658_v38 = vpop.f32.mrf.mxu0 }
 0x57c   : > { %v3659_v27 = vadd.f32 %v5987_v10, %v3658_v38 }
 0x57e   : > { %v3748_v41 = vadd.f32 %v3716_v13, %v3659_v27  ;;  %v3732_v27 = vld [vmem:[%s5178_s18 + $0xf8] sm:$0xff] }
 0x580   : > { %3780 = vst [vmem:[%s5994_s29 + $0x78] sm:$0xff] %v3748_v41 }
 0x583   : > { %v3661_v39 = vpop.f32.mrf.mxu0 }
 0x584   : > { %v3662_v57 = vadd.f32 %v5987_v10, %v3661_v39 }
 0x586   : > { %v3749_v4 = vadd.f32 %v3717_v20, %v3662_v57 }
 0x588   : > { %3781 = vst [vmem:[%s5994_s29 + $0x80] sm:$0xff] %v3749_v4 }
 0x58b   : > { %v3663_v9 = vpop.f32.mrf.mxu0 }
 0x58c   : > { %v3664_v44 = vadd.f32 %v5987_v10, %v3663_v9 }
 0x58e   : > { %v3750_v2 = vadd.f32 %v3718_v19, %v3664_v44 }
 0x590   : > { %3782 = vst [vmem:[%s5994_s29 + $0x88] sm:$0xff] %v3750_v2 }
 0x593   : > { %v3666_v42 = vpop.f32.mrf.mxu0 }
 0x594   : > { %v3667_v61 = vadd.f32 %v5987_v10, %v3666_v42 }
 0x596   : > { %v3751_v6 = vadd.f32 %v3719_v5, %v3667_v61 }
 0x598   : > { %3783 = vst [vmem:[%s5994_s29 + $0x90] sm:$0xff] %v3751_v6 }
 0x59b   : > { %v3668_v35 = vpop.f32.mrf.mxu0 }
 0x59c   : > { %v3669_v3 = vadd.f32 %v5987_v10, %v3668_v35 }
 0x59e   : > { %v3752_v17 = vadd.f32 %v3720_v45, %v3669_v3 }
 0x5a0   : > { %3784 = vst [vmem:[%s5994_s29 + $0x98] sm:$0xff] %v3752_v17 }
 0x5a3   : > { %v3671_v31 = vpop.f32.mrf.mxu0 }
 0x5a4   : > { %v3672_v49 = vadd.f32 %v5987_v10, %v3671_v31 }
 0x5a6   : > { %v3753_v55 = vadd.f32 %v3721_v16, %v3672_v49 }
 0x5a8   : > { %3785 = vst [vmem:[%s5994_s29 + $0xa0] sm:$0xff] %v3753_v55 }
 0x5ab   : > { %v3673_v0 = vpop.f32.mrf.mxu0 }
 0x5ac   : > { %v3674_v24 = vadd.f32 %v5987_v10, %v3673_v0 }
 0x5ae   : > { %v3754_v46 = vadd.f32 %v3722_v52, %v3674_v24 }
 0x5b0   : > { %3786 = vst [vmem:[%s5994_s29 + $0xa8] sm:$0xff] %v3754_v46 }
 0x5b3   : > { %v3676_v59 = vpop.f32.mrf.mxu0 }
 0x5b4   : > { %v3677_v37 = vadd.f32 %v5987_v10, %v3676_v59 }
 0x5b6   : > { %v3755_v8 = vadd.f32 %v3723_v51, %v3677_v37 }
 0x5b8   : > { %3787 = vst [vmem:[%s5994_s29 + $0xb0] sm:$0xff] %v3755_v8 }
 0x5bb   : > { %v3678_v60 = vpop.f32.mrf.mxu0 }
 0x5bc   : > { %v3679_v62 = vadd.f32 %v5987_v10, %v3678_v60 }
 0x5be   : > { %v3756_v1 = vadd.f32 %v3724_v58, %v3679_v62 }
 0x5c0   : > { %3788 = vst [vmem:[%s5994_s29 + $0xb8] sm:$0xff] %v3756_v1 }
 0x5c3   : > { %v3681_v29 = vpop.f32.mrf.mxu0 }
 0x5c4   : > { %v3682_v30 = vadd.f32 %v5987_v10, %v3681_v29 }
 0x5c6   : > { %v3757_v7 = vadd.f32 %v3725_v63, %v3682_v30 }
 0x5c8   : > { %3789 = vst [vmem:[%s5994_s29 + $0xc0] sm:$0xff] %v3757_v7 }
 0x5cb   : > { %v3683_v26 = vpop.f32.mrf.mxu0 }
 0x5cc   : > { %v3684_v40 = vadd.f32 %v5987_v10, %v3683_v26 }
 0x5ce   : > { %v3758_v28 = vadd.f32 %v3726_v50, %v3684_v40 }
 0x5d0   : > { %3790 = vst [vmem:[%s5994_s29 + $0xc8] sm:$0xff] %v3758_v28 }
 0x5d3   : > { %v3686_v53 = vpop.f32.mrf.mxu0 }
 0x5d4   : > { %v3687_v56 = vadd.f32 %v5987_v10, %v3686_v53 }
 0x5d6   : > { %v3759_v43 = vadd.f32 %v3727_v11, %v3687_v56 }
 0x5d8   : > { %3791 = vst [vmem:[%s5994_s29 + $0xd0] sm:$0xff] %v3759_v43 }
 0x5db   : > { %v3688_v48 = vpop.f32.mrf.mxu0 }
 0x5dc   : > { %v3689_v12 = vadd.f32 %v5987_v10, %v3688_v48 }
 0x5de   : > { %v3760_v18 = vadd.f32 %v3728_v15, %v3689_v12 }
 0x5e0   : > { %3792 = vst [vmem:[%s5994_s29 + $0xd8] sm:$0xff] %v3760_v18 }
 0x5e3   : > { %v3691_v36 = vpop.f32.mrf.mxu0 }
 0x5e4   : > { %v3692_v25 = vadd.f32 %v5987_v10, %v3691_v36 }
 0x5e6   : > { %v3761_v54 = vadd.f32 %v3729_v47, %v3692_v25 }
 0x5e8   : > { %3793 = vst [vmem:[%s5994_s29 + $0xe0] sm:$0xff] %v3761_v54 }
 0x5eb   : > { %v3693_v22 = vpop.f32.mrf.mxu0 }
 0x5ec   : > { %v3694_v34 = vadd.f32 %v5987_v10, %v3693_v22 }
 0x5ee   : > { %v3762_v14 = vadd.f32 %v3730_v33, %v3694_v34 }
 0x5f0   : > { %3794 = vst [vmem:[%s5994_s29 + $0xe8] sm:$0xff] %v3762_v14 }
 0x5f3   : > { %v3696_v23 = vpop.f32.mrf.mxu0 }
 0x5f4   : > { %v3697_v21 = vadd.f32 %v5987_v10, %v3696_v23 }
 0x5f6   : > { %v3763_v38 = vadd.f32 %v3731_v32, %v3697_v21 }
 0x5f8   : > { %3795 = vst [vmem:[%s5994_s29 + $0xf0] sm:$0xff] %v3763_v38 }
 0x5fb   : > { %v3698_v13 = vpop.f32.mrf.mxu0 }
 0x5fc   : > { %v3699_v41 = vadd.f32 %v5987_v10, %v3698_v13 }
 0x5fe   : > { %v3764_v39 = vadd.f32 %v3732_v27, %v3699_v41 }
 0x600   : > { %3796 = vst [vmem:[%s5994_s29 + $0xf8] sm:$0xff] %v3764_v39 }
 0x601   : > { %4909 = shalt.err (!%p4906_p0)
}
 0x602   : > { %s4987_s6 = smov 128   ;;  %s4988_s20 = smov 8  }
 0x603   : > { %4635 = dma.vmem_to_hbm [thread:$0]  (%p5130_p5), %s3814_s10, 4096, %s3816_s11, %s3798_s13, %s4987_s6, %s4987_s6, %s4988_s20  }
 0x604 PF: > { %s6387_s12 = sld [smem:[#allocation17_spill]]  ;;  %p4655_p3 = pnand %p3962_p11, %p5079_p6 }
 0x605   : > { %s6389_s25 = sld [smem:[#allocation19_spill]] }
 0x606   : > { %p4656_p7 = pneg %p4655_p3 }
 0x60a   : > { %s3830_s26 = sand.u32 1, %s6387_s12  }
 0x60b   : > { %s3831_s16 = scalar_lea.sflag [#allocation4], %s3830_s26 }
 0x60c   : > { %4951 = dma.done.wait (%p4656_p7), %s3831_s16, 4096  }
 0x60d   : > { %4953 = vsyncadd (%p4656_p7), %s3831_s16, 4294963200  ;;  %s28_s10 = sadd.s32 1, %s6389_s25   ;;  %s6390_s4 = sld [smem:[#allocation18_spill]] }
 0x60e   : > { %p25_p9 = scmp.ge.s32.totalorder %s28_s10, 4   ;;  %s6391_s29 = sld [smem:[#allocation22_spill]] }
 0x60f   : > { %s6392_s24 = sld [smem:[#allocation21_spill]]  ;;  %s6393_s27 = smov %s4960_s28 }
 0x610   : > { %s6395_s30 = smov %s4972_s9 }
 0x611   :  { %27 = sbr.rel (!%p25_p9) target bundleno = 14 (0xe), region = 123 }
 0x613   : > { %s6394_s28 = smov %s6390_s4 }
 0x615   : > { %s6396_s9 = smov %s6392_s24 }
 0x616   :  { %3837 = vsyncpa [#allocation3], 1 }
 0x617   :  { %3839 = vsyncpa [#allocation3 + $0x1], 1 }
 0x618   :  { %3840 = vsyncpa [#allocation6], 1 }
 0x619   :  { %3842 = vsyncpa [#allocation6 + $0x1], 1 }
 0x61a   :  { %3843 = vsyncpa [#allocation9], 1 }
 0x61b   :  { %3844 = vsyncpa [#allocation4], 1 }
 0x61c   :  { %3846 = vsyncpa [#allocation4 + $0x1], 1 }

// kernel: tpu_custom_call.1
= control target key start
LH: loop header
LB: loop body
LE: loop exit
PB: predicated region body
PF: predicated region fallthrough
CT: control target
= control target key end

     0   :  { %s6142_s0 = inlined_call_operand.hbm [shape: bf16[2,18,32,128], index: 0, kind: input, shape index: {}]   ;;  %s6143_s1 = inlined_call_operand.hbm [shape: f32[2,16,16,128], index: 1, kind: input, shape index: {}]   ;;  %s6144_s2 = inlined_call_operand.hbm [shape: bf16[128,128], index: 2, kind: input, shape index: {}]   ;;  %s6145_s3 = inlined_call_operand.vmem [shape: f32[1,128], index: 3, kind: input, shape index: {}]   ;;  %s6146_s4 = inlined_call_operand.hbm [shape: bf16[1152,128], index: 4, kind: input, shape index: {}]   ;;  %s6147_s5 = inlined_call_operand.vmem [shape: f32[1,128], index: 5, kind: input, shape index: {}]   ;;  %s6148_s6 = inlined_call_operand.hbm [shape: bf16[128,128], index: 6, kind: input, shape index: {}]   ;;  %s6149_s7 = inlined_call_operand.vmem [shape: f32[1,128], index: 7, kind: input, shape index: {}]   ;;  %s6150_s8 = inlined_call_operand.hbm [shape: f32[2,16,16,128], index: 8, kind: output, shape index: {}]  }
   0x1   :  { %6195 = sst [smem:[#allocation94_spill]] %s6142_s0 }
   0x2   :  { %6196 = sst [smem:[#allocation95_spill]] %s6144_s2 }
   0x3   :  { %6197 = sst [smem:[#allocation96_spill]] %s6146_s4 }
   0x4   :  { %6198 = sst [smem:[#allocation97_spill]] %s6148_s6 }
   0x5   :  { %13 = vsyncpa [#allocation3], 0 }
   0x6   :  { %15 = vsyncpa [#allocation3 + $0x1], 0 }
   0x7   :  { %16 = vsyncpa [#allocation6], 0 }
   0x8   :  { %18 = vsyncpa [#allocation6 + $0x1], 0 }
   0x9   :  { %19 = vsyncpa [#allocation9], 0 }
   0xa   :  { %20 = vsyncpa [#allocation4], 0 }
   0xb   :  { %22 = vsyncpa [#allocation4 + $0x1], 0  ;;  %s5034_s27 = smov 0   ;;  %s5036_s28 = smov 0  }
   0xc   :  { %s5038_s29 = smov 0   ;;  %s5040_s30 = smov 0  }
   0xd   :  { %s5042_s9 = smov 0   ;;  %s5044_s10 = smov 0  }
   0xe LB: > { %6199 = sst [smem:[#allocation17_spill]] %s4956_s27  ;;  %s5065_s11 = sadd.s32 4294967295, %s4976_s10   ;;  %s4976_s10 = sphi %s5044_s10, %s28_s10   ;;  %s4972_s9 = sphi %s5042_s9, %s6396_s9   ;;  %s4968_s30 = sphi %s5040_s30, %s6395_s30   ;;  %s4964_s29 = sphi %s5038_s29, %s6391_s29   ;;  %s4960_s28 = sphi %s5036_s28, %s6394_s28   ;;  %s4956_s27 = sphi %s5034_s27, %s6393_s27  }
   0xf   : > { %6200 = sst [smem:[#allocation18_spill]] %s4964_s29  ;;  %s3957_s12 = sadd.s32 4294967294, %s4976_s10  }
  0x10   : > { %6201 = sst [smem:[#allocation19_spill]] %s4976_s10  ;;  %p60_p0 = scmp.ne.s32.totalorder %s4960_s28, %s4956_s27 }
  0x11   : > { %p61_p1 = scmp.eq.s32.totalorder %s5065_s11, 0  ;;  %p240_p2 = scmp.eq.s32.totalorder %s5065_s11, 1 }
  0x12   : > { %p246_p3 = scmp.eq.s32.totalorder %s3957_s12, 1  ;;  %p3958_p5 = scmp.ge.s32.totalorder %s4976_s10, 1 }
  0x13   : > { %p5074_p4 = por %p61_p1, %p60_p0  ;;  %p253_p7 = scmp.lt.s32.totalorder %s4976_s10, 3 }
  0x14   : > { %p5079_p6 = por %p246_p3, %p60_p0  ;;  %s6205_s2 = sld [smem:[#allocation95_spill]] }
  0x15   : > { %p5087_p8 = pnand %p3958_p5, %p253_p7  ;;  %s4978_s19 = smov [#allocation7]  }
  0x16   : > { %s6203_s14 = scalar_select %p5079_p6, 1, 0 }
  0x17   : > { %p4637_p9 = pneg %p5087_p8  ;;  %s266_s20 = sshll.u32 %s4978_s19, 4  ;;  %s267_s20 = int_to_ptr.vmem [resolvable:$true] %s266_s20 }
  0x18   : > { %6204 = sst [smem:[#allocation20_spill]] %s6203_s14  ;;  %p3962_p11 = scmp.ge.s32.totalorder %s4976_s10, 2 }
  0x19   : > { %p5095_p10 = pnand %p4637_p9, %p61_p1  ;;  %s6208_s4 = sld [smem:[#allocation96_spill]] }
  0x1a   : > { %s264_s17 = sshll.u32 %s6205_s2, 4  ;;  %s6151_s25 = smov 64   ;;  %s265_s17 = int_to_ptr.hbm [resolvable:$true] %s264_s17 }
  0x1b   : > { %s6152_s26 = smov 4   ;;  %s4981_s12 = smov [#allocation8]  }
  0x1c   : > { %4640 = dma.hbm_to_vmem [thread:$0]  (!%p5095_p10), %s265_s17, 1024, %s267_s20, [#allocation6], %s6151_s25, %s6151_s25, %s6152_s26  }
  0x1d   : > { %s283_s15 = sshll.u32 %s4981_s12, 4  ;;  %s6209_s6 = sld [smem:[#allocation97_spill]]  ;;  %s284_s15 = int_to_ptr.vmem [resolvable:$true] %s283_s15 }
  0x1e   : > { %s4982_s23 = smov [#allocation10]   ;;  %s40_s17 = sadd.s32 1, %s4972_s9 }
  0x1f   : > { %s281_s24 = sshll.u32 %s6208_s4, 4  ;;  %s300_s2 = sshll.u32 %s4982_s23, 4  ;;  %s282_s24 = int_to_ptr.hbm [resolvable:$true] %s281_s24  ;;  %s301_s2 = int_to_ptr.vmem [resolvable:$true] %s300_s2 }
  0x20   : > { %4643 = dma.hbm_to_vmem [thread:$0]  (!%p5095_p10), %s282_s24, 9216, %s284_s15, [#allocation9], %s6151_s25, %s6151_s25, %s6152_s26  }
  0x21   : > { %p42_p12 = scmp.ge.s32.totalorder %s40_s17, 2  ;;  %s47_s20 = sadd.s32 1, %s4964_s29 }
  0x22   : > { %p54_p13 = scmp.ne.s32.totalorder %s4964_s29, %s4960_s28  ;;  %p55_p0 = scmp.eq.s32.totalorder %s4976_s10, 0 }
  0x23   : > { %s298_s22 = sshll.u32 %s6209_s6, 4  ;;  %s6398_s17 = smov (%p42_p12, %s40_s17), 0  ;;  %s299_s22 = int_to_ptr.hbm [resolvable:$true] %s298_s22 }
  0x24   : > { %4646 = dma.hbm_to_vmem [thread:$0]  (!%p5095_p10), %s299_s22, 1024, %s301_s2, [#allocation9], %s6151_s25, %s6151_s25, %s6152_s26  }
  0x25   : > { %6210 = sst [smem:[#allocation21_spill]] %s6398_s17  ;;  %p56_p3 = por %p55_p0, %p54_p13 }
  0x26   : > { %p5130_p5 = por %p240_p2, %p54_p13  ;;  %s44_s21 = ssub.s32 %s4972_s9, %s6398_s17 }
  0x27   : > { %p4661_p7 = scmp.lt.s32.totalorder %s4976_s10, 2  ;;  %p45_p9 = scmp.eq.s32.totalorder %s44_s21, 0 }
  0x28   : > { %s317_s2 = sand.u32 1, %s4964_s29   ;;  %s4617_s16 = smul.u32 288, %s4972_s9 }
  0x29   : > { %s4616_s12 = smul.u32 288, %s317_s2  ;;  %p5142_p10 = pnand %p4661_p7, %p56_p3 }
  0x2a   : > { %s5139_s15 = scalar_select %p45_p9, %s4964_s29, %s47_s20  }
  0x2b   : > { %s321_s19 = scalar_lea.vmem [#allocation2], %s4616_s12  ;;  %s6214_s0 = sld [smem:[#allocation94_spill]] }
  0x2c   : > { %6212 = sst [smem:[#allocation22_spill]] %s5139_s15  ;;  %s329_s22 = sshll.u32 %s321_s19, 4  ;;  %s330_s22 = int_to_ptr.vmem [resolvable:$true] %s329_s22 }
  0x2d   : > { %s339_s21 = sand.u32 1, %s4976_s10   ;;  %s318_s17 = scalar_lea.sflag [#allocation3], %s317_s2 }
  0x2e   : > { %s6215_s20 = smov 4   ;;  %s6216_s15 = smov 64  }
  0x2f   : > { %s3964_s12 = sshll.u32 %s317_s2, 8  ;;  %s4474_s19 = sshll.u32 %s4972_s9, 8 }
  0x30   : > { %s351_s27 = scalar_lea.hbm %s6143_s1, %s4474_s19  ;;  %s343_s25 = scalar_lea.vmem [#allocation5], %s3964_s12 }
  0x31   : > { %s326_s4 = scalar_lea.hbm %s6214_s0, %s4617_s16  ;;  %s354_s26 = sshll.u32 %s343_s25, 4  ;;  %s355_s26 = int_to_ptr.vmem [resolvable:$true] %s354_s26 }
  0x32   : > { %s327_s6 = sshll.u32 %s326_s4, 4  ;;  %s352_s16 = sshll.u32 %s351_s27, 4  ;;  %s328_s6 = int_to_ptr.hbm [resolvable:$true] %s327_s6  ;;  %s353_s16 = int_to_ptr.hbm [resolvable:$true] %s352_s16 }
  0x33   : > { %4650 = dma.hbm_to_vmem [thread:$0]  (!%p5142_p10), %s328_s6, 4608, %s330_s22, %s318_s17, %s6216_s15, %s6216_s15, %s6215_s20  }
  0x34   : > { %s340_s4 = scalar_lea.sflag [#allocation6], %s339_s21  ;;  %s4983_s0 = smov 128  }
  0x35   : > { %s4984_s10 = smov 8   ;;  %366 = sbr.rel (%p5087_p8) target bundleno = 1540 (0x604), region = 52 }
  0x36   : > { %4653 = dma.hbm_to_vmem [thread:$0]  (!%p5142_p10), %s353_s16, 4096, %s355_s26, %s340_s4, %s4983_s0, %s4983_s0, %s4984_s10  }
  0x3a   : > { %s5164_s6 = sand.u32 1, %s4960_s28  }
  0x3b   : > { %s4618_s29 = smul.u32 288, %s5164_s6  ;;  %s369_s14 = scalar_lea.sflag [#allocation3], %s5164_s6 }
  0x3d   : > { %s5168_s17 = scalar_lea.vmem [#allocation2], %s4618_s29 }
  0x3e   : > { %4935 = dma.done.wait (%p5074_p4), %s369_s14, 4608  }
  0x3f   : > { %4937 = vsyncadd (%p5074_p4), %s369_s14, 4294962688  ;;  %s378_s0 = sand.u32 1, %s5065_s11   ;;  %s3968_s27 = sshll.u32 %s5164_s6, 8 }
  0x40   : > { %s379_s10 = scalar_lea.sflag [#allocation6], %s378_s0  ;;  %s5178_s18 = scalar_lea.vmem [#allocation5], %s3968_s27 }
  0x41   : > { %4939 = dma.done.wait (%p5074_p4), %s379_s10, 4096  }
  0x42   : > { %4941 = vsyncadd (%p5074_p4), %s379_s10, 4294963200 }
  0x43   : > { %4943 = dma.done.wait (%p61_p1), [#allocation6], 1024  }
  0x44   : > { %4945 = vsyncadd (%p61_p1), [#allocation6], 4294966272 }
  0x45   : > { %4947 = dma.done.wait (%p61_p1), [#allocation9], 10240  }
  0x46   : > { %4949 = vsyncadd (%p61_p1), [#allocation9], 4294957056  ;;  %v4518_v0 = vld [vmem:[#allocation7 + $0x38] sm:$0xff]  ;;  %v4517_v1 = vld [vmem:[#allocation7 + $0x30] sm:$0xff]  ;;  %v4985_v38 = vmov 0.0|0.0   ;;  %v4986_v46 = vmov 0.0   ;;  %v1041_v62 = vlaneseq }
  0x47   : > { %798 = vmatpush.bf16.msra.mxu0 %v4518_v0  ;;  %4600 = vmatpush.bf16.msra.mxu1 %v4518_v0  ;;  %v4516_v2 = vld [vmem:[#allocation7 + $0x28] sm:$0xff]  ;;  %v4515_v3 = vld [vmem:[#allocation7 + $0x20] sm:$0xff]  ;;  %v4514_v4 = vld [vmem:[#allocation7 + $0x18] sm:$0xff]  ;;  %v1823_v39 = vunpack.c.l.b16 %v4985_v38  ;;  %v1456_v47 = vrot.slane %v4986_v46, 1  ;;  %v1601_v48 = vrot.slane %v4986_v46, 2  ;;  %vm1455_vm1 = vcmask 1046528  }
  0x48   : > { %4601 = vmatpush.bf16.msra.mxu2 %v4518_v0  ;;  %v4513_v5 = vld [vmem:[#allocation7 + $0x10] sm:$0xff]  ;;  %v4512_v6 = vld [vmem:[#allocation7 + $0x8] sm:$0xff]  ;;  %v4511_v7 = vld [vmem:[#allocation7] sm:$0xff]  ;;  %vm1600_vm2 = vcmask 1045504   ;;  %s5994_s29 = scalar_lea.vmem [#allocation11], %s3968_s27  ;;  %s4599_s14 = sshll.u32 %s4968_s30, 8 }
  0x49   : > { %v4475_v8 = vld [vmem:[%s5168_s17] sm:$0xff]  ;;  %v4476_v9 = vld [vmem:[%s5168_s17 + $0x8] sm:$0xff]  ;;  %v4477_v10 = vld [vmem:[%s5168_s17 + $0x10] sm:$0xff]  ;;  %v5204_v41 = vpack.c.b16 %v1823_v39, %v1823_v39  ;;  %v1568_v50 = vpack.c.bf16 %v1456_v47, %v1456_v47  ;;  %v1713_v51 = vpack.c.bf16 %v1601_v48, %v1601_v48  ;;  %s3812_s27 = scalar_lea.hbm %s6150_s8, %s4599_s14  ;;  %s3813_s10 = sshll.u32 %s5994_s29, 4  ;;  %s3814_s10 = int_to_ptr.vmem [resolvable:$true] %s3813_s10 }
  0x4a   : > { %v4478_v11 = vld [vmem:[%s5168_s17 + $0x18] sm:$0xff]  ;;  %v4479_v12 = vld [vmem:[%s5168_s17 + $0x20] sm:$0xff]  ;;  %v4480_v13 = vld [vmem:[%s5168_s17 + $0x28] sm:$0xff]  ;;  %s3815_s11 = sshll.u32 %s3812_s27, 4  ;;  %s3798_s13 = scalar_lea.sflag [#allocation4], %s5164_s6  ;;  %s3816_s11 = int_to_ptr.hbm [resolvable:$true] %s3815_s11 }
  0x4b   : > { %799 = vmatpush.bf16.msra.mxu0 %v4517_v1  ;;  %4602 = vmatpush.bf16.msra.mxu1 %v4517_v1  ;;  %v4481_v14 = vld [vmem:[%s5168_s17 + $0x30] sm:$0xff]  ;;  %v4508_v15 = vld [vmem:[%s5168_s17 + $0x108] sm:$0xff]  ;;  %v4526_v16 = vld [vmem:[#allocation8 + $0x38] sm:$0xff]  ;;  %6217 = vst [vmem:[#allocation23_spill] sm:$0xff] %v5204_v41  ;;  %v1919_v54 = vunpack.c.l.b16 %v1568_v50  ;;  %v2015_v55 = vunpack.c.l.b16 %v1713_v51  ;;  %s4896_s2 = sshra.s32 %s3816_s11, 4  ;;  %s4902_s23 = scalar_lea.hbm %s6150_s8, 512  ;;  %s4897_s2 = int_to_ptr.hbm [resolvable:$true] %s4896_s2 }
  0x4c   : > { %4603 = vmatpush.bf16.msra.mxu2 %v4517_v1  ;;  %v4525_v17 = vld [vmem:[#allocation8 + $0x30] sm:$0xff]  ;;  %v4524_v18 = vld [vmem:[#allocation8 + $0x28] sm:$0xff]  ;;  %v4523_v19 = vld [vmem:[#allocation8 + $0x20] sm:$0xff]  ;;  %s4898_s30 = scalar_lea.hbm %s4897_s2, 256  ;;  %p4903_p8 = scmp.lt.s32.totalorder %s4897_s2, %s6150_s8 }
  0x4d   : > { %v4534_v20 = vld [vmem:[#allocation8 + $0x78] sm:$0xff]  ;;  %v4509_v23 = vld [vmem:[%s5168_s17 + $0x110] sm:$0xff]  ;;  %v4532_v28 = vld [vmem:[#allocation8 + $0x68] sm:$0xff]  ;;  %v5207_v56 = vpack.c.b16 %v1919_v54, %v1919_v54  ;;  %v5209_v57 = vpack.c.b16 %v2015_v55, %v2015_v55  ;;  %p4899_p1 = scmp.ne.s32.totalorder %s4897_s2, %s4898_s30  ;;  %p4904_p12 = scmp.lt.s32.totalorder %s4902_s23, %s4898_s30 }
  0x4e   : > { %v4542_v21 = vld [vmem:[#allocation8 + $0xb8] sm:$0xff]  ;;  %v4533_v25 = vld [vmem:[#allocation8 + $0x70] sm:$0xff]  ;;  %v4540_v29 = vld [vmem:[#allocation8 + $0xa8] sm:$0xff] }
  0x4f   : > { %800 = vmatpush.bf16.msra.mxu0 %v4516_v2  ;;  %4604 = vmatpush.bf16.msra.mxu1 %v4516_v2  ;;  %v4482_v22 = vld [vmem:[%s5168_s17 + $0x38] sm:$0xff]  ;;  %v4541_v26 = vld [vmem:[#allocation8 + $0xb0] sm:$0xff]  ;;  %v4520_v30 = vld [vmem:[#allocation8 + $0x8] sm:$0xff]  ;;  %6218 = vst [vmem:[#allocation24_spill] sm:$0xff] %v5207_v56  ;;  %p4900_p2 = pnand %p4899_p1, %p5130_p5  ;;  %p4905_p13 = por %p4904_p12, %p4903_p8 }
  0x50   : > { %4605 = vmatpush.bf16.msra.mxu2 %v4516_v2  ;;  %2873 = vmatpush.bf16.msra.mxu3 %v4542_v21  ;;  %v4522_v24 = vld [vmem:[#allocation8 + $0x18] sm:$0xff]  ;;  %v4521_v27 = vld [vmem:[#allocation8 + $0x10] sm:$0xff]  ;;  %v4531_v31 = vld [vmem:[#allocation8 + $0x60] sm:$0xff]  ;;  %6219 = vst [vmem:[#allocation25_spill] sm:$0xff] %v5209_v57  ;;  %v5221_v2 = vshrl.u32 %v1041_v62, 7 }
  0x51   : > { %v4539_v32 = vld [vmem:[#allocation8 + $0xa0] sm:$0xff]  ;;  %v4510_v33 = vld [vmem:[%s5168_s17 + $0x118] sm:$0xff]  ;;  %v4529_v42 = vld [vmem:[#allocation8 + $0x50] sm:$0xff]  ;;  %p4901_p4 = pneg %p4900_p2 }
  0x52   : > { %v4519_v34 = vld [vmem:[#allocation8] sm:$0xff]  ;;  %v4530_v35 = vld [vmem:[#allocation8 + $0x58] sm:$0xff]  ;;  %v4537_v43 = vld [vmem:[#allocation8 + $0x90] sm:$0xff]  ;;  %6220 = vst [vmem:[#allocation26_spill] sm:$0xff] %v5221_v2  ;;  %vm1099_vm0 = vcmp.ge.s32.totalorder %v5221_v2, 1 }
  0x53   : > { %801 = vmatpush.bf16.msra.mxu0 %v4515_v3  ;;  %4606 = vmatpush.bf16.msra.mxu1 %v4515_v3  ;;  %v4538_v36 = vld [vmem:[#allocation8 + $0x98] sm:$0xff]  ;;  %v4483_v37 = vld [vmem:[%s5168_s17 + $0x40] sm:$0xff]  ;;  %v4528_v44 = vld [vmem:[#allocation8 + $0x48] sm:$0xff]  ;;  %p4906_p0 = pnand %p4905_p13, %p4901_p4 }
  0x54   : > { %4607 = vmatpush.bf16.msra.mxu2 %v4515_v3  ;;  %2874 = vmatpush.bf16.msra.mxu3 %v4541_v26  ;;  %v4536_v45 = vld [vmem:[#allocation8 + $0x88] sm:$0xff]  ;;  %v4527_v52 = vld [vmem:[#allocation8 + $0x40] sm:$0xff]  ;;  %v4485_v63 = vld [vmem:[%s5168_s17 + $0x50] sm:$0xff] }
  0x55   : > { %v4535_v53 = vld [vmem:[#allocation8 + $0x80] sm:$0xff]  ;;  %v4484_v58 = vld [vmem:[%s5168_s17 + $0x48] sm:$0xff] }
  0x56   : > { %v5217_v61 = vld [vmem:[%s6145_s3] ss:$0 sm:$0xff] }
  0x57   : > { %802 = vmatpush.bf16.msra.mxu0 %v4514_v4  ;;  %4608 = vmatpush.bf16.msra.mxu1 %v4514_v4 }
  0x58   : > { %4609 = vmatpush.bf16.msra.mxu2 %v4514_v4  ;;  %2875 = vmatpush.bf16.msra.mxu3 %v4540_v29 }
  0x5b   : > { %803 = vmatpush.bf16.msra.mxu0 %v4513_v5  ;;  %4610 = vmatpush.bf16.msra.mxu1 %v4513_v5 }
  0x5c   : > { %4611 = vmatpush.bf16.msra.mxu2 %v4513_v5  ;;  %2876 = vmatpush.bf16.msra.mxu3 %v4539_v32 }
  0x5f   : > { %804 = vmatpush.bf16.msra.mxu0 %v4512_v6  ;;  %4612 = vmatpush.bf16.msra.mxu1 %v4512_v6 }
  0x60   : > { %4613 = vmatpush.bf16.msra.mxu2 %v4512_v6  ;;  %2877 = vmatpush.bf16.msra.mxu3 %v4538_v36 }
  0x63   : > { %805 = vmatpush.bf16.msra.mxu0 %v4511_v7  ;;  %4614 = vmatpush.bf16.msra.mxu1 %v4511_v7 }
  0x64   : > { %4615 = vmatpush.bf16.msra.mxu2 %v4511_v7  ;;  %2878 = vmatpush.bf16.msra.mxu3 %v4537_v43 }
  0x66   : > { %806 = vmatmul.bf16.vlgmr.msra.gmra.mxu0 %v4475_v8  ;;  %955 = vmatmul.bf16.vlgmr.msra.gmra.mxu1 %v4508_v15 }
  0x67   : > { %2695 = vmatpush.bf16.msrb.mxu1 %v4526_v16  ;;  %964 = vmatmul.bf16.vlgmr.msra.gmra.mxu2 %v4510_v33 }
  0x68   : > { %2784 = vmatpush.bf16.msrb.mxu2 %v4534_v20  ;;  %2879 = vmatpush.bf16.msra.mxu3 %v4536_v45 }
  0x6b   : > { %2696 = vmatpush.bf16.msrb.mxu1 %v4525_v17 }
  0x6c   : > { %2785 = vmatpush.bf16.msrb.mxu2 %v4533_v25  ;;  %2880 = vmatpush.bf16.msra.mxu3 %v4535_v53 }
  0x6f   : > { %2697 = vmatpush.bf16.msrb.mxu1 %v4524_v18  ;;  %2881 = vmatmul.bf16.vlgmr.msra.gmra.mxu3 %v5209_v57 }
  0x70   : > { %2786 = vmatpush.bf16.msrb.mxu2 %v4532_v28 }
  0x73   : > { %2698 = vmatpush.bf16.msrb.mxu1 %v4523_v19 }
  0x74   : > { %2787 = vmatpush.bf16.msrb.mxu2 %v4531_v31 }
  0x76   : > { %811 = vmatmul.bf16.gmra.mxu0 %v4476_v9  ;;  %959 = vmatmul.bf16.gmra.mxu1 %v4509_v23 }
  0x77   : > { %2699 = vmatpush.bf16.msrb.mxu1 %v4522_v24 }
  0x78   : > { %2788 = vmatpush.bf16.msrb.mxu2 %v4530_v35 }
  0x7b   : > { %2700 = vmatpush.bf16.msrb.mxu1 %v4521_v27 }
  0x7c   : > { %2789 = vmatpush.bf16.msrb.mxu2 %v4529_v42 }
  0x7f   : > { %2701 = vmatpush.bf16.msrb.mxu1 %v4520_v30 }
  0x80   : > { %2790 = vmatpush.bf16.msrb.mxu2 %v4528_v44 }
  0x83   : > { %2702 = vmatpush.bf16.msrb.mxu1 %v4519_v34 }
  0x84   : > { %2791 = vmatpush.bf16.msrb.mxu2 %v4527_v52  ;;  %v4488_v52 = vld [vmem:[%s5168_s17 + $0x68] sm:$0xff] }
  0x86   : > { %815 = vmatmul.bf16.gmra.mxu0 %v4477_v10  ;;  %2703 = vmatmul.bf16.vlgmr.msrb.gmra.mxu1 %v5204_v41  ;;  %v5228_v10 = vadd.s32 16, %v5221_v2 }
  0x87   : > { %2792 = vmatmul.bf16.vlgmr.msrb.gmra.mxu2 %v5207_v56  ;;  %v4502_v56 = vld [vmem:[%s5168_s17 + $0xd8] sm:$0xff] }
  0x88   : > { %6221 = vst [vmem:[#allocation27_spill] sm:$0xff] %v5228_v10  ;;  %vm1158_vm3 = vcmp.le.s32.totalorder %v5228_v10, 16 }
  0x96   : > { %820 = vmatmul.bf16.gmra.mxu0 %v4478_v11  ;;  %v4486_v11 = vld [vmem:[%s5168_s17 + $0x58] sm:$0xff] }
  0xa6   : > { %824 = vmatmul.bf16.gmra.mxu0 %v4479_v12 }
  0xb6   : > { %829 = vmatmul.bf16.gmra.mxu0 %v4480_v13 }
  0xc6   : > { %833 = vmatmul.bf16.gmra.mxu0 %v4481_v14 }
  0xd6   : > { %838 = vmatmul.bf16.gmra.mxu0 %v4482_v22 }
  0xe3   : > { %v807_v40 = vpop.f32.mrf.mxu0 }
  0xe4   : > { %v4487_v40 = vld [vmem:[%s5168_s17 + $0x60] sm:$0xff] }
  0xe6   : > { %842 = vmatmul.bf16.gmra.mxu0 %v4483_v37 }
  0xeb   : > { %v809_v49 = vpop.f32.mrf.mxu0 }
  0xf3   : > { %v812_v59 = vpop.f32.mrf.mxu0 }
  0xf6   : > { %847 = vmatmul.bf16.gmra.mxu0 %v4484_v58 }
  0xfb   : > { %v814_v60 = vpop.f32.mrf.mxu0 }
 0x103   : > { %v816_v0 = vpop.f32.mrf.mxu0 }
 0x104   : > { %v817_v1 = vadd.f32 %v5217_v61, %v816_v0 }
 0x106   : > { %851 = vmatmul.bf16.gmra.mxu0 %v4485_v63  ;;  %v972_v3 = vmax.f32 %v817_v1, 0.0 }
 0x108   : > { %v1324_v4 = vsel %vm1099_vm0, %v972_v3, 0.0 }
 0x109   : > { %v1377_v8 = vpack.c.bf16 %v1324_v4, %v1324_v4  ;;  %v1461_v19 = vrot.slane %v1324_v4, 1  ;;  %v1606_v20 = vrot.slane %v1324_v4, 2 }
 0x10b   : > { %v818_v5 = vpop.f32.mrf.mxu0  ;;  %v1825_v12 = vunpack.c.l.b16 %v1377_v8 }
 0x10c   : > { %v819_v6 = vadd.f32 %v5217_v61, %v818_v5 }
 0x10e   : > { %v973_v7 = vmax.f32 %v819_v6, 0.0 }
 0x110   : > { %v1378_v9 = vpack.c.bf16 %v973_v7, %v973_v7  ;;  %v1462_v14 = vrot.slane %v973_v7, 1  ;;  %v1607_v15 = vrot.slane %v973_v7, 2 }
 0x112   : > { %v1826_v13 = vunpack.c.l.b16 %v1378_v9  ;;  %v1463_v22 = vsel %vm1455_vm1, %v1461_v19, %v1462_v14  ;;  %v1608_v23 = vsel %vm1600_vm2, %v1606_v20, %v1607_v15 }
 0x113   : > { %v821_v16 = vpop.f32.mrf.mxu0  ;;  %v1570_v27 = vpack.c.bf16 %v1463_v22, %v1463_v22  ;;  %v1715_v28 = vpack.c.bf16 %v1608_v23, %v1608_v23  ;;  %v4489_v22 = vld [vmem:[%s5168_s17 + $0x70] sm:$0xff] }
 0x114   : > { %v822_v17 = vadd.f32 %v5217_v61, %v821_v16  ;;  %v5232_v18 = vpack.c.b16 %v1826_v13, %v1825_v12 }
 0x115   : > { %v1921_v34 = vunpack.c.l.b16 %v1570_v27  ;;  %v2017_v36 = vunpack.c.l.b16 %v1715_v28 }
 0x116   : > { %v974_v21 = vmax.f32 %v822_v17, 0.0  ;;  %856 = vmatmul.bf16.gmra.mxu0 %v4486_v11  ;;  %2708 = vmatmul.bf16.gmra.mxu1 %v5232_v18 }
 0x118   : > { %v1326_v24 = vsel %vm1158_vm3, %v974_v21, 0.0 }
 0x119   : > { %v1464_v25 = vrot.slane %v1326_v24, 1  ;;  %v1609_v26 = vrot.slane %v1326_v24, 2  ;;  %v5271_v24 = vpop.f32.mrf.mxu1 }
 0x11a   : > { %6222 = vst [vmem:[#allocation28_spill] sm:$0xff] %v5271_v24 }
 0x11b   : > { %v823_v29 = vpop.f32.mrf.mxu0  ;;  %v1465_v30 = vsel %vm1455_vm1, %v1462_v14, %v1464_v25  ;;  %v1610_v31 = vsel %vm1600_vm2, %v1607_v15, %v1609_v26 }
 0x11c   : > { %v1571_v32 = vpack.c.bf16 %v1465_v30, %v1465_v30  ;;  %v1716_v33 = vpack.c.bf16 %v1610_v31, %v1610_v31 }
 0x11e   : > { %v1922_v35 = vunpack.c.l.b16 %v1571_v32  ;;  %v2018_v37 = vunpack.c.l.b16 %v1716_v33 }
 0x120   : > { %v5242_v38 = vpack.c.b16 %v1922_v35, %v1921_v34  ;;  %v5244_v39 = vpack.c.b16 %v2018_v37, %v2017_v36  ;;  %v4490_v35 = vld [vmem:[%s5168_s17 + $0x78] sm:$0xff] }
 0x121   : > { %v958_v29 = vpop.f32.mrf.mxu1 }
 0x122   : > { %2797 = vmatmul.bf16.gmra.mxu2 %v5242_v38  ;;  %2886 = vmatmul.bf16.gmra.mxu3 %v5244_v39 }
 0x123   : > { %v825_v42 = vpop.f32.mrf.mxu0 }
 0x124   : > { %v826_v43 = vadd.f32 %v5217_v61, %v825_v42 }
 0x126   : > { %860 = vmatmul.bf16.gmra.mxu0 %v4487_v40  ;;  %v975_v44 = vmax.f32 %v826_v43, 0.0 }
 0x128   : > { %v1327_v45 = vsel %vm1099_vm0, %v975_v44, 0.0 }
 0x129   : > { %v1379_v48 = vpack.c.bf16 %v1327_v45, %v1327_v45  ;;  %v1466_v62 = vrot.slane %v1327_v45, 1  ;;  %v1611_v63 = vrot.slane %v1327_v45, 2  ;;  %v960_v43 = vpop.f32.mrf.mxu1 }
 0x12b   : > { %v827_v46 = vpop.f32.mrf.mxu0  ;;  %v1827_v51 = vunpack.c.l.b16 %v1379_v48 }
 0x12c   : > { %v828_v47 = vadd.f32 %v5217_v61, %v827_v46 }
 0x12e   : > { %v976_v49 = vmax.f32 %v828_v47, 0.0 }
 0x130   : > { %v1380_v50 = vpack.c.bf16 %v976_v49, %v976_v49  ;;  %v1467_v54 = vrot.slane %v976_v49, 1  ;;  %v1612_v55 = vrot.slane %v976_v49, 2 }
 0x132   : > { %v1828_v53 = vunpack.c.l.b16 %v1380_v50  ;;  %v1468_v1 = vsel %vm1455_vm1, %v1466_v62, %v1467_v54  ;;  %v1613_v3 = vsel %vm1600_vm2, %v1611_v63, %v1612_v55  ;;  %v962_v63 = vpop.f32.mrf.mxu1 }
 0x133   : > { %v830_v58 = vpop.f32.mrf.mxu0  ;;  %v1572_v7 = vpack.c.bf16 %v1468_v1, %v1468_v1  ;;  %v1717_v8 = vpack.c.bf16 %v1613_v3, %v1613_v3 }
 0x134   : > { %v831_v59 = vadd.f32 %v5217_v61, %v830_v58  ;;  %v5255_v60 = vpack.c.b16 %v1828_v53, %v1827_v51 }
 0x135   : > { %v1923_v15 = vunpack.c.l.b16 %v1572_v7  ;;  %v2019_v17 = vunpack.c.l.b16 %v1717_v8 }
 0x136   : > { %v977_v0 = vmax.f32 %v831_v59, 0.0  ;;  %865 = vmatmul.bf16.gmra.mxu0 %v4488_v52  ;;  %2713 = vmatmul.bf16.gmra.mxu1 %v5255_v60 }
 0x138   : > { %v1329_v4 = vsel %vm1158_vm3, %v977_v0, 0.0 }
 0x139   : > { %v1469_v5 = vrot.slane %v1329_v4, 1  ;;  %v1614_v6 = vrot.slane %v1329_v4, 2 }
 0x13b   : > { %v832_v9 = vpop.f32.mrf.mxu0  ;;  %v1470_v11 = vsel %vm1455_vm1, %v1467_v54, %v1469_v5  ;;  %v1615_v12 = vsel %vm1600_vm2, %v1612_v55, %v1614_v6 }
 0x13c   : > { %v1573_v13 = vpack.c.bf16 %v1470_v11, %v1470_v11  ;;  %v1718_v14 = vpack.c.bf16 %v1615_v12, %v1615_v12  ;;  %v965_v9 = vpop.f32.mrf.mxu2  ;;  %v4491_v11 = vld [vmem:[%s5168_s17 + $0x80] sm:$0xff] }
 0x13d   : > { %v4493_v9 = vld [vmem:[%s5168_s17 + $0x90] sm:$0xff] }
 0x13e   : > { %v1924_v16 = vunpack.c.l.b16 %v1573_v13  ;;  %v2020_v19 = vunpack.c.l.b16 %v1718_v14 }
 0x140   : > { %v5264_v20 = vpack.c.b16 %v1924_v16, %v1923_v15  ;;  %v5266_v21 = vpack.c.b16 %v2020_v19, %v2019_v17 }
 0x142   : > { %2802 = vmatmul.bf16.gmra.mxu2 %v5264_v20  ;;  %2891 = vmatmul.bf16.gmra.mxu3 %v5266_v21 }
 0x143   : > { %v834_v23 = vpop.f32.mrf.mxu0 }
 0x144   : > { %v835_v25 = vadd.f32 %v5217_v61, %v834_v23  ;;  %v967_v15 = vpop.f32.mrf.mxu2 }
 0x146   : > { %869 = vmatmul.bf16.gmra.mxu0 %v4489_v22  ;;  %v978_v26 = vmax.f32 %v835_v25, 0.0 }
 0x148   : > { %v1330_v27 = vsel %vm1099_vm0, %v978_v26, 0.0 }
 0x149   : > { %v1381_v31 = vpack.c.bf16 %v1330_v27, %v1330_v27  ;;  %v1471_v46 = vrot.slane %v1330_v27, 1  ;;  %v1616_v47 = vrot.slane %v1330_v27, 2  ;;  %v4492_v27 = vld [vmem:[%s5168_s17 + $0x88] sm:$0xff] }
 0x14b   : > { %v836_v28 = vpop.f32.mrf.mxu0  ;;  %v1829_v34 = vunpack.c.l.b16 %v1381_v31 }
 0x14c   : > { %v837_v30 = vadd.f32 %v5217_v61, %v836_v28 }
 0x14e   : > { %v979_v32 = vmax.f32 %v837_v30, 0.0 }
 0x150   : > { %v1382_v33 = vpack.c.bf16 %v979_v32, %v979_v32  ;;  %v1472_v37 = vrot.slane %v979_v32, 1  ;;  %v1617_v40 = vrot.slane %v979_v32, 2  ;;  %v5303_v32 = vld [vmem:[%s6147_s5] ss:$0 sm:$0xff] }
 0x152   : > { %v1830_v36 = vunpack.c.l.b16 %v1382_v33  ;;  %v1473_v49 = vsel %vm1455_vm1, %v1471_v46, %v1472_v37  ;;  %v1618_v50 = vsel %vm1600_vm2, %v1616_v47, %v1617_v40  ;;  %v2793_v47 = vpop.f32.mrf.mxu2 }
 0x153   : > { %v839_v42 = vpop.f32.mrf.mxu0  ;;  %v1574_v54 = vpack.c.bf16 %v1473_v49, %v1473_v49  ;;  %v1719_v55 = vpack.c.bf16 %v1618_v50, %v1618_v50 }
 0x154   : > { %v840_v44 = vadd.f32 %v5217_v61, %v839_v42  ;;  %v5279_v45 = vpack.c.b16 %v1830_v36, %v1829_v34 }
 0x155   : > { %v1925_v3 = vunpack.c.l.b16 %v1574_v54  ;;  %v2021_v5 = vunpack.c.l.b16 %v1719_v55 }
 0x156   : > { %v980_v48 = vmax.f32 %v840_v44, 0.0  ;;  %874 = vmatmul.bf16.gmra.mxu0 %v4490_v35  ;;  %2718 = vmatmul.bf16.gmra.mxu1 %v5279_v45  ;;  %v2704_v35 = vpop.f32.mrf.mxu1 }
 0x158   : > { %v1332_v51 = vsel %vm1158_vm3, %v980_v48, 0.0 }
 0x159   : > { %v1474_v52 = vrot.slane %v1332_v51, 1  ;;  %v1619_v53 = vrot.slane %v1332_v51, 2 }
 0x15b   : > { %v841_v58 = vpop.f32.mrf.mxu0  ;;  %v1475_v59 = vsel %vm1455_vm1, %v1472_v37, %v1474_v52  ;;  %v1620_v62 = vsel %vm1600_vm2, %v1617_v40, %v1619_v53  ;;  %v2705_v40 = vadd.f32 %v5303_v32, %v2704_v35  ;;  %v2882_v53 = vpop.f32.mrf.mxu3 }
 0x15c   : > { %v1575_v0 = vpack.c.bf16 %v1475_v59, %v1475_v59  ;;  %v1720_v1 = vpack.c.bf16 %v1620_v62, %v1620_v62 }
 0x15d   : > { %v2794_v50 = vadd.f32 %v2793_v47, %v2705_v40 }
 0x15e   : > { %v1926_v4 = vunpack.c.l.b16 %v1575_v0  ;;  %v2022_v6 = vunpack.c.l.b16 %v1720_v1 }
 0x15f   : > { %v5316_v59 = vadd.f32 %v2882_v53, %v2794_v50  ;;  %v5340_v50 = vpop.f32.mrf.mxu2 }
 0x160   : > { %v5288_v7 = vpack.c.b16 %v1926_v4, %v1925_v3  ;;  %v5290_v8 = vpack.c.b16 %v2022_v6, %v2021_v5 }
 0x162   : > { %2807 = vmatmul.bf16.gmra.mxu2 %v5288_v7  ;;  %2896 = vmatmul.bf16.gmra.mxu3 %v5290_v8 }
 0x163   : > { %v843_v12 = vpop.f32.mrf.mxu0 }
 0x164   : > { %v844_v13 = vadd.f32 %v5217_v61, %v843_v12 }
 0x166   : > { %878 = vmatmul.bf16.gmra.mxu0 %v4491_v11  ;;  %v981_v14 = vmax.f32 %v844_v13, 0.0 }
 0x168   : > { %v1333_v16 = vsel %vm1099_vm0, %v981_v14, 0.0 }
 0x169   : > { %v1383_v22 = vpack.c.bf16 %v1333_v16, %v1333_v16  ;;  %v1476_v36 = vrot.slane %v1333_v16, 1  ;;  %v1621_v37 = vrot.slane %v1333_v16, 2 }
 0x16b   : > { %v845_v17 = vpop.f32.mrf.mxu0  ;;  %v1831_v26 = vunpack.c.l.b16 %v1383_v22 }
 0x16c   : > { %v846_v19 = vadd.f32 %v5217_v61, %v845_v17 }
 0x16e   : > { %v982_v23 = vmax.f32 %v846_v19, 0.0 }
 0x170   : > { %v1384_v25 = vpack.c.bf16 %v982_v23, %v982_v23  ;;  %v1477_v29 = vrot.slane %v982_v23, 1  ;;  %v1622_v30 = vrot.slane %v982_v23, 2 }
 0x172   : > { %v1832_v28 = vunpack.c.l.b16 %v1384_v25  ;;  %v1478_v43 = vsel %vm1455_vm1, %v1476_v36, %v1477_v29  ;;  %v1623_v44 = vsel %vm1600_vm2, %v1621_v37, %v1622_v30  ;;  %v4494_v25 = vld [vmem:[%s5168_s17 + $0x98] sm:$0xff]  ;;  %v5334_v37 = vpop.f32.mrf.mxu1 }
 0x173   : > { %v848_v31 = vpop.f32.mrf.mxu0  ;;  %v1576_v51 = vpack.c.bf16 %v1478_v43, %v1478_v43  ;;  %v1721_v52 = vpack.c.bf16 %v1623_v44, %v1623_v44 }
 0x174   : > { %v849_v33 = vadd.f32 %v5217_v61, %v848_v31  ;;  %v5306_v34 = vpack.c.b16 %v1832_v28, %v1831_v26 }
 0x175   : > { %v1927_v0 = vunpack.c.l.b16 %v1576_v51  ;;  %v2023_v3 = vunpack.c.l.b16 %v1721_v52 }
 0x176   : > { %v983_v42 = vmax.f32 %v849_v33, 0.0  ;;  %883 = vmatmul.bf16.gmra.mxu0 %v4492_v27  ;;  %2723 = vmatmul.bf16.gmra.mxu1 %v5306_v34 }
 0x178   : > { %v1335_v46 = vsel %vm1158_vm3, %v983_v42, 0.0 }
 0x179   : > { %v1479_v48 = vrot.slane %v1335_v46, 1  ;;  %v1624_v49 = vrot.slane %v1335_v46, 2 }
 0x17b   : > { %v850_v54 = vpop.f32.mrf.mxu0  ;;  %v1480_v55 = vsel %vm1455_vm1, %v1477_v29, %v1479_v48  ;;  %v1625_v58 = vsel %vm1600_vm2, %v1622_v30, %v1624_v49 }
 0x17c   : > { %v1577_v62 = vpack.c.bf16 %v1480_v55, %v1480_v55  ;;  %v1722_v63 = vpack.c.bf16 %v1625_v58, %v1625_v58  ;;  %v5344_v55 = vpop.f32.mrf.mxu3 }
 0x17e   : > { %v1928_v1 = vunpack.c.l.b16 %v1577_v62  ;;  %v2024_v4 = vunpack.c.l.b16 %v1722_v63 }
 0x180   : > { %v5318_v5 = vpack.c.b16 %v1928_v1, %v1927_v0  ;;  %v5320_v6 = vpack.c.b16 %v2024_v4, %v2023_v3 }
 0x182   : > { %2812 = vmatmul.bf16.gmra.mxu2 %v5318_v5  ;;  %2901 = vmatmul.bf16.gmra.mxu3 %v5320_v6 }
 0x183   : > { %v852_v11 = vpop.f32.mrf.mxu0 }
 0x184   : > { %v853_v12 = vadd.f32 %v5217_v61, %v852_v11 }
 0x186   : > { %887 = vmatmul.bf16.gmra.mxu0 %v4493_v9  ;;  %v984_v13 = vmax.f32 %v853_v12, 0.0  ;;  %v4495_v9 = vld [vmem:[%s5168_s17 + $0xa0] sm:$0xff] }
 0x188   : > { %v1336_v14 = vsel %vm1099_vm0, %v984_v13, 0.0 }
 0x189   : > { %v1385_v17 = vpack.c.bf16 %v1336_v14, %v1336_v14  ;;  %v1481_v33 = vrot.slane %v1336_v14, 1  ;;  %v1626_v35 = vrot.slane %v1336_v14, 2 }
 0x18b   : > { %v854_v15 = vpop.f32.mrf.mxu0  ;;  %v1833_v23 = vunpack.c.l.b16 %v1385_v17 }
 0x18c   : > { %v855_v16 = vadd.f32 %v5217_v61, %v854_v15 }
 0x18e   : > { %v985_v19 = vmax.f32 %v855_v16, 0.0 }
 0x190   : > { %v1386_v22 = vpack.c.bf16 %v985_v19, %v985_v19  ;;  %v1482_v27 = vrot.slane %v985_v19, 1  ;;  %v1627_v28 = vrot.slane %v985_v19, 2 }
 0x192   : > { %v1834_v26 = vunpack.c.l.b16 %v1386_v22  ;;  %v1483_v40 = vsel %vm1455_vm1, %v1481_v33, %v1482_v27  ;;  %v1628_v42 = vsel %vm1600_vm2, %v1626_v35, %v1627_v28 }
 0x193   : > { %v857_v29 = vpop.f32.mrf.mxu0  ;;  %v1578_v47 = vpack.c.bf16 %v1483_v40, %v1483_v40  ;;  %v1723_v48 = vpack.c.bf16 %v1628_v42, %v1628_v42  ;;  %v2709_v4 = vpop.f32.mrf.mxu1 }
 0x194   : > { %v858_v30 = vadd.f32 %v5217_v61, %v857_v29  ;;  %v5331_v31 = vpack.c.b16 %v1834_v26, %v1833_v23  ;;  %v2710_v12 = vadd.f32 %v5303_v32, %v2709_v4 }
 0x195   : > { %v1929_v58 = vunpack.c.l.b16 %v1578_v47  ;;  %v2025_v63 = vunpack.c.l.b16 %v1723_v48 }
 0x196   : > { %v986_v36 = vmax.f32 %v858_v30, 0.0  ;;  %892 = vmatmul.bf16.gmra.mxu0 %v4494_v25  ;;  %2728 = vmatmul.bf16.gmra.mxu1 %v5331_v31  ;;  %v4496_v30 = vld [vmem:[%s5168_s17 + $0xa8] sm:$0xff] }
 0x198   : > { %v1338_v43 = vsel %vm1158_vm3, %v986_v36, 0.0 }
 0x199   : > { %v1484_v44 = vrot.slane %v1338_v43, 1  ;;  %v1629_v46 = vrot.slane %v1338_v43, 2 }
 0x19b   : > { %v859_v49 = vpop.f32.mrf.mxu0  ;;  %v1485_v51 = vsel %vm1455_vm1, %v1482_v27, %v1484_v44  ;;  %v1630_v52 = vsel %vm1600_vm2, %v1627_v28, %v1629_v46 }
 0x19c   : > { %v1579_v53 = vpack.c.bf16 %v1485_v51, %v1485_v51  ;;  %v1724_v54 = vpack.c.bf16 %v1630_v52, %v1630_v52  ;;  %v5369_v52 = vpop.f32.mrf.mxu1 }
 0x19e   : > { %v1930_v62 = vunpack.c.l.b16 %v1579_v53  ;;  %v2026_v0 = vunpack.c.l.b16 %v1724_v54 }
 0x1a0   : > { %v5346_v1 = vpack.c.b16 %v1930_v62, %v1929_v58  ;;  %v5348_v3 = vpack.c.b16 %v2026_v0, %v2025_v63 }
 0x1a2   : > { %2817 = vmatmul.bf16.gmra.mxu2 %v5346_v1  ;;  %2906 = vmatmul.bf16.gmra.mxu3 %v5348_v3 }
 0x1a3   : > { %v861_v11 = vpop.f32.mrf.mxu0 }
 0x1a4   : > { %v862_v13 = vadd.f32 %v5217_v61, %v861_v11 }
 0x1a5   : > { %v2798_v14 = vpop.f32.mrf.mxu2  ;;  %v2887_v17 = vpop.f32.mrf.mxu3 }
 0x1a6   : > { %v2799_v15 = vadd.f32 %v2798_v14, %v2710_v12  ;;  %896 = vmatmul.bf16.gmra.mxu0 %v4495_v9  ;;  %v987_v16 = vmax.f32 %v862_v13, 0.0 }
 0x1a8   : > { %v5355_v19 = vadd.f32 %v2887_v17, %v2799_v15  ;;  %v1339_v22 = vsel %vm1099_vm0, %v987_v16, 0.0 }
 0x1a9   : > { %v1387_v26 = vpack.c.bf16 %v1339_v22, %v1339_v22  ;;  %v1486_v44 = vrot.slane %v1339_v22, 1  ;;  %v1631_v46 = vrot.slane %v1339_v22, 2 }
 0x1ab   : > { %v863_v23 = vpop.f32.mrf.mxu0  ;;  %v1835_v29 = vunpack.c.l.b16 %v1387_v26  ;;  %v4497_v26 = vld [vmem:[%s5168_s17 + $0xb0] sm:$0xff] }
 0x1ac   : > { %v864_v25 = vadd.f32 %v5217_v61, %v863_v23 }
 0x1ad   : > { %v5373_v12 = vpop.f32.mrf.mxu2  ;;  %v5375_v17 = vpop.f32.mrf.mxu3 }
 0x1ae   : > { %v988_v27 = vmax.f32 %v864_v25, 0.0  ;;  %6223 = vst [vmem:[#allocation29_spill] sm:$0xff] %v5375_v17 }
 0x1b0   : > { %v1388_v28 = vpack.c.bf16 %v988_v27, %v988_v27  ;;  %v1487_v35 = vrot.slane %v988_v27, 1  ;;  %v1632_v36 = vrot.slane %v988_v27, 2 }
 0x1b2   : > { %v1836_v33 = vunpack.c.l.b16 %v1388_v28  ;;  %v1488_v48 = vsel %vm1455_vm1, %v1486_v44, %v1487_v35  ;;  %v1633_v49 = vsel %vm1600_vm2, %v1631_v46, %v1632_v36 }
 0x1b3   : > { %v866_v40 = vpop.f32.mrf.mxu0  ;;  %v1580_v58 = vpack.c.bf16 %v1488_v48, %v1488_v48  ;;  %v1725_v62 = vpack.c.bf16 %v1633_v49, %v1633_v49  ;;  %v2714_v25 = vpop.f32.mrf.mxu1 }
 0x1b4   : > { %v867_v42 = vadd.f32 %v5217_v61, %v866_v40  ;;  %v5362_v43 = vpack.c.b16 %v1836_v33, %v1835_v29  ;;  %v2715_v28 = vadd.f32 %v5303_v32, %v2714_v25 }
 0x1b5   : > { %v1931_v13 = vunpack.c.l.b16 %v1580_v58  ;;  %v2027_v15 = vunpack.c.l.b16 %v1725_v62 }
 0x1b6   : > { %v989_v47 = vmax.f32 %v867_v42, 0.0  ;;  %901 = vmatmul.bf16.gmra.mxu0 %v4496_v30  ;;  %2733 = vmatmul.bf16.gmra.mxu1 %v5362_v43 }
 0x1b8   : > { %v1341_v51 = vsel %vm1158_vm3, %v989_v47, 0.0 }
 0x1b9   : > { %v1489_v53 = vrot.slane %v1341_v51, 1  ;;  %v1634_v54 = vrot.slane %v1341_v51, 2  ;;  %v4558_v51 = vld [vmem:[#allocation8 + $0x138] sm:$0xff] }
 0x1ba   : > { %3051 = vmatpush.bf16.msra.mxu2 %v4558_v51 }
 0x1bb   : > { %v868_v63 = vpop.f32.mrf.mxu0  ;;  %v1490_v0 = vsel %vm1455_vm1, %v1487_v35, %v1489_v53  ;;  %v1635_v4 = vsel %vm1600_vm2, %v1632_v36, %v1634_v54  ;;  %v4498_v54 = vld [vmem:[%s5168_s17 + $0xb8] sm:$0xff] }
 0x1bc   : > { %v1581_v9 = vpack.c.bf16 %v1490_v0, %v1490_v0  ;;  %v1726_v11 = vpack.c.bf16 %v1635_v4, %v1635_v4 }
 0x1be   : > { %v1932_v14 = vunpack.c.l.b16 %v1581_v9  ;;  %v2028_v16 = vunpack.c.l.b16 %v1726_v11 }
 0x1c0   : > { %v5377_v22 = vpack.c.b16 %v1932_v14, %v1931_v13  ;;  %v5379_v23 = vpack.c.b16 %v2028_v16, %v2027_v15 }
 0x1c2   : > { %2822 = vmatmul.bf16.gmra.mxu2 %v5377_v22  ;;  %2911 = vmatmul.bf16.gmra.mxu3 %v5379_v23 }
 0x1c3   : > { %v870_v27 = vpop.f32.mrf.mxu0 }
 0x1c4   : > { %v871_v29 = vadd.f32 %v5217_v61, %v870_v27 }
 0x1c5   : > { %v2803_v30 = vpop.f32.mrf.mxu2  ;;  %v2892_v36 = vpop.f32.mrf.mxu3 }
 0x1c6   : > { %v2804_v33 = vadd.f32 %v2803_v30, %v2715_v28  ;;  %905 = vmatmul.bf16.gmra.mxu0 %v4497_v26  ;;  %v990_v35 = vmax.f32 %v871_v29, 0.0  ;;  %v5400_v26 = vpop.f32.mrf.mxu1  ;;  %v4566_v29 = vld [vmem:[#allocation8 + $0x178] sm:$0xff] }
 0x1c7   : > { %6224 = vst [vmem:[#allocation30_spill] sm:$0xff] %v5400_v26  ;;  %v4550_v30 = vld [vmem:[#allocation8 + $0xf8] sm:$0xff]  ;;  %3140 = vmatpush.bf16.msrb.mxu3 %v4566_v29 }
 0x1c8   : > { %v5386_v40 = vadd.f32 %v2892_v36, %v2804_v33  ;;  %v1342_v42 = vsel %vm1099_vm0, %v990_v35, 0.0  ;;  %2962 = vmatpush.bf16.msra.mxu1 %v4550_v30 }
 0x1c9   : > { %v1389_v47 = vpack.c.bf16 %v1342_v42, %v1342_v42  ;;  %v1491_v11 = vrot.slane %v1342_v42, 1  ;;  %v1636_v13 = vrot.slane %v1342_v42, 2 }
 0x1cb   : > { %v872_v44 = vpop.f32.mrf.mxu0  ;;  %v1837_v53 = vunpack.c.l.b16 %v1389_v47 }
 0x1cc   : > { %v873_v46 = vadd.f32 %v5217_v61, %v872_v44 }
 0x1ce   : > { %v991_v48 = vmax.f32 %v873_v46, 0.0 }
 0x1d0   : > { %v1390_v49 = vpack.c.bf16 %v991_v48, %v991_v48  ;;  %v1492_v62 = vrot.slane %v991_v48, 1  ;;  %v1637_v63 = vrot.slane %v991_v48, 2  ;;  %v5404_v48 = vpop.f32.mrf.mxu2 }
 0x1d1   : > { %6225 = vst [vmem:[#allocation31_spill] sm:$0xff] %v5404_v48 }
 0x1d2   : > { %v1838_v58 = vunpack.c.l.b16 %v1390_v49  ;;  %v1493_v15 = vsel %vm1455_vm1, %v1491_v11, %v1492_v62  ;;  %v1638_v16 = vsel %vm1600_vm2, %v1636_v13, %v1637_v63 }
 0x1d3   : > { %v875_v0 = vpop.f32.mrf.mxu0  ;;  %v1582_v33 = vpack.c.bf16 %v1493_v15, %v1493_v15  ;;  %v1727_v35 = vpack.c.bf16 %v1638_v16, %v1638_v16 }
 0x1d4   : > { %v876_v4 = vadd.f32 %v5217_v61, %v875_v0  ;;  %v5393_v9 = vpack.c.b16 %v1838_v58, %v1837_v53  ;;  %v5406_v58 = vpop.f32.mrf.mxu3 }
 0x1d5   : > { %v1933_v49 = vunpack.c.l.b16 %v1582_v33  ;;  %v2029_v53 = vunpack.c.l.b16 %v1727_v35  ;;  %6226 = vst [vmem:[#allocation32_spill] sm:$0xff] %v5406_v58 }
 0x1d6   : > { %v992_v14 = vmax.f32 %v876_v4, 0.0  ;;  %910 = vmatmul.bf16.gmra.mxu0 %v4498_v54  ;;  %2738 = vmatmul.bf16.gmra.mxu1 %v5393_v9 }
 0x1d8   : > { %v1344_v25 = vsel %vm1158_vm3, %v992_v14, 0.0 }
 0x1d9   : > { %v1494_v27 = vrot.slane %v1344_v25, 1  ;;  %v1639_v28 = vrot.slane %v1344_v25, 2 }
 0x1db   : > { %v877_v36 = vpop.f32.mrf.mxu0  ;;  %v1495_v42 = vsel %vm1455_vm1, %v1492_v62, %v1494_v27  ;;  %v1640_v44 = vsel %vm1600_vm2, %v1637_v63, %v1639_v28  ;;  %v2719_v62 = vpop.f32.mrf.mxu1  ;;  %v4499_v63 = vld [vmem:[%s5168_s17 + $0xc0] sm:$0xff] }
 0x1dc   : > { %v1583_v46 = vpack.c.bf16 %v1495_v42, %v1495_v42  ;;  %v1728_v47 = vpack.c.bf16 %v1640_v44, %v1640_v44  ;;  %v2720_v13 = vadd.f32 %v5303_v32, %v2719_v62  ;;  %v4557_v44 = vld [vmem:[#allocation8 + $0x130] sm:$0xff] }
 0x1dd   : > { %3052 = vmatpush.bf16.msra.mxu2 %v4557_v44 }
 0x1de   : > { %v1934_v51 = vunpack.c.l.b16 %v1583_v46  ;;  %v2030_v54 = vunpack.c.l.b16 %v1728_v47  ;;  %v4500_v47 = vld [vmem:[%s5168_s17 + $0xc8] sm:$0xff] }
 0x1e0   : > { %v5408_v0 = vpack.c.b16 %v1934_v51, %v1933_v49  ;;  %v5410_v4 = vpack.c.b16 %v2030_v54, %v2029_v53 }
 0x1e2   : > { %6227 = vst [vmem:[#allocation33_spill] sm:$0xff] %v5408_v0  ;;  %2827 = vmatmul.bf16.gmra.mxu2 %v5408_v0  ;;  %2916 = vmatmul.bf16.gmra.mxu3 %v5410_v4 }
 0x1e3   : > { %6228 = vst [vmem:[#allocation34_spill] sm:$0xff] %v5410_v4  ;;  %v879_v11 = vpop.f32.mrf.mxu0 }
 0x1e4   : > { %v880_v14 = vadd.f32 %v5217_v61, %v879_v11 }
 0x1e5   : > { %v2808_v15 = vpop.f32.mrf.mxu2  ;;  %v2897_v27 = vpop.f32.mrf.mxu3 }
 0x1e6   : > { %v2809_v16 = vadd.f32 %v2808_v15, %v2720_v13  ;;  %914 = vmatmul.bf16.gmra.mxu0 %v4499_v63  ;;  %v993_v25 = vmax.f32 %v880_v14, 0.0 }
 0x1e8   : > { %v5417_v28 = vadd.f32 %v2897_v27, %v2809_v16  ;;  %v1345_v29 = vsel %vm1099_vm0, %v993_v25, 0.0  ;;  %v5431_v27 = vpop.f32.mrf.mxu1 }
 0x1e9   : > { %v1391_v35 = vpack.c.bf16 %v1345_v29, %v1345_v29  ;;  %v1496_v11 = vrot.slane %v1345_v29, 1  ;;  %v1641_v13 = vrot.slane %v1345_v29, 2  ;;  %6231 = vst [vmem:[#allocation37_spill] sm:$0xff] %v5431_v27 }
 0x1ea   : > { %6229 = vst [vmem:[#allocation35_spill] sm:$0xff] %v5417_v28 }
 0x1eb   : > { %v881_v30 = vpop.f32.mrf.mxu0  ;;  %v1839_v46 = vunpack.c.l.b16 %v1391_v35  ;;  %v4565_v35 = vld [vmem:[#allocation8 + $0x170] sm:$0xff] }
 0x1ec   : > { %v882_v33 = vadd.f32 %v5217_v61, %v881_v30  ;;  %3141 = vmatpush.bf16.msrb.mxu3 %v4565_v35 }
 0x1ed   : > { %v5437_v57 = vpop.f32.mrf.mxu3 }
 0x1ee   : > { %v994_v36 = vmax.f32 %v882_v33, 0.0  ;;  %6233 = vst [vmem:[#allocation39_spill] sm:$0xff] %v5437_v57 }
 0x1f0   : > { %v1392_v42 = vpack.c.bf16 %v994_v36, %v994_v36  ;;  %v1497_v51 = vrot.slane %v994_v36, 1  ;;  %v1642_v53 = vrot.slane %v994_v36, 2  ;;  %v4549_v36 = vld [vmem:[#allocation8 + $0xf0] sm:$0xff] }
 0x1f1   : > { %2963 = vmatpush.bf16.msra.mxu1 %v4549_v36 }
 0x1f2   : > { %v1840_v49 = vunpack.c.l.b16 %v1392_v42  ;;  %v1498_v15 = vsel %vm1455_vm1, %v1496_v11, %v1497_v51  ;;  %v1643_v16 = vsel %vm1600_vm2, %v1641_v13, %v1642_v53 }
 0x1f3   : > { %v884_v54 = vpop.f32.mrf.mxu0  ;;  %v1584_v42 = vpack.c.bf16 %v1498_v15, %v1498_v15  ;;  %v1729_v44 = vpack.c.bf16 %v1643_v16, %v1643_v16 }
 0x1f4   : > { %v885_v62 = vadd.f32 %v5217_v61, %v884_v54  ;;  %v5424_v63 = vpack.c.b16 %v1840_v49, %v1839_v46 }
 0x1f5   : > { %v1935_v11 = vunpack.c.l.b16 %v1584_v42 }
 0x1f6   : > { %6230 = vst [vmem:[#allocation36_spill] sm:$0xff] %v5424_v63  ;;  %v995_v14 = vmax.f32 %v885_v62, 0.0  ;;  %919 = vmatmul.bf16.gmra.mxu0 %v4500_v47  ;;  %2743 = vmatmul.bf16.gmra.mxu1 %v5424_v63  ;;  %v5435_v62 = vpop.f32.mrf.mxu2 }
 0x1f7   : > { %6232 = vst [vmem:[#allocation38_spill] sm:$0xff] %v5435_v62 }
 0x1f8   : > { %v1347_v25 = vsel %vm1158_vm3, %v995_v14, 0.0  ;;  %v2031_v14 = vunpack.c.l.b16 %v1729_v44 }
 0x1f9   : > { %v1499_v30 = vrot.slane %v1347_v25, 1  ;;  %v1644_v33 = vrot.slane %v1347_v25, 2 }
 0x1fb   : > { %v886_v29 = vpop.f32.mrf.mxu0  ;;  %v1500_v46 = vsel %vm1455_vm1, %v1497_v51, %v1499_v30  ;;  %v1645_v47 = vsel %vm1600_vm2, %v1642_v53, %v1644_v33  ;;  %v2724_v51 = vpop.f32.mrf.mxu1  ;;  %v4501_v53 = vld [vmem:[%s5168_s17 + $0xd0] sm:$0xff] }
 0x1fc   : > { %v1585_v49 = vpack.c.bf16 %v1500_v46, %v1500_v46  ;;  %v1730_v54 = vpack.c.bf16 %v1645_v47, %v1645_v47  ;;  %v2725_v33 = vadd.f32 %v5303_v32, %v2724_v51 }
 0x1fe   : > { %v1936_v13 = vunpack.c.l.b16 %v1585_v49  ;;  %v2032_v25 = vunpack.c.l.b16 %v1730_v54 }
 0x200   : > { %v5439_v15 = vpack.c.b16 %v1936_v13, %v1935_v11  ;;  %v5441_v16 = vpack.c.b16 %v2032_v25, %v2031_v14  ;;  %v4556_v25 = vld [vmem:[#allocation8 + $0x128] sm:$0xff] }
 0x201   : > { %3053 = vmatpush.bf16.msra.mxu2 %v4556_v25 }
 0x202   : > { %6234 = vst [vmem:[#allocation40_spill] sm:$0xff] %v5439_v15  ;;  %2832 = vmatmul.bf16.gmra.mxu2 %v5439_v15  ;;  %2921 = vmatmul.bf16.gmra.mxu3 %v5441_v16 }
 0x203   : > { %6235 = vst [vmem:[#allocation41_spill] sm:$0xff] %v5441_v16  ;;  %v888_v30 = vpop.f32.mrf.mxu0 }
 0x204   : > { %v889_v35 = vadd.f32 %v5217_v61, %v888_v30 }
 0x205   : > { %v2813_v36 = vpop.f32.mrf.mxu2  ;;  %v2902_v29 = vpop.f32.mrf.mxu3 }
 0x206   : > { %v2814_v42 = vadd.f32 %v2813_v36, %v2725_v33  ;;  %923 = vmatmul.bf16.gmra.mxu0 %v4501_v53  ;;  %v996_v44 = vmax.f32 %v889_v35, 0.0 }
 0x208   : > { %v5448_v46 = vadd.f32 %v2902_v29, %v2814_v42  ;;  %v1348_v47 = vsel %vm1099_vm0, %v996_v44, 0.0 }
 0x209   : > { %v1393_v11 = vpack.c.bf16 %v1348_v47, %v1348_v47  ;;  %v1501_v29 = vrot.slane %v1348_v47, 1  ;;  %v1646_v44 = vrot.slane %v1348_v47, 2 }
 0x20a   : > { %6236 = vst [vmem:[#allocation42_spill] sm:$0xff] %v5448_v46 }
 0x20b   : > { %v890_v49 = vpop.f32.mrf.mxu0  ;;  %v1841_v51 = vunpack.c.l.b16 %v1393_v11 }
 0x20c   : > { %v891_v54 = vadd.f32 %v5217_v61, %v890_v49 }
 0x20d   : > { %v5466_v57 = vpop.f32.mrf.mxu2  ;;  %v5468_v46 = vpop.f32.mrf.mxu3 }
 0x20e   : > { %v997_v13 = vmax.f32 %v891_v54, 0.0  ;;  %6238 = vst [vmem:[#allocation44_spill] sm:$0xff] %v5466_v57 }
 0x20f   : > { %6239 = vst [vmem:[#allocation45_spill] sm:$0xff] %v5468_v46  ;;  %v4504_v46 = vld [vmem:[%s5168_s17 + $0xe8] sm:$0xff] }
 0x210   : > { %v1394_v14 = vpack.c.bf16 %v997_v13, %v997_v13  ;;  %v1502_v33 = vrot.slane %v997_v13, 1  ;;  %v1647_v53 = vrot.slane %v997_v13, 2 }
 0x212   : > { %v1842_v30 = vunpack.c.l.b16 %v1394_v14  ;;  %v1503_v49 = vsel %vm1455_vm1, %v1501_v29, %v1502_v33  ;;  %v1648_v54 = vsel %vm1600_vm2, %v1646_v44, %v1647_v53  ;;  %v5462_v14 = vpop.f32.mrf.mxu1 }
 0x213   : > { %v893_v35 = vpop.f32.mrf.mxu0  ;;  %6237 = vst [vmem:[#allocation43_spill] sm:$0xff] %v5462_v14  ;;  %v1731_v24 = vpack.c.bf16 %v1648_v54, %v1648_v54 }
 0x214   : > { %v894_v36 = vadd.f32 %v5217_v61, %v893_v35  ;;  %v5455_v42 = vpack.c.b16 %v1842_v30, %v1841_v51  ;;  %v4564_v35 = vld [vmem:[#allocation8 + $0x168] sm:$0xff]  ;;  %v1586_v30 = vpack.c.bf16 %v1503_v49, %v1503_v49 }
 0x215   : > { %v4548_v51 = vld [vmem:[#allocation8 + $0xe8] sm:$0xff]  ;;  %3142 = vmatpush.bf16.msrb.mxu3 %v4564_v35  ;;  %v2033_v62 = vunpack.c.l.b16 %v1731_v24 }
 0x216   : > { %v998_v41 = vmax.f32 %v894_v36, 0.0  ;;  %928 = vmatmul.bf16.gmra.mxu0 %v4502_v56  ;;  %2748 = vmatmul.bf16.gmra.mxu1 %v5455_v42 }
 0x217   : > { %2964 = vmatpush.bf16.msra.mxu1 %v4548_v51 }
 0x218   : > { %v1350_v11 = vsel %vm1158_vm3, %v998_v41, 0.0  ;;  %v1937_v41 = vunpack.c.l.b16 %v1586_v30 }
 0x219   : > { %v1504_v13 = vrot.slane %v1350_v11, 1  ;;  %v1649_v25 = vrot.slane %v1350_v11, 2 }
 0x21b   : > { %v895_v47 = vpop.f32.mrf.mxu0  ;;  %v1505_v56 = vsel %vm1455_vm1, %v1502_v33, %v1504_v13  ;;  %v1650_v36 = vsel %vm1600_vm2, %v1647_v53, %v1649_v25  ;;  %v2729_v33 = vpop.f32.mrf.mxu1  ;;  %v4503_v53 = vld [vmem:[%s5168_s17 + $0xe0] sm:$0xff] }
 0x21c   : > { %v1587_v29 = vpack.c.bf16 %v1505_v56, %v1505_v56  ;;  %v1732_v44 = vpack.c.bf16 %v1650_v36, %v1650_v36  ;;  %v2730_v25 = vadd.f32 %v5303_v32, %v2729_v33 }
 0x21e   : > { %v1938_v14 = vunpack.c.l.b16 %v1587_v29  ;;  %v2034_v11 = vunpack.c.l.b16 %v1732_v44 }
 0x220   : > { %v5470_v49 = vpack.c.b16 %v1938_v14, %v1937_v41  ;;  %v5472_v54 = vpack.c.b16 %v2034_v11, %v2033_v62  ;;  %v4555_v11 = vld [vmem:[#allocation8 + $0x120] sm:$0xff] }
 0x221   : > { %3054 = vmatpush.bf16.msra.mxu2 %v4555_v11 }
 0x222   : > { %6240 = vst [vmem:[#allocation46_spill] sm:$0xff] %v5472_v54  ;;  %2837 = vmatmul.bf16.gmra.mxu2 %v5470_v49  ;;  %2926 = vmatmul.bf16.gmra.mxu3 %v5472_v54 }
 0x223   : > { %v897_v13 = vpop.f32.mrf.mxu0 }
 0x224   : > { %v898_v35 = vadd.f32 %v5217_v61, %v897_v13 }
 0x225   : > { %v2818_v24 = vpop.f32.mrf.mxu2  ;;  %v2907_v14 = vpop.f32.mrf.mxu3 }
 0x226   : > { %v2819_v51 = vadd.f32 %v2818_v24, %v2730_v25  ;;  %932 = vmatmul.bf16.gmra.mxu0 %v4503_v53  ;;  %v999_v30 = vmax.f32 %v898_v35, 0.0 }
 0x228   : > { %v5479_v47 = vadd.f32 %v2907_v14, %v2819_v51  ;;  %v1351_v62 = vsel %vm1099_vm0, %v999_v30, 0.0 }
 0x229   : > { %v1395_v29 = vpack.c.bf16 %v1351_v62, %v1351_v62  ;;  %v1506_v14 = vrot.slane %v1351_v62, 1  ;;  %v1651_v30 = vrot.slane %v1351_v62, 2 }
 0x22a   : > { %6241 = vst [vmem:[#allocation47_spill] sm:$0xff] %v5479_v47 }
 0x22b   : > { %v899_v56 = vpop.f32.mrf.mxu0  ;;  %v1843_v33 = vunpack.c.l.b16 %v1395_v29 }
 0x22c   : > { %v900_v36 = vadd.f32 %v5217_v61, %v899_v56 }
 0x22d   : > { %v5497_v47 = vpop.f32.mrf.mxu2  ;;  %v5499_v58 = vpop.f32.mrf.mxu3 }
 0x22e   : > { %v1000_v44 = vmax.f32 %v900_v36, 0.0  ;;  %6243 = vst [vmem:[#allocation49_spill] sm:$0xff] %v5497_v47  ;;  %v4506_v47 = vld [vmem:[%s5168_s17 + $0xf8] sm:$0xff] }
 0x22f   : > { %6244 = vst [vmem:[#allocation50_spill] sm:$0xff] %v5499_v58 }
 0x230   : > { %v1396_v41 = vpack.c.bf16 %v1000_v44, %v1000_v44  ;;  %v1507_v25 = vrot.slane %v1000_v44, 1  ;;  %v1652_v53 = vrot.slane %v1000_v44, 2 }
 0x232   : > { %v1844_v13 = vunpack.c.l.b16 %v1396_v41  ;;  %v1508_v56 = vsel %vm1455_vm1, %v1506_v14, %v1507_v25  ;;  %v1653_v36 = vsel %vm1600_vm2, %v1651_v30, %v1652_v53  ;;  %v5493_v41 = vpop.f32.mrf.mxu1 }
 0x233   : > { %v902_v35 = vpop.f32.mrf.mxu0  ;;  %6242 = vst [vmem:[#allocation48_spill] sm:$0xff] %v5493_v41 }
 0x234   : > { %v903_v24 = vadd.f32 %v5217_v61, %v902_v35  ;;  %v5486_v51 = vpack.c.b16 %v1844_v13, %v1843_v33  ;;  %v4563_v61 = vld [vmem:[#allocation8 + $0x160] sm:$0xff]  ;;  %v1588_v13 = vpack.c.bf16 %v1508_v56, %v1508_v56  ;;  %v1733_v35 = vpack.c.bf16 %v1653_v36, %v1653_v36 }
 0x235   : > { %v4547_v33 = vld [vmem:[#allocation8 + $0xe0] sm:$0xff]  ;;  %3143 = vmatpush.bf16.msrb.mxu3 %v4563_v61 }
 0x236   : > { %v1001_v57 = vmax.f32 %v903_v24, 0.0  ;;  %937 = vmatmul.bf16.gmra.mxu0 %v4504_v46  ;;  %2753 = vmatmul.bf16.gmra.mxu1 %v5486_v51  ;;  %v2035_v27 = vunpack.c.l.b16 %v1733_v35  ;;  %v5512_v61 = vld [vmem:[%s6145_s3] ss:$0 sm:$0xff] }
 0x237   : > { %2965 = vmatpush.bf16.msra.mxu1 %v4547_v33 }
 0x238   : > { %v1353_v29 = vsel %vm1158_vm3, %v1001_v57, 0.0  ;;  %v1939_v57 = vunpack.c.l.b16 %v1588_v13 }
 0x239   : > { %v1509_v44 = vrot.slane %v1353_v29, 1  ;;  %v1654_v11 = vrot.slane %v1353_v29, 2 }
 0x23b   : > { %v904_v62 = vpop.f32.mrf.mxu0  ;;  %v1510_v46 = vsel %vm1455_vm1, %v1507_v25, %v1509_v44  ;;  %v1655_v24 = vsel %vm1600_vm2, %v1652_v53, %v1654_v11  ;;  %v2734_v25 = vpop.f32.mrf.mxu1  ;;  %v4505_v53 = vld [vmem:[%s5168_s17 + $0xf0] sm:$0xff] }
 0x23c   : > { %v1589_v14 = vpack.c.bf16 %v1510_v46, %v1510_v46  ;;  %v1734_v30 = vpack.c.bf16 %v1655_v24, %v1655_v24  ;;  %v2735_v11 = vadd.f32 %v5303_v32, %v2734_v25  ;;  %v4554_v25 = vld [vmem:[#allocation8 + $0x118] sm:$0xff] }
 0x23d   : > { %3055 = vmatpush.bf16.msra.mxu2 %v4554_v25 }
 0x23e   : > { %v1940_v41 = vunpack.c.l.b16 %v1589_v14  ;;  %v2036_v29 = vunpack.c.l.b16 %v1734_v30 }
 0x240   : > { %v5501_v56 = vpack.c.b16 %v1940_v41, %v1939_v57  ;;  %v5503_v36 = vpack.c.b16 %v2036_v29, %v2035_v27 }
 0x242   : > { %2842 = vmatmul.bf16.gmra.mxu2 %v5501_v56  ;;  %2931 = vmatmul.bf16.gmra.mxu3 %v5503_v36 }
 0x243   : > { %v906_v44 = vpop.f32.mrf.mxu0 }
 0x244   : > { %v907_v41 = vadd.f32 %v5512_v61, %v906_v44 }
 0x245   : > { %v2823_v33 = vpop.f32.mrf.mxu2  ;;  %v2912_v35 = vpop.f32.mrf.mxu3 }
 0x246   : > { %v2824_v27 = vadd.f32 %v2823_v33, %v2735_v11  ;;  %941 = vmatmul.bf16.gmra.mxu0 %v4505_v53  ;;  %v1002_v13 = vmax.f32 %v907_v41, 0.0 }
 0x248   : > { %v5515_v62 = vadd.f32 %v2912_v35, %v2824_v27  ;;  %v1354_v46 = vsel %vm1099_vm0, %v1002_v13, 0.0 }
 0x249   : > { %v1397_v30 = vpack.c.bf16 %v1354_v46, %v1354_v46  ;;  %v1511_v35 = vrot.slane %v1354_v46, 1  ;;  %v1656_v13 = vrot.slane %v1354_v46, 2 }
 0x24a   : > { %6245 = vst [vmem:[#allocation51_spill] sm:$0xff] %v5515_v62 }
 0x24b   : > { %v908_v24 = vpop.f32.mrf.mxu0  ;;  %v1845_v58 = vunpack.c.l.b16 %v1397_v30 }
 0x24c   : > { %v909_v14 = vadd.f32 %v5512_v61, %v908_v24 }
 0x24e   : > { %v1003_v57 = vmax.f32 %v909_v14, 0.0 }
 0x250   : > { %v1398_v29 = vpack.c.bf16 %v1003_v57, %v1003_v57  ;;  %v1512_v11 = vrot.slane %v1003_v57, 1  ;;  %v1657_v53 = vrot.slane %v1003_v57, 2 }
 0x252   : > { %v1846_v44 = vunpack.c.l.b16 %v1398_v29  ;;  %v1513_v24 = vsel %vm1455_vm1, %v1511_v35, %v1512_v11  ;;  %v1658_v14 = vsel %vm1600_vm2, %v1656_v13, %v1657_v53  ;;  %v5529_v29 = vpop.f32.mrf.mxu1 }
 0x253   : > { %v911_v41 = vpop.f32.mrf.mxu0  ;;  %6247 = vst [vmem:[#allocation53_spill] sm:$0xff] %v5529_v29  ;;  %v1590_v48 = vpack.c.bf16 %v1513_v24, %v1513_v24  ;;  %v1735_v46 = vpack.c.bf16 %v1658_v14, %v1658_v14 }
 0x254   : > { %v912_v33 = vadd.f32 %v5512_v61, %v911_v41  ;;  %v5522_v27 = vpack.c.b16 %v1846_v44, %v1845_v58  ;;  %v4562_v41 = vld [vmem:[#allocation8 + $0x158] sm:$0xff] }
 0x255   : > { %v4546_v58 = vld [vmem:[#allocation8 + $0xd8] sm:$0xff]  ;;  %3144 = vmatpush.bf16.msrb.mxu3 %v4562_v41  ;;  %v1941_v29 = vunpack.c.l.b16 %v1590_v48  ;;  %v2037_v26 = vunpack.c.l.b16 %v1735_v46 }
 0x256   : > { %6246 = vst [vmem:[#allocation52_spill] sm:$0xff] %v5522_v27  ;;  %v1004_v62 = vmax.f32 %v912_v33, 0.0  ;;  %946 = vmatmul.bf16.gmra.mxu0 %v4506_v47  ;;  %2758 = vmatmul.bf16.gmra.mxu1 %v5522_v27  ;;  %v4598_v44 = vld [vmem:[#allocation10 + $0x38] sm:$0xff]  ;;  %v5535_v27 = vpop.f32.mrf.mxu3 }
 0x257   : > { %2966 = vmatpush.bf16.msra.mxu1 %v4546_v58  ;;  %3612 = vmatpush.bf16.msrb.mxu0 %v4598_v44  ;;  %6249 = vst [vmem:[#allocation55_spill] sm:$0xff] %v5535_v27  ;;  %v4561_v27 = vld [vmem:[#allocation8 + $0x150] sm:$0xff] }
 0x258   : > { %v1356_v30 = vsel %vm1158_vm3, %v1004_v62, 0.0  ;;  %v5533_v62 = vpop.f32.mrf.mxu2 }
 0x259   : > { %v1514_v57 = vrot.slane %v1356_v30, 1  ;;  %v1659_v25 = vrot.slane %v1356_v30, 2  ;;  %6248 = vst [vmem:[#allocation54_spill] sm:$0xff] %v5533_v62  ;;  %3145 = vmatpush.bf16.msrb.mxu3 %v4561_v27 }
 0x25b   : > { %v913_v33 = vpop.f32.mrf.mxu0  ;;  %v1515_v47 = vsel %vm1455_vm1, %v1512_v11, %v1514_v57  ;;  %v1660_v28 = vsel %vm1600_vm2, %v1657_v53, %v1659_v25  ;;  %v2739_v11 = vpop.f32.mrf.mxu1  ;;  %v4507_v53 = vld [vmem:[%s5168_s17 + $0x100] sm:$0xff] }
 0x25c   : > { %v1591_v35 = vpack.c.bf16 %v1515_v47, %v1515_v47  ;;  %v1736_v13 = vpack.c.bf16 %v1660_v28, %v1660_v28  ;;  %v2740_v57 = vadd.f32 %v5303_v32, %v2739_v11 }
 0x25e   : > { %v1942_v30 = vunpack.c.l.b16 %v1591_v35  ;;  %v2038_v17 = vunpack.c.l.b16 %v1736_v13  ;;  %v4553_v13 = vld [vmem:[#allocation8 + $0x110] sm:$0xff] }
 0x25f   : > { %3056 = vmatpush.bf16.msra.mxu2 %v4553_v13 }
 0x260   : > { %v5537_v24 = vpack.c.b16 %v1942_v30, %v1941_v29  ;;  %v5539_v14 = vpack.c.b16 %v2038_v17, %v2037_v26 }
 0x262   : > { %6250 = vst [vmem:[#allocation56_spill] sm:$0xff] %v5537_v24  ;;  %2847 = vmatmul.bf16.gmra.mxu2 %v5537_v24  ;;  %2936 = vmatmul.bf16.gmra.mxu3 %v5539_v14 }
 0x263   : > { %6251 = vst [vmem:[#allocation57_spill] sm:$0xff] %v5539_v14  ;;  %v915_v28 = vpop.f32.mrf.mxu0 }
 0x264   : > { %v916_v48 = vadd.f32 %v5512_v61, %v915_v28 }
 0x265   : > { %v2828_v25 = vpop.f32.mrf.mxu2  ;;  %v2917_v44 = vpop.f32.mrf.mxu3 }
 0x266   : > { %v2829_v41 = vadd.f32 %v2828_v25, %v2740_v57  ;;  %950 = vmatmul.bf16.gmra.mxu0 %v4507_v53  ;;  %v1005_v58 = vmax.f32 %v916_v48, 0.0 }
 0x268   : > { %v5546_v29 = vadd.f32 %v2917_v44, %v2829_v41  ;;  %v1357_v17 = vsel %vm1099_vm0, %v1005_v58, 0.0 }
 0x269   : > { %v1399_v33 = vpack.c.bf16 %v1357_v17, %v1357_v17  ;;  %v1516_v41 = vrot.slane %v1357_v17, 1  ;;  %v1661_v44 = vrot.slane %v1357_v17, 2 }
 0x26a   : > { %6252 = vst [vmem:[#allocation58_spill] sm:$0xff] %v5546_v29 }
 0x26b   : > { %v917_v26 = vpop.f32.mrf.mxu0  ;;  %v1847_v30 = vunpack.c.l.b16 %v1399_v33 }
 0x26c   : > { %v918_v46 = vadd.f32 %v5512_v61, %v917_v26 }
 0x26d   : > { %v5563_v29 = vpop.f32.mrf.mxu2 }
 0x26e   : > { %v1006_v47 = vmax.f32 %v918_v46, 0.0  ;;  %6255 = vst [vmem:[#allocation61_spill] sm:$0xff] %v5563_v29 }
 0x270   : > { %v1400_v35 = vpack.c.bf16 %v1006_v47, %v1006_v47  ;;  %v1517_v28 = vrot.slane %v1006_v47, 1  ;;  %v1662_v57 = vrot.slane %v1006_v47, 2 }
 0x272   : > { %v1848_v11 = vunpack.c.l.b16 %v1400_v35  ;;  %v1518_v26 = vsel %vm1455_vm1, %v1516_v41, %v1517_v28  ;;  %v1663_v46 = vsel %vm1600_vm2, %v1661_v44, %v1662_v57  ;;  %v5559_v35 = vpop.f32.mrf.mxu1 }
 0x273   : > { %v920_v53 = vpop.f32.mrf.mxu0  ;;  %6254 = vst [vmem:[#allocation60_spill] sm:$0xff] %v5559_v35 }
 0x274   : > { %v921_v48 = vadd.f32 %v5512_v61, %v920_v53  ;;  %v5552_v25 = vpack.c.b16 %v1848_v11, %v1847_v30  ;;  %v4545_v53 = vld [vmem:[#allocation8 + $0xd0] sm:$0xff]  ;;  %v1592_v30 = vpack.c.bf16 %v1518_v26, %v1518_v26  ;;  %v1737_v11 = vpack.c.bf16 %v1663_v46, %v1663_v46 }
 0x275   : > { %2967 = vmatpush.bf16.msra.mxu1 %v4545_v53 }
 0x276   : > { %6253 = vst [vmem:[#allocation59_spill] sm:$0xff] %v5552_v25  ;;  %v1007_v58 = vmax.f32 %v921_v48, 0.0  ;;  %2763 = vmatmul.bf16.gmra.mxu1 %v5552_v25  ;;  %v2039_v35 = vunpack.c.l.b16 %v1737_v11 }
 0x278   : > { %v1359_v33 = vsel %vm1158_vm3, %v1007_v58, 0.0  ;;  %v1943_v58 = vunpack.c.l.b16 %v1592_v30 }
 0x279   : > { %v1519_v47 = vrot.slane %v1359_v33, 1  ;;  %v1664_v13 = vrot.slane %v1359_v33, 2  ;;  %v5565_v33 = vpop.f32.mrf.mxu3 }
 0x27a   : > { %6256 = vst [vmem:[#allocation62_spill] sm:$0xff] %v5565_v33 }
 0x27b   : > { %v922_v62 = vpop.f32.mrf.mxu0  ;;  %v1520_v17 = vsel %vm1455_vm1, %v1517_v28, %v1519_v47  ;;  %v1665_v48 = vsel %vm1600_vm2, %v1662_v57, %v1664_v13 }
 0x27c   : > { %v1593_v41 = vpack.c.bf16 %v1520_v17, %v1520_v17  ;;  %v1738_v44 = vpack.c.bf16 %v1665_v48, %v1665_v48  ;;  %v2744_v62 = vpop.f32.mrf.mxu1 }
 0x27d   : > { %v2745_v28 = vadd.f32 %v5303_v32, %v2744_v62 }
 0x27e   : > { %v1944_v25 = vunpack.c.l.b16 %v1593_v41  ;;  %v2040_v14 = vunpack.c.l.b16 %v1738_v44  ;;  %v4552_v41 = vld [vmem:[#allocation8 + $0x108] sm:$0xff] }
 0x27f   : > { %3057 = vmatpush.bf16.msra.mxu2 %v4552_v41  ;;  %v4560_v41 = vld [vmem:[#allocation8 + $0x148] sm:$0xff] }
 0x280   : > { %v5567_v24 = vpack.c.b16 %v1944_v25, %v1943_v58  ;;  %v5569_v26 = vpack.c.b16 %v2040_v14, %v2039_v35  ;;  %3146 = vmatpush.bf16.msrb.mxu3 %v4560_v41 }
 0x282   : > { %6257 = vst [vmem:[#allocation63_spill] sm:$0xff] %v5567_v24  ;;  %2852 = vmatmul.bf16.gmra.mxu2 %v5567_v24  ;;  %2941 = vmatmul.bf16.gmra.mxu3 %v5569_v26 }
 0x283   : > { %6258 = vst [vmem:[#allocation64_spill] sm:$0xff] %v5569_v26  ;;  %v924_v27 = vpop.f32.mrf.mxu0 }
 0x284   : > { %v925_v57 = vadd.f32 %v5512_v61, %v924_v27 }
 0x285   : > { %v2833_v46 = vpop.f32.mrf.mxu2  ;;  %v2922_v53 = vpop.f32.mrf.mxu3 }
 0x286   : > { %v2834_v47 = vadd.f32 %v2833_v46, %v2745_v28  ;;  %v1008_v13 = vmax.f32 %v925_v57, 0.0 }
 0x288   : > { %v5575_v30 = vadd.f32 %v2922_v53, %v2834_v47  ;;  %v1360_v14 = vsel %vm1099_vm0, %v1008_v13, 0.0 }
 0x289   : > { %v1401_v11 = vpack.c.bf16 %v1360_v14, %v1360_v14  ;;  %v1521_v46 = vrot.slane %v1360_v14, 1  ;;  %v1666_v47 = vrot.slane %v1360_v14, 2 }
 0x28a   : > { %6259 = vst [vmem:[#allocation65_spill] sm:$0xff] %v5575_v30 }
 0x28b   : > { %v926_v25 = vpop.f32.mrf.mxu0  ;;  %v1849_v44 = vunpack.c.l.b16 %v1401_v11  ;;  %v5588_v11 = vpop.f32.mrf.mxu1 }
 0x28c   : > { %v927_v35 = vadd.f32 %v5512_v61, %v926_v25  ;;  %6261 = vst [vmem:[#allocation67_spill] sm:$0xff] %v5588_v11 }
 0x28d   : > { %v5594_v26 = vpop.f32.mrf.mxu3 }
 0x28e   : > { %v1009_v17 = vmax.f32 %v927_v35, 0.0  ;;  %6263 = vst [vmem:[#allocation69_spill] sm:$0xff] %v5594_v26 }
 0x290   : > { %v1402_v48 = vpack.c.bf16 %v1009_v17, %v1009_v17  ;;  %v1522_v58 = vrot.slane %v1009_v17, 1  ;;  %v1667_v62 = vrot.slane %v1009_v17, 2 }
 0x292   : > { %v1850_v32 = vunpack.c.l.b16 %v1402_v48  ;;  %v1523_v53 = vsel %vm1455_vm1, %v1521_v46, %v1522_v58  ;;  %v1668_v25 = vsel %vm1600_vm2, %v1666_v47, %v1667_v62 }
 0x293   : > { %v929_v27 = vpop.f32.mrf.mxu0  ;;  %v1739_v33 = vpack.c.bf16 %v1668_v25, %v1668_v25 }
 0x294   : > { %v930_v28 = vadd.f32 %v5512_v61, %v929_v27  ;;  %v5581_v57 = vpack.c.b16 %v1850_v32, %v1849_v44  ;;  %v4544_v27 = vld [vmem:[#allocation8 + $0xc8] sm:$0xff]  ;;  %v4597_v44 = vld [vmem:[#allocation10 + $0x30] sm:$0xff]  ;;  %v1594_v32 = vpack.c.bf16 %v1523_v53, %v1523_v53 }
 0x295   : > { %2968 = vmatpush.bf16.msra.mxu1 %v4544_v27  ;;  %3613 = vmatpush.bf16.msrb.mxu0 %v4597_v44 }
 0x296   : > { %6260 = vst [vmem:[#allocation66_spill] sm:$0xff] %v5581_v57  ;;  %v1010_v13 = vmax.f32 %v930_v28, 0.0  ;;  %2768 = vmatmul.bf16.gmra.mxu1 %v5581_v57  ;;  %v1945_v11 = vunpack.c.l.b16 %v1594_v32 }
 0x298   : > { %v1362_v35 = vsel %vm1158_vm3, %v1010_v13, 0.0  ;;  %v5592_v13 = vpop.f32.mrf.mxu2 }
 0x299   : > { %v1524_v17 = vrot.slane %v1362_v35, 1  ;;  %v1669_v48 = vrot.slane %v1362_v35, 2  ;;  %6262 = vst [vmem:[#allocation68_spill] sm:$0xff] %v5592_v13  ;;  %v2041_v35 = vunpack.c.l.b16 %v1739_v33  ;;  %v4559_v13 = vld [vmem:[#allocation8 + $0x140] sm:$0xff] }
 0x29a   : > { %3147 = vmatpush.bf16.msrb.mxu3 %v4559_v13 }
 0x29b   : > { %v931_v14 = vpop.f32.mrf.mxu0  ;;  %v1525_v28 = vsel %vm1455_vm1, %v1522_v58, %v1524_v17  ;;  %v1670_v29 = vsel %vm1600_vm2, %v1667_v62, %v1669_v48  ;;  %v2749_v58 = vpop.f32.mrf.mxu1 }
 0x29c   : > { %v1595_v46 = vpack.c.bf16 %v1525_v28, %v1525_v28  ;;  %v1740_v47 = vpack.c.bf16 %v1670_v29, %v1670_v29  ;;  %v5605_v29 = vld [vmem:[%s6147_s5] ss:$0 sm:$0xff] }
 0x29d   : > { %v2750_v33 = vadd.f32 %v5605_v29, %v2749_v58 }
 0x29e   : > { %v1946_v30 = vunpack.c.l.b16 %v1595_v46  ;;  %v2042_v57 = vunpack.c.l.b16 %v1740_v47  ;;  %v4551_v47 = vld [vmem:[#allocation8 + $0x100] sm:$0xff] }
 0x29f   : > { %3058 = vmatpush.bf16.msra.mxu2 %v4551_v47 }
 0x2a0   : > { %v5596_v53 = vpack.c.b16 %v1946_v30, %v1945_v11  ;;  %v5598_v25 = vpack.c.b16 %v2042_v57, %v2041_v35 }
 0x2a2   : > { %6264 = vst [vmem:[#allocation70_spill] sm:$0xff] %v5596_v53  ;;  %2857 = vmatmul.bf16.gmra.mxu2 %v5596_v53  ;;  %2946 = vmatmul.bf16.gmra.mxu3 %v5598_v25 }
 0x2a3   : > { %6265 = vst [vmem:[#allocation71_spill] sm:$0xff] %v5598_v25  ;;  %v933_v62 = vpop.f32.mrf.mxu0 }
 0x2a4   : > { %v934_v17 = vadd.f32 %v5512_v61, %v933_v62 }
 0x2a5   : > { %v2838_v48 = vpop.f32.mrf.mxu2  ;;  %v2927_v57 = vpop.f32.mrf.mxu3 }
 0x2a6   : > { %v2839_v30 = vadd.f32 %v2838_v48, %v2750_v33  ;;  %v1011_v11 = vmax.f32 %v934_v17, 0.0 }
 0x2a8   : > { %v5609_v41 = vadd.f32 %v2927_v57, %v2839_v30  ;;  %v1363_v27 = vsel %vm1099_vm0, %v1011_v11, 0.0 }
 0x2a9   : > { %v1403_v14 = vpack.c.bf16 %v1363_v27, %v1363_v27  ;;  %v1526_v30 = vrot.slane %v1363_v27, 1  ;;  %v1671_v57 = vrot.slane %v1363_v27, 2 }
 0x2aa   : > { %6266 = vst [vmem:[#allocation72_spill] sm:$0xff] %v5609_v41 }
 0x2ab   : > { %v935_v44 = vpop.f32.mrf.mxu0  ;;  %v1851_v35 = vunpack.c.l.b16 %v1403_v14 }
 0x2ac   : > { %v936_v32 = vadd.f32 %v5512_v61, %v935_v44 }
 0x2ae   : > { %v1012_v28 = vmax.f32 %v936_v32, 0.0 }
 0x2b0   : > { %v1404_v46 = vpack.c.bf16 %v1012_v28, %v1012_v28  ;;  %v1527_v62 = vrot.slane %v1012_v28, 1  ;;  %v1672_v26 = vrot.slane %v1012_v28, 2 }
 0x2b2   : > { %v1852_v58 = vunpack.c.l.b16 %v1404_v46  ;;  %v1528_v44 = vsel %vm1455_vm1, %v1526_v30, %v1527_v62  ;;  %v1673_v32 = vsel %vm1600_vm2, %v1671_v57, %v1672_v26  ;;  %v5622_v46 = vpop.f32.mrf.mxu1 }
 0x2b3   : > { %v938_v33 = vpop.f32.mrf.mxu0  ;;  %6268 = vst [vmem:[#allocation74_spill] sm:$0xff] %v5622_v46 }
 0x2b4   : > { %v939_v17 = vadd.f32 %v5512_v61, %v938_v33  ;;  %v5615_v48 = vpack.c.b16 %v1852_v58, %v1851_v35  ;;  %v4543_v33 = vld [vmem:[#allocation8 + $0xc0] sm:$0xff]  ;;  %v1596_v35 = vpack.c.bf16 %v1528_v44, %v1528_v44  ;;  %v1741_v58 = vpack.c.bf16 %v1673_v32, %v1673_v32 }
 0x2b5   : > { %2969 = vmatpush.bf16.msra.mxu1 %v4543_v33 }
 0x2b6   : > { %6267 = vst [vmem:[#allocation73_spill] sm:$0xff] %v5615_v48  ;;  %v1013_v11 = vmax.f32 %v939_v17, 0.0  ;;  %2773 = vmatmul.bf16.gmra.mxu1 %v5615_v48  ;;  %v5626_v48 = vpop.f32.mrf.mxu2  ;;  %v2043_v46 = vunpack.c.l.b16 %v1741_v58 }
 0x2b7   : > { %6269 = vst [vmem:[#allocation75_spill] sm:$0xff] %v5626_v48 }
 0x2b8   : > { %v1365_v14 = vsel %vm1158_vm3, %v1013_v11, 0.0  ;;  %v1947_v11 = vunpack.c.l.b16 %v1596_v35 }
 0x2b9   : > { %v1529_v28 = vrot.slane %v1365_v14, 1  ;;  %v1674_v47 = vrot.slane %v1365_v14, 2  ;;  %v5628_v14 = vpop.f32.mrf.mxu3 }
 0x2ba   : > { %6270 = vst [vmem:[#allocation76_spill] sm:$0xff] %v5628_v14 }
 0x2bb   : > { %v940_v41 = vpop.f32.mrf.mxu0  ;;  %v1530_v27 = vsel %vm1455_vm1, %v1527_v62, %v1529_v28  ;;  %v1675_v17 = vsel %vm1600_vm2, %v1672_v26, %v1674_v47 }
 0x2bc   : > { %v1597_v30 = vpack.c.bf16 %v1530_v27, %v1530_v27  ;;  %v1742_v57 = vpack.c.bf16 %v1675_v17, %v1675_v17  ;;  %v2754_v41 = vpop.f32.mrf.mxu1 }
 0x2bd   : > { %v2755_v13 = vadd.f32 %v5605_v29, %v2754_v41 }
 0x2be   : > { %v1948_v25 = vunpack.c.l.b16 %v1597_v30  ;;  %v2044_v53 = vunpack.c.l.b16 %v1742_v57 }
 0x2c0   : > { %v5630_v24 = vpack.c.b16 %v1948_v25, %v1947_v11  ;;  %v5632_v44 = vpack.c.b16 %v2044_v53, %v2043_v46  ;;  %v4582_v11 = vld [vmem:[#allocation8 + $0x1f8] sm:$0xff] }
 0x2c1   : > { %3318 = vmatpush.bf16.msrb.mxu2 %v4582_v11 }
 0x2c2   : > { %6271 = vst [vmem:[#allocation77_spill] sm:$0xff] %v5630_v24  ;;  %2862 = vmatmul.bf16.gmra.mxu2 %v5630_v24  ;;  %2951 = vmatmul.bf16.gmra.mxu3 %v5632_v44 }
 0x2c3   : > { %6272 = vst [vmem:[#allocation78_spill] sm:$0xff] %v5632_v44  ;;  %v942_v26 = vpop.f32.mrf.mxu0 }
 0x2c4   : > { %v943_v62 = vadd.f32 %v5512_v61, %v942_v26 }
 0x2c5   : > { %v2843_v32 = vpop.f32.mrf.mxu2  ;;  %v2932_v33 = vpop.f32.mrf.mxu3 }
 0x2c6   : > { %v2844_v28 = vadd.f32 %v2843_v32, %v2755_v13  ;;  %v1014_v47 = vmax.f32 %v943_v62, 0.0  ;;  %v4590_v32 = vld [vmem:[#allocation8 + $0x238] sm:$0xff] }
 0x2c7   : > { %3407 = vmatpush.bf16.msra.mxu3 %v4590_v32 }
 0x2c8   : > { %v5638_v35 = vadd.f32 %v2932_v33, %v2844_v28  ;;  %v1366_v53 = vsel %vm1099_vm0, %v1014_v47, 0.0 }
 0x2c9   : > { %v1405_v58 = vpack.c.bf16 %v1366_v53, %v1366_v53  ;;  %v1531_v28 = vrot.slane %v1366_v53, 1  ;;  %v1676_v47 = vrot.slane %v1366_v53, 2 }
 0x2ca   : > { %6273 = vst [vmem:[#allocation79_spill] sm:$0xff] %v5638_v35 }
 0x2cb   : > { %v944_v25 = vpop.f32.mrf.mxu0  ;;  %v1853_v30 = vunpack.c.l.b16 %v1405_v58 }
 0x2cc   : > { %v945_v46 = vadd.f32 %v5512_v61, %v944_v25  ;;  %v4574_v25 = vld [vmem:[#allocation8 + $0x1b8] sm:$0xff] }
 0x2cd   : > { %3229 = vmatpush.bf16.msrb.mxu1 %v4574_v25  ;;  %v5655_v2 = vpop.f32.mrf.mxu2 }
 0x2ce   : > { %v1015_v27 = vmax.f32 %v945_v46, 0.0  ;;  %v4596_v46 = vld [vmem:[#allocation10 + $0x28] sm:$0xff] }
 0x2cf   : > { %3614 = vmatpush.bf16.msrb.mxu0 %v4596_v46  ;;  %v5657_v46 = vpop.f32.mrf.mxu3 }
 0x2d0   : > { %v1406_v17 = vpack.c.bf16 %v1015_v27, %v1015_v27  ;;  %v1532_v41 = vrot.slane %v1015_v27, 1  ;;  %v1677_v26 = vrot.slane %v1015_v27, 2 }
 0x2d2   : > { %v1854_v57 = vunpack.c.l.b16 %v1406_v17  ;;  %v1533_v58 = vsel %vm1455_vm1, %v1531_v28, %v1532_v41  ;;  %v1678_v17 = vsel %vm1600_vm2, %v1676_v47, %v1677_v26 }
 0x2d3   : > { %v947_v14 = vpop.f32.mrf.mxu0  ;;  %v1598_v53 = vpack.c.bf16 %v1533_v58, %v1533_v58  ;;  %v1743_v11 = vpack.c.bf16 %v1678_v17, %v1678_v17 }
 0x2d4   : > { %v948_v13 = vadd.f32 %v5512_v61, %v947_v14  ;;  %v5644_v62 = vpack.c.b16 %v1854_v57, %v1853_v30  ;;  %v5651_v14 = vpop.f32.mrf.mxu1 }
 0x2d5   : > { %6275 = vst [vmem:[#allocation81_spill] sm:$0xff] %v5651_v14  ;;  %v1949_v47 = vunpack.c.l.b16 %v1598_v53 }
 0x2d6   : > { %6274 = vst [vmem:[#allocation80_spill] sm:$0xff] %v5644_v62  ;;  %v1016_v33 = vmax.f32 %v948_v13, 0.0  ;;  %2778 = vmatmul.bf16.gmra.mxu1 %v5644_v62 }
 0x2d8   : > { %v1368_v27 = vsel %vm1158_vm3, %v1016_v33, 0.0  ;;  %v2045_v33 = vunpack.c.l.b16 %v1743_v11 }
 0x2d9   : > { %v1534_v30 = vrot.slane %v1368_v27, 1  ;;  %v1679_v57 = vrot.slane %v1368_v27, 2 }
 0x2db   : > { %v949_v13 = vpop.f32.mrf.mxu0  ;;  %v1535_v32 = vsel %vm1455_vm1, %v1532_v41, %v1534_v30  ;;  %v1680_v48 = vsel %vm1600_vm2, %v1677_v26, %v1679_v57  ;;  %v4589_v30 = vld [vmem:[#allocation8 + $0x230] sm:$0xff] }
 0x2dc   : > { %v1599_v35 = vpack.c.bf16 %v1535_v32, %v1535_v32  ;;  %v1744_v28 = vpack.c.bf16 %v1680_v48, %v1680_v48  ;;  %v2759_v58 = vpop.f32.mrf.mxu1  ;;  %3408 = vmatpush.bf16.msra.mxu3 %v4589_v30  ;;  %v4573_v57 = vld [vmem:[#allocation8 + $0x1b0] sm:$0xff] }
 0x2dd   : > { %v2760_v41 = vadd.f32 %v5605_v29, %v2759_v58  ;;  %3230 = vmatpush.bf16.msrb.mxu1 %v4573_v57  ;;  %v4572_v58 = vld [vmem:[#allocation8 + $0x1a8] sm:$0xff] }
 0x2de   : > { %v1950_v10 = vunpack.c.l.b16 %v1599_v35  ;;  %v2046_v25 = vunpack.c.l.b16 %v1744_v28 }
 0x2e0   : > { %v5659_v14 = vpack.c.b16 %v1950_v10, %v1949_v47  ;;  %v5661_v27 = vpack.c.b16 %v2046_v25, %v2045_v33  ;;  %v4581_v10 = vld [vmem:[#allocation8 + $0x1f0] sm:$0xff]  ;;  %v4580_v33 = vld [vmem:[#allocation8 + $0x1e8] sm:$0xff] }
 0x2e1   : > { %3319 = vmatpush.bf16.msrb.mxu2 %v4581_v10  ;;  %v4588_v25 = vld [vmem:[#allocation8 + $0x228] sm:$0xff]  ;;  %3231 = vmatpush.bf16.msrb.mxu1 %v4572_v58 }
 0x2e2   : > { %6276 = vst [vmem:[#allocation82_spill] sm:$0xff] %v5659_v14  ;;  %2867 = vmatmul.bf16.gmra.mxu2 %v5659_v14  ;;  %2956 = vmatmul.bf16.gmra.mxu3 %v5661_v27 }
 0x2e3   : > { %6277 = vst [vmem:[#allocation83_spill] sm:$0xff] %v5661_v27  ;;  %3409 = vmatpush.bf16.msra.mxu3 %v4588_v25 }
 0x2e4   : > { %v5672_v53 = vpop.f32.mrf.mxu1 }
 0x2e5   : > { %v2848_v48 = vpop.f32.mrf.mxu2  ;;  %v2937_v35 = vpop.f32.mrf.mxu3  ;;  %3320 = vmatpush.bf16.msrb.mxu2 %v4580_v33  ;;  %v4571_v33 = vld [vmem:[#allocation8 + $0x1a0] sm:$0xff] }
 0x2e6   : > { %v2849_v26 = vadd.f32 %v2848_v48, %v2760_v41  ;;  %2970 = vmatmul.bf16.vlgmr.msra.gmra.mxu1 %v5232_v18  ;;  %v4595_v48 = vld [vmem:[#allocation10 + $0x20] sm:$0xff] }
 0x2e7   : > { %3615 = vmatpush.bf16.msrb.mxu0 %v4595_v48  ;;  %3232 = vmatpush.bf16.msrb.mxu1 %v4571_v33  ;;  %v4578_v33 = vld [vmem:[#allocation8 + $0x1d8] sm:$0xff] }
 0x2e8   : > { %v5667_v17 = vadd.f32 %v2937_v35, %v2849_v26 }
 0x2ed   : > { %v5674_v11 = vpop.f32.mrf.mxu2  ;;  %v5676_v18 = vpop.f32.mrf.mxu3 }
 0x2f2   : > { %3059 = vmatmul.bf16.vlgmr.msra.gmra.mxu2 %v5242_v38  ;;  %3148 = vmatmul.bf16.vlgmr.msrb.gmra.mxu3 %v5244_v39 }
 0x2f3   : > { %v2764_v13 = vpop.f32.mrf.mxu1 }
 0x2f4   : > { %v2765_v38 = vadd.f32 %v5605_v29, %v2764_v13 }
 0x2f6   : > { %2975 = vmatmul.bf16.gmra.mxu1 %v5255_v60 }
 0x2fb   : > { %v5687_v41 = vpop.f32.mrf.mxu1 }
 0x302   : > { %3064 = vmatmul.bf16.gmra.mxu2 %v5264_v20  ;;  %3153 = vmatmul.bf16.gmra.mxu3 %v5266_v21 }
 0x305   : > { %v2853_v39 = vpop.f32.mrf.mxu2  ;;  %v2942_v28 = vpop.f32.mrf.mxu3 }
 0x306   : > { %v2854_v32 = vadd.f32 %v2853_v39, %v2765_v38  ;;  %2980 = vmatmul.bf16.gmra.mxu1 %v5279_v45 }
 0x308   : > { %v5682_v47 = vadd.f32 %v2942_v28, %v2854_v32  ;;  %v4579_v32 = vld [vmem:[#allocation8 + $0x1e0] sm:$0xff] }
 0x309   : > { %3321 = vmatpush.bf16.msrb.mxu2 %v4579_v32  ;;  %v4587_v28 = vld [vmem:[#allocation8 + $0x220] sm:$0xff] }
 0x30a   : > { %3410 = vmatpush.bf16.msra.mxu3 %v4587_v28 }
 0x30d   : > { %v5689_v26 = vpop.f32.mrf.mxu2  ;;  %v5691_v35 = vpop.f32.mrf.mxu3  ;;  %3322 = vmatpush.bf16.msrb.mxu2 %v4578_v33 }
 0x312   : > { %3069 = vmatmul.bf16.gmra.mxu2 %v5288_v7  ;;  %3158 = vmatmul.bf16.gmra.mxu3 %v5290_v8 }
 0x313   : > { %v2769_v10 = vpop.f32.mrf.mxu1 }
 0x314   : > { %v2770_v30 = vadd.f32 %v5605_v29, %v2769_v10 }
 0x316   : > { %2985 = vmatmul.bf16.gmra.mxu1 %v5306_v34 }
 0x31b   : > { %v5702_v25 = vpop.f32.mrf.mxu1 }
 0x31c   : > { %6278 = vst [vmem:[#allocation84_spill] sm:$0xff] %v5702_v25 }
 0x322   : > { %3074 = vmatmul.bf16.gmra.mxu2 %v5318_v5  ;;  %3163 = vmatmul.bf16.gmra.mxu3 %v5320_v6 }
 0x325   : > { %v2858_v57 = vpop.f32.mrf.mxu2  ;;  %v2947_v38 = vpop.f32.mrf.mxu3 }
 0x326   : > { %v2859_v13 = vadd.f32 %v2858_v57, %v2770_v30  ;;  %2990 = vmatmul.bf16.gmra.mxu1 %v5331_v31 }
 0x328   : > { %v5697_v39 = vadd.f32 %v2947_v38, %v2859_v13 }
 0x32d   : > { %v5704_v58 = vpop.f32.mrf.mxu2  ;;  %v5706_v48 = vpop.f32.mrf.mxu3 }
 0x32e   : > { %6279 = vst [vmem:[#allocation85_spill] sm:$0xff] %v5704_v58  ;;  %v4586_v58 = vld [vmem:[#allocation8 + $0x218] sm:$0xff] }
 0x32f   : > { %6280 = vst [vmem:[#allocation86_spill] sm:$0xff] %v5706_v48  ;;  %3411 = vmatpush.bf16.msra.mxu3 %v4586_v58 }
 0x332   : > { %3079 = vmatmul.bf16.gmra.mxu2 %v5346_v1  ;;  %3168 = vmatmul.bf16.gmra.mxu3 %v5348_v3 }
 0x333   : > { %v2774_v10 = vpop.f32.mrf.mxu1 }
 0x334   : > { %v2775_v30 = vadd.f32 %v5605_v29, %v2774_v10  ;;  %v4570_v10 = vld [vmem:[#allocation8 + $0x198] sm:$0xff] }
 0x335   : > { %3233 = vmatpush.bf16.msrb.mxu1 %v4570_v10 }
 0x336   : > { %2995 = vmatmul.bf16.gmra.mxu1 %v5362_v43 }
 0x33b   : > { %v5714_v28 = vpop.f32.mrf.mxu1 }
 0x33c   : > { %6282 = vst [vmem:[#allocation88_spill] sm:$0xff] %v5714_v28 }
 0x342   : > { %3084 = vmatmul.bf16.gmra.mxu2 %v5377_v22  ;;  %3173 = vmatmul.bf16.gmra.mxu3 %v5379_v23 }
 0x345   : > { %v2863_v57 = vpop.f32.mrf.mxu2  ;;  %v2952_v38 = vpop.f32.mrf.mxu3 }
 0x346   : > { %v2864_v13 = vadd.f32 %v2863_v57, %v2775_v30  ;;  %3000 = vmatmul.bf16.gmra.mxu1 %v5393_v9 }
 0x348   : > { %v5712_v32 = vadd.f32 %v2952_v38, %v2864_v13  ;;  %v4594_v38 = vld [vmem:[#allocation10 + $0x18] sm:$0xff] }
 0x349   : > { %3616 = vmatpush.bf16.msrb.mxu0 %v4594_v38 }
 0x34a   : > { %6281 = vst [vmem:[#allocation87_spill] sm:$0xff] %v5712_v32 }
 0x34d   : > { %v5719_v57 = vpop.f32.mrf.mxu2  ;;  %v5721_v13 = vpop.f32.mrf.mxu3 }
 0x34e   : > { %6283 = vst [vmem:[#allocation89_spill] sm:$0xff] %v5719_v57 }
 0x34f   : > { %6284 = vst [vmem:[#allocation90_spill] sm:$0xff] %v5721_v13 }
 0x352   : > { %3089 = vmatmul.bf16.gmra.mxu2 %v5408_v0  ;;  %3178 = vmatmul.bf16.gmra.mxu3 %v5410_v4 }
 0x353   : > { %v2779_v48 = vpop.f32.mrf.mxu1 }
 0x354   : > { %v2780_v33 = vadd.f32 %v5605_v29, %v2779_v48  ;;  %v2707_v48 = vadd.f32 %v5605_v29, %v5334_v37  ;;  %v4569_v37 = vld [vmem:[#allocation8 + $0x190] sm:$0xff] }
 0x355   : > { %3234 = vmatpush.bf16.msrb.mxu1 %v4569_v37 }
 0x356   : > { %3005 = vmatmul.bf16.gmra.mxu1 %v5424_v63 }
 0x35b   : > { %v2781_v30 = vpop.f32.mrf.mxu1 }
 0x35c   : > { %v2782_v13 = vadd.f32 %v5605_v29, %v2781_v30 }
 0x362   : > { %3094 = vmatmul.bf16.gmra.mxu2 %v5439_v15  ;;  %3183 = vmatmul.bf16.gmra.mxu3 %v5441_v16 }
 0x363   : > { %v2971_v28 = vpop.f32.mrf.mxu1 }
 0x364   : > { %v2972_v32 = vadd.f32 %v2971_v28, %v5316_v59  ;;  %v4577_v59 = vld [vmem:[#allocation8 + $0x1d0] sm:$0xff] }
 0x365   : > { %v2868_v63 = vpop.f32.mrf.mxu2  ;;  %v2957_v58 = vpop.f32.mrf.mxu3  ;;  %3323 = vmatpush.bf16.msrb.mxu2 %v4577_v59  ;;  %v4585_v28 = vld [vmem:[#allocation8 + $0x210] sm:$0xff] }
 0x366   : > { %v2869_v25 = vadd.f32 %v2868_v63, %v2780_v33  ;;  %3010 = vmatmul.bf16.gmra.mxu1 %v5455_v42  ;;  %v2796_v33 = vadd.f32 %v5340_v50, %v2707_v48  ;;  %3412 = vmatpush.bf16.msra.mxu3 %v4585_v28 }
 0x368   : > { %v5728_v10 = vadd.f32 %v2957_v58, %v2869_v25 }
 0x36b   : > { %v2973_v57 = vpop.f32.mrf.mxu1 }
 0x36d   : > { %v2870_v4 = vpop.f32.mrf.mxu2  ;;  %v2959_v15 = vpop.f32.mrf.mxu3 }
 0x36e   : > { %v2871_v0 = vadd.f32 %v2870_v4, %v2782_v13 }
 0x370   : > { %v5731_v16 = vadd.f32 %v2959_v15, %v2871_v0  ;;  %v2885_v15 = vadd.f32 %v5344_v55, %v2796_v33  ;;  %v6289_v33 = vld [vmem:[#allocation29_spill] sm:$0xff] }
 0x372   : > { %3099 = vmatmul.bf16.gmra.mxu2 %v5470_v49  ;;  %3188 = vmatmul.bf16.gmra.mxu3 %v5472_v54  ;;  %v2974_v58 = vadd.f32 %v2973_v57, %v2885_v15 }
 0x373   : > { %v2976_v63 = vpop.f32.mrf.mxu1 }
 0x374   : > { %v2977_v25 = vadd.f32 %v2976_v63, %v5355_v19 }
 0x375   : > { %v3060_v38 = vpop.f32.mrf.mxu2  ;;  %v3149_v30 = vpop.f32.mrf.mxu3 }
 0x376   : > { %v3061_v4 = vadd.f32 %v3060_v38, %v2972_v32  ;;  %3015 = vmatmul.bf16.gmra.mxu1 %v5486_v51  ;;  %v2712_v32 = vadd.f32 %v5605_v29, %v5369_v52  ;;  %v6291_v52 = vld [vmem:[#allocation56_spill] sm:$0xff] }
 0x378   : > { %v5740_v0 = vadd.f32 %v3149_v30, %v3061_v4  ;;  %v2801_v38 = vadd.f32 %v5373_v12, %v2712_v32  ;;  %v6287_v30 = vld [vmem:[#allocation52_spill] sm:$0xff] }
 0x37a   : > { %6285 = vst [vmem:[#allocation91_spill] sm:$0xff] %v5740_v0  ;;  %v2890_v4 = vadd.f32 %v6289_v33, %v2801_v38  ;;  %v4584_v38 = vld [vmem:[#allocation8 + $0x208] sm:$0xff]  ;;  %v6295_v33 = vld [vmem:[#allocation31_spill] sm:$0xff]  ;;  %v4593_v0 = vld [vmem:[#allocation10 + $0x10] sm:$0xff] }
 0x37b   : > { %v2978_v13 = vpop.f32.mrf.mxu1  ;;  %3413 = vmatpush.bf16.msra.mxu3 %v4584_v38  ;;  %3617 = vmatpush.bf16.msrb.mxu0 %v4593_v0  ;;  %v6302_v38 = vld [vmem:[#allocation37_spill] sm:$0xff] }
 0x37c   : > { %v2979_v15 = vadd.f32 %v2978_v13, %v2890_v4 }
 0x37d   : > { %v3062_v54 = vpop.f32.mrf.mxu2  ;;  %v3151_v19 = vpop.f32.mrf.mxu3 }
 0x37e   : > { %v3063_v59 = vadd.f32 %v3062_v54, %v2974_v58 }
 0x380   : > { %v5743_v63 = vadd.f32 %v3151_v19, %v3063_v59 }
 0x382   : > { %6286 = vst [vmem:[#allocation92_spill] sm:$0xff] %v5743_v63  ;;  %3104 = vmatmul.bf16.gmra.mxu2 %v5501_v56  ;;  %3193 = vmatmul.bf16.gmra.mxu3 %v5503_v36 }
 0x383   : > { %v2981_v50 = vpop.f32.mrf.mxu1 }
 0x384   : > { %v2982_v48 = vadd.f32 %v2981_v50, %v5386_v40  ;;  %v6292_v40 = vld [vmem:[#allocation57_spill] sm:$0xff]  ;;  %v4576_v50 = vld [vmem:[#allocation8 + $0x1c8] sm:$0xff] }
 0x385   : > { %v3065_v28 = vpop.f32.mrf.mxu2  ;;  %v3154_v55 = vpop.f32.mrf.mxu3  ;;  %3324 = vmatpush.bf16.msrb.mxu2 %v4576_v50 }
 0x386   : > { %v3066_v57 = vadd.f32 %v3065_v28, %v2977_v25  ;;  %3020 = vmatmul.bf16.gmra.mxu1 %v6287_v30  ;;  %v6293_v25 = vld [vmem:[#allocation30_spill] sm:$0xff]  ;;  %v6294_v28 = vld [vmem:[#allocation35_spill] sm:$0xff] }
 0x387   : > { %v2717_v32 = vadd.f32 %v5605_v29, %v6293_v25  ;;  %v6300_v30 = vld [vmem:[#allocation63_spill] sm:$0xff] }
 0x388   : > { %v5752_v54 = vadd.f32 %v3154_v55, %v3066_v57 }
 0x389   : > { %v2806_v4 = vadd.f32 %v6295_v33, %v2717_v32 }
 0x38a   : > { %6288 = vst [vmem:[#allocation93_spill] sm:$0xff] %v5752_v54 }
 0x38b   : > { %v2983_v37 = vpop.f32.mrf.mxu1 }
 0x38d   : > { %v3067_v58 = vpop.f32.mrf.mxu2  ;;  %v3156_v19 = vpop.f32.mrf.mxu3 }
 0x38e   : > { %v3068_v59 = vadd.f32 %v3067_v58, %v2979_v15  ;;  %v6296_v58 = vld [vmem:[#allocation59_spill] sm:$0xff] }
 0x390   : > { %v5755_v63 = vadd.f32 %v3156_v19, %v3068_v59  ;;  %v4568_v59 = vld [vmem:[#allocation8 + $0x188] sm:$0xff] }
 0x391   : > { %3235 = vmatpush.bf16.msrb.mxu1 %v4568_v59 }
 0x392   : > { %6290 = vst [vmem:[#allocation29_spill] sm:$0xff] %v5755_v63  ;;  %3109 = vmatmul.bf16.gmra.mxu2 %v6291_v52  ;;  %3198 = vmatmul.bf16.gmra.mxu3 %v6292_v40  ;;  %v6298_v63 = vld [vmem:[#allocation32_spill] sm:$0xff] }
 0x393   : > { %v2986_v12 = vpop.f32.mrf.mxu1  ;;  %v2895_v54 = vadd.f32 %v6298_v63, %v2806_v4 }
 0x394   : > { %v2987_v55 = vadd.f32 %v2986_v12, %v6294_v28 }
 0x395   : > { %v3070_v57 = vpop.f32.mrf.mxu2  ;;  %v3159_v13 = vpop.f32.mrf.mxu3  ;;  %v2984_v25 = vadd.f32 %v2983_v37, %v2895_v54  ;;  %v6304_v54 = vld [vmem:[#allocation38_spill] sm:$0xff] }
 0x396   : > { %v3071_v15 = vadd.f32 %v3070_v57, %v2982_v48  ;;  %3025 = vmatmul.bf16.gmra.mxu1 %v6296_v58  ;;  %v6301_v48 = vld [vmem:[#allocation64_spill] sm:$0xff]  ;;  %v2722_v57 = vadd.f32 %v5605_v29, %v6302_v38  ;;  %v6309_v38 = vld [vmem:[#allocation70_spill] sm:$0xff] }
 0x397   : > { %v6328_v58 = vld [vmem:[#allocation58_spill] sm:$0xff] }
 0x398   : > { %v5764_v19 = vadd.f32 %v3159_v13, %v3071_v15  ;;  %v6303_v13 = vld [vmem:[#allocation42_spill] sm:$0xff]  ;;  %v2811_v37 = vadd.f32 %v6304_v54, %v2722_v57 }
 0x39a   : > { %6297 = vst [vmem:[#allocation30_spill] sm:$0xff] %v5764_v19 }
 0x39b   : > { %v2988_v40 = vpop.f32.mrf.mxu1 }
 0x39d   : > { %v3072_v52 = vpop.f32.mrf.mxu2  ;;  %v3161_v12 = vpop.f32.mrf.mxu3 }
 0x39e   : > { %v3073_v50 = vadd.f32 %v3072_v52, %v2984_v25  ;;  %v6305_v52 = vld [vmem:[#allocation66_spill] sm:$0xff]  ;;  %v6307_v25 = vld [vmem:[#allocation39_spill] sm:$0xff] }
 0x3a0   : > { %v5767_v28 = vadd.f32 %v3161_v12, %v3073_v50  ;;  %v2900_v12 = vadd.f32 %v6307_v25, %v2811_v37  ;;  %v4583_v37 = vld [vmem:[#allocation8 + $0x200] sm:$0xff]  ;;  %v6313_v25 = vld [vmem:[#allocation44_spill] sm:$0xff] }
 0x3a1   : > { %3414 = vmatpush.bf16.msra.mxu3 %v4583_v37 }
 0x3a2   : > { %6299 = vst [vmem:[#allocation35_spill] sm:$0xff] %v5767_v28  ;;  %3114 = vmatmul.bf16.gmra.mxu2 %v6300_v30  ;;  %3203 = vmatmul.bf16.gmra.mxu3 %v6301_v48  ;;  %v2989_v28 = vadd.f32 %v2988_v40, %v2900_v12 }
 0x3a3   : > { %v2991_v32 = vpop.f32.mrf.mxu1 }
 0x3a4   : > { %v2992_v63 = vadd.f32 %v2991_v32, %v6303_v13  ;;  %v6310_v32 = vld [vmem:[#allocation71_spill] sm:$0xff] }
 0x3a5   : > { %v3075_v33 = vpop.f32.mrf.mxu2  ;;  %v3164_v4 = vpop.f32.mrf.mxu3  ;;  %v4575_v13 = vld [vmem:[#allocation8 + $0x1c0] sm:$0xff] }
 0x3a6   : > { %v3076_v15 = vadd.f32 %v3075_v33, %v2987_v55  ;;  %3030 = vmatmul.bf16.gmra.mxu1 %v6305_v52  ;;  %v6311_v55 = vld [vmem:[#allocation43_spill] sm:$0xff]  ;;  %3325 = vmatpush.bf16.msrb.mxu2 %v4575_v13 }
 0x3a7   : > { %v2727_v33 = vadd.f32 %v5605_v29, %v6311_v55 }
 0x3a8   : > { %v5776_v59 = vadd.f32 %v3164_v4, %v3076_v15  ;;  %v6312_v4 = vld [vmem:[#allocation47_spill] sm:$0xff] }
 0x3a9   : > { %v2816_v12 = vadd.f32 %v6313_v25, %v2727_v33 }
 0x3aa   : > { %6306 = vst [vmem:[#allocation31_spill] sm:$0xff] %v5776_v59  ;;  %v6316_v59 = vld [vmem:[#allocation45_spill] sm:$0xff] }
 0x3ab   : > { %v2993_v50 = vpop.f32.mrf.mxu1 }
 0x3ad   : > { %v3077_v19 = vpop.f32.mrf.mxu2  ;;  %v3166_v0 = vpop.f32.mrf.mxu3 }
 0x3ae   : > { %v3078_v48 = vadd.f32 %v3077_v19, %v2989_v28  ;;  %v6314_v28 = vld [vmem:[#allocation73_spill] sm:$0xff] }
 0x3b0   : > { %v5779_v30 = vadd.f32 %v3166_v0, %v3078_v48  ;;  %v951_v48 = vpop.f32.mrf.mxu0 }
 0x3b1   : > { %v952_v33 = vadd.f32 %v5512_v61, %v951_v48  ;;  %v4730_v48 = vld [vmem:[%s6145_s3] ss:$0 sm:$0xff] }
 0x3b2   : > { %6308 = vst [vmem:[#allocation32_spill] sm:$0xff] %v5779_v30  ;;  %3119 = vmatmul.bf16.gmra.mxu2 %v6309_v38  ;;  %3208 = vmatmul.bf16.gmra.mxu3 %v6310_v32  ;;  %v4567_v30 = vld [vmem:[#allocation8 + $0x180] sm:$0xff]  ;;  %v2905_v32 = vadd.f32 %v6316_v59, %v2816_v12  ;;  %v6320_v12 = vld [vmem:[#allocation49_spill] sm:$0xff] }
 0x3b3   : > { %v2996_v57 = vpop.f32.mrf.mxu1  ;;  %3236 = vmatpush.bf16.msrb.mxu1 %v4567_v30  ;;  %v6319_v59 = vld [vmem:[#allocation51_spill] sm:$0xff] }
 0x3b4   : > { %v2997_v54 = vadd.f32 %v2996_v57, %v6312_v4  ;;  %v2994_v38 = vadd.f32 %v2993_v50, %v2905_v32  ;;  %v1017_v32 = vmax.f32 %v952_v33, 0.0  ;;  %v6324_v33 = vld [vmem:[#allocation50_spill] sm:$0xff] }
 0x3b5   : > { %v3080_v15 = vpop.f32.mrf.mxu2  ;;  %v3169_v40 = vpop.f32.mrf.mxu3 }
 0x3b6   : > { %v3081_v19 = vadd.f32 %v3080_v15, %v2992_v63  ;;  %3035 = vmatmul.bf16.gmra.mxu1 %v6314_v28  ;;  %v6318_v15 = vld [vmem:[#allocation48_spill] sm:$0xff] }
 0x3b8   : > { %v5788_v0 = vadd.f32 %v3169_v40, %v3081_v19  ;;  %v953_v63 = vpop.f32.mrf.mxu0  ;;  %v2732_v40 = vadd.f32 %v5605_v29, %v6318_v15 }
 0x3b9   : > { %v954_v30 = vadd.f32 %v5512_v61, %v953_v63  ;;  %v1369_v63 = vsel %vm1099_vm0, %v1017_v32, 0.0 }
 0x3ba   : > { %6315 = vst [vmem:[#allocation37_spill] sm:$0xff] %v5788_v0  ;;  %v2821_v19 = vadd.f32 %v6320_v12, %v2732_v40  ;;  %v1759_v32 = vrot.slane %v1369_v63, 2 }
 0x3bb   : > { %v2998_v55 = vpop.f32.mrf.mxu1 }
 0x3bd   : > { %v3082_v57 = vpop.f32.mrf.mxu2  ;;  %v3171_v13 = vpop.f32.mrf.mxu3 }
 0x3be   : > { %v3083_v4 = vadd.f32 %v3082_v57, %v2994_v38 }
 0x3c0   : > { %v5791_v52 = vadd.f32 %v3171_v13, %v3083_v4  ;;  %v6321_v13 = vld [vmem:[#allocation28_spill] sm:$0xff] }
 0x3c1   : > { %v957_v4 = vadd.f32 %v4730_v48, %v6321_v13 }
 0x3c2   : > { %6317 = vst [vmem:[#allocation42_spill] sm:$0xff] %v5791_v52  ;;  %3124 = vmatmul.bf16.gmra.mxu2 %v5630_v24  ;;  %3213 = vmatmul.bf16.gmra.mxu3 %v5632_v44  ;;  %v1018_v52 = vmax.f32 %v954_v30, 0.0 }
 0x3c3   : > { %v3001_v37 = vpop.f32.mrf.mxu1 }
 0x3c4   : > { %v3002_v50 = vadd.f32 %v3001_v37, %v6319_v59  ;;  %v2910_v37 = vadd.f32 %v6324_v33, %v2821_v19  ;;  %v1745_v59 = vpack.c.bf16 %v1369_v63, %v1369_v63  ;;  %v1746_v0 = vpack.c.bf16 %v1018_v52, %v1018_v52  ;;  %v6327_v33 = vld [vmem:[#allocation53_spill] sm:$0xff] }
 0x3c5   : > { %v3085_v25 = vpop.f32.mrf.mxu2  ;;  %v3174_v38 = vpop.f32.mrf.mxu3  ;;  %v1760_v13 = vrot.slane %v1018_v52, 2 }
 0x3c6   : > { %v3086_v57 = vadd.f32 %v3085_v25, %v2997_v54  ;;  %3040 = vmatmul.bf16.gmra.mxu1 %v5644_v62  ;;  %v1019_v54 = vmax.f32 %v957_v4, 0.0  ;;  %v2999_v25 = vadd.f32 %v2998_v55, %v2910_v37  ;;  %v2081_v44 = vunpack.c.l.b16 %v1745_v59 }
 0x3c7   : > { %v2082_v28 = vunpack.c.l.b16 %v1746_v0  ;;  %v2737_v0 = vadd.f32 %v5605_v29, %v6327_v33 }
 0x3c8   : > { %v5806_v15 = vadd.f32 %v3174_v38, %v3086_v57  ;;  %v1371_v30 = vsel %vm1158_vm3, %v1019_v54, 0.0  ;;  %v1750_v38 = vrot.slane %v1369_v63, 1  ;;  %v1751_v57 = vrot.slane %v1018_v52, 1 }
 0x3c9   : > { %v5817_v19 = vpack.c.b16 %v2082_v28, %v2081_v44  ;;  %v1753_v55 = vrot.slane %v1371_v30, 1  ;;  %v1762_v4 = vrot.slane %v1371_v30, 2  ;;  %v1761_v63 = vsel %vm1600_vm2, %v1759_v32, %v1760_v13  ;;  %v6329_v44 = vld [vmem:[#allocation54_spill] sm:$0xff] }
 0x3ca   : > { %6322 = vst [vmem:[#allocation38_spill] sm:$0xff] %v5806_v15  ;;  %v1752_v59 = vsel %vm1455_vm1, %v1750_v38, %v1751_v57  ;;  %v2826_v28 = vadd.f32 %v6329_v44, %v2737_v0  ;;  %v6330_v38 = vld [vmem:[#allocation55_spill] sm:$0xff] }
 0x3cb   : > { %v3003_v40 = vpop.f32.mrf.mxu1  ;;  %v1754_v52 = vsel %vm1455_vm1, %v1751_v57, %v1753_v55  ;;  %v1763_v54 = vsel %vm1600_vm2, %v1760_v13, %v1762_v4 }
 0x3cc   : > { %v1758_v33 = vpack.c.bf16 %v1754_v52, %v1754_v52 }
 0x3cd   : > { %v3087_v12 = vpop.f32.mrf.mxu2  ;;  %v3176_v62 = vpop.f32.mrf.mxu3 }
 0x3ce   : > { %v3088_v24 = vadd.f32 %v3087_v12, %v2999_v25  ;;  %v1757_v12 = vpack.c.bf16 %v1752_v59, %v1752_v59  ;;  %v2088_v55 = vunpack.c.l.b16 %v1758_v33  ;;  %v6334_v33 = vld [vmem:[#allocation62_spill] sm:$0xff] }
 0x3d0   : > { %v5813_v48 = vadd.f32 %v3176_v62, %v3088_v24 }
 0x3d2   : > { %6326 = vst [vmem:[#allocation39_spill] sm:$0xff] %v5813_v48  ;;  %3129 = vmatmul.bf16.gmra.mxu2 %v5659_v14  ;;  %3218 = vmatmul.bf16.gmra.mxu3 %v5661_v27  ;;  %v2915_v48 = vadd.f32 %v6330_v38, %v2826_v28  ;;  %v2087_v27 = vunpack.c.l.b16 %v1757_v12 }
 0x3d3   : > { %v3006_v61 = vpop.f32.mrf.mxu1 }
 0x3d4   : > { %v3007_v37 = vadd.f32 %v3006_v61, %v6328_v58  ;;  %v1766_v61 = vpack.c.bf16 %v1761_v63, %v1761_v63  ;;  %v1767_v58 = vpack.c.bf16 %v1763_v54, %v1763_v54  ;;  %v3004_v57 = vadd.f32 %v3003_v40, %v2915_v48  ;;  %v6331_v63 = vld [vmem:[#allocation60_spill] sm:$0xff]  ;;  %v6332_v48 = vld [vmem:[#allocation65_spill] sm:$0xff] }
 0x3d5   : > { %v3090_v24 = vpop.f32.mrf.mxu2  ;;  %v3179_v62 = vpop.f32.mrf.mxu3  ;;  %v2742_v40 = vadd.f32 %v5605_v29, %v6331_v63 }
 0x3d6   : > { %v3091_v25 = vadd.f32 %v3090_v24, %v3002_v50  ;;  %3045 = vmatmul.bf16.gmra.mxu1 %v5817_v19  ;;  %v2093_v32 = vunpack.c.l.b16 %v1766_v61  ;;  %v2094_v14 = vunpack.c.l.b16 %v1767_v58  ;;  %v5833_v24 = vpack.c.b16 %v2088_v55, %v2087_v27 }
 0x3d8   : > { %v5828_v30 = vadd.f32 %v3179_v62, %v3091_v25  ;;  %v5835_v59 = vpack.c.b16 %v2094_v14, %v2093_v32  ;;  %v4592_v62 = vld [vmem:[#allocation10 + $0x8] sm:$0xff]  ;;  %v6333_v25 = vld [vmem:[#allocation61_spill] sm:$0xff] }
 0x3d9   : > { %3618 = vmatpush.bf16.msrb.mxu0 %v4592_v62  ;;  %v2831_v12 = vadd.f32 %v6333_v25, %v2742_v40  ;;  %v6337_v40 = vld [vmem:[#allocation68_spill] sm:$0xff] }
 0x3db   : > { %v3008_v15 = vpop.f32.mrf.mxu1  ;;  %v2920_v61 = vadd.f32 %v6334_v33, %v2831_v12 }
 0x3dd   : > { %v3092_v13 = vpop.f32.mrf.mxu2  ;;  %v3181_v4 = vpop.f32.mrf.mxu3  ;;  %v3009_v38 = vadd.f32 %v3008_v15, %v2920_v61 }
 0x3de   : > { %v3093_v0 = vadd.f32 %v3092_v13, %v3004_v57 }
 0x3e0   : > { %v5831_v50 = vadd.f32 %v3181_v4, %v3093_v0  ;;  %v6335_v0 = vld [vmem:[#allocation67_spill] sm:$0xff] }
 0x3e2   : > { %3134 = vmatmul.bf16.gmra.mxu2 %v5833_v24  ;;  %3223 = vmatmul.bf16.gmra.mxu3 %v5835_v59 }
 0x3e3   : > { %v3011_v52 = vpop.f32.mrf.mxu1 }
 0x3e4   : > { %v3012_v54 = vadd.f32 %v3011_v52, %v6332_v48 }
 0x3e5   : > { %v3095_v44 = vpop.f32.mrf.mxu2  ;;  %v3184_v28 = vpop.f32.mrf.mxu3 }
 0x3e6   : > { %v3096_v27 = vadd.f32 %v3095_v44, %v3007_v37  ;;  %3237 = vmatmul.bf16.vlgmr.msrb.gmra.mxu1 %v5255_v60  ;;  %v2747_v37 = vadd.f32 %v5605_v29, %v6335_v0  ;;  %v6336_v60 = vld [vmem:[#allocation72_spill] sm:$0xff]  ;;  %v6341_v0 = vld [vmem:[#allocation75_spill] sm:$0xff] }
 0x3e8   : > { %v5844_v14 = vadd.f32 %v3184_v28, %v3096_v27  ;;  %v2836_v48 = vadd.f32 %v6337_v40, %v2747_v37  ;;  %v6338_v28 = vld [vmem:[#allocation69_spill] sm:$0xff] }
 0x3ea   : > { %v2925_v25 = vadd.f32 %v6338_v28, %v2836_v48 }
 0x3eb   : > { %v3013_v58 = vpop.f32.mrf.mxu1 }
 0x3ec   : > { %v3014_v12 = vadd.f32 %v3013_v58, %v2925_v25 }
 0x3ed   : > { %v3097_v57 = vpop.f32.mrf.mxu2  ;;  %v3186_v55 = vpop.f32.mrf.mxu3 }
 0x3ee   : > { %v3098_v32 = vadd.f32 %v3097_v57, %v3009_v38  ;;  %v6339_v57 = vld [vmem:[#allocation74_spill] sm:$0xff] }
 0x3f0   : > { %v5847_v13 = vadd.f32 %v3186_v55, %v3098_v32 }
 0x3f2   : > { %3326 = vmatmul.bf16.vlgmr.msrb.gmra.mxu2 %v5264_v20  ;;  %3415 = vmatmul.bf16.vlgmr.msra.gmra.mxu3 %v5266_v21 }
 0x3f3   : > { %v3016_v4 = vpop.f32.mrf.mxu1 }
 0x3f4   : > { %v3017_v62 = vadd.f32 %v3016_v4, %v6336_v60 }
 0x3f5   : > { %v3100_v52 = vpop.f32.mrf.mxu2  ;;  %v3189_v63 = vpop.f32.mrf.mxu3 }
 0x3f6   : > { %v3101_v15 = vadd.f32 %v3100_v52, %v3012_v54  ;;  %3242 = vmatmul.bf16.gmra.mxu1 %v5279_v45  ;;  %v2752_v54 = vadd.f32 %v5605_v29, %v6339_v57  ;;  %v6340_v45 = vld [vmem:[#allocation79_spill] sm:$0xff]  ;;  %v6342_v52 = vld [vmem:[#allocation76_spill] sm:$0xff] }
 0x3f8   : > { %v5856_v44 = vadd.f32 %v3189_v63, %v3101_v15  ;;  %v2841_v37 = vadd.f32 %v6341_v0, %v2752_v54 }
 0x3fa   : > { %v2930_v63 = vadd.f32 %v6342_v52, %v2841_v37 }
 0x3fb   : > { %v3018_v20 = vpop.f32.mrf.mxu1 }
 0x3fc   : > { %v3019_v40 = vadd.f32 %v3018_v20, %v2930_v63 }
 0x3fd   : > { %v3102_v21 = vpop.f32.mrf.mxu2  ;;  %v3191_v27 = vpop.f32.mrf.mxu3 }
 0x3fe   : > { %v3103_v33 = vadd.f32 %v3102_v21, %v3014_v12  ;;  %v6343_v12 = vld [vmem:[#allocation81_spill] sm:$0xff] }
 0x400   : > { %v5859_v61 = vadd.f32 %v3191_v27, %v3103_v33 }
 0x402   : > { %3331 = vmatmul.bf16.gmra.mxu2 %v5288_v7  ;;  %3420 = vmatmul.bf16.gmra.mxu3 %v5290_v8 }
 0x403   : > { %v3021_v38 = vpop.f32.mrf.mxu1 }
 0x404   : > { %v3022_v55 = vadd.f32 %v3021_v38, %v6340_v45 }
 0x405   : > { %v3105_v32 = vpop.f32.mrf.mxu2  ;;  %v3194_v4 = vpop.f32.mrf.mxu3 }
 0x406   : > { %v3106_v58 = vadd.f32 %v3105_v32, %v3017_v62  ;;  %3247 = vmatmul.bf16.gmra.mxu1 %v5306_v34  ;;  %v2757_v62 = vadd.f32 %v5605_v29, %v6343_v12 }
 0x408   : > { %v5868_v60 = vadd.f32 %v3194_v4, %v3106_v58  ;;  %v2846_v33 = vadd.f32 %v5655_v2, %v2757_v62  ;;  %v2762_v2 = vadd.f32 %v5605_v29, %v5672_v53 }
 0x40a   : > { %v2935_v57 = vadd.f32 %v5657_v46, %v2846_v33  ;;  %v2851_v37 = vadd.f32 %v5674_v11, %v2762_v2 }
 0x40b   : > { %v3023_v7 = vpop.f32.mrf.mxu1 }
 0x40c   : > { %v3024_v54 = vadd.f32 %v3023_v7, %v2935_v57 }
 0x40d   : > { %v3107_v8 = vpop.f32.mrf.mxu2  ;;  %v3196_v48 = vpop.f32.mrf.mxu3 }
 0x40e   : > { %v3108_v15 = vadd.f32 %v3107_v8, %v3019_v40 }
 0x410   : > { %v5871_v28 = vadd.f32 %v3196_v48, %v3108_v15 }
 0x412   : > { %3336 = vmatmul.bf16.gmra.mxu2 %v5318_v5  ;;  %3425 = vmatmul.bf16.gmra.mxu3 %v5320_v6 }
 0x413   : > { %v3026_v25 = vpop.f32.mrf.mxu1 }
 0x414   : > { %v3027_v34 = vadd.f32 %v3026_v25, %v5667_v17 }
 0x415   : > { %v3110_v21 = vpop.f32.mrf.mxu2  ;;  %v3199_v27 = vpop.f32.mrf.mxu3 }
 0x416   : > { %v3111_v20 = vadd.f32 %v3110_v21, %v3022_v55  ;;  %3252 = vmatmul.bf16.gmra.mxu1 %v5331_v31  ;;  %v4591_v55 = vld [vmem:[#allocation10] sm:$0xff] }
 0x417   : > { %3619 = vmatpush.bf16.msrb.mxu0 %v4591_v55 }
 0x418   : > { %v5880_v38 = vadd.f32 %v3199_v27, %v3111_v20 }
 0x41b   : > { %v3028_v5 = vpop.f32.mrf.mxu1 }
 0x41d   : > { %v3112_v6 = vpop.f32.mrf.mxu2  ;;  %v3201_v45 = vpop.f32.mrf.mxu3 }
 0x41e   : > { %v3113_v32 = vadd.f32 %v3112_v6, %v3024_v54 }
 0x420   : > { %v5883_v4 = vadd.f32 %v3201_v45, %v3113_v32 }
 0x422   : > { %3341 = vmatmul.bf16.gmra.mxu2 %v5346_v1  ;;  %3430 = vmatmul.bf16.gmra.mxu3 %v5348_v3  ;;  %v2940_v1 = vadd.f32 %v5676_v18, %v2851_v37 }
 0x423   : > { %v3031_v17 = vpop.f32.mrf.mxu1 }
 0x424   : > { %v3032_v31 = vadd.f32 %v3031_v17, %v5682_v47  ;;  %v3029_v63 = vadd.f32 %v3028_v5, %v2940_v1  ;;  %v6349_v17 = vld [vmem:[#allocation36_spill] sm:$0xff] }
 0x425   : > { %v3115_v0 = vpop.f32.mrf.mxu2  ;;  %v3204_v46 = vpop.f32.mrf.mxu3 }
 0x426   : > { %v3116_v58 = vadd.f32 %v3115_v0, %v3027_v34  ;;  %3257 = vmatmul.bf16.gmra.mxu1 %v5362_v43  ;;  %v2767_v43 = vadd.f32 %v5605_v29, %v5687_v41  ;;  %v6344_v41 = vld [vmem:[#allocation33_spill] sm:$0xff] }
 0x428   : > { %v5892_v52 = vadd.f32 %v3204_v46, %v3116_v58  ;;  %v2856_v18 = vadd.f32 %v5689_v26, %v2767_v43  ;;  %v6346_v26 = vld [vmem:[#allocation84_spill] sm:$0xff] }
 0x429   : > { %v2772_v57 = vadd.f32 %v5605_v29, %v6346_v26  ;;  %v6351_v29 = vld [vmem:[#allocation40_spill] sm:$0xff] }
 0x42a   : > { %v2945_v62 = vadd.f32 %v5691_v35, %v2856_v18  ;;  %v6348_v35 = vld [vmem:[#allocation85_spill] sm:$0xff] }
 0x42b   : > { %v3033_v3 = vpop.f32.mrf.mxu1  ;;  %v2861_v45 = vadd.f32 %v6348_v35, %v2772_v57 }
 0x42c   : > { %v3034_v34 = vadd.f32 %v3033_v3, %v2945_v62 }
 0x42d   : > { %v3117_v7 = vpop.f32.mrf.mxu2  ;;  %v3206_v40 = vpop.f32.mrf.mxu3 }
 0x42e   : > { %v3118_v53 = vadd.f32 %v3117_v7, %v3029_v63  ;;  %v6352_v63 = vld [vmem:[#allocation41_spill] sm:$0xff] }
 0x430   : > { %v5895_v8 = vadd.f32 %v3206_v40, %v3118_v53  ;;  %v4731_v40 = vld [vmem:[%s6147_s5] ss:$0 sm:$0xff]  ;;  %v6353_v53 = vld [vmem:[#allocation88_spill] sm:$0xff] }
 0x432   : > { %3346 = vmatmul.bf16.gmra.mxu2 %v5377_v22  ;;  %3435 = vmatmul.bf16.gmra.mxu3 %v5379_v23 }
 0x433   : > { %v3036_v11 = vpop.f32.mrf.mxu1 }
 0x434   : > { %v3037_v47 = vadd.f32 %v3036_v11, %v5697_v39  ;;  %v6345_v39 = vld [vmem:[#allocation34_spill] sm:$0xff]  ;;  %v2777_v11 = vadd.f32 %v4731_v40, %v6353_v53 }
 0x435   : > { %v3120_v48 = vpop.f32.mrf.mxu2  ;;  %v3209_v15 = vpop.f32.mrf.mxu3 }
 0x436   : > { %v3121_v25 = vadd.f32 %v3120_v48, %v3032_v31  ;;  %3262 = vmatmul.bf16.gmra.mxu1 %v5393_v9  ;;  %v6347_v9 = vld [vmem:[#allocation87_spill] sm:$0xff]  ;;  %v6350_v31 = vld [vmem:[#allocation86_spill] sm:$0xff] }
 0x437   : > { %v2950_v55 = vadd.f32 %v6350_v31, %v2861_v45 }
 0x438   : > { %v5904_v12 = vadd.f32 %v3209_v15, %v3121_v25  ;;  %v6354_v15 = vld [vmem:[#allocation89_spill] sm:$0xff] }
 0x439   : > { %v2866_v18 = vadd.f32 %v6354_v15, %v2777_v11 }
 0x43b   : > { %v3038_v22 = vpop.f32.mrf.mxu1 }
 0x43c   : > { %v3039_v46 = vadd.f32 %v3038_v22, %v2950_v55  ;;  %v6355_v22 = vld [vmem:[#allocation90_spill] sm:$0xff]  ;;  %v6357_v55 = vld [vmem:[#allocation52_spill] sm:$0xff] }
 0x43d   : > { %v3122_v23 = vpop.f32.mrf.mxu2  ;;  %v3211_v21 = vpop.f32.mrf.mxu3 }
 0x43e   : > { %v3123_v27 = vadd.f32 %v3122_v23, %v3034_v34  ;;  %v2955_v34 = vadd.f32 %v6355_v22, %v2866_v18  ;;  %v6363_v22 = vld [vmem:[#allocation93_spill] sm:$0xff] }
 0x440   : > { %v5907_v33 = vadd.f32 %v3211_v21, %v3123_v27 }
 0x442   : > { %3351 = vmatmul.bf16.gmra.mxu2 %v6344_v41  ;;  %3440 = vmatmul.bf16.gmra.mxu3 %v6345_v39 }
 0x443   : > { %v3041_v20 = vpop.f32.mrf.mxu1 }
 0x444   : > { %v3042_v5 = vadd.f32 %v3041_v20, %v6347_v9 }
 0x445   : > { %v3125_v54 = vpop.f32.mrf.mxu2  ;;  %v3214_v6 = vpop.f32.mrf.mxu3 }
 0x446   : > { %v3126_v32 = vadd.f32 %v3125_v54, %v3037_v47  ;;  %3267 = vmatmul.bf16.gmra.mxu1 %v6349_v17 }
 0x448   : > { %v5916_v2 = vadd.f32 %v3214_v6, %v3126_v32 }
 0x44b   : > { %v3043_v0 = vpop.f32.mrf.mxu1 }
 0x44c   : > { %v3044_v21 = vadd.f32 %v3043_v0, %v2955_v34  ;;  %v6358_v0 = vld [vmem:[#allocation91_spill] sm:$0xff] }
 0x44d   : > { %v3127_v37 = vpop.f32.mrf.mxu2  ;;  %v3216_v58 = vpop.f32.mrf.mxu3 }
 0x44e   : > { %v3128_v1 = vadd.f32 %v3127_v37, %v3039_v46 }
 0x450   : > { %v5919_v3 = vadd.f32 %v3216_v58, %v3128_v1  ;;  %v6359_v58 = vld [vmem:[#allocation92_spill] sm:$0xff] }
 0x452   : > { %3356 = vmatmul.bf16.gmra.mxu2 %v6351_v29  ;;  %3445 = vmatmul.bf16.gmra.mxu3 %v6352_v63 }
 0x453   : > { %v3046_v7 = vpop.f32.mrf.mxu1 }
 0x454   : > { %v3047_v43 = vadd.f32 %v3046_v7, %v5728_v10  ;;  %v6356_v10 = vld [vmem:[#allocation46_spill] sm:$0xff] }
 0x455   : > { %v3130_v47 = vpop.f32.mrf.mxu2  ;;  %v3219_v48 = vpop.f32.mrf.mxu3 }
 0x456   : > { %v3131_v25 = vadd.f32 %v3130_v47, %v3042_v5  ;;  %3272 = vmatmul.bf16.gmra.mxu1 %v5455_v42 }
 0x458   : > { %v5930_v62 = vadd.f32 %v3219_v48, %v3131_v25  ;;  %v6362_v25 = vld [vmem:[#allocation59_spill] sm:$0xff] }
 0x45b   : > { %v3048_v23 = vpop.f32.mrf.mxu1 }
 0x45c   : > { %v3049_v27 = vadd.f32 %v3048_v23, %v5731_v16 }
 0x45d   : > { %v3132_v41 = vpop.f32.mrf.mxu2  ;;  %v3221_v39 = vpop.f32.mrf.mxu3 }
 0x45e   : > { %v3133_v20 = vadd.f32 %v3132_v41, %v3044_v21 }
 0x460   : > { %v5934_v26 = vadd.f32 %v3221_v39, %v3133_v20 }
 0x462   : > { %3361 = vmatmul.bf16.gmra.mxu2 %v5470_v49  ;;  %3450 = vmatmul.bf16.gmra.mxu3 %v6356_v10 }
 0x463   : > { %v3238_v57 = vpop.f32.mrf.mxu1 }
 0x464   : > { %v3239_v46 = vadd.f32 %v3238_v57, %v6358_v0 }
 0x465   : > { %v3135_v9 = vpop.f32.mrf.mxu2  ;;  %v3224_v42 = vpop.f32.mrf.mxu3 }
 0x466   : > { %v3136_v5 = vadd.f32 %v3135_v9, %v3047_v43  ;;  %3277 = vmatmul.bf16.gmra.mxu1 %v5486_v51  ;;  %v6360_v43 = vld [vmem:[#allocation56_spill] sm:$0xff] }
 0x468   : > { %v5939_v54 = vadd.f32 %v3224_v42, %v3136_v5 }
 0x46b   : > { %v3240_v6 = vpop.f32.mrf.mxu1 }
 0x46c   : > { %v3241_v1 = vadd.f32 %v3240_v6, %v6359_v58  ;;  %v6365_v6 = vld [vmem:[#allocation63_spill] sm:$0xff] }
 0x46d   : > { %v3137_v35 = vpop.f32.mrf.mxu2  ;;  %v3226_v16 = vpop.f32.mrf.mxu3 }
 0x46e   : > { %v3138_v45 = vadd.f32 %v3137_v35, %v3049_v27  ;;  %v6364_v27 = vld [vmem:[#allocation29_spill] sm:$0xff]  ;;  %v6366_v35 = vld [vmem:[#allocation64_spill] sm:$0xff] }
 0x470   : > { %v5941_v32 = vadd.f32 %v3226_v16, %v3138_v45 }
 0x472   : > { %3366 = vmatmul.bf16.gmra.mxu2 %v5501_v56  ;;  %3455 = vmatmul.bf16.gmra.mxu3 %v5503_v36  ;;  %v6361_v36 = vld [vmem:[#allocation57_spill] sm:$0xff] }
 0x473   : > { %v3243_v49 = vpop.f32.mrf.mxu1 }
 0x474   : > { %v3244_v34 = vadd.f32 %v3243_v49, %v6363_v22  ;;  %v6367_v49 = vld [vmem:[#allocation66_spill] sm:$0xff] }
 0x475   : > { %v3327_v17 = vpop.f32.mrf.mxu2  ;;  %v3416_v31 = vpop.f32.mrf.mxu3 }
 0x476   : > { %3282 = vmatmul.bf16.gmra.mxu1 %v6357_v55  ;;  %v3328_v51 = vadd.f32 %v3327_v17, %v3239_v46  ;;  %v6368_v55 = vld [vmem:[#allocation30_spill] sm:$0xff] }
 0x478   : > { %v3417_v7 = vadd.f32 %v3416_v31, %v3328_v51 }
 0x47a   : > { %v3496_v11 = vmax.f32 %v3417_v7, 0.0 }
 0x47b   : > { %v3245_v37 = vpop.f32.mrf.mxu1 }
 0x47c   : > { %v3246_v41 = vadd.f32 %v3245_v37, %v6364_v27  ;;  %v6369_v37 = vld [vmem:[#allocation35_spill] sm:$0xff] }
 0x47d   : > { %v3329_v29 = vpop.f32.mrf.mxu2  ;;  %v3418_v63 = vpop.f32.mrf.mxu3 }
 0x47e   : > { %v3330_v40 = vadd.f32 %v3329_v29, %v3241_v1 }
 0x480   : > { %v3419_v53 = vadd.f32 %v3418_v63, %v3330_v40 }
 0x482   : > { %v3497_v56 = vmax.f32 %v3419_v53, 0.0  ;;  %3371 = vmatmul.bf16.gmra.mxu2 %v6360_v43  ;;  %3460 = vmatmul.bf16.gmra.mxu3 %v6361_v36  ;;  %v6371_v43 = vld [vmem:[#allocation71_spill] sm:$0xff] }
 0x483   : > { %v3248_v47 = vpop.f32.mrf.mxu1 }
 0x484   : > { %v3528_v48 = vpack.c.bf16 %v3497_v56, %v3496_v11  ;;  %v3249_v0 = vadd.f32 %v3248_v47, %v6368_v55  ;;  %v6370_v56 = vld [vmem:[#allocation70_spill] sm:$0xff]  ;;  %v6372_v47 = vld [vmem:[#allocation73_spill] sm:$0xff] }
 0x485   : > { %v3332_v15 = vpop.f32.mrf.mxu2  ;;  %v3421_v18 = vpop.f32.mrf.mxu3 }
 0x486   : > { %3287 = vmatmul.bf16.gmra.mxu1 %v6362_v25  ;;  %3620 = vmatmul.bf16.vlgmr.msrb.gmra.mxu0 %v3528_v48  ;;  %v3333_v23 = vadd.f32 %v3332_v15, %v3244_v34  ;;  %v6373_v25 = vld [vmem:[#allocation31_spill] sm:$0xff] }
 0x488   : > { %v3422_v10 = vadd.f32 %v3421_v18, %v3333_v23 }
 0x48a   : > { %v3498_v42 = vmax.f32 %v3422_v10, 0.0 }
 0x48b   : > { %v3250_v21 = vpop.f32.mrf.mxu1 }
 0x48c   : > { %v3251_v58 = vadd.f32 %v3250_v21, %v6369_v37  ;;  %v6374_v21 = vld [vmem:[#allocation32_spill] sm:$0xff] }
 0x48d   : > { %v3334_v39 = vpop.f32.mrf.mxu2  ;;  %v3423_v20 = vpop.f32.mrf.mxu3 }
 0x48e   : > { %v3335_v57 = vadd.f32 %v3334_v39, %v3246_v41 }
 0x490   : > { %v3424_v9 = vadd.f32 %v3423_v20, %v3335_v57 }
 0x492   : > { %v3499_v5 = vmax.f32 %v3424_v9, 0.0  ;;  %3376 = vmatmul.bf16.gmra.mxu2 %v6365_v6  ;;  %3465 = vmatmul.bf16.gmra.mxu3 %v6366_v35  ;;  %v6376_v6 = vld [vmem:[#allocation78_spill] sm:$0xff] }
 0x493   : > { %v3253_v16 = vpop.f32.mrf.mxu1 }
 0x494   : > { %v3529_v45 = vpack.c.bf16 %v3499_v5, %v3498_v42  ;;  %v3254_v22 = vadd.f32 %v3253_v16, %v6373_v25  ;;  %v6375_v5 = vld [vmem:[#allocation77_spill] sm:$0xff]  ;;  %v6377_v16 = vld [vmem:[#allocation80_spill] sm:$0xff] }
 0x495   : > { %v3337_v17 = vpop.f32.mrf.mxu2  ;;  %v3426_v31 = vpop.f32.mrf.mxu3 }
 0x496   : > { %3292 = vmatmul.bf16.gmra.mxu1 %v6367_v49  ;;  %3625 = vmatmul.bf16.gmra.mxu0 %v3529_v45  ;;  %v3338_v46 = vadd.f32 %v3337_v17, %v3249_v0  ;;  %v6378_v49 = vld [vmem:[#allocation37_spill] sm:$0xff] }
 0x498   : > { %v3427_v63 = vadd.f32 %v3426_v31, %v3338_v46 }
 0x49a   : > { %v3500_v53 = vmax.f32 %v3427_v63, 0.0 }
 0x49b   : > { %v3255_v51 = vpop.f32.mrf.mxu1 }
 0x49c   : > { %v3256_v27 = vadd.f32 %v3255_v51, %v6374_v21  ;;  %v6379_v51 = vld [vmem:[#allocation42_spill] sm:$0xff] }
 0x49d   : > { %v3339_v1 = vpop.f32.mrf.mxu2  ;;  %v3428_v29 = vpop.f32.mrf.mxu3 }
 0x49e   : > { %v3340_v7 = vadd.f32 %v3339_v1, %v3251_v58 }
 0x4a0   : > { %v3429_v40 = vadd.f32 %v3428_v29, %v3340_v7 }
 0x4a2   : > { %v3501_v11 = vmax.f32 %v3429_v40, 0.0  ;;  %3381 = vmatmul.bf16.gmra.mxu2 %v6370_v56  ;;  %3470 = vmatmul.bf16.gmra.mxu3 %v6371_v43  ;;  %v6381_v56 = vld [vmem:[#allocation83_spill] sm:$0xff] }
 0x4a3   : > { %v3258_v36 = vpop.f32.mrf.mxu1 }
 0x4a4   : > { %v3530_v48 = vpack.c.bf16 %v3501_v11, %v3500_v53  ;;  %v3259_v55 = vadd.f32 %v3258_v36, %v6378_v49  ;;  %v6380_v11 = vld [vmem:[#allocation82_spill] sm:$0xff] }
 0x4a5   : > { %v3342_v15 = vpop.f32.mrf.mxu2  ;;  %v3431_v18 = vpop.f32.mrf.mxu3  ;;  %v6382_v36 = vld [vmem:[#allocation38_spill] sm:$0xff] }
 0x4a6   : > { %3297 = vmatmul.bf16.gmra.mxu1 %v6372_v47  ;;  %3630 = vmatmul.bf16.gmra.mxu0 %v3530_v48  ;;  %v3343_v34 = vadd.f32 %v3342_v15, %v3254_v22 }
 0x4a8   : > { %v3432_v20 = vadd.f32 %v3431_v18, %v3343_v34  ;;  %v6383_v34 = vld [vmem:[#allocation39_spill] sm:$0xff] }
 0x4aa   : > { %v3502_v9 = vmax.f32 %v3432_v20, 0.0 }
 0x4ab   : > { %v3260_v23 = vpop.f32.mrf.mxu1 }
 0x4ac   : > { %v3261_v37 = vadd.f32 %v3260_v23, %v6379_v51  ;;  %v6385_v51 = vld [vmem:[#allocation24_spill] sm:$0xff] }
 0x4ad   : > { %v3344_v41 = vpop.f32.mrf.mxu2  ;;  %v3433_v39 = vpop.f32.mrf.mxu3 }
 0x4ae   : > { %v3345_v10 = vadd.f32 %v3344_v41, %v3256_v27 }
 0x4b0   : > { %v3434_v57 = vadd.f32 %v3433_v39, %v3345_v10 }
 0x4b2   : > { %v3503_v42 = vmax.f32 %v3434_v57, 0.0  ;;  %3386 = vmatmul.bf16.gmra.mxu2 %v6375_v5  ;;  %3475 = vmatmul.bf16.gmra.mxu3 %v6376_v6  ;;  %v6384_v6 = vld [vmem:[#allocation23_spill] sm:$0xff] }
 0x4b3   : > { %v3263_v35 = vpop.f32.mrf.mxu1 }
 0x4b4   : > { %v3531_v45 = vpack.c.bf16 %v3503_v42, %v3502_v9  ;;  %v3264_v47 = vadd.f32 %v3263_v35, %v6382_v36 }
 0x4b5   : > { %v3347_v17 = vpop.f32.mrf.mxu2  ;;  %v3436_v31 = vpop.f32.mrf.mxu3 }
 0x4b6   : > { %3302 = vmatmul.bf16.gmra.mxu1 %v6377_v16  ;;  %3635 = vmatmul.bf16.gmra.mxu0 %v3531_v45  ;;  %v3348_v0 = vadd.f32 %v3347_v17, %v3259_v55 }
 0x4b8   : > { %v3437_v29 = vadd.f32 %v3436_v31, %v3348_v0 }
 0x4ba   : > { %v3504_v40 = vmax.f32 %v3437_v29, 0.0 }
 0x4bb   : > { %v3265_v46 = vpop.f32.mrf.mxu1 }
 0x4bc   : > { %v3266_v23 = vadd.f32 %v3265_v46, %v6383_v34 }
 0x4bd   : > { %v3349_v58 = vpop.f32.mrf.mxu2  ;;  %v3438_v1 = vpop.f32.mrf.mxu3 }
 0x4be   : > { %v3350_v63 = vadd.f32 %v3349_v58, %v3261_v37  ;;  %v6386_v37 = vld [vmem:[#allocation25_spill] sm:$0xff] }
 0x4c0   : > { %v3439_v7 = vadd.f32 %v3438_v1, %v3350_v63 }
 0x4c2   : > { %v3505_v53 = vmax.f32 %v3439_v7, 0.0  ;;  %3391 = vmatmul.bf16.gmra.mxu2 %v6380_v11  ;;  %3480 = vmatmul.bf16.gmra.mxu3 %v6381_v56 }
 0x4c3   : > { %v3268_v43 = vpop.f32.mrf.mxu1 }
 0x4c4   : > { %v3532_v48 = vpack.c.bf16 %v3505_v53, %v3504_v40  ;;  %v3269_v35 = vadd.f32 %v3268_v43, %v5828_v30 }
 0x4c5   : > { %v3352_v15 = vpop.f32.mrf.mxu2  ;;  %v3441_v18 = vpop.f32.mrf.mxu3 }
 0x4c6   : > { %3307 = vmatmul.bf16.gmra.mxu1 %v5817_v19  ;;  %3640 = vmatmul.bf16.gmra.mxu0 %v3532_v48  ;;  %v3353_v25 = vadd.f32 %v3352_v15, %v3264_v47 }
 0x4c8   : > { %v3442_v41 = vadd.f32 %v3441_v18, %v3353_v25 }
 0x4ca   : > { %v3506_v10 = vmax.f32 %v3442_v41, 0.0 }
 0x4cb   : > { %v3270_v22 = vpop.f32.mrf.mxu1 }
 0x4cc   : > { %v3271_v31 = vadd.f32 %v3270_v22, %v5831_v50 }
 0x4cd   : > { %v3354_v21 = vpop.f32.mrf.mxu2  ;;  %v3443_v27 = vpop.f32.mrf.mxu3 }
 0x4ce   : > { %v3355_v39 = vadd.f32 %v3354_v21, %v3266_v23 }
 0x4d0   : > { %v3444_v20 = vadd.f32 %v3443_v27, %v3355_v39 }
 0x4d2   : > { %v3507_v57 = vmax.f32 %v3444_v20, 0.0  ;;  %3396 = vmatmul.bf16.gmra.mxu2 %v5833_v24  ;;  %3485 = vmatmul.bf16.gmra.mxu3 %v5835_v59 }
 0x4d3   : > { %v3273_v9 = vpop.f32.mrf.mxu1 }
 0x4d4   : > { %v3533_v19 = vpack.c.bf16 %v3507_v57, %v3506_v10  ;;  %v3274_v30 = vadd.f32 %v3273_v9, %v5844_v14  ;;  %v5987_v10 = vld [vmem:[%s6149_s7] ss:$0 sm:$0xff] }
 0x4d5   : > { %v3357_v42 = vpop.f32.mrf.mxu2  ;;  %v3446_v5 = vpop.f32.mrf.mxu3 }
 0x4d6   : > { %3312 = vmatmul.bf16.gmra.mxu1 %v6384_v6  ;;  %3645 = vmatmul.bf16.gmra.mxu0 %v3533_v19  ;;  %v3358_v45 = vadd.f32 %v3357_v42, %v3269_v35  ;;  %v3701_v42 = vld [vmem:[%s5178_s18] sm:$0xff] }
 0x4d8   : > { %v3447_v55 = vadd.f32 %v3446_v5, %v3358_v45 }
 0x4da   : > { %v3508_v46 = vmax.f32 %v3447_v55, 0.0  ;;  %v3702_v55 = vld [vmem:[%s5178_s18 + $0x8] sm:$0xff] }
 0x4db   : > { %v3275_v17 = vpop.f32.mrf.mxu1 }
 0x4dc   : > { %v3276_v40 = vadd.f32 %v3275_v17, %v5847_v13 }
 0x4dd   : > { %v3359_v16 = vpop.f32.mrf.mxu2  ;;  %v3448_v49 = vpop.f32.mrf.mxu3 }
 0x4de   : > { %v3360_v0 = vadd.f32 %v3359_v16, %v3271_v31 }
 0x4e0   : > { %v3449_v24 = vadd.f32 %v3448_v49, %v3360_v0 }
 0x4e2   : > { %v3509_v59 = vmax.f32 %v3449_v24, 0.0  ;;  %3401 = vmatmul.bf16.gmra.mxu2 %v6385_v51  ;;  %3490 = vmatmul.bf16.gmra.mxu3 %v6386_v37 }
 0x4e3   : > { %v3278_v58 = vpop.f32.mrf.mxu1 }
 0x4e4   : > { %v3534_v1 = vpack.c.bf16 %v3509_v59, %v3508_v46  ;;  %v3279_v34 = vadd.f32 %v3278_v58, %v5856_v44 }
 0x4e5   : > { %v3362_v29 = vpop.f32.mrf.mxu2  ;;  %v3451_v63 = vpop.f32.mrf.mxu3 }
 0x4e6   : > { %3650 = vmatmul.bf16.gmra.mxu0 %v3534_v1  ;;  %v3363_v7 = vadd.f32 %v3362_v29, %v3274_v30 }
 0x4e8   : > { %v3452_v56 = vadd.f32 %v3451_v63, %v3363_v7  ;;  %v3703_v7 = vld [vmem:[%s5178_s18 + $0x10] sm:$0xff] }
 0x4ea   : > { %v3510_v15 = vmax.f32 %v3452_v56, 0.0 }
 0x4eb   : > { %v3280_v50 = vpop.f32.mrf.mxu1 }
 0x4ec   : > { %v3281_v21 = vadd.f32 %v3280_v50, %v5859_v61 }
 0x4ed   : > { %v3364_v53 = vpop.f32.mrf.mxu2  ;;  %v3453_v11 = vpop.f32.mrf.mxu3 }
 0x4ee   : > { %v3365_v43 = vadd.f32 %v3364_v53, %v3276_v40 }
 0x4f0   : > { %v3454_v48 = vadd.f32 %v3453_v11, %v3365_v43 }
 0x4f2   : > { %v3511_v18 = vmax.f32 %v3454_v48, 0.0 }
 0x4f3   : > { %v3283_v36 = vpop.f32.mrf.mxu1 }
 0x4f4   : > { %v3535_v47 = vpack.c.bf16 %v3511_v18, %v3510_v15  ;;  %v3284_v17 = vadd.f32 %v3283_v36, %v5868_v60  ;;  %v3704_v18 = vld [vmem:[%s5178_s18 + $0x18] sm:$0xff] }
 0x4f5   : > { %v3367_v25 = vpop.f32.mrf.mxu2  ;;  %v3456_v22 = vpop.f32.mrf.mxu3 }
 0x4f6   : > { %3655 = vmatmul.bf16.gmra.mxu0 %v3535_v47  ;;  %v3368_v14 = vadd.f32 %v3367_v25, %v3279_v34 }
 0x4f8   : > { %v3457_v41 = vadd.f32 %v3456_v22, %v3368_v14 }
 0x4fa   : > { %v3512_v57 = vmax.f32 %v3457_v41, 0.0 }
 0x4fb   : > { %v3285_v23 = vpop.f32.mrf.mxu1 }
 0x4fc   : > { %v3286_v0 = vadd.f32 %v3285_v23, %v5871_v28 }
 0x4fd   : > { %v3369_v13 = vpop.f32.mrf.mxu2  ;;  %v3458_v27 = vpop.f32.mrf.mxu3 }
 0x4fe   : > { %v3370_v39 = vadd.f32 %v3369_v13, %v3281_v21 }
 0x500   : > { %v3459_v20 = vadd.f32 %v3458_v27, %v3370_v39  ;;  %v3705_v39 = vld [vmem:[%s5178_s18 + $0x20] sm:$0xff] }
 0x502   : > { %v3513_v9 = vmax.f32 %v3459_v20, 0.0 }
 0x503   : > { %v3288_v19 = vpop.f32.mrf.mxu1  ;;  %v3621_v44 = vpop.f32.mrf.mxu0 }
 0x504   : > { %v3536_v5 = vpack.c.bf16 %v3513_v9, %v3512_v57  ;;  %v3622_v61 = vadd.f32 %v5987_v10, %v3621_v44  ;;  %v3289_v56 = vadd.f32 %v3288_v19, %v5880_v38 }
 0x505   : > { %v3372_v6 = vpop.f32.mrf.mxu2  ;;  %v3461_v35 = vpop.f32.mrf.mxu3 }
 0x506   : > { %v3733_v45 = vadd.f32 %v3701_v42, %v3622_v61  ;;  %3660 = vmatmul.bf16.gmra.mxu0 %v3536_v5  ;;  %v3373_v31 = vadd.f32 %v3372_v6, %v3284_v17  ;;  %v3706_v61 = vld [vmem:[%s5178_s18 + $0x28] sm:$0xff] }
 0x508   : > { %3765 = vst [vmem:[%s5994_s29] sm:$0xff] %v3733_v45  ;;  %v3462_v51 = vadd.f32 %v3461_v35, %v3373_v31 }
 0x50a   : > { %v3514_v1 = vmax.f32 %v3462_v51, 0.0 }
 0x50b   : > { %v3290_v16 = vpop.f32.mrf.mxu1  ;;  %v3623_v49 = vpop.f32.mrf.mxu0 }
 0x50c   : > { %v3624_v24 = vadd.f32 %v5987_v10, %v3623_v49  ;;  %v3291_v36 = vadd.f32 %v3290_v16, %v5883_v4 }
 0x50d   : > { %v3374_v46 = vpop.f32.mrf.mxu2  ;;  %v3463_v59 = vpop.f32.mrf.mxu3 }
 0x50e   : > { %v3734_v37 = vadd.f32 %v3702_v55, %v3624_v24  ;;  %v3375_v60 = vadd.f32 %v3374_v46, %v3286_v0 }
 0x510   : > { %3766 = vst [vmem:[%s5994_s29 + $0x8] sm:$0xff] %v3734_v37  ;;  %v3464_v58 = vadd.f32 %v3463_v59, %v3375_v60  ;;  %v3707_v59 = vld [vmem:[%s5178_s18 + $0x30] sm:$0xff] }
 0x512   : > { %v3515_v29 = vmax.f32 %v3464_v58, 0.0 }
 0x513   : > { %v3293_v63 = vpop.f32.mrf.mxu1  ;;  %v3626_v30 = vpop.f32.mrf.mxu0 }
 0x514   : > { %v3537_v50 = vpack.c.bf16 %v3515_v29, %v3514_v1  ;;  %v3627_v40 = vadd.f32 %v5987_v10, %v3626_v30  ;;  %v3294_v44 = vadd.f32 %v3293_v63, %v5892_v52 }
 0x515   : > { %v3377_v28 = vpop.f32.mrf.mxu2  ;;  %v3466_v53 = vpop.f32.mrf.mxu3 }
 0x516   : > { %v3735_v11 = vadd.f32 %v3703_v7, %v3627_v40  ;;  %3665 = vmatmul.bf16.gmra.mxu0 %v3537_v50  ;;  %v3378_v43 = vadd.f32 %v3377_v28, %v3289_v56  ;;  %v3708_v7 = vld [vmem:[%s5178_s18 + $0x38] sm:$0xff] }
 0x518   : > { %3767 = vst [vmem:[%s5994_s29 + $0x10] sm:$0xff] %v3735_v11  ;;  %v3467_v34 = vadd.f32 %v3466_v53, %v3378_v43 }
 0x51a   : > { %v3516_v38 = vmax.f32 %v3467_v34, 0.0 }
 0x51b   : > { %v3295_v48 = vpop.f32.mrf.mxu1  ;;  %v3628_v15 = vpop.f32.mrf.mxu0 }
 0x51c   : > { %v3629_v47 = vadd.f32 %v5987_v10, %v3628_v15  ;;  %v3296_v6 = vadd.f32 %v3295_v48, %v5895_v8 }
 0x51d   : > { %v3379_v25 = vpop.f32.mrf.mxu2  ;;  %v3468_v22 = vpop.f32.mrf.mxu3 }
 0x51e   : > { %v3736_v14 = vadd.f32 %v3704_v18, %v3629_v47  ;;  %v3380_v23 = vadd.f32 %v3379_v25, %v3291_v36  ;;  %v3709_v47 = vld [vmem:[%s5178_s18 + $0x40] sm:$0xff] }
 0x520   : > { %3768 = vst [vmem:[%s5994_s29 + $0x18] sm:$0xff] %v3736_v14  ;;  %v3469_v21 = vadd.f32 %v3468_v22, %v3380_v23 }
 0x522   : > { %v3517_v13 = vmax.f32 %v3469_v21, 0.0 }
 0x523   : > { %v3298_v27 = vpop.f32.mrf.mxu1  ;;  %v3631_v41 = vpop.f32.mrf.mxu0 }
 0x524   : > { %v3538_v20 = vpack.c.bf16 %v3517_v13, %v3516_v38  ;;  %v3632_v57 = vadd.f32 %v5987_v10, %v3631_v41  ;;  %v3299_v29 = vadd.f32 %v3298_v27, %v5904_v12  ;;  %v3710_v27 = vld [vmem:[%s5178_s18 + $0x48] sm:$0xff] }
 0x525   : > { %v3382_v4 = vpop.f32.mrf.mxu2  ;;  %v3471_v9 = vpop.f32.mrf.mxu3 }
 0x526   : > { %v3737_v19 = vadd.f32 %v3705_v39, %v3632_v57  ;;  %3670 = vmatmul.bf16.gmra.mxu0 %v3538_v20  ;;  %v3383_v42 = vadd.f32 %v3382_v4, %v3294_v44 }
 0x528   : > { %3769 = vst [vmem:[%s5994_s29 + $0x20] sm:$0xff] %v3737_v19  ;;  %v3472_v16 = vadd.f32 %v3471_v9, %v3383_v42 }
 0x52a   : > { %v3518_v52 = vmax.f32 %v3472_v16, 0.0 }
 0x52b   : > { %v3633_v5 = vpop.f32.mrf.mxu0  ;;  %v3300_v35 = vpop.f32.mrf.mxu1 }
 0x52c   : > { %v3634_v45 = vadd.f32 %v5987_v10, %v3633_v5  ;;  %v3301_v50 = vadd.f32 %v3300_v35, %v5907_v33 }
 0x52d   : > { %v3384_v17 = vpop.f32.mrf.mxu2  ;;  %v3473_v31 = vpop.f32.mrf.mxu3 }
 0x52e   : > { %v3738_v49 = vadd.f32 %v3706_v61, %v3634_v45  ;;  %v3385_v55 = vadd.f32 %v3384_v17, %v3296_v6  ;;  %v3711_v61 = vld [vmem:[%s5178_s18 + $0x50] sm:$0xff] }
 0x530   : > { %3770 = vst [vmem:[%s5994_s29 + $0x28] sm:$0xff] %v3738_v49  ;;  %v3474_v0 = vadd.f32 %v3473_v31, %v3385_v55 }
 0x532   : > { %v3519_v24 = vmax.f32 %v3474_v0, 0.0  ;;  %v3712_v0 = vld [vmem:[%s5178_s18 + $0x58] sm:$0xff] }
 0x533   : > { %v3636_v46 = vpop.f32.mrf.mxu0  ;;  %v3303_v58 = vpop.f32.mrf.mxu1 }
 0x534   : > { %v3539_v51 = vpack.c.bf16 %v3519_v24, %v3518_v52  ;;  %v3637_v37 = vadd.f32 %v5987_v10, %v3636_v46  ;;  %v3304_v23 = vadd.f32 %v3303_v58, %v5916_v2 }
 0x535   : > { %v3387_v8 = vpop.f32.mrf.mxu2  ;;  %v3476_v60 = vpop.f32.mrf.mxu3 }
 0x536   : > { %v3739_v1 = vadd.f32 %v3707_v59, %v3637_v37  ;;  %3675 = vmatmul.bf16.gmra.mxu0 %v3539_v51  ;;  %v3388_v63 = vadd.f32 %v3387_v8, %v3299_v29 }
 0x538   : > { %3771 = vst [vmem:[%s5994_s29 + $0x30] sm:$0xff] %v3739_v1  ;;  %v3477_v11 = vadd.f32 %v3476_v60, %v3388_v63  ;;  %v3713_v63 = vld [vmem:[%s5178_s18 + $0x60] sm:$0xff] }
 0x53a   : > { %v3520_v12 = vmax.f32 %v3477_v11, 0.0 }
 0x53b   : > { %v3638_v30 = vpop.f32.mrf.mxu0  ;;  %v3305_v48 = vpop.f32.mrf.mxu1 }
 0x53c   : > { %v3639_v40 = vadd.f32 %v5987_v10, %v3638_v30  ;;  %v3306_v41 = vadd.f32 %v3305_v48, %v5919_v3 }
 0x53d   : > { %v3389_v28 = vpop.f32.mrf.mxu2  ;;  %v3478_v53 = vpop.f32.mrf.mxu3 }
 0x53e   : > { %v3740_v56 = vadd.f32 %v3708_v7, %v3639_v40  ;;  %v3390_v43 = vadd.f32 %v3389_v28, %v3301_v50 }
 0x540   : > { %3772 = vst [vmem:[%s5994_s29 + $0x38] sm:$0xff] %v3740_v56  ;;  %v3479_v15 = vadd.f32 %v3478_v53, %v3390_v43  ;;  %v3714_v43 = vld [vmem:[%s5178_s18 + $0x68] sm:$0xff] }
 0x542   : > { %v3521_v18 = vmax.f32 %v3479_v15, 0.0 }
 0x543   : > { %v3641_v36 = vpop.f32.mrf.mxu0  ;;  %v3308_v21 = vpop.f32.mrf.mxu1 }
 0x544   : > { %v3540_v25 = vpack.c.bf16 %v3521_v18, %v3520_v12  ;;  %v3642_v22 = vadd.f32 %v5987_v10, %v3641_v36  ;;  %v3309_v16 = vadd.f32 %v3308_v21, %v5930_v62 }
 0x545   : > { %v3392_v33 = vpop.f32.mrf.mxu2  ;;  %v3481_v34 = vpop.f32.mrf.mxu3 }
 0x546   : > { %v3741_v14 = vadd.f32 %v3709_v47, %v3642_v22  ;;  %3680 = vmatmul.bf16.gmra.mxu0 %v3540_v25  ;;  %v3393_v38 = vadd.f32 %v3392_v33, %v3304_v23 }
 0x548   : > { %3773 = vst [vmem:[%s5994_s29 + $0x40] sm:$0xff] %v3741_v14  ;;  %v3482_v4 = vadd.f32 %v3481_v34, %v3393_v38  ;;  %v3715_v14 = vld [vmem:[%s5178_s18 + $0x70] sm:$0xff] }
 0x54a   : > { %v3522_v2 = vmax.f32 %v3482_v4, 0.0 }
 0x54b   : > { %v3643_v13 = vpop.f32.mrf.mxu0  ;;  %v3310_v6 = vpop.f32.mrf.mxu1 }
 0x54c   : > { %v3644_v39 = vadd.f32 %v5987_v10, %v3643_v13  ;;  %v3311_v52 = vadd.f32 %v3310_v6, %v5934_v26  ;;  %v3716_v13 = vld [vmem:[%s5178_s18 + $0x78] sm:$0xff] }
 0x54d   : > { %v3394_v20 = vpop.f32.mrf.mxu2  ;;  %v3483_v57 = vpop.f32.mrf.mxu3 }
 0x54e   : > { %v3742_v9 = vadd.f32 %v3710_v27, %v3644_v39  ;;  %v3395_v19 = vadd.f32 %v3394_v20, %v3306_v41  ;;  %v3717_v20 = vld [vmem:[%s5178_s18 + $0x80] sm:$0xff] }
 0x550   : > { %3774 = vst [vmem:[%s5994_s29 + $0x48] sm:$0xff] %v3742_v9  ;;  %v3484_v44 = vadd.f32 %v3483_v57, %v3395_v19  ;;  %v3718_v19 = vld [vmem:[%s5178_s18 + $0x88] sm:$0xff] }
 0x552   : > { %v3523_v42 = vmax.f32 %v3484_v44, 0.0 }
 0x553   : > { %v3646_v5 = vpop.f32.mrf.mxu0  ;;  %v3313_v60 = vpop.f32.mrf.mxu1 }
 0x554   : > { %v3541_v35 = vpack.c.bf16 %v3523_v42, %v3522_v2  ;;  %v3647_v45 = vadd.f32 %v5987_v10, %v3646_v5  ;;  %v3314_v28 = vadd.f32 %v3313_v60, %v5939_v54  ;;  %v3719_v5 = vld [vmem:[%s5178_s18 + $0x90] sm:$0xff] }
 0x555   : > { %v3397_v3 = vpop.f32.mrf.mxu2  ;;  %v3486_v17 = vpop.f32.mrf.mxu3 }
 0x556   : > { %v3743_v31 = vadd.f32 %v3711_v61, %v3647_v45  ;;  %3685 = vmatmul.bf16.gmra.mxu0 %v3541_v35  ;;  %v3398_v49 = vadd.f32 %v3397_v3, %v3309_v16  ;;  %v3720_v45 = vld [vmem:[%s5178_s18 + $0x98] sm:$0xff]  ;;  %v3721_v16 = vld [vmem:[%s5178_s18 + $0xa0] sm:$0xff] }
 0x558   : > { %3775 = vst [vmem:[%s5994_s29 + $0x50] sm:$0xff] %v3743_v31  ;;  %v3487_v51 = vadd.f32 %v3486_v17, %v3398_v49 }
 0x55a   : > { %v3524_v62 = vmax.f32 %v3487_v51, 0.0  ;;  %v3723_v51 = vld [vmem:[%s5178_s18 + $0xb0] sm:$0xff] }
 0x55b   : > { %v3648_v55 = vpop.f32.mrf.mxu0  ;;  %v3315_v53 = vpop.f32.mrf.mxu1 }
 0x55c   : > { %v3649_v24 = vadd.f32 %v5987_v10, %v3648_v55  ;;  %v3316_v48 = vadd.f32 %v3315_v53, %v5941_v32 }
 0x55d   : > { %v3399_v46 = vpop.f32.mrf.mxu2  ;;  %v3488_v59 = vpop.f32.mrf.mxu3 }
 0x55e   : > { %v3744_v37 = vadd.f32 %v3712_v0, %v3649_v24  ;;  %v3400_v8 = vadd.f32 %v3399_v46, %v3311_v52  ;;  %v3722_v52 = vld [vmem:[%s5178_s18 + $0xa8] sm:$0xff] }
 0x560   : > { %3776 = vst [vmem:[%s5994_s29 + $0x58] sm:$0xff] %v3744_v37  ;;  %v3489_v58 = vadd.f32 %v3488_v59, %v3400_v8 }
 0x562   : > { %v3525_v1 = vmax.f32 %v3489_v58, 0.0  ;;  %v3724_v58 = vld [vmem:[%s5178_s18 + $0xb8] sm:$0xff] }
 0x563   : > { %v3651_v29 = vpop.f32.mrf.mxu0 }
 0x564   : > { %v3542_v30 = vpack.c.bf16 %v3525_v1, %v3524_v62  ;;  %v3652_v7 = vadd.f32 %v5987_v10, %v3651_v29 }
 0x565   : > { %v3402_v26 = vpop.f32.mrf.mxu2  ;;  %v3491_v50 = vpop.f32.mrf.mxu3 }
 0x566   : > { %v3745_v40 = vadd.f32 %v3713_v63, %v3652_v7  ;;  %3690 = vmatmul.bf16.gmra.mxu0 %v3542_v30  ;;  %v3403_v11 = vadd.f32 %v3402_v26, %v3314_v28  ;;  %v3725_v63 = vld [vmem:[%s5178_s18 + $0xc0] sm:$0xff] }
 0x568   : > { %3777 = vst [vmem:[%s5994_s29 + $0x60] sm:$0xff] %v3745_v40  ;;  %v3492_v18 = vadd.f32 %v3491_v50, %v3403_v11  ;;  %v3726_v50 = vld [vmem:[%s5178_s18 + $0xc8] sm:$0xff]  ;;  %v3727_v11 = vld [vmem:[%s5178_s18 + $0xd0] sm:$0xff] }
 0x56a   : > { %v3526_v22 = vmax.f32 %v3492_v18, 0.0 }
 0x56b   : > { %v3653_v56 = vpop.f32.mrf.mxu0 }
 0x56c   : > { %v3654_v15 = vadd.f32 %v5987_v10, %v3653_v56 }
 0x56d   : > { %v3404_v12 = vpop.f32.mrf.mxu2  ;;  %v3493_v25 = vpop.f32.mrf.mxu3 }
 0x56e   : > { %v3746_v36 = vadd.f32 %v3714_v43, %v3654_v15  ;;  %v3405_v47 = vadd.f32 %v3404_v12, %v3316_v48  ;;  %v3728_v15 = vld [vmem:[%s5178_s18 + $0xd8] sm:$0xff] }
 0x570   : > { %3778 = vst [vmem:[%s5994_s29 + $0x68] sm:$0xff] %v3746_v36  ;;  %v3494_v54 = vadd.f32 %v3493_v25, %v3405_v47  ;;  %v3729_v47 = vld [vmem:[%s5178_s18 + $0xe0] sm:$0xff] }
 0x572   : > { %v3527_v33 = vmax.f32 %v3494_v54, 0.0 }
 0x573   : > { %v3656_v34 = vpop.f32.mrf.mxu0 }
 0x574   : > { %v3543_v23 = vpack.c.bf16 %v3527_v33, %v3526_v22  ;;  %v3657_v32 = vadd.f32 %v5987_v10, %v3656_v34  ;;  %v3730_v33 = vld [vmem:[%s5178_s18 + $0xe8] sm:$0xff] }
 0x576   : > { %v3747_v21 = vadd.f32 %v3715_v14, %v3657_v32  ;;  %3695 = vmatmul.bf16.gmra.mxu0 %v3543_v23  ;;  %v3731_v32 = vld [vmem:[%s5178_s18 + $0xf0] sm:$0xff] }
 0x578   : > { %3779 = vst [vmem:[%s5994_s29 + $0x70] sm:$0xff] %v3747_v21 }
 0x57b   : > { %v3658_v38 = vpop.f32.mrf.mxu0 }
 0x57c   : > { %v3659_v27 = vadd.f32 %v5987_v10, %v3658_v38 }
 0x57e   : > { %v3748_v41 = vadd.f32 %v3716_v13, %v3659_v27  ;;  %v3732_v27 = vld [vmem:[%s5178_s18 + $0xf8] sm:$0xff] }
 0x580   : > { %3780 = vst [vmem:[%s5994_s29 + $0x78] sm:$0xff] %v3748_v41 }
 0x583   : > { %v3661_v39 = vpop.f32.mrf.mxu0 }
 0x584   : > { %v3662_v57 = vadd.f32 %v5987_v10, %v3661_v39 }
 0x586   : > { %v3749_v4 = vadd.f32 %v3717_v20, %v3662_v57 }
 0x588   : > { %3781 = vst [vmem:[%s5994_s29 + $0x80] sm:$0xff] %v3749_v4 }
 0x58b   : > { %v3663_v9 = vpop.f32.mrf.mxu0 }
 0x58c   : > { %v3664_v44 = vadd.f32 %v5987_v10, %v3663_v9 }
 0x58e   : > { %v3750_v2 = vadd.f32 %v3718_v19, %v3664_v44 }
 0x590   : > { %3782 = vst [vmem:[%s5994_s29 + $0x88] sm:$0xff] %v3750_v2 }
 0x593   : > { %v3666_v42 = vpop.f32.mrf.mxu0 }
 0x594   : > { %v3667_v61 = vadd.f32 %v5987_v10, %v3666_v42 }
 0x596   : > { %v3751_v6 = vadd.f32 %v3719_v5, %v3667_v61 }
 0x598   : > { %3783 = vst [vmem:[%s5994_s29 + $0x90] sm:$0xff] %v3751_v6 }
 0x59b   : > { %v3668_v35 = vpop.f32.mrf.mxu0 }
 0x59c   : > { %v3669_v3 = vadd.f32 %v5987_v10, %v3668_v35 }
 0x59e   : > { %v3752_v17 = vadd.f32 %v3720_v45, %v3669_v3 }
 0x5a0   : > { %3784 = vst [vmem:[%s5994_s29 + $0x98] sm:$0xff] %v3752_v17 }
 0x5a3   : > { %v3671_v31 = vpop.f32.mrf.mxu0 }
 0x5a4   : > { %v3672_v49 = vadd.f32 %v5987_v10, %v3671_v31 }
 0x5a6   : > { %v3753_v55 = vadd.f32 %v3721_v16, %v3672_v49 }
 0x5a8   : > { %3785 = vst [vmem:[%s5994_s29 + $0xa0] sm:$0xff] %v3753_v55 }
 0x5ab   : > { %v3673_v0 = vpop.f32.mrf.mxu0 }
 0x5ac   : > { %v3674_v24 = vadd.f32 %v5987_v10, %v3673_v0 }
 0x5ae   : > { %v3754_v46 = vadd.f32 %v3722_v52, %v3674_v24 }
 0x5b0   : > { %3786 = vst [vmem:[%s5994_s29 + $0xa8] sm:$0xff] %v3754_v46 }
 0x5b3   : > { %v3676_v59 = vpop.f32.mrf.mxu0 }
 0x5b4   : > { %v3677_v37 = vadd.f32 %v5987_v10, %v3676_v59 }
 0x5b6   : > { %v3755_v8 = vadd.f32 %v3723_v51, %v3677_v37 }
 0x5b8   : > { %3787 = vst [vmem:[%s5994_s29 + $0xb0] sm:$0xff] %v3755_v8 }
 0x5bb   : > { %v3678_v60 = vpop.f32.mrf.mxu0 }
 0x5bc   : > { %v3679_v62 = vadd.f32 %v5987_v10, %v3678_v60 }
 0x5be   : > { %v3756_v1 = vadd.f32 %v3724_v58, %v3679_v62 }
 0x5c0   : > { %3788 = vst [vmem:[%s5994_s29 + $0xb8] sm:$0xff] %v3756_v1 }
 0x5c3   : > { %v3681_v29 = vpop.f32.mrf.mxu0 }
 0x5c4   : > { %v3682_v30 = vadd.f32 %v5987_v10, %v3681_v29 }
 0x5c6   : > { %v3757_v7 = vadd.f32 %v3725_v63, %v3682_v30 }
 0x5c8   : > { %3789 = vst [vmem:[%s5994_s29 + $0xc0] sm:$0xff] %v3757_v7 }
 0x5cb   : > { %v3683_v26 = vpop.f32.mrf.mxu0 }
 0x5cc   : > { %v3684_v40 = vadd.f32 %v5987_v10, %v3683_v26 }
 0x5ce   : > { %v3758_v28 = vadd.f32 %v3726_v50, %v3684_v40 }
 0x5d0   : > { %3790 = vst [vmem:[%s5994_s29 + $0xc8] sm:$0xff] %v3758_v28 }
 0x5d3   : > { %v3686_v53 = vpop.f32.mrf.mxu0 }
 0x5d4   : > { %v3687_v56 = vadd.f32 %v5987_v10, %v3686_v53 }
 0x5d6   : > { %v3759_v43 = vadd.f32 %v3727_v11, %v3687_v56 }
 0x5d8   : > { %3791 = vst [vmem:[%s5994_s29 + $0xd0] sm:$0xff] %v3759_v43 }
 0x5db   : > { %v3688_v48 = vpop.f32.mrf.mxu0 }
 0x5dc   : > { %v3689_v12 = vadd.f32 %v5987_v10, %v3688_v48 }
 0x5de   : > { %v3760_v18 = vadd.f32 %v3728_v15, %v3689_v12 }
 0x5e0   : > { %3792 = vst [vmem:[%s5994_s29 + $0xd8] sm:$0xff] %v3760_v18 }
 0x5e3   : > { %v3691_v36 = vpop.f32.mrf.mxu0 }
 0x5e4   : > { %v3692_v25 = vadd.f32 %v5987_v10, %v3691_v36 }
 0x5e6   : > { %v3761_v54 = vadd.f32 %v3729_v47, %v3692_v25 }
 0x5e8   : > { %3793 = vst [vmem:[%s5994_s29 + $0xe0] sm:$0xff] %v3761_v54 }
 0x5eb   : > { %v3693_v22 = vpop.f32.mrf.mxu0 }
 0x5ec   : > { %v3694_v34 = vadd.f32 %v5987_v10, %v3693_v22 }
 0x5ee   : > { %v3762_v14 = vadd.f32 %v3730_v33, %v3694_v34 }
 0x5f0   : > { %3794 = vst [vmem:[%s5994_s29 + $0xe8] sm:$0xff] %v3762_v14 }
 0x5f3   : > { %v3696_v23 = vpop.f32.mrf.mxu0 }
 0x5f4   : > { %v3697_v21 = vadd.f32 %v5987_v10, %v3696_v23 }
 0x5f6   : > { %v3763_v38 = vadd.f32 %v3731_v32, %v3697_v21 }
 0x5f8   : > { %3795 = vst [vmem:[%s5994_s29 + $0xf0] sm:$0xff] %v3763_v38 }
 0x5fb   : > { %v3698_v13 = vpop.f32.mrf.mxu0 }
 0x5fc   : > { %v3699_v41 = vadd.f32 %v5987_v10, %v3698_v13 }
 0x5fe   : > { %v3764_v39 = vadd.f32 %v3732_v27, %v3699_v41 }
 0x600   : > { %3796 = vst [vmem:[%s5994_s29 + $0xf8] sm:$0xff] %v3764_v39 }
 0x601   : > { %4909 = shalt.err (!%p4906_p0)
}
 0x602   : > { %s4987_s6 = smov 128   ;;  %s4988_s20 = smov 8  }
 0x603   : > { %4635 = dma.vmem_to_hbm [thread:$0]  (%p5130_p5), %s3814_s10, 4096, %s3816_s11, %s3798_s13, %s4987_s6, %s4987_s6, %s4988_s20  }
 0x604 PF: > { %s6387_s12 = sld [smem:[#allocation17_spill]]  ;;  %p4655_p3 = pnand %p3962_p11, %p5079_p6 }
 0x605   : > { %s6389_s25 = sld [smem:[#allocation19_spill]] }
 0x606   : > { %p4656_p7 = pneg %p4655_p3 }
 0x60a   : > { %s3830_s26 = sand.u32 1, %s6387_s12  }
 0x60b   : > { %s3831_s16 = scalar_lea.sflag [#allocation4], %s3830_s26 }
 0x60c   : > { %4951 = dma.done.wait (%p4656_p7), %s3831_s16, 4096  }
 0x60d   : > { %4953 = vsyncadd (%p4656_p7), %s3831_s16, 4294963200  ;;  %s28_s10 = sadd.s32 1, %s6389_s25   ;;  %s6390_s4 = sld [smem:[#allocation18_spill]] }
 0x60e   : > { %p25_p9 = scmp.ge.s32.totalorder %s28_s10, 4   ;;  %s6391_s29 = sld [smem:[#allocation22_spill]] }
 0x60f   : > { %s6392_s24 = sld [smem:[#allocation21_spill]]  ;;  %s6393_s27 = smov %s4960_s28 }
 0x610   : > { %s6395_s30 = smov %s4972_s9 }
 0x611   :  { %27 = sbr.rel (!%p25_p9) target bundleno = 14 (0xe), region = 123 }
 0x613   : > { %s6394_s28 = smov %s6390_s4 }
 0x615   : > { %s6396_s9 = smov %s6392_s24 }
 0x616   :  { %3837 = vsyncpa [#allocation3], 1 }
 0x617   :  { %3839 = vsyncpa [#allocation3 + $0x1], 1 }
 0x618   :  { %3840 = vsyncpa [#allocation6], 1 }
 0x619   :  { %3842 = vsyncpa [#allocation6 + $0x1], 1 }
 0x61a   :  { %3843 = vsyncpa [#allocation9], 1 }
 0x61b   :  { %3844 = vsyncpa [#allocation4], 1 }
 0x61c   :  { %3846 = vsyncpa [#allocation4 + $0x1], 1 }

</bundles_post_ra>
